<compile_context>
chip_gen: v5e
topology: v5e:2x2
jax: 0.10.0
libtpu: 0.0.40
codegen_flags: <defaults>
</compile_context>

<pallas_src>
import jax
import jax.numpy as jnp
from jax import lax
from jax.experimental import pallas as pl
from jax.experimental.pallas import tpu as pltpu

KS = 3          # 3x3x3 kernel
LANE = 128
SUBLANE = 8


def _round_up(v, m):
    return (v + m - 1) // m * m


def _make_kernel(Cp, nb, Mp, Rp, starts, compute_dtype):
    """Fused BasicBlock kernel for fixed (padded, 128-aligned) geometry."""

    def stack_shifted(src_ref, stacked_ref):
        # src_ref: (nb, Cp, Mp + 2*Rp)   stacked_ref: (27*Cp, nb*Mp)
        # stacked[t*Cp + c, b*Mp + q] = src[b, c, starts[t] + q]
        for b in range(nb):
            col0 = b * Mp
            for t, s in enumerate(starts):
                stacked_ref[t * Cp:(t + 1) * Cp, col0:col0 + Mp] = \
                    src_ref[b, :, s:s + Mp]

    def kernel(x_ref, w1_ref, w2_ref, b1_ref, b2_ref, mask_ref, out_ref,
               stacked_ref, mid_ref):
        # ---------- conv1 -> bn1 (scale in weights, bias here) -> dropout(id) -> relu
        stack_shifted(x_ref, stacked_ref)
        h1 = jnp.dot(w1_ref[...], stacked_ref[...],
                     preferred_element_type=jnp.float32)      # one MXU pass, K=27*Cp
        h1 = jnp.maximum(h1 + b1_ref[...], 0.0)               # f32 epilogue (v5e-safe)
        h1 = (h1 * mask_ref[...]).astype(compute_dtype)       # zero conv2's spatial halo

        # Write conv2's zero-padded input into the persistent scratch.  The +/-Rp
        # margins are intentionally left untouched: interior output columns never
        # read them, halo/tail columns are discarded by the wrapper.
        for b in range(nb):
            mid_ref[b, :, Rp:Rp + Mp] = h1[:, b * Mp:(b + 1) * Mp]

        # ---------- conv2 -> bn2
        stack_shifted(mid_ref, stacked_ref)
        h2 = jnp.dot(w2_ref[...], stacked_ref[...],
                     preferred_element_type=jnp.float32) + b2_ref[...]

        # ---------- residual + relu; lane-dense 128-aligned stores
        for b in range(nb):
            res = x_ref[b, :, Rp:Rp + Mp].astype(jnp.float32)
            out_ref[b, :, :] = jnp.maximum(h2[:, b * Mp:(b + 1) * Mp] + res, 0.0)

    return kernel


def init_params(key, in_planes, planes):
    ks = jax.random.split(key, 10)
    w1 = jax.random.normal(ks[0], (planes, in_planes, KS, KS, KS), jnp.float32) * 0.1
    w2 = jax.random.normal(ks[1], (planes, planes, KS, KS, KS), jnp.float32) * 0.1

    def bn(k0, k1, k2, k3):
        return dict(
            gamma=jax.random.uniform(k0, (planes,), jnp.float32, 0.5, 1.5),
            beta=jax.random.normal(k1, (planes,), jnp.float32) * 0.1,
            mean=jax.random.normal(k2, (planes,), jnp.float32) * 0.1,
            var=jax.random.uniform(k3, (planes,), jnp.float32, 0.5, 1.5),
        )

    return dict(w1=w1, w2=w2,
                bn1=bn(ks[2], ks[3], ks[4], ks[5]),
                bn2=bn(ks[6], ks[7], ks[8], ks[9]))


def basic_block_forward(x, params, eps=1e-5, compute_dtype=jnp.float32, nb=None):
    """x: (N, C, D, H, W) float32, PyTorch NCDHW layout. Eval-mode forward."""
    N, C, D, H, W = x.shape
    w1, w2 = params["w1"], params["w2"]
    planes, in_planes = w1.shape[0], w1.shape[1]
    assert C == in_planes == planes, \
        "stride=1 / downsample=None path requires in_planes == planes"

    Dp, Hp, Wp = D + 2, H + 2, W + 2
    M = Dp * Hp * Wp                      # flattened padded spatial volume
    R = Hp * Wp + Wp + 1                  # max |shift| of a 3x3x3 tap
    Mp = _round_up(M, LANE)               # 128-aligned lane extent (unmasked stores)
    Rp = _round_up(R, LANE)               # 128-aligned shift margin
    Cp = max(SUBLANE, _round_up(planes, SUBLANE))
    n_taps = KS ** 3
    Kdim = n_taps * Cp                    # stacked contraction depth (27*Cp)
    Lx = Mp + 2 * Rp

    # slice start of each tap inside the [Rp margin | volume(Mp) | Rp margin] buffer
    starts = [Rp - R + kd * Hp * Wp + kh * Wp + kw
              for kd in range(KS) for kh in range(KS) for kw in range(KS)]

    def fuse_bn(bn):
        s = bn["gamma"] / jnp.sqrt(bn["var"] + eps)
        return s, bn["beta"] - bn["mean"] * s

    s1, b1 = fuse_bn(params["bn1"])
    s2, b2 = fuse_bn(params["bn2"])

    def pack_w(w, s):
        # (O, I, kd, kh, kw) -> single lane-dense (Cp, 27*Cp) slab, BN scale folded in.
        o, i = w.shape[0], w.shape[1]
        wt = jnp.transpose(w, (0, 2, 3, 4, 1)).reshape(o, n_taps, i) * s[:, None, None]
        wt = jnp.pad(wt, ((0, Cp - o), (0, 0), (0, Cp - i)))
        return wt.reshape(Cp, Kdim).astype(compute_dtype)

    def pack_b(b):
        return jnp.pad(b, (0, Cp - planes)).reshape(Cp, 1).astype(jnp.float32)

    w1p, w2p = pack_w(w1, s1), pack_w(w2, s2)
    b1p, b2p = pack_b(b1), pack_b(b2)

    # Interior mask over the flattened padded volume (1 inside, 0 on halo / tail pad).
    mask = jnp.zeros((Dp, Hp, Wp), jnp.float32)
    mask = mask.at[1:1 + D, 1:1 + H, 1:1 + W].set(1.0).reshape(1, M)
    mask = jnp.pad(mask, ((0, 0), (0, Mp - M)))                  # (1, Mp)

    # Activations: channel pad -> spatial zero pad -> flatten -> +/-Rp lane margins.
    # (Wrapper does only pads/reshapes - no transposes.)
    xp = jnp.pad(x, ((0, 0), (0, Cp - C), (1, 1), (1, 1), (1, 1)))   # (N,Cp,Dp,Hp,Wp)
    xin = jnp.pad(xp.reshape(N, Cp, M),
                  ((0, 0), (0, 0), (Rp, (Mp - M) + Rp))).astype(compute_dtype)

    # Pick nb: amortize per-grid-step overhead, keep grid >= 2 (v7x: 2 TensorCores),
    # stay under a conservative VMEM budget (weights/bias/mask are negligible).
    itemsize = jnp.dtype(compute_dtype).itemsize
    per_elem = (2 * Cp * Lx * itemsize          # x block, double-buffered
                + 2 * Cp * Mp * 4               # f32 out block, double-buffered
                + Kdim * Mp * itemsize          # stacked scratch
                + Cp * Lx * itemsize)           # mid scratch
    if nb is None:
        nb = 1
        for cand in range(1, N + 1):
            if N % cand:
                continue
            if N // cand < min(2, N):           # keep >= 2 grid steps when N >= 2
                continue
            if cand * per_elem > 40 * 1024 * 1024:
                continue
            nb = cand
    assert N % nb == 0

    mask_t = jnp.tile(mask, (1, nb))            # (1, nb*Mp)

    kernel = _make_kernel(Cp, nb, Mp, Rp, starts, compute_dtype)

    out_flat = pl.pallas_call(
        kernel,
        out_shape=jax.ShapeDtypeStruct((N, Cp, Mp), jnp.float32),
        grid=(N // nb,),
        in_specs=[
            pl.BlockSpec((nb, Cp, Lx), lambda n: (n, 0, 0)),     # activations (+margins)
            pl.BlockSpec((Cp, Kdim), lambda n: (0, 0)),          # conv1 weight slab (BN1 fused)
            pl.BlockSpec((Cp, Kdim), lambda n: (0, 0)),          # conv2 weight slab (BN2 fused)
            pl.BlockSpec((Cp, 1), lambda n: (0, 0)),             # bn1 bias
            pl.BlockSpec((Cp, 1), lambda n: (0, 0)),             # bn2 bias
            pl.BlockSpec((1, nb * Mp), lambda n: (0, 0)),        # interior mask (tiled)
        ],
        out_specs=pl.BlockSpec((nb, Cp, Mp), lambda n: (n, 0, 0)),
        scratch_shapes=[
            pltpu.VMEM((Kdim, nb * Mp), compute_dtype),          # stacked shifted activation
            pltpu.VMEM((nb, Cp, Lx), compute_dtype),             # conv2 padded input
        ],
        compiler_params=pltpu.CompilerParams(
            dimension_semantics=("parallel",),   # batch blocks independent (2 TCs on v7x)
            vmem_limit_bytes=48 * 1024 * 1024),
    )(xin, w1p, w2p, b1p, b2p, mask_t)

    # (N, Cp, Mp) -> NCDHW: drop channel/tail padding and spatial halo (slice+reshape).
    out = out_flat[:, :planes, :M].reshape(N, planes, Dp, Hp, Wp)
    return out[:, :, 1:1 + D, 1:1 + H, 1:1 + W]


def ref_forward(x, params, eps=1e-5):
    """Plain-JAX reference of the PyTorch eval-mode forward (NCDHW)."""
    def conv(y, w):
        return lax.conv_general_dilated(
            y, w, window_strides=(1, 1, 1), padding=((1, 1),) * 3,
            dimension_numbers=("NCDHW", "OIDHW", "NCDHW"))

    def bn(y, p):
        sh = (1, -1, 1, 1, 1)
        return (y - p["mean"].reshape(sh)) / jnp.sqrt(p["var"].reshape(sh) + eps) \
               * p["gamma"].reshape(sh) + p["beta"].reshape(sh)

    out = jnp.maximum(bn(conv(x, params["w1"]), params["bn1"]), 0.0)
    out = bn(conv(out, params["w2"]), params["bn2"])
    return jnp.maximum(out + x, 0.0)


if __name__ == "__main__":
    key = jax.random.PRNGKey(0)
    kx, kp = jax.random.split(key)

    # Small NCDHW input; N=4 so nb=2 per grid step and grid=2 (both v7x TCs used).
    N, C, D, H, W = 4, 4, 8, 8, 8
    x = jax.random.normal(kx, (N, C, D, H, W), jnp.float32)
    params = init_params(kp, C, C)

    ref = jax.block_until_ready(ref_forward(x, params))

    # f32 storage path: strict numerical check.
    out_f32 = jax.block_until_ready(
        basic_block_forward(x, params, compute_dtype=jnp.float32))
    assert out_f32.shape == ref.shape == (N, C, D, H, W)
    err = float(jnp.max(jnp.abs(out_f32 - ref)))
    if err > 1e-3:
        raise AssertionError(f"f32 Pallas BasicBlock mismatch vs reference, max_err={err}")

    # bf16 storage / f32-accumulate path (recommended on v6e/v7x): loose smoke check
    # (quantization of activations + weights dominates the error here).
    out_bf16 = jax.block_until_ready(
        basic_block_forward(x, params, compute_dtype=jnp.bfloat16))
    tol = 0.05 * float(jnp.max(jnp.abs(ref))) + 0.05
    err_bf = float(jnp.max(jnp.abs(out_bf16 - ref)))
    if err_bf > tol:
        raise AssertionError(
            f"bf16 Pallas BasicBlock mismatch vs reference, max_err={err_bf}, tol={tol}")

    print("KERNEL_OK")
</pallas_src>

<mosaic_0001>
module attributes {stable_mosaic.version = 11 : i64} {
  func.func @kernel(%arg0: i32, %arg1: memref<2x8x1280xf32, #tpu.memory_space<vmem>>, %arg2: memref<8x216xf32, #tpu.memory_space<vmem>>, %arg3: memref<8x216xf32, #tpu.memory_space<vmem>>, %arg4: memref<8x1xf32, #tpu.memory_space<vmem>>, %arg5: memref<8x1xf32, #tpu.memory_space<vmem>>, %arg6: memref<1x2048xf32, #tpu.memory_space<vmem>>, %arg7: memref<2x8x1024xf32, #tpu.memory_space<vmem>>, %arg8: memref<216x2048xf32, #tpu.memory_space<vmem>>, %arg9: memref<2x8x1280xf32, #tpu.memory_space<vmem>>) attributes {dimension_semantics = [#tpu.dimension_semantics<parallel>], iteration_bounds = array<i64: 2>, scalar_prefetch = 0 : i64, scratch_operands = 2 : i64, tpu.core_type = #tpu.core_type<tc>, window_params = [{transform_indices = @transform_0, window_bounds = array<i64: 2, 8, 1280>}, {pipeline_mode = #tpu.pipeline_mode<synchronous>, transform_indices = @transform_1, window_bounds = array<i64: 8, 216>}, {pipeline_mode = #tpu.pipeline_mode<synchronous>, transform_indices = @transform_2, window_bounds = array<i64: 8, 216>}, {pipeline_mode = #tpu.pipeline_mode<synchronous>, transform_indices = @transform_3, window_bounds = array<i64: 8, 1>}, {pipeline_mode = #tpu.pipeline_mode<synchronous>, transform_indices = @transform_4, window_bounds = array<i64: 8, 1>}, {pipeline_mode = #tpu.pipeline_mode<synchronous>, transform_indices = @transform_5, window_bounds = array<i64: 1, 2048>}, {transform_indices = @transform_6, window_bounds = array<i64: 2, 8, 1024>}]} {
    %c0 = arith.constant 0 : index
    %c0_0 = arith.constant 0 : index
    %c17 = arith.constant 17 : index
    %0 = vector.load %arg1[%c0, %c0_0, %c17] : memref<2x8x1280xf32, #tpu.memory_space<vmem>>, vector<1x8x1024xf32>
    %1 = vector.shape_cast %0 : vector<1x8x1024xf32> to vector<8x1024xf32>
    %c0_1 = arith.constant 0 : index
    %c0_2 = arith.constant 0 : index
    %2 = vector.load %arg8[%c0_1, %c0_2] : memref<216x2048xf32, #tpu.memory_space<vmem>>, vector<8x1024xf32>
    tpu.vector_store %arg8[%c0_1, %c0_2], %1 {strides = array<i32>} : memref<216x2048xf32, #tpu.memory_space<vmem>>, vector<8x1024xf32>,
    %c0_3 = arith.constant 0 : index
    %c0_4 = arith.constant 0 : index
    %c18 = arith.constant 18 : index
    %3 = vector.load %arg1[%c0_3, %c0_4, %c18] : memref<2x8x1280xf32, #tpu.memory_space<vmem>>, vector<1x8x1024xf32>
    %4 = vector.shape_cast %3 : vector<1x8x1024xf32> to vector<8x1024xf32>
    %c8 = arith.constant 8 : index
    %c0_5 = arith.constant 0 : index
    %5 = vector.load %arg8[%c8, %c0_5] : memref<216x2048xf32, #tpu.memory_space<vmem>>, vector<8x1024xf32>
    tpu.vector_store %arg8[%c8, %c0_5], %4 {strides = array<i32>} : memref<216x2048xf32, #tpu.memory_space<vmem>>, vector<8x1024xf32>,
    %c0_6 = arith.constant 0 : index
    %c0_7 = arith.constant 0 : index
    %c19 = arith.constant 19 : index
    %6 = vector.load %arg1[%c0_6, %c0_7, %c19] : memref<2x8x1280xf32, #tpu.memory_space<vmem>>, vector<1x8x1024xf32>
    %7 = vector.shape_cast %6 : vector<1x8x1024xf32> to vector<8x1024xf32>
    %c16 = arith.constant 16 : index
    %c0_8 = arith.constant 0 : index
    %8 = vector.load %arg8[%c16, %c0_8] : memref<216x2048xf32, #tpu.memory_space<vmem>>, vector<8x1024xf32>
    tpu.vector_store %arg8[%c16, %c0_8], %7 {strides = array<i32>} : memref<216x2048xf32, #tpu.memory_space<vmem>>, vector<8x1024xf32>,
    %c0_9 = arith.constant 0 : index
    %c0_10 = arith.constant 0 : index
    %c27 = arith.constant 27 : index
    %9 = vector.load %arg1[%c0_9, %c0_10, %c27] : memref<2x8x1280xf32, #tpu.memory_space<vmem>>, vector<1x8x1024xf32>
    %10 = vector.shape_cast %9 : vector<1x8x1024xf32> to vector<8x1024xf32>
    %c24 = arith.constant 24 : index
    %c0_11 = arith.constant 0 : index
    %11 = vector.load %arg8[%c24, %c0_11] : memref<216x2048xf32, #tpu.memory_space<vmem>>, vector<8x1024xf32>
    tpu.vector_store %arg8[%c24, %c0_11], %10 {strides = array<i32>} : memref<216x2048xf32, #tpu.memory_space<vmem>>, vector<8x1024xf32>,
    %c0_12 = arith.constant 0 : index
    %c0_13 = arith.constant 0 : index
    %c28 = arith.constant 28 : index
    %12 = vector.load %arg1[%c0_12, %c0_13, %c28] : memref<2x8x1280xf32, #tpu.memory_space<vmem>>, vector<1x8x1024xf32>
    %13 = vector.shape_cast %12 : vector<1x8x1024xf32> to vector<8x1024xf32>
    %c32 = arith.constant 32 : index
    %c0_14 = arith.constant 0 : index
    %14 = vector.load %arg8[%c32, %c0_14] : memref<216x2048xf32, #tpu.memory_space<vmem>>, vector<8x1024xf32>
    tpu.vector_store %arg8[%c32, %c0_14], %13 {strides = array<i32>} : memref<216x2048xf32, #tpu.memory_space<vmem>>, vector<8x1024xf32>,
    %c0_15 = arith.constant 0 : index
    %c0_16 = arith.constant 0 : index
    %c29 = arith.constant 29 : index
    %15 = vector.load %arg1[%c0_15, %c0_16, %c29] : memref<2x8x1280xf32, #tpu.memory_space<vmem>>, vector<1x8x1024xf32>
    %16 = vector.shape_cast %15 : vector<1x8x1024xf32> to vector<8x1024xf32>
    %c40 = arith.constant 40 : index
    %c0_17 = arith.constant 0 : index
    %17 = vector.load %arg8[%c40, %c0_17] : memref<216x2048xf32, #tpu.memory_space<vmem>>, vector<8x1024xf32>
    tpu.vector_store %arg8[%c40, %c0_17], %16 {strides = array<i32>} : memref<216x2048xf32, #tpu.memory_space<vmem>>, vector<8x1024xf32>,
    %c0_18 = arith.constant 0 : index
    %c0_19 = arith.constant 0 : index
    %c37 = arith.constant 37 : index
    %18 = vector.load %arg1[%c0_18, %c0_19, %c37] : memref<2x8x1280xf32, #tpu.memory_space<vmem>>, vector<1x8x1024xf32>
    %19 = vector.shape_cast %18 : vector<1x8x1024xf32> to vector<8x1024xf32>
    %c48 = arith.constant 48 : index
    %c0_20 = arith.constant 0 : index
    %20 = vector.load %arg8[%c48, %c0_20] : memref<216x2048xf32, #tpu.memory_space<vmem>>, vector<8x1024xf32>
    tpu.vector_store %arg8[%c48, %c0_20], %19 {strides = array<i32>} : memref<216x2048xf32, #tpu.memory_space<vmem>>, vector<8x1024xf32>,
    %c0_21 = arith.constant 0 : index
    %c0_22 = arith.constant 0 : index
    %c38 = arith.constant 38 : index
    %21 = vector.load %arg1[%c0_21, %c0_22, %c38] : memref<2x8x1280xf32, #tpu.memory_space<vmem>>, vector<1x8x1024xf32>
    %22 = vector.shape_cast %21 : vector<1x8x1024xf32> to vector<8x1024xf32>
    %c56 = arith.constant 56 : index
    %c0_23 = arith.constant 0 : index
    %23 = vector.load %arg8[%c56, %c0_23] : memref<216x2048xf32, #tpu.memory_space<vmem>>, vector<8x1024xf32>
    tpu.vector_store %arg8[%c56, %c0_23], %22 {strides = array<i32>} : memref<216x2048xf32, #tpu.memory_space<vmem>>, vector<8x1024xf32>,
    %c0_24 = arith.constant 0 : index
    %c0_25 = arith.constant 0 : index
    %c39 = arith.constant 39 : index
    %24 = vector.load %arg1[%c0_24, %c0_25, %c39] : memref<2x8x1280xf32, #tpu.memory_space<vmem>>, vector<1x8x1024xf32>
    %25 = vector.shape_cast %24 : vector<1x8x1024xf32> to vector<8x1024xf32>
    %c64 = arith.constant 64 : index
    %c0_26 = arith.constant 0 : index
    %26 = vector.load %arg8[%c64, %c0_26] : memref<216x2048xf32, #tpu.memory_space<vmem>>, vector<8x1024xf32>
    tpu.vector_store %arg8[%c64, %c0_26], %25 {strides = array<i32>} : memref<216x2048xf32, #tpu.memory_space<vmem>>, vector<8x1024xf32>,
    %c0_27 = arith.constant 0 : index
    %c0_28 = arith.constant 0 : index
    %c117 = arith.constant 117 : index
    %27 = vector.load %arg1[%c0_27, %c0_28, %c117] : memref<2x8x1280xf32, #tpu.memory_space<vmem>>, vector<1x8x1024xf32>
    %28 = vector.shape_cast %27 : vector<1x8x1024xf32> to vector<8x1024xf32>
    %c72 = arith.constant 72 : index
    %c0_29 = arith.constant 0 : index
    %29 = vector.load %arg8[%c72, %c0_29] : memref<216x2048xf32, #tpu.memory_space<vmem>>, vector<8x1024xf32>
    tpu.vector_store %arg8[%c72, %c0_29], %28 {strides = array<i32>} : memref<216x2048xf32, #tpu.memory_space<vmem>>, vector<8x1024xf32>,
    %c0_30 = arith.constant 0 : index
    %c0_31 = arith.constant 0 : index
    %c118 = arith.constant 118 : index
    %30 = vector.load %arg1[%c0_30, %c0_31, %c118] : memref<2x8x1280xf32, #tpu.memory_space<vmem>>, vector<1x8x1024xf32>
    %31 = vector.shape_cast %30 : vector<1x8x1024xf32> to vector<8x1024xf32>
    %c80 = arith.constant 80 : index
    %c0_32 = arith.constant 0 : index
    %32 = vector.load %arg8[%c80, %c0_32] : memref<216x2048xf32, #tpu.memory_space<vmem>>, vector<8x1024xf32>
    tpu.vector_store %arg8[%c80, %c0_32], %31 {strides = array<i32>} : memref<216x2048xf32, #tpu.memory_space<vmem>>, vector<8x1024xf32>,
    %c0_33 = arith.constant 0 : index
    %c0_34 = arith.constant 0 : index
    %c119 = arith.constant 119 : index
    %33 = vector.load %arg1[%c0_33, %c0_34, %c119] : memref<2x8x1280xf32, #tpu.memory_space<vmem>>, vector<1x8x1024xf32>
    %34 = vector.shape_cast %33 : vector<1x8x1024xf32> to vector<8x1024xf32>
    %c88 = arith.constant 88 : index
    %c0_35 = arith.constant 0 : index
    %35 = vector.load %arg8[%c88, %c0_35] : memref<216x2048xf32, #tpu.memory_space<vmem>>, vector<8x1024xf32>
    tpu.vector_store %arg8[%c88, %c0_35], %34 {strides = array<i32>} : memref<216x2048xf32, #tpu.memory_space<vmem>>, vector<8x1024xf32>,
    %c0_36 = arith.constant 0 : index
    %c0_37 = arith.constant 0 : index
    %c127 = arith.constant 127 : index
    %36 = vector.load %arg1[%c0_36, %c0_37, %c127] : memref<2x8x1280xf32, #tpu.memory_space<vmem>>, vector<1x8x1024xf32>
    %37 = vector.shape_cast %36 : vector<1x8x1024xf32> to vector<8x1024xf32>
    %c96 = arith.constant 96 : index
    %c0_38 = arith.constant 0 : index
    %38 = vector.load %arg8[%c96, %c0_38] : memref<216x2048xf32, #tpu.memory_space<vmem>>, vector<8x1024xf32>
    tpu.vector_store %arg8[%c96, %c0_38], %37 {strides = array<i32>} : memref<216x2048xf32, #tpu.memory_space<vmem>>, vector<8x1024xf32>,
    %c0_39 = arith.constant 0 : index
    %c0_40 = arith.constant 0 : index
    %c128 = arith.constant 128 : index
    %39 = vector.load %arg1[%c0_39, %c0_40, %c128] : memref<2x8x1280xf32, #tpu.memory_space<vmem>>, vector<1x8x1024xf32>
    %40 = vector.shape_cast %39 : vector<1x8x1024xf32> to vector<8x1024xf32>
    %c104 = arith.constant 104 : index
    %c0_41 = arith.constant 0 : index
    %41 = vector.load %arg8[%c104, %c0_41] : memref<216x2048xf32, #tpu.memory_space<vmem>>, vector<8x1024xf32>
    tpu.vector_store %arg8[%c104, %c0_41], %40 {strides = array<i32>} : memref<216x2048xf32, #tpu.memory_space<vmem>>, vector<8x1024xf32>,
    %c0_42 = arith.constant 0 : index
    %c0_43 = arith.constant 0 : index
    %c129 = arith.constant 129 : index
    %42 = vector.load %arg1[%c0_42, %c0_43, %c129] : memref<2x8x1280xf32, #tpu.memory_space<vmem>>, vector<1x8x1024xf32>
    %43 = vector.shape_cast %42 : vector<1x8x1024xf32> to vector<8x1024xf32>
    %c112 = arith.constant 112 : index
    %c0_44 = arith.constant 0 : index
    %44 = vector.load %arg8[%c112, %c0_44] : memref<216x2048xf32, #tpu.memory_space<vmem>>, vector<8x1024xf32>
    tpu.vector_store %arg8[%c112, %c0_44], %43 {strides = array<i32>} : memref<216x2048xf32, #tpu.memory_space<vmem>>, vector<8x1024xf32>,
    %c0_45 = arith.constant 0 : index
    %c0_46 = arith.constant 0 : index
    %c137 = arith.constant 137 : index
    %45 = vector.load %arg1[%c0_45, %c0_46, %c137] : memref<2x8x1280xf32, #tpu.memory_space<vmem>>, vector<1x8x1024xf32>
    %46 = vector.shape_cast %45 : vector<1x8x1024xf32> to vector<8x1024xf32>
    %c120 = arith.constant 120 : index
    %c0_47 = arith.constant 0 : index
    %47 = vector.load %arg8[%c120, %c0_47] : memref<216x2048xf32, #tpu.memory_space<vmem>>, vector<8x1024xf32>
    tpu.vector_store %arg8[%c120, %c0_47], %46 {strides = array<i32>} : memref<216x2048xf32, #tpu.memory_space<vmem>>, vector<8x1024xf32>,
    %c0_48 = arith.constant 0 : index
    %c0_49 = arith.constant 0 : index
    %c138 = arith.constant 138 : index
    %48 = vector.load %arg1[%c0_48, %c0_49, %c138] : memref<2x8x1280xf32, #tpu.memory_space<vmem>>, vector<1x8x1024xf32>
    %49 = vector.shape_cast %48 : vector<1x8x1024xf32> to vector<8x1024xf32>
    %c128_50 = arith.constant 128 : index
    %c0_51 = arith.constant 0 : index
    %50 = vector.load %arg8[%c128_50, %c0_51] : memref<216x2048xf32, #tpu.memory_space<vmem>>, vector<8x1024xf32>
    tpu.vector_store %arg8[%c128_50, %c0_51], %49 {strides = array<i32>} : memref<216x2048xf32, #tpu.memory_space<vmem>>, vector<8x1024xf32>,
    %c0_52 = arith.constant 0 : index
    %c0_53 = arith.constant 0 : index
    %c139 = arith.constant 139 : index
    %51 = vector.load %arg1[%c0_52, %c0_53, %c139] : memref<2x8x1280xf32, #tpu.memory_space<vmem>>, vector<1x8x1024xf32>
    %52 = vector.shape_cast %51 : vector<1x8x1024xf32> to vector<8x1024xf32>
    %c136 = arith.constant 136 : index
    %c0_54 = arith.constant 0 : index
    %53 = vector.load %arg8[%c136, %c0_54] : memref<216x2048xf32, #tpu.memory_space<vmem>>, vector<8x1024xf32>
    tpu.vector_store %arg8[%c136, %c0_54], %52 {strides = array<i32>} : memref<216x2048xf32, #tpu.memory_space<vmem>>, vector<8x1024xf32>,
    %c0_55 = arith.constant 0 : index
    %c0_56 = arith.constant 0 : index
    %c217 = arith.constant 217 : index
    %54 = vector.load %arg1[%c0_55, %c0_56, %c217] : memref<2x8x1280xf32, #tpu.memory_space<vmem>>, vector<1x8x1024xf32>
    %55 = vector.shape_cast %54 : vector<1x8x1024xf32> to vector<8x1024xf32>
    %c144 = arith.constant 144 : index
    %c0_57 = arith.constant 0 : index
    %56 = vector.load %arg8[%c144, %c0_57] : memref<216x2048xf32, #tpu.memory_space<vmem>>, vector<8x1024xf32>
    tpu.vector_store %arg8[%c144, %c0_57], %55 {strides = array<i32>} : memref<216x2048xf32, #tpu.memory_space<vmem>>, vector<8x1024xf32>,
    %c0_58 = arith.constant 0 : index
    %c0_59 = arith.constant 0 : index
    %c218 = arith.constant 218 : index
    %57 = vector.load %arg1[%c0_58, %c0_59, %c218] : memref<2x8x1280xf32, #tpu.memory_space<vmem>>, vector<1x8x1024xf32>
    %58 = vector.shape_cast %57 : vector<1x8x1024xf32> to vector<8x1024xf32>
    %c152 = arith.constant 152 : index
    %c0_60 = arith.constant 0 : index
    %59 = vector.load %arg8[%c152, %c0_60] : memref<216x2048xf32, #tpu.memory_space<vmem>>, vector<8x1024xf32>
    tpu.vector_store %arg8[%c152, %c0_60], %58 {strides = array<i32>} : memref<216x2048xf32, #tpu.memory_space<vmem>>, vector<8x1024xf32>,
    %c0_61 = arith.constant 0 : index
    %c0_62 = arith.constant 0 : index
    %c219 = arith.constant 219 : index
    %60 = vector.load %arg1[%c0_61, %c0_62, %c219] : memref<2x8x1280xf32, #tpu.memory_space<vmem>>, vector<1x8x1024xf32>
    %61 = vector.shape_cast %60 : vector<1x8x1024xf32> to vector<8x1024xf32>
    %c160 = arith.constant 160 : index
    %c0_63 = arith.constant 0 : index
    %62 = vector.load %arg8[%c160, %c0_63] : memref<216x2048xf32, #tpu.memory_space<vmem>>, vector<8x1024xf32>
    tpu.vector_store %arg8[%c160, %c0_63], %61 {strides = array<i32>} : memref<216x2048xf32, #tpu.memory_space<vmem>>, vector<8x1024xf32>,
    %c0_64 = arith.constant 0 : index
    %c0_65 = arith.constant 0 : index
    %c227 = arith.constant 227 : index
    %63 = vector.load %arg1[%c0_64, %c0_65, %c227] : memref<2x8x1280xf32, #tpu.memory_space<vmem>>, vector<1x8x1024xf32>
    %64 = vector.shape_cast %63 : vector<1x8x1024xf32> to vector<8x1024xf32>
    %c168 = arith.constant 168 : index
    %c0_66 = arith.constant 0 : index
    %65 = vector.load %arg8[%c168, %c0_66] : memref<216x2048xf32, #tpu.memory_space<vmem>>, vector<8x1024xf32>
    tpu.vector_store %arg8[%c168, %c0_66], %64 {strides = array<i32>} : memref<216x2048xf32, #tpu.memory_space<vmem>>, vector<8x1024xf32>,
    %c0_67 = arith.constant 0 : index
    %c0_68 = arith.constant 0 : index
    %c228 = arith.constant 228 : index
    %66 = vector.load %arg1[%c0_67, %c0_68, %c228] : memref<2x8x1280xf32, #tpu.memory_space<vmem>>, vector<1x8x1024xf32>
    %67 = vector.shape_cast %66 : vector<1x8x1024xf32> to vector<8x1024xf32>
    %c176 = arith.constant 176 : index
    %c0_69 = arith.constant 0 : index
    %68 = vector.load %arg8[%c176, %c0_69] : memref<216x2048xf32, #tpu.memory_space<vmem>>, vector<8x1024xf32>
    tpu.vector_store %arg8[%c176, %c0_69], %67 {strides = array<i32>} : memref<216x2048xf32, #tpu.memory_space<vmem>>, vector<8x1024xf32>,
    %c0_70 = arith.constant 0 : index
    %c0_71 = arith.constant 0 : index
    %c229 = arith.constant 229 : index
    %69 = vector.load %arg1[%c0_70, %c0_71, %c229] : memref<2x8x1280xf32, #tpu.memory_space<vmem>>, vector<1x8x1024xf32>
    %70 = vector.shape_cast %69 : vector<1x8x1024xf32> to vector<8x1024xf32>
    %c184 = arith.constant 184 : index
    %c0_72 = arith.constant 0 : index
    %71 = vector.load %arg8[%c184, %c0_72] : memref<216x2048xf32, #tpu.memory_space<vmem>>, vector<8x1024xf32>
    tpu.vector_store %arg8[%c184, %c0_72], %70 {strides = array<i32>} : memref<216x2048xf32, #tpu.memory_space<vmem>>, vector<8x1024xf32>,
    %c0_73 = arith.constant 0 : index
    %c0_74 = arith.constant 0 : index
    %c237 = arith.constant 237 : index
    %72 = vector.load %arg1[%c0_73, %c0_74, %c237] : memref<2x8x1280xf32, #tpu.memory_space<vmem>>, vector<1x8x1024xf32>
    %73 = vector.shape_cast %72 : vector<1x8x1024xf32> to vector<8x1024xf32>
    %c192 = arith.constant 192 : index
    %c0_75 = arith.constant 0 : index
    %74 = vector.load %arg8[%c192, %c0_75] : memref<216x2048xf32, #tpu.memory_space<vmem>>, vector<8x1024xf32>
    tpu.vector_store %arg8[%c192, %c0_75], %73 {strides = array<i32>} : memref<216x2048xf32, #tpu.memory_space<vmem>>, vector<8x1024xf32>,
    %c0_76 = arith.constant 0 : index
    %c0_77 = arith.constant 0 : index
    %c238 = arith.constant 238 : index
    %75 = vector.load %arg1[%c0_76, %c0_77, %c238] : memref<2x8x1280xf32, #tpu.memory_space<vmem>>, vector<1x8x1024xf32>
    %76 = vector.shape_cast %75 : vector<1x8x1024xf32> to vector<8x1024xf32>
    %c200 = arith.constant 200 : index
    %c0_78 = arith.constant 0 : index
    %77 = vector.load %arg8[%c200, %c0_78] : memref<216x2048xf32, #tpu.memory_space<vmem>>, vector<8x1024xf32>
    tpu.vector_store %arg8[%c200, %c0_78], %76 {strides = array<i32>} : memref<216x2048xf32, #tpu.memory_space<vmem>>, vector<8x1024xf32>,
    %c0_79 = arith.constant 0 : index
    %c0_80 = arith.constant 0 : index
    %c239 = arith.constant 239 : index
    %78 = vector.load %arg1[%c0_79, %c0_80, %c239] : memref<2x8x1280xf32, #tpu.memory_space<vmem>>, vector<1x8x1024xf32>
    %79 = vector.shape_cast %78 : vector<1x8x1024xf32> to vector<8x1024xf32>
    %c208 = arith.constant 208 : index
    %c0_81 = arith.constant 0 : index
    %80 = vector.load %arg8[%c208, %c0_81] : memref<216x2048xf32, #tpu.memory_space<vmem>>, vector<8x1024xf32>
    tpu.vector_store %arg8[%c208, %c0_81], %79 {strides = array<i32>} : memref<216x2048xf32, #tpu.memory_space<vmem>>, vector<8x1024xf32>,
    %c1 = arith.constant 1 : index
    %c0_82 = arith.constant 0 : index
    %c17_83 = arith.constant 17 : index
    %81 = vector.load %arg1[%c1, %c0_82, %c17_83] : memref<2x8x1280xf32, #tpu.memory_space<vmem>>, vector<1x8x1024xf32>
    %82 = vector.shape_cast %81 : vector<1x8x1024xf32> to vector<8x1024xf32>
    %c0_84 = arith.constant 0 : index
    %c1024 = arith.constant 1024 : index
    %83 = vector.load %arg8[%c0_84, %c1024] : memref<216x2048xf32, #tpu.memory_space<vmem>>, vector<8x1024xf32>
    tpu.vector_store %arg8[%c0_84, %c1024], %82 {strides = array<i32>} : memref<216x2048xf32, #tpu.memory_space<vmem>>, vector<8x1024xf32>,
    %c1_85 = arith.constant 1 : index
    %c0_86 = arith.constant 0 : index
    %c18_87 = arith.constant 18 : index
    %84 = vector.load %arg1[%c1_85, %c0_86, %c18_87] : memref<2x8x1280xf32, #tpu.memory_space<vmem>>, vector<1x8x1024xf32>
    %85 = vector.shape_cast %84 : vector<1x8x1024xf32> to vector<8x1024xf32>
    %c8_88 = arith.constant 8 : index
    %c1024_89 = arith.constant 1024 : index
    %86 = vector.load %arg8[%c8_88, %c1024_89] : memref<216x2048xf32, #tpu.memory_space<vmem>>, vector<8x1024xf32>
    tpu.vector_store %arg8[%c8_88, %c1024_89], %85 {strides = array<i32>} : memref<216x2048xf32, #tpu.memory_space<vmem>>, vector<8x1024xf32>,
    %c1_90 = arith.constant 1 : index
    %c0_91 = arith.constant 0 : index
    %c19_92 = arith.constant 19 : index
    %87 = vector.load %arg1[%c1_90, %c0_91, %c19_92] : memref<2x8x1280xf32, #tpu.memory_space<vmem>>, vector<1x8x1024xf32>
    %88 = vector.shape_cast %87 : vector<1x8x1024xf32> to vector<8x1024xf32>
    %c16_93 = arith.constant 16 : index
    %c1024_94 = arith.constant 1024 : index
    %89 = vector.load %arg8[%c16_93, %c1024_94] : memref<216x2048xf32, #tpu.memory_space<vmem>>, vector<8x1024xf32>
    tpu.vector_store %arg8[%c16_93, %c1024_94], %88 {strides = array<i32>} : memref<216x2048xf32, #tpu.memory_space<vmem>>, vector<8x1024xf32>,
    %c1_95 = arith.constant 1 : index
    %c0_96 = arith.constant 0 : index
    %c27_97 = arith.constant 27 : index
    %90 = vector.load %arg1[%c1_95, %c0_96, %c27_97] : memref<2x8x1280xf32, #tpu.memory_space<vmem>>, vector<1x8x1024xf32>
    %91 = vector.shape_cast %90 : vector<1x8x1024xf32> to vector<8x1024xf32>
    %c24_98 = arith.constant 24 : index
    %c1024_99 = arith.constant 1024 : index
    %92 = vector.load %arg8[%c24_98, %c1024_99] : memref<216x2048xf32, #tpu.memory_space<vmem>>, vector<8x1024xf32>
    tpu.vector_store %arg8[%c24_98, %c1024_99], %91 {strides = array<i32>} : memref<216x2048xf32, #tpu.memory_space<vmem>>, vector<8x1024xf32>,
    %c1_100 = arith.constant 1 : index
    %c0_101 = arith.constant 0 : index
    %c28_102 = arith.constant 28 : index
    %93 = vector.load %arg1[%c1_100, %c0_101, %c28_102] : memref<2x8x1280xf32, #tpu.memory_space<vmem>>, vector<1x8x1024xf32>
    %94 = vector.shape_cast %93 : vector<1x8x1024xf32> to vector<8x1024xf32>
    %c32_103 = arith.constant 32 : index
    %c1024_104 = arith.constant 1024 : index
    %95 = vector.load %arg8[%c32_103, %c1024_104] : memref<216x2048xf32, #tpu.memory_space<vmem>>, vector<8x1024xf32>
    tpu.vector_store %arg8[%c32_103, %c1024_104], %94 {strides = array<i32>} : memref<216x2048xf32, #tpu.memory_space<vmem>>, vector<8x1024xf32>,
    %c1_105 = arith.constant 1 : index
    %c0_106 = arith.constant 0 : index
    %c29_107 = arith.constant 29 : index
    %96 = vector.load %arg1[%c1_105, %c0_106, %c29_107] : memref<2x8x1280xf32, #tpu.memory_space<vmem>>, vector<1x8x1024xf32>
    %97 = vector.shape_cast %96 : vector<1x8x1024xf32> to vector<8x1024xf32>
    %c40_108 = arith.constant 40 : index
    %c1024_109 = arith.constant 1024 : index
    %98 = vector.load %arg8[%c40_108, %c1024_109] : memref<216x2048xf32, #tpu.memory_space<vmem>>, vector<8x1024xf32>
    tpu.vector_store %arg8[%c40_108, %c1024_109], %97 {strides = array<i32>} : memref<216x2048xf32, #tpu.memory_space<vmem>>, vector<8x1024xf32>,
    %c1_110 = arith.constant 1 : index
    %c0_111 = arith.constant 0 : index
    %c37_112 = arith.constant 37 : index
    %99 = vector.load %arg1[%c1_110, %c0_111, %c37_112] : memref<2x8x1280xf32, #tpu.memory_space<vmem>>, vector<1x8x1024xf32>
    %100 = vector.shape_cast %99 : vector<1x8x1024xf32> to vector<8x1024xf32>
    %c48_113 = arith.constant 48 : index
    %c1024_114 = arith.constant 1024 : index
    %101 = vector.load %arg8[%c48_113, %c1024_114] : memref<216x2048xf32, #tpu.memory_space<vmem>>, vector<8x1024xf32>
    tpu.vector_store %arg8[%c48_113, %c1024_114], %100 {strides = array<i32>} : memref<216x2048xf32, #tpu.memory_space<vmem>>, vector<8x1024xf32>,
    %c1_115 = arith.constant 1 : index
    %c0_116 = arith.constant 0 : index
    %c38_117 = arith.constant 38 : index
    %102 = vector.load %arg1[%c1_115, %c0_116, %c38_117] : memref<2x8x1280xf32, #tpu.memory_space<vmem>>, vector<1x8x1024xf32>
    %103 = vector.shape_cast %102 : vector<1x8x1024xf32> to vector<8x1024xf32>
    %c56_118 = arith.constant 56 : index
    %c1024_119 = arith.constant 1024 : index
    %104 = vector.load %arg8[%c56_118, %c1024_119] : memref<216x2048xf32, #tpu.memory_space<vmem>>, vector<8x1024xf32>
    tpu.vector_store %arg8[%c56_118, %c1024_119], %103 {strides = array<i32>} : memref<216x2048xf32, #tpu.memory_space<vmem>>, vector<8x1024xf32>,
    %c1_120 = arith.constant 1 : index
    %c0_121 = arith.constant 0 : index
    %c39_122 = arith.constant 39 : index
    %105 = vector.load %arg1[%c1_120, %c0_121, %c39_122] : memref<2x8x1280xf32, #tpu.memory_space<vmem>>, vector<1x8x1024xf32>
    %106 = vector.shape_cast %105 : vector<1x8x1024xf32> to vector<8x1024xf32>
    %c64_123 = arith.constant 64 : index
    %c1024_124 = arith.constant 1024 : index
    %107 = vector.load %arg8[%c64_123, %c1024_124] : memref<216x2048xf32, #tpu.memory_space<vmem>>, vector<8x1024xf32>
    tpu.vector_store %arg8[%c64_123, %c1024_124], %106 {strides = array<i32>} : memref<216x2048xf32, #tpu.memory_space<vmem>>, vector<8x1024xf32>,
    %c1_125 = arith.constant 1 : index
    %c0_126 = arith.constant 0 : index
    %c117_127 = arith.constant 117 : index
    %108 = vector.load %arg1[%c1_125, %c0_126, %c117_127] : memref<2x8x1280xf32, #tpu.memory_space<vmem>>, vector<1x8x1024xf32>
    %109 = vector.shape_cast %108 : vector<1x8x1024xf32> to vector<8x1024xf32>
    %c72_128 = arith.constant 72 : index
    %c1024_129 = arith.constant 1024 : index
    %110 = vector.load %arg8[%c72_128, %c1024_129] : memref<216x2048xf32, #tpu.memory_space<vmem>>, vector<8x1024xf32>
    tpu.vector_store %arg8[%c72_128, %c1024_129], %109 {strides = array<i32>} : memref<216x2048xf32, #tpu.memory_space<vmem>>, vector<8x1024xf32>,
    %c1_130 = arith.constant 1 : index
    %c0_131 = arith.constant 0 : index
    %c118_132 = arith.constant 118 : index
    %111 = vector.load %arg1[%c1_130, %c0_131, %c118_132] : memref<2x8x1280xf32, #tpu.memory_space<vmem>>, vector<1x8x1024xf32>
    %112 = vector.shape_cast %111 : vector<1x8x1024xf32> to vector<8x1024xf32>
    %c80_133 = arith.constant 80 : index
    %c1024_134 = arith.constant 1024 : index
    %113 = vector.load %arg8[%c80_133, %c1024_134] : memref<216x2048xf32, #tpu.memory_space<vmem>>, vector<8x1024xf32>
    tpu.vector_store %arg8[%c80_133, %c1024_134], %112 {strides = array<i32>} : memref<216x2048xf32, #tpu.memory_space<vmem>>, vector<8x1024xf32>,
    %c1_135 = arith.constant 1 : index
    %c0_136 = arith.constant 0 : index
    %c119_137 = arith.constant 119 : index
    %114 = vector.load %arg1[%c1_135, %c0_136, %c119_137] : memref<2x8x1280xf32, #tpu.memory_space<vmem>>, vector<1x8x1024xf32>
    %115 = vector.shape_cast %114 : vector<1x8x1024xf32> to vector<8x1024xf32>
    %c88_138 = arith.constant 88 : index
    %c1024_139 = arith.constant 1024 : index
    %116 = vector.load %arg8[%c88_138, %c1024_139] : memref<216x2048xf32, #tpu.memory_space<vmem>>, vector<8x1024xf32>
    tpu.vector_store %arg8[%c88_138, %c1024_139], %115 {strides = array<i32>} : memref<216x2048xf32, #tpu.memory_space<vmem>>, vector<8x1024xf32>,
    %c1_140 = arith.constant 1 : index
    %c0_141 = arith.constant 0 : index
    %c127_142 = arith.constant 127 : index
    %117 = vector.load %arg1[%c1_140, %c0_141, %c127_142] : memref<2x8x1280xf32, #tpu.memory_space<vmem>>, vector<1x8x1024xf32>
    %118 = vector.shape_cast %117 : vector<1x8x1024xf32> to vector<8x1024xf32>
    %c96_143 = arith.constant 96 : index
    %c1024_144 = arith.constant 1024 : index
    %119 = vector.load %arg8[%c96_143, %c1024_144] : memref<216x2048xf32, #tpu.memory_space<vmem>>, vector<8x1024xf32>
    tpu.vector_store %arg8[%c96_143, %c1024_144], %118 {strides = array<i32>} : memref<216x2048xf32, #tpu.memory_space<vmem>>, vector<8x1024xf32>,
    %c1_145 = arith.constant 1 : index
    %c0_146 = arith.constant 0 : index
    %c128_147 = arith.constant 128 : index
    %120 = vector.load %arg1[%c1_145, %c0_146, %c128_147] : memref<2x8x1280xf32, #tpu.memory_space<vmem>>, vector<1x8x1024xf32>
    %121 = vector.shape_cast %120 : vector<1x8x1024xf32> to vector<8x1024xf32>
    %c104_148 = arith.constant 104 : index
    %c1024_149 = arith.constant 1024 : index
    %122 = vector.load %arg8[%c104_148, %c1024_149] : memref<216x2048xf32, #tpu.memory_space<vmem>>, vector<8x1024xf32>
    tpu.vector_store %arg8[%c104_148, %c1024_149], %121 {strides = array<i32>} : memref<216x2048xf32, #tpu.memory_space<vmem>>, vector<8x1024xf32>,
    %c1_150 = arith.constant 1 : index
    %c0_151 = arith.constant 0 : index
    %c129_152 = arith.constant 129 : index
    %123 = vector.load %arg1[%c1_150, %c0_151, %c129_152] : memref<2x8x1280xf32, #tpu.memory_space<vmem>>, vector<1x8x1024xf32>
    %124 = vector.shape_cast %123 : vector<1x8x1024xf32> to vector<8x1024xf32>
    %c112_153 = arith.constant 112 : index
    %c1024_154 = arith.constant 1024 : index
    %125 = vector.load %arg8[%c112_153, %c1024_154] : memref<216x2048xf32, #tpu.memory_space<vmem>>, vector<8x1024xf32>
    tpu.vector_store %arg8[%c112_153, %c1024_154], %124 {strides = array<i32>} : memref<216x2048xf32, #tpu.memory_space<vmem>>, vector<8x1024xf32>,
    %c1_155 = arith.constant 1 : index
    %c0_156 = arith.constant 0 : index
    %c137_157 = arith.constant 137 : index
    %126 = vector.load %arg1[%c1_155, %c0_156, %c137_157] : memref<2x8x1280xf32, #tpu.memory_space<vmem>>, vector<1x8x1024xf32>
    %127 = vector.shape_cast %126 : vector<1x8x1024xf32> to vector<8x1024xf32>
    %c120_158 = arith.constant 120 : index
    %c1024_159 = arith.constant 1024 : index
    %128 = vector.load %arg8[%c120_158, %c1024_159] : memref<216x2048xf32, #tpu.memory_space<vmem>>, vector<8x1024xf32>
    tpu.vector_store %arg8[%c120_158, %c1024_159], %127 {strides = array<i32>} : memref<216x2048xf32, #tpu.memory_space<vmem>>, vector<8x1024xf32>,
    %c1_160 = arith.constant 1 : index
    %c0_161 = arith.constant 0 : index
    %c138_162 = arith.constant 138 : index
    %129 = vector.load %arg1[%c1_160, %c0_161, %c138_162] : memref<2x8x1280xf32, #tpu.memory_space<vmem>>, vector<1x8x1024xf32>
    %130 = vector.shape_cast %129 : vector<1x8x1024xf32> to vector<8x1024xf32>
    %c128_163 = arith.constant 128 : index
    %c1024_164 = arith.constant 1024 : index
    %131 = vector.load %arg8[%c128_163, %c1024_164] : memref<216x2048xf32, #tpu.memory_space<vmem>>, vector<8x1024xf32>
    tpu.vector_store %arg8[%c128_163, %c1024_164], %130 {strides = array<i32>} : memref<216x2048xf32, #tpu.memory_space<vmem>>, vector<8x1024xf32>,
    %c1_165 = arith.constant 1 : index
    %c0_166 = arith.constant 0 : index
    %c139_167 = arith.constant 139 : index
    %132 = vector.load %arg1[%c1_165, %c0_166, %c139_167] : memref<2x8x1280xf32, #tpu.memory_space<vmem>>, vector<1x8x1024xf32>
    %133 = vector.shape_cast %132 : vector<1x8x1024xf32> to vector<8x1024xf32>
    %c136_168 = arith.constant 136 : index
    %c1024_169 = arith.constant 1024 : index
    %134 = vector.load %arg8[%c136_168, %c1024_169] : memref<216x2048xf32, #tpu.memory_space<vmem>>, vector<8x1024xf32>
    tpu.vector_store %arg8[%c136_168, %c1024_169], %133 {strides = array<i32>} : memref<216x2048xf32, #tpu.memory_space<vmem>>, vector<8x1024xf32>,
    %c1_170 = arith.constant 1 : index
    %c0_171 = arith.constant 0 : index
    %c217_172 = arith.constant 217 : index
    %135 = vector.load %arg1[%c1_170, %c0_171, %c217_172] : memref<2x8x1280xf32, #tpu.memory_space<vmem>>, vector<1x8x1024xf32>
    %136 = vector.shape_cast %135 : vector<1x8x1024xf32> to vector<8x1024xf32>
    %c144_173 = arith.constant 144 : index
    %c1024_174 = arith.constant 1024 : index
    %137 = vector.load %arg8[%c144_173, %c1024_174] : memref<216x2048xf32, #tpu.memory_space<vmem>>, vector<8x1024xf32>
    tpu.vector_store %arg8[%c144_173, %c1024_174], %136 {strides = array<i32>} : memref<216x2048xf32, #tpu.memory_space<vmem>>, vector<8x1024xf32>,
    %c1_175 = arith.constant 1 : index
    %c0_176 = arith.constant 0 : index
    %c218_177 = arith.constant 218 : index
    %138 = vector.load %arg1[%c1_175, %c0_176, %c218_177] : memref<2x8x1280xf32, #tpu.memory_space<vmem>>, vector<1x8x1024xf32>
    %139 = vector.shape_cast %138 : vector<1x8x1024xf32> to vector<8x1024xf32>
    %c152_178 = arith.constant 152 : index
    %c1024_179 = arith.constant 1024 : index
    %140 = vector.load %arg8[%c152_178, %c1024_179] : memref<216x2048xf32, #tpu.memory_space<vmem>>, vector<8x1024xf32>
    tpu.vector_store %arg8[%c152_178, %c1024_179], %139 {strides = array<i32>} : memref<216x2048xf32, #tpu.memory_space<vmem>>, vector<8x1024xf32>,
    %c1_180 = arith.constant 1 : index
    %c0_181 = arith.constant 0 : index
    %c219_182 = arith.constant 219 : index
    %141 = vector.load %arg1[%c1_180, %c0_181, %c219_182] : memref<2x8x1280xf32, #tpu.memory_space<vmem>>, vector<1x8x1024xf32>
    %142 = vector.shape_cast %141 : vector<1x8x1024xf32> to vector<8x1024xf32>
    %c160_183 = arith.constant 160 : index
    %c1024_184 = arith.constant 1024 : index
    %143 = vector.load %arg8[%c160_183, %c1024_184] : memref<216x2048xf32, #tpu.memory_space<vmem>>, vector<8x1024xf32>
    tpu.vector_store %arg8[%c160_183, %c1024_184], %142 {strides = array<i32>} : memref<216x2048xf32, #tpu.memory_space<vmem>>, vector<8x1024xf32>,
    %c1_185 = arith.constant 1 : index
    %c0_186 = arith.constant 0 : index
    %c227_187 = arith.constant 227 : index
    %144 = vector.load %arg1[%c1_185, %c0_186, %c227_187] : memref<2x8x1280xf32, #tpu.memory_space<vmem>>, vector<1x8x1024xf32>
    %145 = vector.shape_cast %144 : vector<1x8x1024xf32> to vector<8x1024xf32>
    %c168_188 = arith.constant 168 : index
    %c1024_189 = arith.constant 1024 : index
    %146 = vector.load %arg8[%c168_188, %c1024_189] : memref<216x2048xf32, #tpu.memory_space<vmem>>, vector<8x1024xf32>
    tpu.vector_store %arg8[%c168_188, %c1024_189], %145 {strides = array<i32>} : memref<216x2048xf32, #tpu.memory_space<vmem>>, vector<8x1024xf32>,
    %c1_190 = arith.constant 1 : index
    %c0_191 = arith.constant 0 : index
    %c228_192 = arith.constant 228 : index
    %147 = vector.load %arg1[%c1_190, %c0_191, %c228_192] : memref<2x8x1280xf32, #tpu.memory_space<vmem>>, vector<1x8x1024xf32>
    %148 = vector.shape_cast %147 : vector<1x8x1024xf32> to vector<8x1024xf32>
    %c176_193 = arith.constant 176 : index
    %c1024_194 = arith.constant 1024 : index
    %149 = vector.load %arg8[%c176_193, %c1024_194] : memref<216x2048xf32, #tpu.memory_space<vmem>>, vector<8x1024xf32>
    tpu.vector_store %arg8[%c176_193, %c1024_194], %148 {strides = array<i32>} : memref<216x2048xf32, #tpu.memory_space<vmem>>, vector<8x1024xf32>,
    %c1_195 = arith.constant 1 : index
    %c0_196 = arith.constant 0 : index
    %c229_197 = arith.constant 229 : index
    %150 = vector.load %arg1[%c1_195, %c0_196, %c229_197] : memref<2x8x1280xf32, #tpu.memory_space<vmem>>, vector<1x8x1024xf32>
    %151 = vector.shape_cast %150 : vector<1x8x1024xf32> to vector<8x1024xf32>
    %c184_198 = arith.constant 184 : index
    %c1024_199 = arith.constant 1024 : index
    %152 = vector.load %arg8[%c184_198, %c1024_199] : memref<216x2048xf32, #tpu.memory_space<vmem>>, vector<8x1024xf32>
    tpu.vector_store %arg8[%c184_198, %c1024_199], %151 {strides = array<i32>} : memref<216x2048xf32, #tpu.memory_space<vmem>>, vector<8x1024xf32>,
    %c1_200 = arith.constant 1 : index
    %c0_201 = arith.constant 0 : index
    %c237_202 = arith.constant 237 : index
    %153 = vector.load %arg1[%c1_200, %c0_201, %c237_202] : memref<2x8x1280xf32, #tpu.memory_space<vmem>>, vector<1x8x1024xf32>
    %154 = vector.shape_cast %153 : vector<1x8x1024xf32> to vector<8x1024xf32>
    %c192_203 = arith.constant 192 : index
    %c1024_204 = arith.constant 1024 : index
    %155 = vector.load %arg8[%c192_203, %c1024_204] : memref<216x2048xf32, #tpu.memory_space<vmem>>, vector<8x1024xf32>
    tpu.vector_store %arg8[%c192_203, %c1024_204], %154 {strides = array<i32>} : memref<216x2048xf32, #tpu.memory_space<vmem>>, vector<8x1024xf32>,
    %c1_205 = arith.constant 1 : index
    %c0_206 = arith.constant 0 : index
    %c238_207 = arith.constant 238 : index
    %156 = vector.load %arg1[%c1_205, %c0_206, %c238_207] : memref<2x8x1280xf32, #tpu.memory_space<vmem>>, vector<1x8x1024xf32>
    %157 = vector.shape_cast %156 : vector<1x8x1024xf32> to vector<8x1024xf32>
    %c200_208 = arith.constant 200 : index
    %c1024_209 = arith.constant 1024 : index
    %158 = vector.load %arg8[%c200_208, %c1024_209] : memref<216x2048xf32, #tpu.memory_space<vmem>>, vector<8x1024xf32>
    tpu.vector_store %arg8[%c200_208, %c1024_209], %157 {strides = array<i32>} : memref<216x2048xf32, #tpu.memory_space<vmem>>, vector<8x1024xf32>,
    %c1_210 = arith.constant 1 : index
    %c0_211 = arith.constant 0 : index
    %c239_212 = arith.constant 239 : index
    %159 = vector.load %arg1[%c1_210, %c0_211, %c239_212] : memref<2x8x1280xf32, #tpu.memory_space<vmem>>, vector<1x8x1024xf32>
    %160 = vector.shape_cast %159 : vector<1x8x1024xf32> to vector<8x1024xf32>
    %c208_213 = arith.constant 208 : index
    %c1024_214 = arith.constant 1024 : index
    %161 = vector.load %arg8[%c208_213, %c1024_214] : memref<216x2048xf32, #tpu.memory_space<vmem>>, vector<8x1024xf32>
    tpu.vector_store %arg8[%c208_213, %c1024_214], %160 {strides = array<i32>} : memref<216x2048xf32, #tpu.memory_space<vmem>>, vector<8x1024xf32>,
    %c0_215 = arith.constant 0 : index
    %c0_216 = arith.constant 0 : index
    %162 = vector.load %arg2[%c0_215, %c0_216] : memref<8x216xf32, #tpu.memory_space<vmem>>, vector<8x216xf32>
    %c0_217 = arith.constant 0 : index
    %c0_218 = arith.constant 0 : index
    %163 = vector.load %arg8[%c0_217, %c0_218] : memref<216x2048xf32, #tpu.memory_space<vmem>>, vector<216x2048xf32>
    %cst = arith.constant dense<0.000000e+00> : vector<8x2048xf32>
    %164 = tpu.matmul %162, %163, %cst {dimension_numbers = #tpu.dot_dimension_numbers<[1], [0], [0], [1], [0, 0, 1, 1], [], []>} : vector<8x216xf32>, vector<216x2048xf32>, vector<8x2048xf32> -> vector<8x2048xf32>
    %c0_219 = arith.constant 0 : index
    %c0_220 = arith.constant 0 : index
    %165 = vector.load %arg4[%c0_219, %c0_220] : memref<8x1xf32, #tpu.memory_space<vmem>>, vector<8x1xf32>
    %166 = vector.broadcast %165 : vector<8x1xf32> to vector<8x2048xf32>
    %167 = arith.addf %164, %166 : vector<8x2048xf32>
    %cst_221 = arith.constant 0.000000e+00 : f32
    %168 = vector.broadcast %cst_221 : f32 to vector<8x2048xf32>
    %169 = arith.maximumf %167, %168 : vector<8x2048xf32>
    %c0_222 = arith.constant 0 : index
    %c0_223 = arith.constant 0 : index
    %170 = vector.load %arg6[%c0_222, %c0_223] : memref<1x2048xf32, #tpu.memory_space<vmem>>, vector<1x2048xf32>
    %171 = vector.broadcast %170 : vector<1x2048xf32> to vector<8x2048xf32>
    %172 = arith.mulf %169, %171 : vector<8x2048xf32>
    %173 = vector.extract_strided_slice %172 {offsets = [0, 0], sizes = [8, 1024], strides = [1, 1]} : vector<8x2048xf32> to vector<8x1024xf32>
    %c0_224 = arith.constant 0 : index
    %c0_225 = arith.constant 0 : index
    %c128_226 = arith.constant 128 : index
    %174 = vector.load %arg9[%c0_224, %c0_225, %c128_226] : memref<2x8x1280xf32, #tpu.memory_space<vmem>>, vector<1x8x1024xf32>
    %175 = vector.shape_cast %174 : vector<1x8x1024xf32> to vector<8x1024xf32>
    %176 = vector.shape_cast %173 : vector<8x1024xf32> to vector<1x8x1024xf32>
    tpu.vector_store %arg9[%c0_224, %c0_225, %c128_226], %176 {strides = array<i32>} : memref<2x8x1280xf32, #tpu.memory_space<vmem>>, vector<1x8x1024xf32>,
    %177 = vector.extract_strided_slice %172 {offsets = [0, 1024], sizes = [8, 1024], strides = [1, 1]} : vector<8x2048xf32> to vector<8x1024xf32>
    %c1_227 = arith.constant 1 : index
    %c0_228 = arith.constant 0 : index
    %c128_229 = arith.constant 128 : index
    %178 = vector.load %arg9[%c1_227, %c0_228, %c128_229] : memref<2x8x1280xf32, #tpu.memory_space<vmem>>, vector<1x8x1024xf32>
    %179 = vector.shape_cast %178 : vector<1x8x1024xf32> to vector<8x1024xf32>
    %180 = vector.shape_cast %177 : vector<8x1024xf32> to vector<1x8x1024xf32>
    tpu.vector_store %arg9[%c1_227, %c0_228, %c128_229], %180 {strides = array<i32>} : memref<2x8x1280xf32, #tpu.memory_space<vmem>>, vector<1x8x1024xf32>,
    %c0_230 = arith.constant 0 : index
    %c0_231 = arith.constant 0 : index
    %c17_232 = arith.constant 17 : index
    %181 = vector.load %arg9[%c0_230, %c0_231, %c17_232] : memref<2x8x1280xf32, #tpu.memory_space<vmem>>, vector<1x8x1024xf32>
    %182 = vector.shape_cast %181 : vector<1x8x1024xf32> to vector<8x1024xf32>
    %c0_233 = arith.constant 0 : index
    %c0_234 = arith.constant 0 : index
    %183 = vector.load %arg8[%c0_233, %c0_234] : memref<216x2048xf32, #tpu.memory_space<vmem>>, vector<8x1024xf32>
    tpu.vector_store %arg8[%c0_233, %c0_234], %182 {strides = array<i32>} : memref<216x2048xf32, #tpu.memory_space<vmem>>, vector<8x1024xf32>,
    %c0_235 = arith.constant 0 : index
    %c0_236 = arith.constant 0 : index
    %c18_237 = arith.constant 18 : index
    %184 = vector.load %arg9[%c0_235, %c0_236, %c18_237] : memref<2x8x1280xf32, #tpu.memory_space<vmem>>, vector<1x8x1024xf32>
    %185 = vector.shape_cast %184 : vector<1x8x1024xf32> to vector<8x1024xf32>
    %c8_238 = arith.constant 8 : index
    %c0_239 = arith.constant 0 : index
    %186 = vector.load %arg8[%c8_238, %c0_239] : memref<216x2048xf32, #tpu.memory_space<vmem>>, vector<8x1024xf32>
    tpu.vector_store %arg8[%c8_238, %c0_239], %185 {strides = array<i32>} : memref<216x2048xf32, #tpu.memory_space<vmem>>, vector<8x1024xf32>,
    %c0_240 = arith.constant 0 : index
    %c0_241 = arith.constant 0 : index
    %c19_242 = arith.constant 19 : index
    %187 = vector.load %arg9[%c0_240, %c0_241, %c19_242] : memref<2x8x1280xf32, #tpu.memory_space<vmem>>, vector<1x8x1024xf32>
    %188 = vector.shape_cast %187 : vector<1x8x1024xf32> to vector<8x1024xf32>
    %c16_243 = arith.constant 16 : index
    %c0_244 = arith.constant 0 : index
    %189 = vector.load %arg8[%c16_243, %c0_244] : memref<216x2048xf32, #tpu.memory_space<vmem>>, vector<8x1024xf32>
    tpu.vector_store %arg8[%c16_243, %c0_244], %188 {strides = array<i32>} : memref<216x2048xf32, #tpu.memory_space<vmem>>, vector<8x1024xf32>,
    %c0_245 = arith.constant 0 : index
    %c0_246 = arith.constant 0 : index
    %c27_247 = arith.constant 27 : index
    %190 = vector.load %arg9[%c0_245, %c0_246, %c27_247] : memref<2x8x1280xf32, #tpu.memory_space<vmem>>, vector<1x8x1024xf32>
    %191 = vector.shape_cast %190 : vector<1x8x1024xf32> to vector<8x1024xf32>
    %c24_248 = arith.constant 24 : index
    %c0_249 = arith.constant 0 : index
    %192 = vector.load %arg8[%c24_248, %c0_249] : memref<216x2048xf32, #tpu.memory_space<vmem>>, vector<8x1024xf32>
    tpu.vector_store %arg8[%c24_248, %c0_249], %191 {strides = array<i32>} : memref<216x2048xf32, #tpu.memory_space<vmem>>, vector<8x1024xf32>,
    %c0_250 = arith.constant 0 : index
    %c0_251 = arith.constant 0 : index
    %c28_252 = arith.constant 28 : index
    %193 = vector.load %arg9[%c0_250, %c0_251, %c28_252] : memref<2x8x1280xf32, #tpu.memory_space<vmem>>, vector<1x8x1024xf32>
    %194 = vector.shape_cast %193 : vector<1x8x1024xf32> to vector<8x1024xf32>
    %c32_253 = arith.constant 32 : index
    %c0_254 = arith.constant 0 : index
    %195 = vector.load %arg8[%c32_253, %c0_254] : memref<216x2048xf32, #tpu.memory_space<vmem>>, vector<8x1024xf32>
    tpu.vector_store %arg8[%c32_253, %c0_254], %194 {strides = array<i32>} : memref<216x2048xf32, #tpu.memory_space<vmem>>, vector<8x1024xf32>,
    %c0_255 = arith.constant 0 : index
    %c0_256 = arith.constant 0 : index
    %c29_257 = arith.constant 29 : index
    %196 = vector.load %arg9[%c0_255, %c0_256, %c29_257] : memref<2x8x1280xf32, #tpu.memory_space<vmem>>, vector<1x8x1024xf32>
    %197 = vector.shape_cast %196 : vector<1x8x1024xf32> to vector<8x1024xf32>
    %c40_258 = arith.constant 40 : index
    %c0_259 = arith.constant 0 : index
    %198 = vector.load %arg8[%c40_258, %c0_259] : memref<216x2048xf32, #tpu.memory_space<vmem>>, vector<8x1024xf32>
    tpu.vector_store %arg8[%c40_258, %c0_259], %197 {strides = array<i32>} : memref<216x2048xf32, #tpu.memory_space<vmem>>, vector<8x1024xf32>,
    %c0_260 = arith.constant 0 : index
    %c0_261 = arith.constant 0 : index
    %c37_262 = arith.constant 37 : index
    %199 = vector.load %arg9[%c0_260, %c0_261, %c37_262] : memref<2x8x1280xf32, #tpu.memory_space<vmem>>, vector<1x8x1024xf32>
    %200 = vector.shape_cast %199 : vector<1x8x1024xf32> to vector<8x1024xf32>
    %c48_263 = arith.constant 48 : index
    %c0_264 = arith.constant 0 : index
    %201 = vector.load %arg8[%c48_263, %c0_264] : memref<216x2048xf32, #tpu.memory_space<vmem>>, vector<8x1024xf32>
    tpu.vector_store %arg8[%c48_263, %c0_264], %200 {strides = array<i32>} : memref<216x2048xf32, #tpu.memory_space<vmem>>, vector<8x1024xf32>,
    %c0_265 = arith.constant 0 : index
    %c0_266 = arith.constant 0 : index
    %c38_267 = arith.constant 38 : index
    %202 = vector.load %arg9[%c0_265, %c0_266, %c38_267] : memref<2x8x1280xf32, #tpu.memory_space<vmem>>, vector<1x8x1024xf32>
    %203 = vector.shape_cast %202 : vector<1x8x1024xf32> to vector<8x1024xf32>
    %c56_268 = arith.constant 56 : index
    %c0_269 = arith.constant 0 : index
    %204 = vector.load %arg8[%c56_268, %c0_269] : memref<216x2048xf32, #tpu.memory_space<vmem>>, vector<8x1024xf32>
    tpu.vector_store %arg8[%c56_268, %c0_269], %203 {strides = array<i32>} : memref<216x2048xf32, #tpu.memory_space<vmem>>, vector<8x1024xf32>,
    %c0_270 = arith.constant 0 : index
    %c0_271 = arith.constant 0 : index
    %c39_272 = arith.constant 39 : index
    %205 = vector.load %arg9[%c0_270, %c0_271, %c39_272] : memref<2x8x1280xf32, #tpu.memory_space<vmem>>, vector<1x8x1024xf32>
    %206 = vector.shape_cast %205 : vector<1x8x1024xf32> to vector<8x1024xf32>
    %c64_273 = arith.constant 64 : index
    %c0_274 = arith.constant 0 : index
    %207 = vector.load %arg8[%c64_273, %c0_274] : memref<216x2048xf32, #tpu.memory_space<vmem>>, vector<8x1024xf32>
    tpu.vector_store %arg8[%c64_273, %c0_274], %206 {strides = array<i32>} : memref<216x2048xf32, #tpu.memory_space<vmem>>, vector<8x1024xf32>,
    %c0_275 = arith.constant 0 : index
    %c0_276 = arith.constant 0 : index
    %c117_277 = arith.constant 117 : index
    %208 = vector.load %arg9[%c0_275, %c0_276, %c117_277] : memref<2x8x1280xf32, #tpu.memory_space<vmem>>, vector<1x8x1024xf32>
    %209 = vector.shape_cast %208 : vector<1x8x1024xf32> to vector<8x1024xf32>
    %c72_278 = arith.constant 72 : index
    %c0_279 = arith.constant 0 : index
    %210 = vector.load %arg8[%c72_278, %c0_279] : memref<216x2048xf32, #tpu.memory_space<vmem>>, vector<8x1024xf32>
    tpu.vector_store %arg8[%c72_278, %c0_279], %209 {strides = array<i32>} : memref<216x2048xf32, #tpu.memory_space<vmem>>, vector<8x1024xf32>,
    %c0_280 = arith.constant 0 : index
    %c0_281 = arith.constant 0 : index
    %c118_282 = arith.constant 118 : index
    %211 = vector.load %arg9[%c0_280, %c0_281, %c118_282] : memref<2x8x1280xf32, #tpu.memory_space<vmem>>, vector<1x8x1024xf32>
    %212 = vector.shape_cast %211 : vector<1x8x1024xf32> to vector<8x1024xf32>
    %c80_283 = arith.constant 80 : index
    %c0_284 = arith.constant 0 : index
    %213 = vector.load %arg8[%c80_283, %c0_284] : memref<216x2048xf32, #tpu.memory_space<vmem>>, vector<8x1024xf32>
    tpu.vector_store %arg8[%c80_283, %c0_284], %212 {strides = array<i32>} : memref<216x2048xf32, #tpu.memory_space<vmem>>, vector<8x1024xf32>,
    %c0_285 = arith.constant 0 : index
    %c0_286 = arith.constant 0 : index
    %c119_287 = arith.constant 119 : index
    %214 = vector.load %arg9[%c0_285, %c0_286, %c119_287] : memref<2x8x1280xf32, #tpu.memory_space<vmem>>, vector<1x8x1024xf32>
    %215 = vector.shape_cast %214 : vector<1x8x1024xf32> to vector<8x1024xf32>
    %c88_288 = arith.constant 88 : index
    %c0_289 = arith.constant 0 : index
    %216 = vector.load %arg8[%c88_288, %c0_289] : memref<216x2048xf32, #tpu.memory_space<vmem>>, vector<8x1024xf32>
    tpu.vector_store %arg8[%c88_288, %c0_289], %215 {strides = array<i32>} : memref<216x2048xf32, #tpu.memory_space<vmem>>, vector<8x1024xf32>,
    %c0_290 = arith.constant 0 : index
    %c0_291 = arith.constant 0 : index
    %c127_292 = arith.constant 127 : index
    %217 = vector.load %arg9[%c0_290, %c0_291, %c127_292] : memref<2x8x1280xf32, #tpu.memory_space<vmem>>, vector<1x8x1024xf32>
    %218 = vector.shape_cast %217 : vector<1x8x1024xf32> to vector<8x1024xf32>
    %c96_293 = arith.constant 96 : index
    %c0_294 = arith.constant 0 : index
    %219 = vector.load %arg8[%c96_293, %c0_294] : memref<216x2048xf32, #tpu.memory_space<vmem>>, vector<8x1024xf32>
    tpu.vector_store %arg8[%c96_293, %c0_294], %218 {strides = array<i32>} : memref<216x2048xf32, #tpu.memory_space<vmem>>, vector<8x1024xf32>,
    %c0_295 = arith.constant 0 : index
    %c0_296 = arith.constant 0 : index
    %c128_297 = arith.constant 128 : index
    %220 = vector.load %arg9[%c0_295, %c0_296, %c128_297] : memref<2x8x1280xf32, #tpu.memory_space<vmem>>, vector<1x8x1024xf32>
    %221 = vector.shape_cast %220 : vector<1x8x1024xf32> to vector<8x1024xf32>
    %c104_298 = arith.constant 104 : index
    %c0_299 = arith.constant 0 : index
    %222 = vector.load %arg8[%c104_298, %c0_299] : memref<216x2048xf32, #tpu.memory_space<vmem>>, vector<8x1024xf32>
    tpu.vector_store %arg8[%c104_298, %c0_299], %221 {strides = array<i32>} : memref<216x2048xf32, #tpu.memory_space<vmem>>, vector<8x1024xf32>,
    %c0_300 = arith.constant 0 : index
    %c0_301 = arith.constant 0 : index
    %c129_302 = arith.constant 129 : index
    %223 = vector.load %arg9[%c0_300, %c0_301, %c129_302] : memref<2x8x1280xf32, #tpu.memory_space<vmem>>, vector<1x8x1024xf32>
    %224 = vector.shape_cast %223 : vector<1x8x1024xf32> to vector<8x1024xf32>
    %c112_303 = arith.constant 112 : index
    %c0_304 = arith.constant 0 : index
    %225 = vector.load %arg8[%c112_303, %c0_304] : memref<216x2048xf32, #tpu.memory_space<vmem>>, vector<8x1024xf32>
    tpu.vector_store %arg8[%c112_303, %c0_304], %224 {strides = array<i32>} : memref<216x2048xf32, #tpu.memory_space<vmem>>, vector<8x1024xf32>,
    %c0_305 = arith.constant 0 : index
    %c0_306 = arith.constant 0 : index
    %c137_307 = arith.constant 137 : index
    %226 = vector.load %arg9[%c0_305, %c0_306, %c137_307] : memref<2x8x1280xf32, #tpu.memory_space<vmem>>, vector<1x8x1024xf32>
    %227 = vector.shape_cast %226 : vector<1x8x1024xf32> to vector<8x1024xf32>
    %c120_308 = arith.constant 120 : index
    %c0_309 = arith.constant 0 : index
    %228 = vector.load %arg8[%c120_308, %c0_309] : memref<216x2048xf32, #tpu.memory_space<vmem>>, vector<8x1024xf32>
    tpu.vector_store %arg8[%c120_308, %c0_309], %227 {strides = array<i32>} : memref<216x2048xf32, #tpu.memory_space<vmem>>, vector<8x1024xf32>,
    %c0_310 = arith.constant 0 : index
    %c0_311 = arith.constant 0 : index
    %c138_312 = arith.constant 138 : index
    %229 = vector.load %arg9[%c0_310, %c0_311, %c138_312] : memref<2x8x1280xf32, #tpu.memory_space<vmem>>, vector<1x8x1024xf32>
    %230 = vector.shape_cast %229 : vector<1x8x1024xf32> to vector<8x1024xf32>
    %c128_313 = arith.constant 128 : index
    %c0_314 = arith.constant 0 : index
    %231 = vector.load %arg8[%c128_313, %c0_314] : memref<216x2048xf32, #tpu.memory_space<vmem>>, vector<8x1024xf32>
    tpu.vector_store %arg8[%c128_313, %c0_314], %230 {strides = array<i32>} : memref<216x2048xf32, #tpu.memory_space<vmem>>, vector<8x1024xf32>,
    %c0_315 = arith.constant 0 : index
    %c0_316 = arith.constant 0 : index
    %c139_317 = arith.constant 139 : index
    %232 = vector.load %arg9[%c0_315, %c0_316, %c139_317] : memref<2x8x1280xf32, #tpu.memory_space<vmem>>, vector<1x8x1024xf32>
    %233 = vector.shape_cast %232 : vector<1x8x1024xf32> to vector<8x1024xf32>
    %c136_318 = arith.constant 136 : index
    %c0_319 = arith.constant 0 : index
    %234 = vector.load %arg8[%c136_318, %c0_319] : memref<216x2048xf32, #tpu.memory_space<vmem>>, vector<8x1024xf32>
    tpu.vector_store %arg8[%c136_318, %c0_319], %233 {strides = array<i32>} : memref<216x2048xf32, #tpu.memory_space<vmem>>, vector<8x1024xf32>,
    %c0_320 = arith.constant 0 : index
    %c0_321 = arith.constant 0 : index
    %c217_322 = arith.constant 217 : index
    %235 = vector.load %arg9[%c0_320, %c0_321, %c217_322] : memref<2x8x1280xf32, #tpu.memory_space<vmem>>, vector<1x8x1024xf32>
    %236 = vector.shape_cast %235 : vector<1x8x1024xf32> to vector<8x1024xf32>
    %c144_323 = arith.constant 144 : index
    %c0_324 = arith.constant 0 : index
    %237 = vector.load %arg8[%c144_323, %c0_324] : memref<216x2048xf32, #tpu.memory_space<vmem>>, vector<8x1024xf32>
    tpu.vector_store %arg8[%c144_323, %c0_324], %236 {strides = array<i32>} : memref<216x2048xf32, #tpu.memory_space<vmem>>, vector<8x1024xf32>,
    %c0_325 = arith.constant 0 : index
    %c0_326 = arith.constant 0 : index
    %c218_327 = arith.constant 218 : index
    %238 = vector.load %arg9[%c0_325, %c0_326, %c218_327] : memref<2x8x1280xf32, #tpu.memory_space<vmem>>, vector<1x8x1024xf32>
    %239 = vector.shape_cast %238 : vector<1x8x1024xf32> to vector<8x1024xf32>
    %c152_328 = arith.constant 152 : index
    %c0_329 = arith.constant 0 : index
    %240 = vector.load %arg8[%c152_328, %c0_329] : memref<216x2048xf32, #tpu.memory_space<vmem>>, vector<8x1024xf32>
    tpu.vector_store %arg8[%c152_328, %c0_329], %239 {strides = array<i32>} : memref<216x2048xf32, #tpu.memory_space<vmem>>, vector<8x1024xf32>,
    %c0_330 = arith.constant 0 : index
    %c0_331 = arith.constant 0 : index
    %c219_332 = arith.constant 219 : index
    %241 = vector.load %arg9[%c0_330, %c0_331, %c219_332] : memref<2x8x1280xf32, #tpu.memory_space<vmem>>, vector<1x8x1024xf32>
    %242 = vector.shape_cast %241 : vector<1x8x1024xf32> to vector<8x1024xf32>
    %c160_333 = arith.constant 160 : index
    %c0_334 = arith.constant 0 : index
    %243 = vector.load %arg8[%c160_333, %c0_334] : memref<216x2048xf32, #tpu.memory_space<vmem>>, vector<8x1024xf32>
    tpu.vector_store %arg8[%c160_333, %c0_334], %242 {strides = array<i32>} : memref<216x2048xf32, #tpu.memory_space<vmem>>, vector<8x1024xf32>,
    %c0_335 = arith.constant 0 : index
    %c0_336 = arith.constant 0 : index
    %c227_337 = arith.constant 227 : index
    %244 = vector.load %arg9[%c0_335, %c0_336, %c227_337] : memref<2x8x1280xf32, #tpu.memory_space<vmem>>, vector<1x8x1024xf32>
    %245 = vector.shape_cast %244 : vector<1x8x1024xf32> to vector<8x1024xf32>
    %c168_338 = arith.constant 168 : index
    %c0_339 = arith.constant 0 : index
    %246 = vector.load %arg8[%c168_338, %c0_339] : memref<216x2048xf32, #tpu.memory_space<vmem>>, vector<8x1024xf32>
    tpu.vector_store %arg8[%c168_338, %c0_339], %245 {strides = array<i32>} : memref<216x2048xf32, #tpu.memory_space<vmem>>, vector<8x1024xf32>,
    %c0_340 = arith.constant 0 : index
    %c0_341 = arith.constant 0 : index
    %c228_342 = arith.constant 228 : index
    %247 = vector.load %arg9[%c0_340, %c0_341, %c228_342] : memref<2x8x1280xf32, #tpu.memory_space<vmem>>, vector<1x8x1024xf32>
    %248 = vector.shape_cast %247 : vector<1x8x1024xf32> to vector<8x1024xf32>
    %c176_343 = arith.constant 176 : index
    %c0_344 = arith.constant 0 : index
    %249 = vector.load %arg8[%c176_343, %c0_344] : memref<216x2048xf32, #tpu.memory_space<vmem>>, vector<8x1024xf32>
    tpu.vector_store %arg8[%c176_343, %c0_344], %248 {strides = array<i32>} : memref<216x2048xf32, #tpu.memory_space<vmem>>, vector<8x1024xf32>,
    %c0_345 = arith.constant 0 : index
    %c0_346 = arith.constant 0 : index
    %c229_347 = arith.constant 229 : index
    %250 = vector.load %arg9[%c0_345, %c0_346, %c229_347] : memref<2x8x1280xf32, #tpu.memory_space<vmem>>, vector<1x8x1024xf32>
    %251 = vector.shape_cast %250 : vector<1x8x1024xf32> to vector<8x1024xf32>
    %c184_348 = arith.constant 184 : index
    %c0_349 = arith.constant 0 : index
    %252 = vector.load %arg8[%c184_348, %c0_349] : memref<216x2048xf32, #tpu.memory_space<vmem>>, vector<8x1024xf32>
    tpu.vector_store %arg8[%c184_348, %c0_349], %251 {strides = array<i32>} : memref<216x2048xf32, #tpu.memory_space<vmem>>, vector<8x1024xf32>,
    %c0_350 = arith.constant 0 : index
    %c0_351 = arith.constant 0 : index
    %c237_352 = arith.constant 237 : index
    %253 = vector.load %arg9[%c0_350, %c0_351, %c237_352] : memref<2x8x1280xf32, #tpu.memory_space<vmem>>, vector<1x8x1024xf32>
    %254 = vector.shape_cast %253 : vector<1x8x1024xf32> to vector<8x1024xf32>
    %c192_353 = arith.constant 192 : index
    %c0_354 = arith.constant 0 : index
    %255 = vector.load %arg8[%c192_353, %c0_354] : memref<216x2048xf32, #tpu.memory_space<vmem>>, vector<8x1024xf32>
    tpu.vector_store %arg8[%c192_353, %c0_354], %254 {strides = array<i32>} : memref<216x2048xf32, #tpu.memory_space<vmem>>, vector<8x1024xf32>,
    %c0_355 = arith.constant 0 : index
    %c0_356 = arith.constant 0 : index
    %c238_357 = arith.constant 238 : index
    %256 = vector.load %arg9[%c0_355, %c0_356, %c238_357] : memref<2x8x1280xf32, #tpu.memory_space<vmem>>, vector<1x8x1024xf32>
    %257 = vector.shape_cast %256 : vector<1x8x1024xf32> to vector<8x1024xf32>
    %c200_358 = arith.constant 200 : index
    %c0_359 = arith.constant 0 : index
    %258 = vector.load %arg8[%c200_358, %c0_359] : memref<216x2048xf32, #tpu.memory_space<vmem>>, vector<8x1024xf32>
    tpu.vector_store %arg8[%c200_358, %c0_359], %257 {strides = array<i32>} : memref<216x2048xf32, #tpu.memory_space<vmem>>, vector<8x1024xf32>,
    %c0_360 = arith.constant 0 : index
    %c0_361 = arith.constant 0 : index
    %c239_362 = arith.constant 239 : index
    %259 = vector.load %arg9[%c0_360, %c0_361, %c239_362] : memref<2x8x1280xf32, #tpu.memory_space<vmem>>, vector<1x8x1024xf32>
    %260 = vector.shape_cast %259 : vector<1x8x1024xf32> to vector<8x1024xf32>
    %c208_363 = arith.constant 208 : index
    %c0_364 = arith.constant 0 : index
    %261 = vector.load %arg8[%c208_363, %c0_364] : memref<216x2048xf32, #tpu.memory_space<vmem>>, vector<8x1024xf32>
    tpu.vector_store %arg8[%c208_363, %c0_364], %260 {strides = array<i32>} : memref<216x2048xf32, #tpu.memory_space<vmem>>, vector<8x1024xf32>,
    %c1_365 = arith.constant 1 : index
    %c0_366 = arith.constant 0 : index
    %c17_367 = arith.constant 17 : index
    %262 = vector.load %arg9[%c1_365, %c0_366, %c17_367] : memref<2x8x1280xf32, #tpu.memory_space<vmem>>, vector<1x8x1024xf32>
    %263 = vector.shape_cast %262 : vector<1x8x1024xf32> to vector<8x1024xf32>
    %c0_368 = arith.constant 0 : index
    %c1024_369 = arith.constant 1024 : index
    %264 = vector.load %arg8[%c0_368, %c1024_369] : memref<216x2048xf32, #tpu.memory_space<vmem>>, vector<8x1024xf32>
    tpu.vector_store %arg8[%c0_368, %c1024_369], %263 {strides = array<i32>} : memref<216x2048xf32, #tpu.memory_space<vmem>>, vector<8x1024xf32>,
    %c1_370 = arith.constant 1 : index
    %c0_371 = arith.constant 0 : index
    %c18_372 = arith.constant 18 : index
    %265 = vector.load %arg9[%c1_370, %c0_371, %c18_372] : memref<2x8x1280xf32, #tpu.memory_space<vmem>>, vector<1x8x1024xf32>
    %266 = vector.shape_cast %265 : vector<1x8x1024xf32> to vector<8x1024xf32>
    %c8_373 = arith.constant 8 : index
    %c1024_374 = arith.constant 1024 : index
    %267 = vector.load %arg8[%c8_373, %c1024_374] : memref<216x2048xf32, #tpu.memory_space<vmem>>, vector<8x1024xf32>
    tpu.vector_store %arg8[%c8_373, %c1024_374], %266 {strides = array<i32>} : memref<216x2048xf32, #tpu.memory_space<vmem>>, vector<8x1024xf32>,
    %c1_375 = arith.constant 1 : index
    %c0_376 = arith.constant 0 : index
    %c19_377 = arith.constant 19 : index
    %268 = vector.load %arg9[%c1_375, %c0_376, %c19_377] : memref<2x8x1280xf32, #tpu.memory_space<vmem>>, vector<1x8x1024xf32>
    %269 = vector.shape_cast %268 : vector<1x8x1024xf32> to vector<8x1024xf32>
    %c16_378 = arith.constant 16 : index
    %c1024_379 = arith.constant 1024 : index
    %270 = vector.load %arg8[%c16_378, %c1024_379] : memref<216x2048xf32, #tpu.memory_space<vmem>>, vector<8x1024xf32>
    tpu.vector_store %arg8[%c16_378, %c1024_379], %269 {strides = array<i32>} : memref<216x2048xf32, #tpu.memory_space<vmem>>, vector<8x1024xf32>,
    %c1_380 = arith.constant 1 : index
    %c0_381 = arith.constant 0 : index
    %c27_382 = arith.constant 27 : index
    %271 = vector.load %arg9[%c1_380, %c0_381, %c27_382] : memref<2x8x1280xf32, #tpu.memory_space<vmem>>, vector<1x8x1024xf32>
    %272 = vector.shape_cast %271 : vector<1x8x1024xf32> to vector<8x1024xf32>
    %c24_383 = arith.constant 24 : index
    %c1024_384 = arith.constant 1024 : index
    %273 = vector.load %arg8[%c24_383, %c1024_384] : memref<216x2048xf32, #tpu.memory_space<vmem>>, vector<8x1024xf32>
    tpu.vector_store %arg8[%c24_383, %c1024_384], %272 {strides = array<i32>} : memref<216x2048xf32, #tpu.memory_space<vmem>>, vector<8x1024xf32>,
    %c1_385 = arith.constant 1 : index
    %c0_386 = arith.constant 0 : index
    %c28_387 = arith.constant 28 : index
    %274 = vector.load %arg9[%c1_385, %c0_386, %c28_387] : memref<2x8x1280xf32, #tpu.memory_space<vmem>>, vector<1x8x1024xf32>
    %275 = vector.shape_cast %274 : vector<1x8x1024xf32> to vector<8x1024xf32>
    %c32_388 = arith.constant 32 : index
    %c1024_389 = arith.constant 1024 : index
    %276 = vector.load %arg8[%c32_388, %c1024_389] : memref<216x2048xf32, #tpu.memory_space<vmem>>, vector<8x1024xf32>
    tpu.vector_store %arg8[%c32_388, %c1024_389], %275 {strides = array<i32>} : memref<216x2048xf32, #tpu.memory_space<vmem>>, vector<8x1024xf32>,
    %c1_390 = arith.constant 1 : index
    %c0_391 = arith.constant 0 : index
    %c29_392 = arith.constant 29 : index
    %277 = vector.load %arg9[%c1_390, %c0_391, %c29_392] : memref<2x8x1280xf32, #tpu.memory_space<vmem>>, vector<1x8x1024xf32>
    %278 = vector.shape_cast %277 : vector<1x8x1024xf32> to vector<8x1024xf32>
    %c40_393 = arith.constant 40 : index
    %c1024_394 = arith.constant 1024 : index
    %279 = vector.load %arg8[%c40_393, %c1024_394] : memref<216x2048xf32, #tpu.memory_space<vmem>>, vector<8x1024xf32>
    tpu.vector_store %arg8[%c40_393, %c1024_394], %278 {strides = array<i32>} : memref<216x2048xf32, #tpu.memory_space<vmem>>, vector<8x1024xf32>,
    %c1_395 = arith.constant 1 : index
    %c0_396 = arith.constant 0 : index
    %c37_397 = arith.constant 37 : index
    %280 = vector.load %arg9[%c1_395, %c0_396, %c37_397] : memref<2x8x1280xf32, #tpu.memory_space<vmem>>, vector<1x8x1024xf32>
    %281 = vector.shape_cast %280 : vector<1x8x1024xf32> to vector<8x1024xf32>
    %c48_398 = arith.constant 48 : index
    %c1024_399 = arith.constant 1024 : index
    %282 = vector.load %arg8[%c48_398, %c1024_399] : memref<216x2048xf32, #tpu.memory_space<vmem>>, vector<8x1024xf32>
    tpu.vector_store %arg8[%c48_398, %c1024_399], %281 {strides = array<i32>} : memref<216x2048xf32, #tpu.memory_space<vmem>>, vector<8x1024xf32>,
    %c1_400 = arith.constant 1 : index
    %c0_401 = arith.constant 0 : index
    %c38_402 = arith.constant 38 : index
    %283 = vector.load %arg9[%c1_400, %c0_401, %c38_402] : memref<2x8x1280xf32, #tpu.memory_space<vmem>>, vector<1x8x1024xf32>
    %284 = vector.shape_cast %283 : vector<1x8x1024xf32> to vector<8x1024xf32>
    %c56_403 = arith.constant 56 : index
    %c1024_404 = arith.constant 1024 : index
    %285 = vector.load %arg8[%c56_403, %c1024_404] : memref<216x2048xf32, #tpu.memory_space<vmem>>, vector<8x1024xf32>
    tpu.vector_store %arg8[%c56_403, %c1024_404], %284 {strides = array<i32>} : memref<216x2048xf32, #tpu.memory_space<vmem>>, vector<8x1024xf32>,
    %c1_405 = arith.constant 1 : index
    %c0_406 = arith.constant 0 : index
    %c39_407 = arith.constant 39 : index
    %286 = vector.load %arg9[%c1_405, %c0_406, %c39_407] : memref<2x8x1280xf32, #tpu.memory_space<vmem>>, vector<1x8x1024xf32>
    %287 = vector.shape_cast %286 : vector<1x8x1024xf32> to vector<8x1024xf32>
    %c64_408 = arith.constant 64 : index
    %c1024_409 = arith.constant 1024 : index
    %288 = vector.load %arg8[%c64_408, %c1024_409] : memref<216x2048xf32, #tpu.memory_space<vmem>>, vector<8x1024xf32>
    tpu.vector_store %arg8[%c64_408, %c1024_409], %287 {strides = array<i32>} : memref<216x2048xf32, #tpu.memory_space<vmem>>, vector<8x1024xf32>,
    %c1_410 = arith.constant 1 : index
    %c0_411 = arith.constant 0 : index
    %c117_412 = arith.constant 117 : index
    %289 = vector.load %arg9[%c1_410, %c0_411, %c117_412] : memref<2x8x1280xf32, #tpu.memory_space<vmem>>, vector<1x8x1024xf32>
    %290 = vector.shape_cast %289 : vector<1x8x1024xf32> to vector<8x1024xf32>
    %c72_413 = arith.constant 72 : index
    %c1024_414 = arith.constant 1024 : index
    %291 = vector.load %arg8[%c72_413, %c1024_414] : memref<216x2048xf32, #tpu.memory_space<vmem>>, vector<8x1024xf32>
    tpu.vector_store %arg8[%c72_413, %c1024_414], %290 {strides = array<i32>} : memref<216x2048xf32, #tpu.memory_space<vmem>>, vector<8x1024xf32>,
    %c1_415 = arith.constant 1 : index
    %c0_416 = arith.constant 0 : index
    %c118_417 = arith.constant 118 : index
    %292 = vector.load %arg9[%c1_415, %c0_416, %c118_417] : memref<2x8x1280xf32, #tpu.memory_space<vmem>>, vector<1x8x1024xf32>
    %293 = vector.shape_cast %292 : vector<1x8x1024xf32> to vector<8x1024xf32>
    %c80_418 = arith.constant 80 : index
    %c1024_419 = arith.constant 1024 : index
    %294 = vector.load %arg8[%c80_418, %c1024_419] : memref<216x2048xf32, #tpu.memory_space<vmem>>, vector<8x1024xf32>
    tpu.vector_store %arg8[%c80_418, %c1024_419], %293 {strides = array<i32>} : memref<216x2048xf32, #tpu.memory_space<vmem>>, vector<8x1024xf32>,
    %c1_420 = arith.constant 1 : index
    %c0_421 = arith.constant 0 : index
    %c119_422 = arith.constant 119 : index
    %295 = vector.load %arg9[%c1_420, %c0_421, %c119_422] : memref<2x8x1280xf32, #tpu.memory_space<vmem>>, vector<1x8x1024xf32>
    %296 = vector.shape_cast %295 : vector<1x8x1024xf32> to vector<8x1024xf32>
    %c88_423 = arith.constant 88 : index
    %c1024_424 = arith.constant 1024 : index
    %297 = vector.load %arg8[%c88_423, %c1024_424] : memref<216x2048xf32, #tpu.memory_space<vmem>>, vector<8x1024xf32>
    tpu.vector_store %arg8[%c88_423, %c1024_424], %296 {strides = array<i32>} : memref<216x2048xf32, #tpu.memory_space<vmem>>, vector<8x1024xf32>,
    %c1_425 = arith.constant 1 : index
    %c0_426 = arith.constant 0 : index
    %c127_427 = arith.constant 127 : index
    %298 = vector.load %arg9[%c1_425, %c0_426, %c127_427] : memref<2x8x1280xf32, #tpu.memory_space<vmem>>, vector<1x8x1024xf32>
    %299 = vector.shape_cast %298 : vector<1x8x1024xf32> to vector<8x1024xf32>
    %c96_428 = arith.constant 96 : index
    %c1024_429 = arith.constant 1024 : index
    %300 = vector.load %arg8[%c96_428, %c1024_429] : memref<216x2048xf32, #tpu.memory_space<vmem>>, vector<8x1024xf32>
    tpu.vector_store %arg8[%c96_428, %c1024_429], %299 {strides = array<i32>} : memref<216x2048xf32, #tpu.memory_space<vmem>>, vector<8x1024xf32>,
    %c1_430 = arith.constant 1 : index
    %c0_431 = arith.constant 0 : index
    %c128_432 = arith.constant 128 : index
    %301 = vector.load %arg9[%c1_430, %c0_431, %c128_432] : memref<2x8x1280xf32, #tpu.memory_space<vmem>>, vector<1x8x1024xf32>
    %302 = vector.shape_cast %301 : vector<1x8x1024xf32> to vector<8x1024xf32>
    %c104_433 = arith.constant 104 : index
    %c1024_434 = arith.constant 1024 : index
    %303 = vector.load %arg8[%c104_433, %c1024_434] : memref<216x2048xf32, #tpu.memory_space<vmem>>, vector<8x1024xf32>
    tpu.vector_store %arg8[%c104_433, %c1024_434], %302 {strides = array<i32>} : memref<216x2048xf32, #tpu.memory_space<vmem>>, vector<8x1024xf32>,
    %c1_435 = arith.constant 1 : index
    %c0_436 = arith.constant 0 : index
    %c129_437 = arith.constant 129 : index
    %304 = vector.load %arg9[%c1_435, %c0_436, %c129_437] : memref<2x8x1280xf32, #tpu.memory_space<vmem>>, vector<1x8x1024xf32>
    %305 = vector.shape_cast %304 : vector<1x8x1024xf32> to vector<8x1024xf32>
    %c112_438 = arith.constant 112 : index
    %c1024_439 = arith.constant 1024 : index
    %306 = vector.load %arg8[%c112_438, %c1024_439] : memref<216x2048xf32, #tpu.memory_space<vmem>>, vector<8x1024xf32>
    tpu.vector_store %arg8[%c112_438, %c1024_439], %305 {strides = array<i32>} : memref<216x2048xf32, #tpu.memory_space<vmem>>, vector<8x1024xf32>,
    %c1_440 = arith.constant 1 : index
    %c0_441 = arith.constant 0 : index
    %c137_442 = arith.constant 137 : index
    %307 = vector.load %arg9[%c1_440, %c0_441, %c137_442] : memref<2x8x1280xf32, #tpu.memory_space<vmem>>, vector<1x8x1024xf32>
    %308 = vector.shape_cast %307 : vector<1x8x1024xf32> to vector<8x1024xf32>
    %c120_443 = arith.constant 120 : index
    %c1024_444 = arith.constant 1024 : index
    %309 = vector.load %arg8[%c120_443, %c1024_444] : memref<216x2048xf32, #tpu.memory_space<vmem>>, vector<8x1024xf32>
    tpu.vector_store %arg8[%c120_443, %c1024_444], %308 {strides = array<i32>} : memref<216x2048xf32, #tpu.memory_space<vmem>>, vector<8x1024xf32>,
    %c1_445 = arith.constant 1 : index
    %c0_446 = arith.constant 0 : index
    %c138_447 = arith.constant 138 : index
    %310 = vector.load %arg9[%c1_445, %c0_446, %c138_447] : memref<2x8x1280xf32, #tpu.memory_space<vmem>>, vector<1x8x1024xf32>
    %311 = vector.shape_cast %310 : vector<1x8x1024xf32> to vector<8x1024xf32>
    %c128_448 = arith.constant 128 : index
    %c1024_449 = arith.constant 1024 : index
    %312 = vector.load %arg8[%c128_448, %c1024_449] : memref<216x2048xf32, #tpu.memory_space<vmem>>, vector<8x1024xf32>
    tpu.vector_store %arg8[%c128_448, %c1024_449], %311 {strides = array<i32>} : memref<216x2048xf32, #tpu.memory_space<vmem>>, vector<8x1024xf32>,
    %c1_450 = arith.constant 1 : index
    %c0_451 = arith.constant 0 : index
    %c139_452 = arith.constant 139 : index
    %313 = vector.load %arg9[%c1_450, %c0_451, %c139_452] : memref<2x8x1280xf32, #tpu.memory_space<vmem>>, vector<1x8x1024xf32>
    %314 = vector.shape_cast %313 : vector<1x8x1024xf32> to vector<8x1024xf32>
    %c136_453 = arith.constant 136 : index
    %c1024_454 = arith.constant 1024 : index
    %315 = vector.load %arg8[%c136_453, %c1024_454] : memref<216x2048xf32, #tpu.memory_space<vmem>>, vector<8x1024xf32>
    tpu.vector_store %arg8[%c136_453, %c1024_454], %314 {strides = array<i32>} : memref<216x2048xf32, #tpu.memory_space<vmem>>, vector<8x1024xf32>,
    %c1_455 = arith.constant 1 : index
    %c0_456 = arith.constant 0 : index
    %c217_457 = arith.constant 217 : index
    %316 = vector.load %arg9[%c1_455, %c0_456, %c217_457] : memref<2x8x1280xf32, #tpu.memory_space<vmem>>, vector<1x8x1024xf32>
    %317 = vector.shape_cast %316 : vector<1x8x1024xf32> to vector<8x1024xf32>
    %c144_458 = arith.constant 144 : index
    %c1024_459 = arith.constant 1024 : index
    %318 = vector.load %arg8[%c144_458, %c1024_459] : memref<216x2048xf32, #tpu.memory_space<vmem>>, vector<8x1024xf32>
    tpu.vector_store %arg8[%c144_458, %c1024_459], %317 {strides = array<i32>} : memref<216x2048xf32, #tpu.memory_space<vmem>>, vector<8x1024xf32>,
    %c1_460 = arith.constant 1 : index
    %c0_461 = arith.constant 0 : index
    %c218_462 = arith.constant 218 : index
    %319 = vector.load %arg9[%c1_460, %c0_461, %c218_462] : memref<2x8x1280xf32, #tpu.memory_space<vmem>>, vector<1x8x1024xf32>
    %320 = vector.shape_cast %319 : vector<1x8x1024xf32> to vector<8x1024xf32>
    %c152_463 = arith.constant 152 : index
    %c1024_464 = arith.constant 1024 : index
    %321 = vector.load %arg8[%c152_463, %c1024_464] : memref<216x2048xf32, #tpu.memory_space<vmem>>, vector<8x1024xf32>
    tpu.vector_store %arg8[%c152_463, %c1024_464], %320 {strides = array<i32>} : memref<216x2048xf32, #tpu.memory_space<vmem>>, vector<8x1024xf32>,
    %c1_465 = arith.constant 1 : index
    %c0_466 = arith.constant 0 : index
    %c219_467 = arith.constant 219 : index
    %322 = vector.load %arg9[%c1_465, %c0_466, %c219_467] : memref<2x8x1280xf32, #tpu.memory_space<vmem>>, vector<1x8x1024xf32>
    %323 = vector.shape_cast %322 : vector<1x8x1024xf32> to vector<8x1024xf32>
    %c160_468 = arith.constant 160 : index
    %c1024_469 = arith.constant 1024 : index
    %324 = vector.load %arg8[%c160_468, %c1024_469] : memref<216x2048xf32, #tpu.memory_space<vmem>>, vector<8x1024xf32>
    tpu.vector_store %arg8[%c160_468, %c1024_469], %323 {strides = array<i32>} : memref<216x2048xf32, #tpu.memory_space<vmem>>, vector<8x1024xf32>,
    %c1_470 = arith.constant 1 : index
    %c0_471 = arith.constant 0 : index
    %c227_472 = arith.constant 227 : index
    %325 = vector.load %arg9[%c1_470, %c0_471, %c227_472] : memref<2x8x1280xf32, #tpu.memory_space<vmem>>, vector<1x8x1024xf32>
    %326 = vector.shape_cast %325 : vector<1x8x1024xf32> to vector<8x1024xf32>
    %c168_473 = arith.constant 168 : index
    %c1024_474 = arith.constant 1024 : index
    %327 = vector.load %arg8[%c168_473, %c1024_474] : memref<216x2048xf32, #tpu.memory_space<vmem>>, vector<8x1024xf32>
    tpu.vector_store %arg8[%c168_473, %c1024_474], %326 {strides = array<i32>} : memref<216x2048xf32, #tpu.memory_space<vmem>>, vector<8x1024xf32>,
    %c1_475 = arith.constant 1 : index
    %c0_476 = arith.constant 0 : index
    %c228_477 = arith.constant 228 : index
    %328 = vector.load %arg9[%c1_475, %c0_476, %c228_477] : memref<2x8x1280xf32, #tpu.memory_space<vmem>>, vector<1x8x1024xf32>
    %329 = vector.shape_cast %328 : vector<1x8x1024xf32> to vector<8x1024xf32>
    %c176_478 = arith.constant 176 : index
    %c1024_479 = arith.constant 1024 : index
    %330 = vector.load %arg8[%c176_478, %c1024_479] : memref<216x2048xf32, #tpu.memory_space<vmem>>, vector<8x1024xf32>
    tpu.vector_store %arg8[%c176_478, %c1024_479], %329 {strides = array<i32>} : memref<216x2048xf32, #tpu.memory_space<vmem>>, vector<8x1024xf32>,
    %c1_480 = arith.constant 1 : index
    %c0_481 = arith.constant 0 : index
    %c229_482 = arith.constant 229 : index
    %331 = vector.load %arg9[%c1_480, %c0_481, %c229_482] : memref<2x8x1280xf32, #tpu.memory_space<vmem>>, vector<1x8x1024xf32>
    %332 = vector.shape_cast %331 : vector<1x8x1024xf32> to vector<8x1024xf32>
    %c184_483 = arith.constant 184 : index
    %c1024_484 = arith.constant 1024 : index
    %333 = vector.load %arg8[%c184_483, %c1024_484] : memref<216x2048xf32, #tpu.memory_space<vmem>>, vector<8x1024xf32>
    tpu.vector_store %arg8[%c184_483, %c1024_484], %332 {strides = array<i32>} : memref<216x2048xf32, #tpu.memory_space<vmem>>, vector<8x1024xf32>,
    %c1_485 = arith.constant 1 : index
    %c0_486 = arith.constant 0 : index
    %c237_487 = arith.constant 237 : index
    %334 = vector.load %arg9[%c1_485, %c0_486, %c237_487] : memref<2x8x1280xf32, #tpu.memory_space<vmem>>, vector<1x8x1024xf32>
    %335 = vector.shape_cast %334 : vector<1x8x1024xf32> to vector<8x1024xf32>
    %c192_488 = arith.constant 192 : index
    %c1024_489 = arith.constant 1024 : index
    %336 = vector.load %arg8[%c192_488, %c1024_489] : memref<216x2048xf32, #tpu.memory_space<vmem>>, vector<8x1024xf32>
    tpu.vector_store %arg8[%c192_488, %c1024_489], %335 {strides = array<i32>} : memref<216x2048xf32, #tpu.memory_space<vmem>>, vector<8x1024xf32>,
    %c1_490 = arith.constant 1 : index
    %c0_491 = arith.constant 0 : index
    %c238_492 = arith.constant 238 : index
    %337 = vector.load %arg9[%c1_490, %c0_491, %c238_492] : memref<2x8x1280xf32, #tpu.memory_space<vmem>>, vector<1x8x1024xf32>
    %338 = vector.shape_cast %337 : vector<1x8x1024xf32> to vector<8x1024xf32>
    %c200_493 = arith.constant 200 : index
    %c1024_494 = arith.constant 1024 : index
    %339 = vector.load %arg8[%c200_493, %c1024_494] : memref<216x2048xf32, #tpu.memory_space<vmem>>, vector<8x1024xf32>
    tpu.vector_store %arg8[%c200_493, %c1024_494], %338 {strides = array<i32>} : memref<216x2048xf32, #tpu.memory_space<vmem>>, vector<8x1024xf32>,
    %c1_495 = arith.constant 1 : index
    %c0_496 = arith.constant 0 : index
    %c239_497 = arith.constant 239 : index
    %340 = vector.load %arg9[%c1_495, %c0_496, %c239_497] : memref<2x8x1280xf32, #tpu.memory_space<vmem>>, vector<1x8x1024xf32>
    %341 = vector.shape_cast %340 : vector<1x8x1024xf32> to vector<8x1024xf32>
    %c208_498 = arith.constant 208 : index
    %c1024_499 = arith.constant 1024 : index
    %342 = vector.load %arg8[%c208_498, %c1024_499] : memref<216x2048xf32, #tpu.memory_space<vmem>>, vector<8x1024xf32>
    tpu.vector_store %arg8[%c208_498, %c1024_499], %341 {strides = array<i32>} : memref<216x2048xf32, #tpu.memory_space<vmem>>, vector<8x1024xf32>,
    %c0_500 = arith.constant 0 : index
    %c0_501 = arith.constant 0 : index
    %343 = vector.load %arg3[%c0_500, %c0_501] : memref<8x216xf32, #tpu.memory_space<vmem>>, vector<8x216xf32>
    %c0_502 = arith.constant 0 : index
    %c0_503 = arith.constant 0 : index
    %344 = vector.load %arg8[%c0_502, %c0_503] : memref<216x2048xf32, #tpu.memory_space<vmem>>, vector<216x2048xf32>
    %cst_504 = arith.constant dense<0.000000e+00> : vector<8x2048xf32>
    %345 = tpu.matmul %343, %344, %cst_504 {dimension_numbers = #tpu.dot_dimension_numbers<[1], [0], [0], [1], [0, 0, 1, 1], [], []>} : vector<8x216xf32>, vector<216x2048xf32>, vector<8x2048xf32> -> vector<8x2048xf32>
    %c0_505 = arith.constant 0 : index
    %c0_506 = arith.constant 0 : index
    %346 = vector.load %arg5[%c0_505, %c0_506] : memref<8x1xf32, #tpu.memory_space<vmem>>, vector<8x1xf32>
    %347 = vector.broadcast %346 : vector<8x1xf32> to vector<8x2048xf32>
    %348 = arith.addf %345, %347 : vector<8x2048xf32>
    %c0_507 = arith.constant 0 : index
    %c0_508 = arith.constant 0 : index
    %c128_509 = arith.constant 128 : index
    %349 = vector.load %arg1[%c0_507, %c0_508, %c128_509] : memref<2x8x1280xf32, #tpu.memory_space<vmem>>, vector<1x8x1024xf32>
    %350 = vector.shape_cast %349 : vector<1x8x1024xf32> to vector<8x1024xf32>
    %351 = vector.extract_strided_slice %348 {offsets = [0, 0], sizes = [8, 1024], strides = [1, 1]} : vector<8x2048xf32> to vector<8x1024xf32>
    %352 = arith.addf %351, %350 : vector<8x1024xf32>
    %cst_510 = arith.constant 0.000000e+00 : f32
    %353 = vector.broadcast %cst_510 : f32 to vector<8x1024xf32>
    %354 = arith.maximumf %352, %353 : vector<8x1024xf32>
    %c0_511 = arith.constant 0 : index
    %c0_512 = arith.constant 0 : index
    %c0_513 = arith.constant 0 : index
    %355 = vector.load %arg7[%c0_511, %c0_512, %c0_513] : memref<2x8x1024xf32, #tpu.memory_space<vmem>>, vector<1x8x1024xf32>
    %356 = vector.shape_cast %355 : vector<1x8x1024xf32> to vector<8x1024xf32>
    %357 = vector.shape_cast %354 : vector<8x1024xf32> to vector<1x8x1024xf32>
    tpu.vector_store %arg7[%c0_511, %c0_512, %c0_513], %357 {strides = array<i32>} : memref<2x8x1024xf32, #tpu.memory_space<vmem>>, vector<1x8x1024xf32>,
    %c1_514 = arith.constant 1 : index
    %c0_515 = arith.constant 0 : index
    %c128_516 = arith.constant 128 : index
    %358 = vector.load %arg1[%c1_514, %c0_515, %c128_516] : memref<2x8x1280xf32, #tpu.memory_space<vmem>>, vector<1x8x1024xf32>
    %359 = vector.shape_cast %358 : vector<1x8x1024xf32> to vector<8x1024xf32>
    %360 = vector.extract_strided_slice %348 {offsets = [0, 1024], sizes = [8, 1024], strides = [1, 1]} : vector<8x2048xf32> to vector<8x1024xf32>
    %361 = arith.addf %360, %359 : vector<8x1024xf32>
    %cst_517 = arith.constant 0.000000e+00 : f32
    %362 = vector.broadcast %cst_517 : f32 to vector<8x1024xf32>
    %363 = arith.maximumf %361, %362 : vector<8x1024xf32>
    %c1_518 = arith.constant 1 : index
    %c0_519 = arith.constant 0 : index
    %c0_520 = arith.constant 0 : index
    %364 = vector.load %arg7[%c1_518, %c0_519, %c0_520] : memref<2x8x1024xf32, #tpu.memory_space<vmem>>, vector<1x8x1024xf32>
    %365 = vector.shape_cast %364 : vector<1x8x1024xf32> to vector<8x1024xf32>
    %366 = vector.shape_cast %363 : vector<8x1024xf32> to vector<1x8x1024xf32>
    tpu.vector_store %arg7[%c1_518, %c0_519, %c0_520], %366 {strides = array<i32>} : memref<2x8x1024xf32, #tpu.memory_space<vmem>>, vector<1x8x1024xf32>,
    return
  }
  func.func @transform_0(%arg0: i32) -> (i32, i32, i32) {
    %c0_i32 = arith.constant 0 : i32
    %c0_i32_0 = arith.constant 0 : i32
    %c0_i32_1 = arith.constant 0 : i32
    return %arg0, %c0_i32, %c0_i32_0 : i32, i32, i32
  }
  func.func @transform_1(%arg0: i32) -> (i32, i32) {
    %c0_i32 = arith.constant 0 : i32
    %c0_i32_0 = arith.constant 0 : i32
    %c0_i32_1 = arith.constant 0 : i32
    return %c0_i32, %c0_i32_0 : i32, i32
  }
  func.func @transform_2(%arg0: i32) -> (i32, i32) {
    %c0_i32 = arith.constant 0 : i32
    %c0_i32_0 = arith.constant 0 : i32
    %c0_i32_1 = arith.constant 0 : i32
    return %c0_i32, %c0_i32_0 : i32, i32
  }
  func.func @transform_3(%arg0: i32) -> (i32, i32) {
    %c0_i32 = arith.constant 0 : i32
    %c0_i32_0 = arith.constant 0 : i32
    %c0_i32_1 = arith.constant 0 : i32
    return %c0_i32, %c0_i32_0 : i32, i32
  }
  func.func @transform_4(%arg0: i32) -> (i32, i32) {
    %c0_i32 = arith.constant 0 : i32
    %c0_i32_0 = arith.constant 0 : i32
    %c0_i32_1 = arith.constant 0 : i32
    return %c0_i32, %c0_i32_0 : i32, i32
  }
  func.func @transform_5(%arg0: i32) -> (i32, i32) {
    %c0_i32 = arith.constant 0 : i32
    %c0_i32_0 = arith.constant 0 : i32
    %c0_i32_1 = arith.constant 0 : i32
    return %c0_i32, %c0_i32_0 : i32, i32
  }
  func.func @transform_6(%arg0: i32) -> (i32, i32, i32) {
    %c0_i32 = arith.constant 0 : i32
    %c0_i32_0 = arith.constant 0 : i32
    %c0_i32_1 = arith.constant 0 : i32
    return %arg0, %c0_i32, %c0_i32_0 : i32, i32, i32
  }
}

</mosaic_0001>

<bundles_post_ra>
// kernel: tpu_custom_call.1
= control target key start
LH: loop header
LB: loop body
LE: loop exit
PB: predicated region body
PF: predicated region fallthrough
CT: control target
= control target key end

     0   :  { %s18654_s0 = inlined_call_operand.hbm [shape: f32[4,8,1280], index: 0, kind: input, shape index: {}]   ;;  %s18655_s1 = inlined_call_operand.vmem [shape: f32[8,216], index: 1, kind: input, shape index: {}]   ;;  %s18656_s2 = inlined_call_operand.hbm [shape: f32[8,216], index: 2, kind: input, shape index: {}]   ;;  %s18657_s3 = inlined_call_operand.vmem [shape: f32[8,1], index: 3, kind: input, shape index: {}]   ;;  %s18658_s4 = inlined_call_operand.vmem [shape: f32[8,1], index: 4, kind: input, shape index: {}]   ;;  %s18659_s5 = inlined_call_operand.hbm [shape: f32[1,2048], index: 5, kind: input, shape index: {}]   ;;  %s18660_s6 = inlined_call_operand.hbm [shape: f32[4,8,1024], index: 6, kind: output, shape index: {}]  }
   0x1   :  { %19314 = sst [smem:[#allocation121_spill]] %s18654_s0 }
   0x2   :  { %19315 = sst [smem:[#allocation122_spill]] %s18655_s1 }
   0x3   :  { %19316 = sst [smem:[#allocation123_spill]] %s18656_s2 }
   0x4   :  { %19317 = sst [smem:[#allocation124_spill]] %s18657_s3 }
   0x5   :  { %19318 = sst [smem:[#allocation125_spill]] %s18659_s5 }
   0x6   :  { %11 = vsyncpa [#allocation5], 0 }
   0x7   :  { %13 = vsyncpa [#allocation5 + $0x1], 0 }
   0x8   :  { %14 = vsyncpa [#allocation8], 0 }
   0x9   :  { %15 = vsyncpa [#allocation6], 0 }
   0xa   :  { %17 = vsyncpa [#allocation6 + $0x1], 0  ;;  %s12051_s21 = smov 0   ;;  %s12053_s22 = smov 0  }
   0xb   :  { %s12055_s23 = smov 0   ;;  %s12057_s24 = smov 0  }
   0xc LB: > { %19319 = sst [smem:[#allocation14_spill]] %s11969_s21  ;;  %s12072_s25 = sadd.s32 4294967295, %s11981_s24   ;;  %s11981_s24 = sphi %s12057_s24, %s21103_s24   ;;  %s11977_s23 = sphi %s12055_s23, %s21106_s23   ;;  %s11973_s22 = sphi %s12053_s22, %s21105_s22   ;;  %s11969_s21 = sphi %s12051_s21, %s21104_s21  }
   0xd   : > { %19320 = sst [smem:[#allocation15_spill]] %s11973_s22  ;;  %s9061_s26 = sadd.s32 4294967294, %s11981_s24  }
   0xe   : > { %19321 = sst [smem:[#allocation16_spill]] %s11977_s23  ;;  %s12076_s27 = sadd.s32 1, %s11981_s24  }
   0xf   : > { %19322 = sst [smem:[#allocation17_spill]] %s11981_s24  ;;  %s30_s28 = sadd.s32 1, %s11977_s23 }
  0x10   : > { %19323 = sst [smem:[#allocation18_spill]] %s12076_s27  ;;  %s27_s29 = ssub.s32 %s11981_s24, %s12076_s27 }
  0x11   : > { %p37_p0 = scmp.ne.s32.totalorder %s11977_s23, %s11973_s22  ;;  %p28_p1 = scmp.eq.s32.totalorder %s27_s29, 0 }
  0x12   : > { %p38_p2 = scmp.eq.s32.totalorder %s11981_s24, 0  ;;  %p43_p3 = scmp.ne.s32.totalorder %s11973_s22, %s11969_s21 }
  0x13   : > { %p44_p4 = scmp.eq.s32.totalorder %s12072_s25, 0  ;;  %p172_p7 = scmp.eq.s32.totalorder %s12072_s25, 1 }
  0x14   : > { %s12088_s30 = scalar_select %p28_p1, %s11977_s23, %s30_s28  }
  0x15   : > { %p12090_p5 = por %p38_p2, %p37_p0  ;;  %p12096_p6 = por %p44_p4, %p43_p3 }
  0x16   : > { %19324 = sst [smem:[#allocation19_spill]] %s12088_s30  ;;  %p178_p8 = scmp.eq.s32.totalorder %s9061_s26, 1 }
  0x17   : > { %p9062_p9 = scmp.ge.s32.totalorder %s11981_s24, 1  ;;  %p185_p10 = scmp.lt.s32.totalorder %s11981_s24, 3 }
  0x18   : > { %p12103_p11 = por %p172_p7, %p37_p0  ;;  %p12107_p12 = por %p178_p8, %p43_p3 }
  0x19   : > { %p12111_p13 = pnand %p9062_p9, %p185_p10  ;;  %s19331_s2 = sld [smem:[#allocation123_spill]] }
  0x1a   : > { %s19328_s10 = scalar_select %p12107_p12, 1, 0 }
  0x1b   : > { %p9386_p1 = pneg %p12111_p13  ;;  %s11983_s15 = smov [#allocation7]  }
  0x1c   : > { %19329 = sst [smem:[#allocation20_spill]] %s19328_s10  ;;  %s202_s16 = sshll.u32 %s11983_s15, 4  ;;  %s203_s16 = int_to_ptr.vmem [resolvable:$true] %s202_s16 }
  0x1d   : > { %p9387_p2 = pnand %p9386_p1, %p44_p4  ;;  %p9403_p3 = scmp.lt.s32.totalorder %s11981_s24, 2 }
  0x1e   : > { %s19332_s5 = sld [smem:[#allocation125_spill]]  ;;  %s11984_s26 = smov [#allocation9]  }
  0x1f   : > { %s200_s14 = sshll.u32 %s19331_s2, 4  ;;  %p12129_p7 = pnand %p9403_p3, %p12090_p5  ;;  %s201_s14 = int_to_ptr.hbm [resolvable:$true] %s200_s14 }
  0x20   : > { %9389 = dma.hbm_to_vmem [thread:$0]  (!%p9387_p2), %s201_s14, 256, %s203_s16, [#allocation8]  }
  0x21   : > { %s220_s28 = sshll.u32 %s11984_s26, 4  ;;  %s231_s29 = sand.u32 1, %s11977_s23   ;;  %s221_s28 = int_to_ptr.vmem [resolvable:$true] %s220_s28 }
  0x22   : > { %s9371_s12 = smul.u32 160, %s231_s29  ;;  %s19334_s0 = sld [smem:[#allocation121_spill]] }
  0x23   : > { %s9372_s13 = smul.u32 160, %s11981_s24  ;;  %s232_s7 = scalar_lea.sflag [#allocation5], %s231_s29 }
  0x24   : > { %s218_s19 = sshll.u32 %s19332_s5, 4  ;;  %s235_s18 = scalar_lea.vmem [#allocation4], %s9371_s12  ;;  %s219_s19 = int_to_ptr.hbm [resolvable:$true] %s218_s19 }
  0x25   : > { %9392 = dma.hbm_to_vmem [thread:$0]  (!%p9387_p2), %s219_s19, 256, %s221_s28, [#allocation8]  }
  0x26   : > { %s244_s5 = sshll.u32 %s235_s18, 4  ;;  %p11885_p8 = pneg %p12129_p7  ;;  %s245_s5 = int_to_ptr.vmem [resolvable:$true] %s244_s5 }
  0x28   : > { %s241_s17 = scalar_lea.hbm %s19334_s0, %s9372_s13  ;;  %s11888_s28 = scalar_lea.hbm %s19334_s0, 320 }
  0x29   : > { %s242_s14 = sshll.u32 %s241_s17, 4  ;;  %s243_s14 = int_to_ptr.hbm [resolvable:$true] %s242_s14 }
  0x2a   : > { %s11881_s16 = sshra.s32 %s243_s14, 4  ;;  %s11882_s16 = int_to_ptr.hbm [resolvable:$true] %s11881_s16 }
  0x2b   : > { %s11883_s30 = scalar_lea.hbm %s11882_s16, 160  ;;  %p11889_p1 = scmp.lt.s32.totalorder %s11882_s16, %s19334_s0 }
  0x2c   : > { %p11884_p5 = scmp.ne.s32.totalorder %s11882_s16, %s11883_s30  ;;  %p11890_p2 = scmp.lt.s32.totalorder %s11888_s28, %s11883_s30 }
  0x2e   : > { %p11886_p9 = pnand %p11885_p8, %p11884_p5  ;;  %p11891_p3 = por %p11890_p2, %p11889_p1 }
  0x30   : > { %p11887_p10 = pneg %p11886_p9 }
  0x32   : > { %p11892_p0 = pnand %p11891_p3, %p11887_p10 }
  0x34   : > { %11895 = shalt.err (!%p11892_p0)
}
  0x35   : > { %s11985_s29 = smov 1280   ;;  %s11986_s12 = smov 80  }
  0x36   : > { %9396 = dma.hbm_to_vmem [thread:$0]  (!%p12129_p7), %s243_s14, 2560, %s245_s5, %s232_s7, %s11985_s29, %s11985_s29, %s11986_s12  }
  0x37   : > { %256 = sbr.rel (%p12111_p13) target bundleno = 1836 (0x72c), region = 44 }
  0x3c   : > { %s12151_s15 = sand.u32 1, %s11973_s22  }
  0x3d   : > { %s9373_s17 = smul.u32 160, %s12151_s15  ;;  %s259_s18 = scalar_lea.sflag [#allocation5], %s12151_s15 }
  0x3f   : > { %s12155_s30 = scalar_lea.vmem [#allocation4], %s9373_s17 }
  0x40   : > { %11956 = dma.done.wait (%p12096_p6), %s259_s18, 2560  }
  0x41   : > { %11958 = vsyncadd (%p12096_p6), %s259_s18, 4294964736 }
  0x42   : > { %11960 = dma.done.wait (%p44_p4), [#allocation8], 512  }
  0x43   : > { %11962 = vsyncadd (%p44_p4), [#allocation8], 4294966784  ;;  %v12166_v0 = vld [vmem:[%s12155_s30 + $0x40] sm:$0xff]  ;;  %v9073_v1 = vld [vmem:[%s12155_s30 + $0x50] sm:$0xff]  ;;  %s18996_s5 = smov 111   ;;  %s18994_s8 = smov 110  }
  0x44   : > { %v12170_v2 = vld [vmem:[%s12155_s30 + $0x20] sm:$0xff]  ;;  %v12173_v3 = vpack.i.bf16 %v9073_v1, %v12166_v0  ;;  %v12176_v4 = vld [vmem:[%s12155_s30 + $0x28] sm:$0xff]  ;;  %v12196_v9 = vld [vmem:[%s12155_s30 + $0x30] sm:$0xff]  ;;  %s18992_s11 = smov 109   ;;  %s18908_s20 = smov 101   ;;  %vm18770_vm0 = vcmask 908288  }
  0x45   : > { %v304_v5 = vld [vmem:[%s12155_s30] sm:$0xff]  ;;  %v12180_v6 = vld [vmem:[%s12155_s30 + $0x8] sm:$0xff]  ;;  %v12184_v7 = vpack.i.bf16 %v12176_v4, %v12170_v2  ;;  %v12199_v10 = vld [vmem:[%s12155_s30 + $0x38] sm:$0xff]  ;;  %s18760_s14 = smov 100   ;;  %s18758_s7 = smov 99   ;;  %vm18777_vm1 = vcmask 900096   ;;  %v12423_v52 = vpack.i.bf16 %v12196_v9, %v12176_v4 }
  0x46   : > { %v12187_v8 = vpack.i.bf16 %v12180_v6, %v304_v5  ;;  %9493 = vrot.lane.b32.xlu2 %v12173_v3, %s18996_s5  ;;  %v12202_v11 = vld [vmem:[%s12155_s30 + $0x10] sm:$0xff]  ;;  %v12205_v12 = vld [vmem:[%s12155_s30 + $0x18] sm:$0xff]  ;;  %v12209_v13 = vpack.i.bf16 %v12199_v10, %v12196_v9  ;;  %s18889_s16 = smov 91   ;;  %s18887_s19 = smov 90   ;;  %vm18792_vm2 = vcmask 818176   ;;  %v9812_v51 = vpack.i.bf16 %v12166_v0, %v12199_v10  ;;  %v1121_v56 = vld [vmem:[%s12155_s30 + $0x48] sm:$0xff] }
  0x47   : > { %9483 = vrot.lane.b32.xlu1 %v12184_v7, %s18996_s5  ;;  %v12213_v14 = vpack.i.bf16 %v12205_v12, %v12202_v11  ;;  %s18885_s26 = smov 89   ;;  %s18883_s28 = smov 11   ;;  %v12403_v45 = vpack.i.bf16 %v12202_v11, %v12180_v6  ;;  %v9802_v53 = vpack.i.bf16 %v12170_v2, %v12205_v12  ;;  %v9198_v57 = vld [vmem:[%s12155_s30 + $0x58] sm:$0xff]  ;;  %vm18785_vm3 = vcmask 891904  }
  0x48   : > { %9473 = vrot.lane.b32.xlu0 %v12187_v8, %s18996_s5  ;;  %s18881_s2 = smov 10   ;;  %s18879_s13 = smov 9   ;;  %v12446_v60 = vpack.i.bf16 %v9198_v57, %v1121_v56  ;;  %vm18799_vm4 = vcmask 736256   ;;  %vm18790_vm5 = vcmask 826368   ;;  %vm18797_vm6 = vcmask 809984  }
  0x49   : > { %s18877_s29 = smov 1   ;;  %s18871_s12 = smov 127   ;;  %vm18798_vm7 = vcmask 744448   ;;  %vm18857_vm8 = vcmask 80896   ;;  %vm18806_vm9 = vcmask 728064   ;;  %vm18807_vm10 = vcmask 89088  }
  0x4a   : > { %s18661_s17 = smov 119   ;;  %s18670_s18 = smov 118   ;;  %vm18969_vm11 = vcmask 1039360   ;;  %vm1210_vm12 = vcmask 973824   ;;  %vm18858_vm13 = vcmask 72704   ;;  %vm18859_vm14 = vcmask 7168  }
  0x4b   : > { %vm1881_vm15 = vcmask 138240   ;;  %s19429_s1 = sld [smem:[#allocation122_spill]]  ;;  %s20199_s0 = smov 11  }
  0x4c   : > { %s19854_s3 = sld [smem:[#allocation124_spill]]  ;;  %s20211_s23 = smov 1  }
  0x4d   : > { %s20217_s22 = smov 127   ;;  %s20264_s27 = smov 18  }
  0x4e   : > { %9498 = vrot.lane.b32.xlu2 %v12187_v8, %s18994_s8  ;;  %s20291_s24 = smov 17   ;;  %s20299_s10 = smov 111  }
  0x4f   : > { %9488 = vrot.lane.b32.xlu1 %v12209_v13, %s18996_s5  ;;  %s20309_s21 = smov 110  }
  0x50   : > { %9478 = vrot.lane.b32.xlu0 %v12213_v14, %s18996_s5 }
  0x56   : > { %9513 = vrot.lane.b32.xlu2 %v12209_v13, %s18994_s8 }
  0x57   : > { %9508 = vrot.lane.b32.xlu1 %v12184_v7, %s18994_s8 }
  0x58   : > { %9503 = vrot.lane.b32.xlu0 %v12213_v14, %s18994_s8 }
  0x5e   : > { %9528 = vrot.lane.b32.xlu2 %v12213_v14, %s18992_s11 }
  0x5f   : > { %9523 = vrot.lane.b32.xlu1 %v12187_v8, %s18992_s11 }
  0x60   : > { %9518 = vrot.lane.b32.xlu0 %v12173_v3, %s18994_s8 }
  0x66   : > { %9543 = vrot.lane.b32.xlu2 %v12173_v3, %s18992_s11 }
  0x67   : > { %9538 = vrot.lane.b32.xlu1 %v12209_v13, %s18992_s11 }
  0x68   : > { %9533 = vrot.lane.b32.xlu0 %v12184_v7, %s18992_s11 }
  0x6e   : > { %9558 = vrot.lane.b32.xlu2 %v12184_v7, %s18908_s20 }
  0x6f   : > { %9553 = vrot.lane.b32.xlu1 %v12213_v14, %s18908_s20 }
  0x70   : > { %9548 = vrot.lane.b32.xlu0 %v12187_v8, %s18908_s20 }
  0x76   : > { %9573 = vrot.lane.b32.xlu2 %v12187_v8, %s18760_s14 }
  0x77   : > { %9568 = vrot.lane.b32.xlu1 %v12173_v3, %s18908_s20 }
  0x78   : > { %9563 = vrot.lane.b32.xlu0 %v12209_v13, %s18908_s20 }
  0x7e   : > { %9588 = vrot.lane.b32.xlu2 %v12209_v13, %s18760_s14 }
  0x7f   : > { %9583 = vrot.lane.b32.xlu1 %v12184_v7, %s18760_s14 }
  0x80   : > { %9578 = vrot.lane.b32.xlu0 %v12213_v14, %s18760_s14 }
  0x86   : > { %9603 = vrot.lane.b32.xlu2 %v12213_v14, %s18758_s7 }
  0x87   : > { %9598 = vrot.lane.b32.xlu1 %v12187_v8, %s18758_s7 }
  0x88   : > { %9593 = vrot.lane.b32.xlu0 %v12173_v3, %s18760_s14 }
  0x8e   : > { %9618 = vrot.lane.b32.xlu2 %v12173_v3, %s18758_s7 }
  0x8f   : > { %9613 = vrot.lane.b32.xlu1 %v12209_v13, %s18758_s7 }
  0x90   : > { %9608 = vrot.lane.b32.xlu0 %v12184_v7, %s18758_s7 }
  0x96   : > { %9633 = vrot.lane.b32.xlu2 %v12184_v7, %s18889_s16 }
  0x97   : > { %9628 = vrot.lane.b32.xlu1 %v12213_v14, %s18889_s16 }
  0x98   : > { %9623 = vrot.lane.b32.xlu0 %v12187_v8, %s18889_s16 }
  0x9e   : > { %9648 = vrot.lane.b32.xlu2 %v12187_v8, %s18887_s19 }
  0x9f   : > { %9643 = vrot.lane.b32.xlu1 %v12173_v3, %s18889_s16 }
  0xa0   : > { %9638 = vrot.lane.b32.xlu0 %v12209_v13, %s18889_s16  ;;  %v12281_v15 = vpop.permute.xlu2 %9493 }
  0xa1   : > { %19335 = vst [vmem:[#allocation21_spill] sm:$0xff] %v12281_v15  ;;  %v12565_v15 = vld [vmem:[%s12155_s30 + $0x8] sm:$0xff] }
  0xa6   : > { %9663 = vrot.lane.b32.xlu2 %v12209_v13, %s18887_s19 }
  0xa7   : > { %9658 = vrot.lane.b32.xlu1 %v12184_v7, %s18887_s19 }
  0xa8   : > { %9653 = vrot.lane.b32.xlu0 %v12213_v14, %s18887_s19  ;;  %v12289_v16 = vpop.permute.xlu2 %9498 }
  0xae   : > { %9678 = vrot.lane.b32.xlu2 %v12213_v14, %s18885_s26 }
  0xaf   : > { %9673 = vrot.lane.b32.xlu1 %v12187_v8, %s18885_s26 }
  0xb0   : > { %9668 = vrot.lane.b32.xlu0 %v12173_v3, %s18887_s19  ;;  %v12297_v17 = vpop.permute.xlu2 %9513 }
  0xb1   : > { %19336 = vst [vmem:[#allocation22_spill] sm:$0xff] %v12297_v17 }
  0xb6   : > { %9693 = vrot.lane.b32.xlu2 %v12173_v3, %s18885_s26 }
  0xb7   : > { %9688 = vrot.lane.b32.xlu1 %v12209_v13, %s18885_s26 }
  0xb8   : > { %9683 = vrot.lane.b32.xlu0 %v12184_v7, %s18885_s26  ;;  %v12305_v18 = vpop.permute.xlu2 %9528 }
  0xb9   : > { %v12307_v19 = vpop.permute.xlu1 %9483  ;;  %v18673_v61 = vunpack.i.l.bf16 %v12305_v18  ;;  %v18665_v62 = vunpack.i.h.bf16 %v12305_v18 }
  0xba   : > { %19337 = vst [vmem:[#allocation23_spill] sm:$0xff] %v12307_v19  ;;  %v12309_v20 = vpop.permute.xlu0 %9473 }
  0xbb   : > { %v12466_v2 = vsel %vm18785_vm3, %v18673_v61, %v18665_v62 }
  0xbc   : > { %19358 = vst [vmem:[#allocation44_spill] sm:$0xff] %v12466_v2 }
  0xbe   : > { %9708 = vrot.lane.b32.xlu2 %v12184_v7, %s18883_s28 }
  0xbf   : > { %9703 = vrot.lane.b32.xlu1 %v12213_v14, %s18883_s28 }
  0xc0   : > { %9698 = vrot.lane.b32.xlu0 %v12187_v8, %s18883_s28  ;;  %v12317_v21 = vpop.permute.xlu2 %9543 }
  0xc1   : > { %19338 = vst [vmem:[#allocation24_spill] sm:$0xff] %v12317_v21  ;;  %v12319_v22 = vpop.permute.xlu1 %9488 }
  0xc2   : > { %19339 = vst [vmem:[#allocation25_spill] sm:$0xff] %v12319_v22  ;;  %v12321_v23 = vpop.permute.xlu0 %9478  ;;  %v12562_v22 = vld [vmem:[%s12155_s30 + $0x20] sm:$0xff] }
  0xc3   : > { %v18663_v24 = vunpack.i.h.bf16 %v12321_v23  ;;  %v18668_v25 = vunpack.i.l.bf16 %v12321_v23 }
  0xc5   : > { %v12330_v26 = vsel %vm18770_vm0, %v18668_v25, %v18663_v24 }
  0xc6   : > { %19340 = vst [vmem:[#allocation26_spill] sm:$0xff] %v12330_v26  ;;  %9723 = vrot.lane.b32.xlu2 %v12187_v8, %s18881_s2 }
  0xc7   : > { %9718 = vrot.lane.b32.xlu1 %v12173_v3, %s18883_s28 }
  0xc8   : > { %9713 = vrot.lane.b32.xlu0 %v12209_v13, %s18883_s28  ;;  %v12338_v27 = vpop.permute.xlu2 %9558 }
  0xc9   : > { %19341 = vst [vmem:[#allocation27_spill] sm:$0xff] %v12338_v27  ;;  %v12340_v28 = vpop.permute.xlu1 %9508 }
  0xca   : > { %19342 = vst [vmem:[#allocation28_spill] sm:$0xff] %v12340_v28  ;;  %v12342_v29 = vpop.permute.xlu0 %9503 }
  0xcb   : > { %v18664_v30 = vunpack.i.h.bf16 %v12342_v29  ;;  %v18672_v31 = vunpack.i.l.bf16 %v12342_v29 }
  0xcd   : > { %v12351_v32 = vsel %vm18777_vm1, %v18672_v31, %v18664_v30 }
  0xce   : > { %19343 = vst [vmem:[#allocation29_spill] sm:$0xff] %v12351_v32  ;;  %9738 = vrot.lane.b32.xlu2 %v12209_v13, %s18881_s2 }
  0xcf   : > { %9733 = vrot.lane.b32.xlu1 %v12184_v7, %s18881_s2 }
  0xd0   : > { %9728 = vrot.lane.b32.xlu0 %v12213_v14, %s18881_s2  ;;  %v12359_v33 = vpop.permute.xlu2 %9573 }
  0xd1   : > { %v12361_v34 = vpop.permute.xlu1 %9523 }
  0xd2   : > { %v12363_v35 = vpop.permute.xlu0 %9518 }
  0xd3   : > { %19344 = vst [vmem:[#allocation30_spill] sm:$0xff] %v12363_v35  ;;  %v12568_v35 = vld [vmem:[%s12155_s30 + $0x10] sm:$0xff] }
  0xd6   : > { %9753 = vrot.lane.b32.xlu2 %v12213_v14, %s18879_s13 }
  0xd7   : > { %9748 = vrot.lane.b32.xlu1 %v12187_v8, %s18879_s13 }
  0xd8   : > { %9743 = vrot.lane.b32.xlu0 %v12173_v3, %s18881_s2  ;;  %v12371_v36 = vpop.permute.xlu2 %9588 }
  0xd9   : > { %19345 = vst [vmem:[#allocation31_spill] sm:$0xff] %v12371_v36  ;;  %v12373_v37 = vpop.permute.xlu1 %9538 }
  0xda   : > { %19346 = vst [vmem:[#allocation32_spill] sm:$0xff] %v12373_v37  ;;  %v12375_v38 = vpop.permute.xlu0 %9533 }
  0xdb   : > { %19347 = vst [vmem:[#allocation33_spill] sm:$0xff] %v12375_v38 }
  0xde   : > { %9768 = vrot.lane.b32.xlu2 %v12173_v3, %s18879_s13 }
  0xdf   : > { %9763 = vrot.lane.b32.xlu1 %v12209_v13, %s18879_s13 }
  0xe0   : > { %9758 = vrot.lane.b32.xlu0 %v12184_v7, %s18879_s13  ;;  %v12383_v39 = vpop.permute.xlu2 %9603 }
  0xe1   : > { %v12385_v40 = vpop.permute.xlu1 %9553  ;;  %v18677_v25 = vunpack.i.l.bf16 %v12383_v39 }
  0xe2   : > { %v12387_v41 = vpop.permute.xlu0 %9548  ;;  %v18667_v11 = vunpack.i.h.bf16 %v12385_v40  ;;  %v18674_v12 = vunpack.i.l.bf16 %v12385_v40 }
  0xe4   : > { %v12510_v24 = vsel %vm18790_vm5, %v18674_v12, %v18667_v11 }
  0xe5   : > { %19364 = vst [vmem:[#allocation50_spill] sm:$0xff] %v12510_v24 }
  0xe6   : > { %9783 = vrot.lane.b32.xlu2 %v12184_v7, %s18877_s29 }
  0xe7   : > { %9778 = vrot.lane.b32.xlu1 %v12213_v14, %s18877_s29 }
  0xe8   : > { %9773 = vrot.lane.b32.xlu0 %v12187_v8, %s18877_s29  ;;  %v12395_v42 = vpop.permute.xlu2 %9618 }
  0xe9   : > { %19348 = vst [vmem:[#allocation34_spill] sm:$0xff] %v12395_v42  ;;  %v12397_v43 = vpop.permute.xlu1 %9568 }
  0xea   : > { %19349 = vst [vmem:[#allocation35_spill] sm:$0xff] %v12397_v43  ;;  %v12399_v44 = vpop.permute.xlu0 %9563 }
  0xeb   : > { %19350 = vst [vmem:[#allocation36_spill] sm:$0xff] %v12399_v44 }
  0xee   : > { %9798 = vrot.lane.b32.xlu2 %v12403_v45, %s18871_s12 }
  0xef   : > { %9793 = vrot.lane.b32.xlu1 %v12173_v3, %s18877_s29 }
  0xf0   : > { %9788 = vrot.lane.b32.xlu0 %v12209_v13, %s18877_s29  ;;  %v12411_v46 = vpop.permute.xlu2 %9633 }
  0xf1   : > { %19351 = vst [vmem:[#allocation37_spill] sm:$0xff] %v12411_v46  ;;  %v12413_v47 = vpop.permute.xlu1 %9583 }
  0xf2   : > { %19352 = vst [vmem:[#allocation38_spill] sm:$0xff] %v12413_v47  ;;  %v12415_v48 = vpop.permute.xlu0 %9578 }
  0xf3   : > { %v18666_v49 = vunpack.i.h.bf16 %v12415_v48  ;;  %v18675_v50 = vunpack.i.l.bf16 %v12415_v48 }
  0xf5   : > { %v12432_v54 = vsel %vm18792_vm2, %v18675_v50, %v18666_v49  ;;  %v1422_v50 = vld [vmem:[%s12155_s30 + $0x28] sm:$0xff] }
  0xf6   : > { %19353 = vst [vmem:[#allocation39_spill] sm:$0xff] %v12432_v54  ;;  %9813 = vrot.lane.b32.xlu2 %v9812_v51, %s18871_s12 }
  0xf7   : > { %9808 = vrot.lane.b32.xlu1 %v12423_v52, %s18871_s12 }
  0xf8   : > { %9803 = vrot.lane.b32.xlu0 %v9802_v53, %s18871_s12  ;;  %v12438_v55 = vpop.permute.xlu2 %9648 }
  0xf9   : > { %v12442_v58 = vpop.permute.xlu1 %9598 }
  0xfa   : > { %v12444_v59 = vpop.permute.xlu0 %9593 }
  0xfb   : > { %19354 = vst [vmem:[#allocation40_spill] sm:$0xff] %v12444_v59 }
  0xfe   : > { %9828 = vrot.lane.b32.xlu2 %v9802_v53, %s18661_s17 }
  0xff   : > { %9823 = vrot.lane.b32.xlu1 %v12403_v45, %s18661_s17 }
 0x100   : > { %9818 = vrot.lane.b32.xlu0 %v12446_v60, %s18871_s12  ;;  %v12455_v63 = vpop.permute.xlu2 %9663 }
 0x101   : > { %19355 = vst [vmem:[#allocation41_spill] sm:$0xff] %v12455_v63  ;;  %v12457_v0 = vpop.permute.xlu1 %9613 }
 0x102   : > { %19356 = vst [vmem:[#allocation42_spill] sm:$0xff] %v12457_v0  ;;  %v12459_v1 = vpop.permute.xlu0 %9608 }
 0x103   : > { %19357 = vst [vmem:[#allocation43_spill] sm:$0xff] %v12459_v1 }
 0x106   : > { %9843 = vrot.lane.b32.xlu2 %v12446_v60, %s18661_s17 }
 0x107   : > { %9838 = vrot.lane.b32.xlu1 %v9812_v51, %s18661_s17 }
 0x108   : > { %9833 = vrot.lane.b32.xlu0 %v12423_v52, %s18661_s17  ;;  %v12473_v3 = vpop.permute.xlu2 %9678  ;;  %s18690_s17 = smov 117  }
 0x109   : > { %v12475_v4 = vpop.permute.xlu1 %9628 }
 0x10a   : > { %v12477_v5 = vpop.permute.xlu0 %9623  ;;  %v18697_v44 = vunpack.i.h.bf16 %v12475_v4  ;;  %v18698_v59 = vunpack.i.l.bf16 %v12475_v4 }
 0x10e   : > { %9858 = vrot.lane.b32.xlu2 %v12423_v52, %s18670_s18 }
 0x10f   : > { %9853 = vrot.lane.b32.xlu1 %v9802_v53, %s18670_s18 }
 0x110   : > { %9848 = vrot.lane.b32.xlu0 %v12403_v45, %s18670_s18  ;;  %v12484_v6 = vpop.permute.xlu2 %9693 }
 0x111   : > { %19359 = vst [vmem:[#allocation45_spill] sm:$0xff] %v12484_v6  ;;  %v12486_v7 = vpop.permute.xlu1 %9643 }
 0x112   : > { %19360 = vst [vmem:[#allocation46_spill] sm:$0xff] %v12486_v7  ;;  %v12488_v8 = vpop.permute.xlu0 %9638 }
 0x113   : > { %19361 = vst [vmem:[#allocation47_spill] sm:$0xff] %v12488_v8 }
 0x116   : > { %9873 = vrot.lane.b32.xlu2 %v12403_v45, %s18690_s17 }
 0x117   : > { %9868 = vrot.lane.b32.xlu1 %v12446_v60, %s18670_s18 }
 0x118   : > { %9863 = vrot.lane.b32.xlu0 %v9812_v51, %s18670_s18  ;;  %v12495_v9 = vpop.permute.xlu2 %9708  ;;  %s18684_s18 = smov 39  }
 0x119   : > { %19362 = vst [vmem:[#allocation48_spill] sm:$0xff] %v12495_v9  ;;  %v12499_v13 = vpop.permute.xlu1 %9658 }
 0x11a   : > { %19363 = vst [vmem:[#allocation49_spill] sm:$0xff] %v12499_v13  ;;  %v12501_v14 = vpop.permute.xlu0 %9653 }
 0x11b   : > { %v18669_v56 = vunpack.i.h.bf16 %v12501_v14  ;;  %v18678_v57 = vunpack.i.l.bf16 %v12501_v14 }
 0x11d   : > { %v12517_v30 = vsel %vm18799_vm4, %v18678_v57, %v18669_v56  ;;  %v18676_v56 = vunpack.i.h.bf16 %v12383_v39 }
 0x11e   : > { %19365 = vst [vmem:[#allocation51_spill] sm:$0xff] %v12517_v30  ;;  %9888 = vrot.lane.b32.xlu2 %v9812_v51, %s18690_s17 }
 0x11f   : > { %9883 = vrot.lane.b32.xlu1 %v12423_v52, %s18690_s17  ;;  %v12541_v51 = vsel %vm18797_vm6, %v18677_v25, %v18676_v56  ;;  %v1423_v56 = vld [vmem:[%s12155_s30 + $0x30] sm:$0xff]  ;;  %v1420_v25 = vld [vmem:[%s12155_s30 + $0x18] sm:$0xff] }
 0x120   : > { %9878 = vrot.lane.b32.xlu0 %v9802_v53, %s18690_s17  ;;  %v12523_v62 = vpop.permute.xlu2 %9723  ;;  %19367 = vst [vmem:[#allocation53_spill] sm:$0xff] %v12541_v51  ;;  %v12574_v21 = vpack.i.bf16 %v1423_v56, %v1422_v50  ;;  %v1424_v50 = vld [vmem:[%s12155_s30 + $0x38] sm:$0xff] }
 0x121   : > { %v12525_v49 = vpop.permute.xlu1 %9673 }
 0x122   : > { %v12527_v11 = vpop.permute.xlu0 %9668 }
 0x123   : > { %19366 = vst [vmem:[#allocation52_spill] sm:$0xff] %v12527_v11 }
 0x126   : > { %9903 = vrot.lane.b32.xlu2 %v9802_v53, %s18684_s18  ;;  %v1364_v53 = vld [vmem:[%s12155_s30 + $0x40] sm:$0xff] }
 0x127   : > { %9898 = vrot.lane.b32.xlu1 %v12403_v45, %s18684_s18  ;;  %v9912_v45 = vpack.i.bf16 %v1364_v53, %v12199_v10  ;;  %v12596_v43 = vpack.i.bf16 %v1364_v53, %v1424_v50  ;;  %v12613_v53 = vsel %vm18798_vm7, %v18698_v59, %v18697_v44  ;;  %v18708_v59 = vunpack.i.l.bf16 %v12473_v3 }
 0x128   : > { %9893 = vrot.lane.b32.xlu0 %v12446_v60, %s18690_s17  ;;  %v12543_v31 = vpop.permute.xlu2 %9738  ;;  %s18709_s17 = smov 37   ;;  %19375 = vst [vmem:[#allocation61_spill] sm:$0xff] %v12613_v53 }
 0x129   : > { %19368 = vst [vmem:[#allocation54_spill] sm:$0xff] %v12543_v31  ;;  %v12546_v61 = vpop.permute.xlu1 %9688 }
 0x12a   : > { %19369 = vst [vmem:[#allocation55_spill] sm:$0xff] %v12546_v61  ;;  %v12548_v12 = vpop.permute.xlu0 %9683 }
 0x12b   : > { %19370 = vst [vmem:[#allocation56_spill] sm:$0xff] %v12548_v12 }
 0x12e   : > { %9918 = vrot.lane.b32.xlu2 %v12446_v60, %s18684_s18 }
 0x12f   : > { %9913 = vrot.lane.b32.xlu1 %v9912_v45, %s18684_s18  ;;  %v12577_v45 = vpack.i.bf16 %v12562_v22, %v1420_v25 }
 0x130   : > { %9908 = vrot.lane.b32.xlu0 %v12423_v52, %s18684_s18  ;;  %v12559_v57 = vpop.permute.xlu2 %9753  ;;  %v12581_v52 = vpack.i.bf16 %v12568_v35, %v12565_v15  ;;  %s18703_s18 = smov 38  }
 0x131   : > { %v12570_v10 = vpop.permute.xlu1 %9703 }
 0x132   : > { %v12572_v17 = vpop.permute.xlu0 %9698  ;;  %v18722_v24 = vunpack.i.l.bf16 %v12570_v10 }
 0x136   : > { %9933 = vrot.lane.b32.xlu2 %v12574_v21, %s18703_s18 }
 0x137   : > { %9928 = vrot.lane.b32.xlu1 %v12577_v45, %s18703_s18 }
 0x138   : > { %9923 = vrot.lane.b32.xlu0 %v12581_v52, %s18703_s18  ;;  %v12589_v37 = vpop.permute.xlu2 %9768 }
 0x139   : > { %19371 = vst [vmem:[#allocation57_spill] sm:$0xff] %v12589_v37  ;;  %v12592_v56 = vpop.permute.xlu1 %9718 }
 0x13a   : > { %19372 = vst [vmem:[#allocation58_spill] sm:$0xff] %v12592_v56  ;;  %v12594_v25 = vpop.permute.xlu0 %9713 }
 0x13b   : > { %19373 = vst [vmem:[#allocation59_spill] sm:$0xff] %v12594_v25 }
 0x13e   : > { %9948 = vrot.lane.b32.xlu2 %v12581_v52, %s18709_s17 }
 0x13f   : > { %9943 = vrot.lane.b32.xlu1 %v12446_v60, %s18703_s18 }
 0x140   : > { %9938 = vrot.lane.b32.xlu0 %v12596_v43, %s18703_s18  ;;  %v12606_v36 = vpop.permute.xlu2 %9783  ;;  %s18714_s18 = smov 29  }
 0x141   : > { %19374 = vst [vmem:[#allocation60_spill] sm:$0xff] %v12606_v36  ;;  %v12615_v50 = vpop.permute.xlu1 %9733 }
 0x142   : > { %19376 = vst [vmem:[#allocation62_spill] sm:$0xff] %v12615_v50  ;;  %v12617_v42 = vpop.permute.xlu0 %9728 }
 0x143   : > { %v18701_v0 = vunpack.i.h.bf16 %v12617_v42  ;;  %v18702_v7 = vunpack.i.l.bf16 %v12617_v42 }
 0x145   : > { %v12626_v8 = vsel %vm18857_vm8, %v18702_v7, %v18701_v0  ;;  %v18707_v0 = vunpack.i.h.bf16 %v12473_v3 }
 0x146   : > { %19377 = vst [vmem:[#allocation63_spill] sm:$0xff] %v12626_v8  ;;  %9963 = vrot.lane.b32.xlu2 %v12596_v43, %s18709_s17 }
 0x147   : > { %9958 = vrot.lane.b32.xlu1 %v12574_v21, %s18709_s17  ;;  %v12647_v7 = vsel %vm18806_vm9, %v18708_v59, %v18707_v0 }
 0x148   : > { %9953 = vrot.lane.b32.xlu0 %v12577_v45, %s18709_s17  ;;  %v12634_v44 = vpop.permute.xlu2 %9798  ;;  %19379 = vst [vmem:[#allocation65_spill] sm:$0xff] %v12647_v7 }
 0x149   : > { %v12637_v11 = vpop.permute.xlu1 %9748 }
 0x14a   : > { %v12639_v63 = vpop.permute.xlu0 %9743 }
 0x14b   : > { %19378 = vst [vmem:[#allocation64_spill] sm:$0xff] %v12639_v63  ;;  %v18721_v63 = vunpack.i.h.bf16 %v12570_v10 }
 0x14d   : > { %v12698_v31 = vsel %vm18807_vm10, %v18722_v24, %v18721_v63  ;;  %v9800_v63 = vunpack.i.l.bf16 %v12634_v44 }
 0x14e   : > { %9978 = vrot.lane.b32.xlu2 %v12577_v45, %s18714_s18  ;;  %19386 = vst [vmem:[#allocation72_spill] sm:$0xff] %v12698_v31  ;;  %v9755_v31 = vunpack.i.l.bf16 %v12559_v57 }
 0x14f   : > { %9973 = vrot.lane.b32.xlu1 %v12581_v52, %s18714_s18 }
 0x150   : > { %9968 = vrot.lane.b32.xlu0 %v12446_v60, %s18709_s17  ;;  %v12655_v6 = vpop.permute.xlu2 %9813  ;;  %s18730_s17 = smov 28  }
 0x151   : > { %19380 = vst [vmem:[#allocation66_spill] sm:$0xff] %v12655_v6  ;;  %v12657_v26 = vpop.permute.xlu1 %9763 }
 0x152   : > { %19381 = vst [vmem:[#allocation67_spill] sm:$0xff] %v12657_v26  ;;  %v12659_v61 = vpop.permute.xlu0 %9758 }
 0x153   : > { %19382 = vst [vmem:[#allocation68_spill] sm:$0xff] %v12659_v61 }
 0x156   : > { %9993 = vrot.lane.b32.xlu2 %v12446_v60, %s18714_s18 }
 0x157   : > { %9988 = vrot.lane.b32.xlu1 %v12596_v43, %s18714_s18 }
 0x158   : > { %9983 = vrot.lane.b32.xlu0 %v12574_v21, %s18714_s18  ;;  %v12667_v0 = vpop.permute.xlu2 %9828  ;;  %s18736_s18 = smov 27  }
 0x159   : > { %v12669_v59 = vpop.permute.xlu1 %9778  ;;  %v18732_v24 = vunpack.i.l.bf16 %v12667_v0 }
 0x15a   : > { %v12671_v32 = vpop.permute.xlu0 %9773 }
 0x15b   : > { %v9775_v19 = vunpack.i.l.bf16 %v12671_v32 }
 0x15e   : > { %10008 = vrot.lane.b32.xlu2 %v12574_v21, %s18730_s17 }
 0x15f   : > { %10003 = vrot.lane.b32.xlu1 %v12577_v45, %s18730_s17 }
 0x160   : > { %9998 = vrot.lane.b32.xlu0 %v12581_v52, %s18730_s17  ;;  %v12679_v56 = vpop.permute.xlu2 %9843 }
 0x161   : > { %19383 = vst [vmem:[#allocation69_spill] sm:$0xff] %v12679_v56  ;;  %v12681_v2 = vpop.permute.xlu1 %9793 }
 0x162   : > { %19384 = vst [vmem:[#allocation70_spill] sm:$0xff] %v12681_v2  ;;  %v12683_v25 = vpop.permute.xlu0 %9788 }
 0x163   : > { %19385 = vst [vmem:[#allocation71_spill] sm:$0xff] %v12683_v25 }
 0x166   : > { %10023 = vrot.lane.b32.xlu2 %v12581_v52, %s18736_s18 }
 0x167   : > { %10018 = vrot.lane.b32.xlu1 %v12446_v60, %s18730_s17 }
 0x168   : > { %10013 = vrot.lane.b32.xlu0 %v12596_v43, %s18730_s17  ;;  %v12700_v37 = vpop.permute.xlu2 %9858  ;;  %s18734_s17 = smov 19  }
 0x169   : > { %19387 = vst [vmem:[#allocation73_spill] sm:$0xff] %v12700_v37  ;;  %v12702_v26 = vpop.permute.xlu1 %9808  ;;  %v18733_v37 = vunpack.i.h.bf16 %v12559_v57 }
 0x16a   : > { %19388 = vst [vmem:[#allocation74_spill] sm:$0xff] %v12702_v26  ;;  %v12704_v54 = vpop.permute.xlu0 %9803 }
 0x16b   : > { %v18724_v2 = vunpack.i.h.bf16 %v12704_v54  ;;  %v9805_v25 = vunpack.i.l.bf16 %v12704_v54 }
 0x16d   : > { %v12711_v51 = vsel %vm18969_vm11, %v9805_v25, %v18724_v2  ;;  %v9801_v2 = vunpack.i.h.bf16 %v12634_v44  ;;  %v12736_v44 = vsel %vm18858_vm13, %v9755_v31, %v18733_v37  ;;  %v9701_v37 = vunpack.i.h.bf16 %v12572_v17 }
 0x16e   : > { %19389 = vst [vmem:[#allocation75_spill] sm:$0xff] %v12711_v51  ;;  %10038 = vrot.lane.b32.xlu2 %v12596_v43, %s18736_s18 }
 0x16f   : > { %10033 = vrot.lane.b32.xlu1 %v12574_v21, %s18736_s18 }
 0x170   : > { %10028 = vrot.lane.b32.xlu0 %v12577_v45, %s18736_s18  ;;  %v12721_v53 = vpop.permute.xlu2 %9873 }
 0x171   : > { %19390 = vst [vmem:[#allocation76_spill] sm:$0xff] %v12721_v53  ;;  %v9824_v30 = vpop.permute.xlu1 %9823  ;;  %v1150_v53 = vsel %vm18969_vm11, %v9800_v63, %v9801_v2  ;;  %v9780_v63 = vunpack.i.l.bf16 %v12669_v59 }
 0x172   : > { %v12723_v6 = vpop.permute.xlu0 %9818  ;;  %v9826_v56 = vunpack.i.h.bf16 %v9824_v30  ;;  %v9825_v7 = vunpack.i.l.bf16 %v9824_v30  ;;  %v9751_v30 = vunpack.i.h.bf16 %v12637_v11 }
 0x173   : > { %19391 = vst [vmem:[#allocation77_spill] sm:$0xff] %v12723_v6  ;;  %v9750_v6 = vunpack.i.l.bf16 %v12637_v11 }
 0x174   : > { %v1211_v8 = vsel %vm1210_vm12, %v9825_v7, %v9826_v56  ;;  %v1212_v51 = vsel %vm1210_vm12, %v9826_v56, %v18732_v24  ;;  %v9776_v7 = vunpack.i.h.bf16 %v12671_v32  ;;  %v9726_v24 = vunpack.i.h.bf16 %v12523_v62 }
 0x175   : > { %3927 = vmatpush.msra.mxu0 %v1211_v8  ;;  %3967 = vmatpush.msra.mxu2 %v1212_v51  ;;  %v1151_v8 = vsel %vm18969_vm11, %v9801_v2, %v9805_v25  ;;  %v9725_v51 = vunpack.i.l.bf16 %v12523_v62  ;;  %v1012_v25 = vsel %vm18858_vm13, %v9750_v6, %v9751_v30  ;;  %v9650_v6 = vunpack.i.l.bf16 %v12438_v55 }
 0x176   : > { %10053 = vrot.lane.b32.xlu2 %v12577_v45, %s18734_s17  ;;  %v1073_v2 = vsel %vm18859_vm14, %v9775_v19, %v9776_v7  ;;  %v9676_v19 = vunpack.i.h.bf16 %v12525_v49 }
 0x177   : > { %10048 = vrot.lane.b32.xlu1 %v12581_v52, %s18734_s17  ;;  %3928 = vmatpush.msra.mxu0 %v1150_v53  ;;  %v1074_v53 = vsel %vm18859_vm14, %v9776_v7, %v9780_v63  ;;  %v951_v62 = vsel %vm18857_vm8, %v9725_v51, %v9726_v24 }
 0x178   : > { %10043 = vrot.lane.b32.xlu0 %v12446_v60, %s18736_s18  ;;  %3968 = vmatpush.msra.mxu2 %v1151_v8  ;;  %v12751_v32 = vpop.permute.xlu2 %9888  ;;  %v1013_v8 = vsel %vm18858_vm13, %v9751_v30, %v9755_v31  ;;  %v19394_v31 = vunpack.i.l.bf16 %v12617_v42  ;;  %s18998_s18 = smov 17  }
 0x179   : > { %v12753_v11 = vpop.permute.xlu1 %9838  ;;  %3929 = vmatpush.msra.mxu0 %v12565_v15  ;;  %v9700_v15 = vunpack.i.l.bf16 %v12572_v17 }
 0x17a   : > { %19392 = vst [vmem:[#allocation78_spill] sm:$0xff] %v12753_v11  ;;  %v12756_v56 = vpop.permute.xlu0 %9833  ;;  %3969 = vmatpush.msra.mxu2 %v12568_v35  ;;  %v9675_v35 = vunpack.i.l.bf16 %v12525_v49  ;;  %v952_v17 = vsel %vm18857_vm8, %v9726_v24, %v19394_v31  ;;  %v9651_v49 = vunpack.i.h.bf16 %v12438_v55  ;;  %v9600_v31 = vunpack.i.l.bf16 %v12442_v58 }
 0x17b   : > { %19393 = vst [vmem:[#allocation79_spill] sm:$0xff] %v12756_v56  ;;  %3930 = vmatpush.msra.mxu0 %v1073_v2  ;;  %v890_v7 = vsel %vm18807_vm10, %v9700_v15, %v9701_v37  ;;  %v19396_v15 = vunpack.i.l.bf16 %v12473_v3 }
 0x17c   : > { %3970 = vmatpush.msra.mxu2 %v1074_v53  ;;  %v9626_v53 = vunpack.i.h.bf16 %v12477_v5 }
 0x17d   : > { %3931 = vmatpush.msra.mxu0 %v1012_v25  ;;  %v19395_v25 = vunpack.i.l.bf16 %v12570_v10  ;;  %v830_v55 = vsel %vm18806_vm9, %v9676_v19, %v19396_v15 }
 0x17e   : > { %3971 = vmatpush.msra.mxu2 %v1013_v8  ;;  %10068 = vrot.lane.b32.xlu2 %v12446_v60, %s18734_s17  ;;  %v9625_v8 = vunpack.i.l.bf16 %v12477_v5 }
 0x17f   : > { %10063 = vrot.lane.b32.xlu1 %v12596_v43, %s18734_s17  ;;  %3932 = vmatpush.msra.mxu0 %v951_v62  ;;  %v891_v24 = vsel %vm18807_vm10, %v9701_v37, %v19395_v25  ;;  %v829_v62 = vsel %vm18806_vm9, %v9675_v35, %v9676_v19  ;;  %v19397_v37 = vunpack.i.l.bf16 %v12501_v14  ;;  %v9575_v25 = vunpack.i.l.bf16 %v12359_v33 }
 0x180   : > { %10058 = vrot.lane.b32.xlu0 %v12574_v21, %s18734_s17  ;;  %3972 = vmatpush.msra.mxu2 %v952_v17  ;;  %v12781_v30 = vpop.permute.xlu2 %9903  ;;  %v768_v17 = vsel %vm18799_vm4, %v9650_v6, %v9651_v49  ;;  %s18906_s17 = smov 18   ;;  %v707_v35 = vsel %vm18798_vm7, %v9625_v8, %v9626_v53  ;;  %v9576_v19 = vunpack.i.h.bf16 %v12359_v33 }
 0x181   : > { %v12785_v51 = vpop.permute.xlu1 %9853  ;;  %3933 = vmatpush.msra.mxu0 %v890_v7  ;;  %v9601_v7 = vunpack.i.h.bf16 %v12442_v58  ;;  %v769_v5 = vsel %vm18799_vm4, %v9651_v49, %v19397_v37  ;;  %v19398_v58 = vunpack.i.l.bf16 %v12475_v4  ;;  %v9551_v49 = vunpack.i.h.bf16 %v12387_v41 }
 0x182   : > { %v12787_v2 = vpop.permute.xlu0 %9848  ;;  %3973 = vmatpush.msra.mxu2 %v891_v24  ;;  %v9550_v24 = vunpack.i.l.bf16 %v12387_v41  ;;  %v585_v41 = vsel %vm18792_vm2, %v9575_v25, %v9576_v19  ;;  %v9526_v37 = vunpack.i.h.bf16 %v12361_v34 }
 0x183   : > { %3934 = vmatpush.msra.mxu0 %v829_v62  ;;  %v708_v6 = vsel %vm18798_vm7, %v9626_v53, %v19398_v58  ;;  %v646_v33 = vsel %vm18797_vm6, %v9600_v31, %v9601_v7  ;;  %v19402_v31 = vunpack.i.l.bf16 %v12415_v48  ;;  %v9500_v58 = vunpack.i.l.bf16 %v12289_v16 }
 0x184   : > { %3974 = vmatpush.msra.mxu2 %v830_v55  ;;  %v19401_v55 = vunpack.i.l.bf16 %v12383_v39 }
 0x185   : > { %3935 = vmatpush.msra.mxu0 %v768_v17  ;;  %v9525_v17 = vunpack.i.l.bf16 %v12361_v34 }
 0x186   : > { %3975 = vmatpush.msra.mxu2 %v769_v5  ;;  %10083 = vrot.lane.b32.xlu2 %v12574_v21, %s18906_s17  ;;  %v647_v53 = vsel %vm18797_vm6, %v9601_v7, %v19401_v55  ;;  %v9781_v5 = vunpack.i.h.bf16 %v12669_v59  ;;  %v9501_v7 = vunpack.i.h.bf16 %v12289_v16  ;;  %v9476_v55 = vunpack.i.h.bf16 %v12309_v20 }
 0x187   : > { %10078 = vrot.lane.b32.xlu1 %v12577_v45, %s18906_s17  ;;  %3936 = vmatpush.msra.mxu0 %v707_v35  ;;  %v586_v35 = vsel %vm18792_vm2, %v9576_v19, %v19402_v31  ;;  %v9475_v19 = vunpack.i.l.bf16 %v12309_v20  ;;  %v463_v16 = vsel %vm18785_vm3, %v9525_v17, %v9526_v37  ;;  %v19404_v59 = vunpack.i.l.bf16 %v12305_v18 }
 0x188   : > { %10073 = vrot.lane.b32.xlu0 %v12581_v52, %s18906_s17  ;;  %3976 = vmatpush.msra.mxu2 %v708_v6  ;;  %v12818_v62 = vpop.permute.xlu2 %9918  ;;  %v524_v6 = vsel %vm18790_vm5, %v9550_v24, %v9551_v49  ;;  %v12844_v34 = vsel %vm18859_vm14, %v9780_v63, %v9781_v5  ;;  %v9831_v24 = vunpack.i.h.bf16 %v12667_v0 }
 0x189   : > { %19399 = vst [vmem:[#allocation80_spill] sm:$0xff] %v12818_v62  ;;  %v12821_v8 = vpop.permute.xlu1 %9868  ;;  %3937 = vmatpush.msra.mxu0 %v646_v33  ;;  %v19403_v33 = vunpack.i.l.bf16 %v12385_v40  ;;  %v464_v63 = vsel %vm18785_vm3, %v9526_v37, %v19404_v59  ;;  %v341_v31 = vsel %vm18770_vm0, %v9475_v19, %v9476_v55  ;;  %v9077_v59 = vld [vmem:[%s12155_s30 + $0x70] sm:$0xff] }
 0x18a   : > { %19400 = vst [vmem:[#allocation81_spill] sm:$0xff] %v12821_v8  ;;  %v12823_v15 = vpop.permute.xlu0 %9863  ;;  %3977 = vmatpush.msra.mxu2 %v647_v53  ;;  %v18751_v53 = vunpack.i.l.bf16 %v12702_v26  ;;  %v19446_v26 = vunpack.i.h.bf16 %v12787_v2 }
 0x18b   : > { %3938 = vmatpush.msra.mxu0 %v585_v41  ;;  %v525_v25 = vsel %vm18790_vm5, %v9551_v49, %v19403_v33  ;;  %v18752_v49 = vunpack.i.l.bf16 %v12756_v56 }
 0x18c   : > { %3978 = vmatpush.msra.mxu2 %v586_v35  ;;  %v18750_v35 = vunpack.i.l.bf16 %v12606_v36 }
 0x18d   : > { %3939 = vmatpush.msra.mxu0 %v524_v6  ;;  %v1214_v33 = vsel %vm1210_vm12, %v9831_v24, %v18752_v49 }
 0x18e   : > { %3979 = vmatpush.msra.mxu2 %v525_v25  ;;  %10098 = vrot.lane.b32.xlu2 %v12581_v52, %s18998_s18  ;;  %v402_v52 = vsel %vm18777_vm1, %v9500_v58, %v9501_v7  ;;  %v19406_v58 = vunpack.i.l.bf16 %v12321_v23  ;;  %v1076_v19 = vsel %vm18859_vm14, %v9781_v5, %v18750_v35 }
 0x18f   : > { %10093 = vrot.lane.b32.xlu1 %v12446_v60, %s18906_s17  ;;  %3940 = vmatpush.msra.mxu0 %v463_v16  ;;  %v19405_v60 = vunpack.i.l.bf16 %v12342_v29  ;;  %v9076_v16 = vld [vmem:[%s12155_s30 + $0x68] sm:$0xff] }
 0x190   : > { %10088 = vrot.lane.b32.xlu0 %v12596_v43, %s18906_s17  ;;  %3980 = vmatpush.msra.mxu2 %v464_v63  ;;  %v12860_v20 = vpop.permute.xlu2 %9933  ;;  %v342_v6 = vsel %vm18770_vm0, %v9476_v55, %v19406_v58  ;;  %v18749_v55 = vunpack.i.l.bf16 %v12659_v61  ;;  %v9074_v63 = vld [vmem:[%s12155_s30 + $0x58] sm:$0xff]  ;;  %v12907_v5 = vpack.i.bf16 %v9077_v59, %v9076_v16  ;;  %v9080_v59 = vld [vmem:[%s12155_s30 + $0x88] sm:$0xff] }
 0x191   : > { %v12864_v17 = vpop.permute.xlu1 %9883  ;;  %3941 = vmatpush.msra.mxu0 %v402_v52  ;;  %v403_v37 = vsel %vm18777_vm1, %v9501_v7, %v19405_v60  ;;  %v19407_v7 = vunpack.i.h.bf16 %v12704_v54  ;;  %v18748_v52 = vunpack.i.l.bf16 %v12615_v50 }
 0x192   : > { %v12866_v41 = vpop.permute.xlu0 %9878  ;;  %3981 = vmatpush.msra.mxu2 %v403_v37  ;;  %v1853_v37 = vld [vmem:[%s12155_s30 + $0x48] sm:$0xff] }
 0x193   : > { %3942 = vmatpush.msra.mxu0 %v341_v31  ;;  %v1153_v25 = vsel %vm18969_vm11, %v19407_v7, %v18751_v53  ;;  %v18738_v31 = vunpack.i.l.bf16 %v12495_v9  ;;  %v10117_v7 = vpack.i.bf16 %v9074_v63, %v1853_v37 }
 0x194   : > { %3982 = vmatpush.msra.mxu2 %v342_v6  ;;  %v19410_v6 = vunpack.i.l.bf16 %v12667_v0  ;;  %v18746_v0 = vunpack.i.l.bf16 %v12499_v13 }
 0x195   : > { %4047 = vmatpush.msrb.mxu0 %v1214_v33 }
 0x196   : > { %10113 = vrot.lane.b32.xlu2 %v12596_v43, %s18998_s18  ;;  %v9075_v43 = vld [vmem:[%s12155_s30 + $0x60] sm:$0xff]  ;;  %v12920_v33 = vsel %vm1210_vm12, %v19410_v6, %v9831_v24  ;;  %v19412_v24 = vunpack.i.h.bf16 %v12570_v10  ;;  %v9078_v6 = vld [vmem:[%s12155_s30 + $0x78] sm:$0xff] }
 0x197   : > { %4048 = vmatpush.msrb.mxu0 %v1153_v25  ;;  %10108 = vrot.lane.b32.xlu1 %v12574_v21, %s18998_s18  ;;  %v12915_v58 = vpack.i.bf16 %v9075_v43, %v9074_v63  ;;  %v18747_v25 = vunpack.i.l.bf16 %v12548_v12  ;;  %v9081_v63 = vld [vmem:[%s12155_s30 + $0x90] sm:$0xff]  ;;  %v18740_v43 = vunpack.i.l.bf16 %v12411_v46 }
 0x198   : > { %10103 = vrot.lane.b32.xlu0 %v12577_v45, %s18998_s18  ;;  %v12897_v54 = vpop.permute.xlu2 %9948  ;;  %v893_v16 = vsel %vm18807_vm10, %v19412_v24, %v18738_v31  ;;  %vm1332_vm10 = vcmask 957440  }
 0x199   : > { %4049 = vmatpush.msrb.mxu0 %v12562_v22  ;;  %v12902_v60 = vpop.permute.xlu1 %9898  ;;  %v19409_v22 = vunpack.i.h.bf16 %v12559_v57  ;;  %v9950_v46 = vunpack.i.l.bf16 %v12897_v54 }
 0x19a   : > { %v12904_v21 = vpop.permute.xlu0 %9893 }
 0x19b   : > { %19408 = vst [vmem:[#allocation82_spill] sm:$0xff] %v12904_v21  ;;  %4050 = vmatpush.msrb.mxu0 %v1076_v19  ;;  %v1015_v45 = vsel %vm18858_vm13, %v19409_v22, %v18749_v55  ;;  %v19411_v19 = vunpack.i.h.bf16 %v12617_v42 }
 0x19d   : > { %4051 = vmatpush.msrb.mxu0 %v1015_v45  ;;  %v954_v57 = vsel %vm18857_vm8, %v19411_v19, %v18748_v52  ;;  %v19413_v45 = vunpack.i.h.bf16 %v12473_v3  ;;  %v9079_v19 = vld [vmem:[%s12155_s30 + $0x80] sm:$0xff]  ;;  %v18745_v3 = vunpack.i.l.bf16 %v12413_v47 }
 0x19e   : > { %10128 = vrot.lane.b32.xlu2 %v12907_v5, %s18996_s5  ;;  %v12963_v31 = vpack.i.bf16 %v9079_v19, %v9078_v6  ;;  %v18743_v6 = vunpack.i.l.bf16 %v12375_v38 }
 0x19f   : > { %4052 = vmatpush.msrb.mxu0 %v954_v57  ;;  %10123 = vrot.lane.b32.xlu1 %v12915_v58, %s18996_s5  ;;  %v832_v10 = vsel %vm18806_vm9, %v19413_v45, %v18747_v25  ;;  %v19414_v57 = vunpack.i.h.bf16 %v12501_v14  ;;  %v19415_v45 = vunpack.i.h.bf16 %v12475_v4  ;;  %v18744_v14 = vunpack.i.l.bf16 %v12338_v27 }
 0x1a0   : > { %10118 = vrot.lane.b32.xlu0 %v10117_v7, %s18998_s18  ;;  %v12939_v42 = vpop.permute.xlu2 %9963  ;;  %v18739_v7 = vunpack.i.l.bf16 %v12459_v1  ;;  %vm1393_vm9 = vcmask 318464  }
 0x1a1   : > { %4053 = vmatpush.msrb.mxu0 %v893_v16  ;;  %v12944_v37 = vpop.permute.xlu1 %9913  ;;  %v771_v24 = vsel %vm18799_vm4, %v19414_v57, %v18746_v0  ;;  %v12961_v16 = vpack.i.bf16 %v9081_v63, %v9080_v59  ;;  %v19416_v59 = vunpack.i.h.bf16 %v12383_v39  ;;  %vm1271_vm4 = vcmask 965632  }
 0x1a2   : > { %v12946_v22 = vpop.permute.xlu0 %9908 }
 0x1a3   : > { %4054 = vmatpush.msrb.mxu0 %v832_v10  ;;  %v710_v10 = vsel %vm18798_vm7, %v19415_v45, %v18740_v43  ;;  %v649_v63 = vsel %vm18797_vm6, %v19416_v59, %v18739_v7  ;;  %v18742_v45 = vunpack.i.l.bf16 %v12340_v28  ;;  %v19420_v43 = vunpack.i.h.bf16 %v12305_v18 }
 0x1a4   : > { %vm1515_vm6 = vcmask 302080   ;;  %vm18869_vm7 = vcmask 310272  }
 0x1a5   : > { %4055 = vmatpush.msrb.mxu0 %v771_v24  ;;  %v19417_v24 = vunpack.i.h.bf16 %v12415_v48  ;;  %v466_v48 = vsel %vm18785_vm3, %v19420_v43, %v18743_v6  ;;  %vm1698_vm3 = vcmask 220160  }
 0x1a6   : > { %10143 = vrot.lane.b32.xlu2 %v12915_v58, %s18994_s8 }
 0x1a7   : > { %4056 = vmatpush.msrb.mxu0 %v710_v10  ;;  %10138 = vrot.lane.b32.xlu1 %v12961_v16, %s18996_s5  ;;  %v588_v39 = vsel %vm18792_vm2, %v19417_v24, %v18745_v3  ;;  %v19418_v10 = vunpack.i.h.bf16 %v12385_v40  ;;  %v19421_v40 = vunpack.i.h.bf16 %v12342_v29  ;;  %vm1576_vm2 = vcmask 236544  }
 0x1a8   : > { %10133 = vrot.lane.b32.xlu0 %v12963_v31, %s18996_s5  ;;  %v12983_v4 = vpop.permute.xlu2 %9978 }
 0x1a9   : > { %4057 = vmatpush.msrb.mxu0 %v649_v63  ;;  %v12986_v19 = vpop.permute.xlu1 %9928  ;;  %v527_v59 = vsel %vm18790_vm5, %v19418_v10, %v18744_v14  ;;  %v19419_v63 = vld [vmem:[#allocation23_spill] sm:$0xff]  ;;  %v405_v24 = vsel %vm18777_vm1, %v19421_v40, %v18742_v45  ;;  %v19424_v10 = vunpack.i.h.bf16 %v12321_v23  ;;  %vm1759_vm1 = vcmask 154624  }
 0x1aa   : > { %v12988_v57 = vpop.permute.xlu0 %9923  ;;  %v18741_v7 = vunpack.i.l.bf16 %v19419_v63  ;;  %vm1637_vm5 = vcmask 228352  }
 0x1ab   : > { %4058 = vmatpush.msrb.mxu0 %v588_v39 }
 0x1ad   : > { %4059 = vmatpush.msrb.mxu0 %v527_v59  ;;  %v344_v59 = vsel %vm18770_vm0, %v19424_v10, %v18741_v7  ;;  %vm1820_vm0 = vcmask 146432  }
 0x1ae   : > { %10158 = vrot.lane.b32.xlu2 %v12961_v16, %s18994_s8 }
 0x1af   : > { %4060 = vmatpush.msrb.mxu0 %v466_v48  ;;  %10153 = vrot.lane.b32.xlu1 %v12963_v31, %s18994_s8 }
 0x1b0   : > { %10148 = vrot.lane.b32.xlu0 %v12907_v5, %s18994_s8  ;;  %v13018_v18 = vpop.permute.xlu2 %9993 }
 0x1b1   : > { %4061 = vmatpush.msrb.mxu0 %v405_v24  ;;  %19422 = vst [vmem:[#allocation83_spill] sm:$0xff] %v13018_v18  ;;  %v13020_v43 = vpop.permute.xlu1 %9943  ;;  %v13121_v18 = vld [vmem:[%s19429_s1] sm:$0xff] }
 0x1b2   : > { %19423 = vst [vmem:[#allocation84_spill] sm:$0xff] %v13020_v43  ;;  %v13022_v39 = vpop.permute.xlu0 %9938  ;;  %3943 = vmatmul.f32.vlgmr.msra.gmra.mxu0 %v13121_v18  ;;  %3983 = vmatmul.f32.vlgmr.msra.gmra.mxu2 %v13121_v18 }
 0x1b3   : > { %4062 = vmatpush.msrb.mxu0 %v344_v59  ;;  %19430 = vst [vmem:[#allocation89_spill] sm:$0xff] %v13121_v18 }
 0x1b6   : > { %10173 = vrot.lane.b32.xlu2 %v12963_v31, %s18992_s11 }
 0x1b7   : > { %10168 = vrot.lane.b32.xlu1 %v12907_v5, %s18992_s11 }
 0x1b8   : > { %10163 = vrot.lane.b32.xlu0 %v12915_v58, %s18992_s11  ;;  %v13035_v29 = vpop.permute.xlu2 %10008 }
 0x1b9   : > { %v13037_v48 = vpop.permute.xlu1 %9958 }
 0x1ba   : > { %v13039_v40 = vpop.permute.xlu0 %9953  ;;  %4063 = vmatmul.f32.vlgmr.msrb.gmra.mxu0 %v13121_v18 }
 0x1be   : > { %10188 = vrot.lane.b32.xlu2 %v12907_v5, %s18908_s20 }
 0x1bf   : > { %10183 = vrot.lane.b32.xlu1 %v12915_v58, %s18908_s20 }
 0x1c0   : > { %10178 = vrot.lane.b32.xlu0 %v12961_v16, %s18992_s11  ;;  %v13047_v23 = vpop.permute.xlu2 %10023 }
 0x1c1   : > { %v13049_v24 = vpop.permute.xlu1 %9973  ;;  %v10025_v18 = vunpack.i.l.bf16 %v13047_v23 }
 0x1c2   : > { %v13051_v10 = vpop.permute.xlu0 %9968  ;;  %v9975_v13 = vunpack.i.l.bf16 %v13049_v24 }
 0x1c3   : > { %19425 = vst [vmem:[#allocation85_spill] sm:$0xff] %v13051_v10 }
 0x1c6   : > { %10203 = vrot.lane.b32.xlu2 %v12915_v58, %s18760_s14 }
 0x1c7   : > { %10198 = vrot.lane.b32.xlu1 %v12961_v16, %s18908_s20 }
 0x1c8   : > { %10193 = vrot.lane.b32.xlu0 %v12963_v31, %s18908_s20  ;;  %v13059_v59 = vpop.permute.xlu2 %10038  ;;  %s20118_s20 = smov 101  }
 0x1c9   : > { %v13061_v7 = vpop.permute.xlu1 %9988 }
 0x1ca   : > { %v13063_v45 = vpop.permute.xlu0 %9983 }
 0x1ce   : > { %10218 = vrot.lane.b32.xlu2 %v12961_v16, %s18760_s14 }
 0x1cf   : > { %10213 = vrot.lane.b32.xlu1 %v12963_v31, %s18760_s14 }
 0x1d0   : > { %10208 = vrot.lane.b32.xlu0 %v12907_v5, %s18760_s14  ;;  %v13071_v6 = vpop.permute.xlu2 %10053  ;;  %s19616_s14 = smov 119  }
 0x1d1   : > { %v13073_v14 = vpop.permute.xlu1 %10003 }
 0x1d2   : > { %v13075_v3 = vpop.permute.xlu0 %9998 }
 0x1d3   : > { %v18800_v12 = vunpack.i.h.bf16 %v13075_v3  ;;  %v10000_v47 = vunpack.i.l.bf16 %v13075_v3 }
 0x1d5   : > { %v1638_v9 = vsel %vm1637_vm5, %v10000_v47, %v18800_v12 }
 0x1d6   : > { %10233 = vrot.lane.b32.xlu2 %v12963_v31, %s18758_s7 }
 0x1d7   : > { %10228 = vrot.lane.b32.xlu1 %v12907_v5, %s18758_s7 }
 0x1d8   : > { %10223 = vrot.lane.b32.xlu0 %v12915_v58, %s18758_s7  ;;  %v13083_v0 = vpop.permute.xlu2 %10068 }
 0x1d9   : > { %19426 = vst [vmem:[#allocation86_spill] sm:$0xff] %v13083_v0  ;;  %v13085_v25 = vpop.permute.xlu1 %10018 }
 0x1da   : > { %19427 = vst [vmem:[#allocation87_spill] sm:$0xff] %v13085_v25  ;;  %v13087_v52 = vpop.permute.xlu0 %10013 }
 0x1de   : > { %10248 = vrot.lane.b32.xlu2 %v12907_v5, %s18889_s16 }
 0x1df   : > { %10243 = vrot.lane.b32.xlu1 %v12915_v58, %s18889_s16 }
 0x1e0   : > { %10238 = vrot.lane.b32.xlu0 %v12961_v16, %s18758_s7  ;;  %v13095_v55 = vpop.permute.xlu2 %10083  ;;  %s19667_s7 = smov 118  }
 0x1e1   : > { %v13097_v35 = vpop.permute.xlu1 %10033 }
 0x1e2   : > { %v13099_v53 = vpop.permute.xlu0 %10028 }
 0x1e6   : > { %10263 = vrot.lane.b32.xlu2 %v12915_v58, %s18887_s19 }
 0x1e7   : > { %10258 = vrot.lane.b32.xlu1 %v12961_v16, %s18889_s16 }
 0x1e8   : > { %10253 = vrot.lane.b32.xlu0 %v12963_v31, %s18889_s16  ;;  %v13107_v49 = vpop.permute.xlu2 %10098  ;;  %s19825_s16 = smov 19  }
 0x1e9   : > { %v18763_v8 = vunpack.i.h.bf16 %v13107_v49  ;;  %v10100_v21 = vunpack.i.l.bf16 %v13107_v49  ;;  %v13111_v62 = vpop.permute.xlu1 %10048  ;;  %v19444_v56 = vunpack.i.h.bf16 %v13107_v49 }
 0x1ea   : > { %v13113_v43 = vpop.permute.xlu0 %10043  ;;  %v10050_v0 = vunpack.i.l.bf16 %v13111_v62 }
 0x1eb   : > { %19428 = vst [vmem:[#allocation88_spill] sm:$0xff] %v13113_v43  ;;  %v1882_v10 = vsel %vm1881_vm15, %v10100_v21, %v18763_v8 }
 0x1ec   : > { %3952 = vmatpush.msra.mxu1 %v1882_v10 }
 0x1ee   : > { %10278 = vrot.lane.b32.xlu2 %v12961_v16, %s18887_s19 }
 0x1ef   : > { %10273 = vrot.lane.b32.xlu1 %v12963_v31, %s18887_s19 }
 0x1f0   : > { %10268 = vrot.lane.b32.xlu0 %v12907_v5, %s18887_s19  ;;  %v13131_v21 = vpop.permute.xlu2 %10113  ;;  %s19820_s19 = smov 27  }
 0x1f1   : > { %v13133_v10 = vpop.permute.xlu1 %10063  ;;  %v19442_v11 = vunpack.i.l.bf16 %v13131_v21 }
 0x1f2   : > { %v13135_v8 = vpop.permute.xlu0 %10058 }
 0x1f6   : > { %10293 = vrot.lane.b32.xlu2 %v12963_v31, %s18885_s26 }
 0x1f7   : > { %10288 = vrot.lane.b32.xlu1 %v12907_v5, %s18885_s26 }
 0x1f8   : > { %10283 = vrot.lane.b32.xlu0 %v12915_v58, %s18885_s26  ;;  %v13144_v25 = vpop.permute.xlu2 %10128 }
 0x1f9   : > { %19431 = vst [vmem:[#allocation90_spill] sm:$0xff] %v13144_v25  ;;  %v13148_v63 = vpop.permute.xlu1 %10078  ;;  %v19432_v25 = vunpack.i.h.bf16 %v13111_v62 }
 0x1fa   : > { %v13150_v28 = vpop.permute.xlu0 %10073 }
 0x1fb   : > { %v18791_v38 = vunpack.i.h.bf16 %v13150_v28  ;;  %v10075_v27 = vunpack.i.l.bf16 %v13150_v28  ;;  %v1760_v1 = vsel %vm1759_vm1, %v10050_v0, %v19432_v25 }
 0x1fd   : > { %v1821_v43 = vsel %vm1820_vm0, %v10075_v27, %v18791_v38  ;;  %v19433_v27 = vunpack.i.h.bf16 %v13047_v23 }
 0x1fe   : > { %3953 = vmatpush.msra.mxu1 %v1821_v43  ;;  %10308 = vrot.lane.b32.xlu2 %v12907_v5, %s18883_s28 }
 0x1ff   : > { %10303 = vrot.lane.b32.xlu1 %v12915_v58, %s18883_s28  ;;  %v1699_v25 = vsel %vm1698_vm3, %v10025_v18, %v19433_v27  ;;  %v19436_v18 = vunpack.i.h.bf16 %v13049_v24 }
 0x200   : > { %10298 = vrot.lane.b32.xlu0 %v12961_v16, %s18885_s26  ;;  %3954 = vmatpush.msra.mxu1 %v1760_v1  ;;  %v13175_v0 = vpop.permute.xlu2 %10143  ;;  %v18805_v1 = vunpack.i.h.bf16 %v12897_v54  ;;  %s19818_s26 = smov 28  }
 0x201   : > { %19434 = vst [vmem:[#allocation91_spill] sm:$0xff] %v13175_v0  ;;  %v13177_v43 = vpop.permute.xlu1 %10093  ;;  %v1577_v27 = vsel %vm1576_vm2, %v9975_v13, %v19436_v18  ;;  %v9850_v13 = vunpack.i.l.bf16 %v12787_v2 }
 0x202   : > { %19435 = vst [vmem:[#allocation92_spill] sm:$0xff] %v13177_v43  ;;  %v13179_v38 = vpop.permute.xlu0 %10088  ;;  %3955 = vmatpush.msra.mxu1 %v1699_v25  ;;  %v9925_v43 = vunpack.i.l.bf16 %v12988_v57  ;;  %v9900_v25 = vunpack.i.l.bf16 %v12902_v60  ;;  %v1516_v47 = vsel %vm1515_vm6, %v9950_v46, %v18805_v1  ;;  %v19439_v46 = vunpack.i.h.bf16 %v12988_v57 }
 0x203   : > { %v1272_v49 = vsel %vm1271_vm4, %v9850_v13, %v19446_v26  ;;  %v19449_v13 = vunpack.i.l.bf16 %v13148_v63  ;;  %v18821_v26 = vunpack.i.h.bf16 %v13073_v14 }
 0x204   : > { %3956 = vmatpush.msra.mxu1 %v1638_v9  ;;  %v19437_v9 = vld [vmem:[#allocation76_spill] sm:$0xff]  ;;  %v1455_v1 = vsel %vm18869_vm7, %v9925_v43, %v19439_v46 }
 0x205   : > { %v9875_v18 = vunpack.i.l.bf16 %v19437_v9  ;;  %v19441_v12 = vunpack.i.h.bf16 %v19437_v9 }
 0x206   : > { %3957 = vmatpush.msra.mxu1 %v1577_v27  ;;  %10323 = vrot.lane.b32.xlu2 %v12915_v58, %s18881_s2 }
 0x207   : > { %10318 = vrot.lane.b32.xlu1 %v12961_v16, %s18883_s28 }
 0x208   : > { %10313 = vrot.lane.b32.xlu0 %v12963_v31, %s18883_s28  ;;  %3958 = vmatpush.msra.mxu1 %v1516_v47  ;;  %v13205_v0 = vpop.permute.xlu2 %10158  ;;  %v19440_v47 = vunpack.i.h.bf16 %v12902_v60  ;;  %s19817_s28 = smov 29  }
 0x209   : > { %19438 = vst [vmem:[#allocation76_spill] sm:$0xff] %v13205_v0  ;;  %v13208_v61 = vpop.permute.xlu1 %10108  ;;  %v18818_v0 = vunpack.i.l.bf16 %v13135_v8 }
 0x20a   : > { %v13216_v36 = vpop.permute.xlu0 %10103  ;;  %3959 = vmatpush.msra.mxu1 %v1455_v1  ;;  %v1394_v50 = vsel %vm1393_vm9, %v9900_v25, %v19440_v47  ;;  %v1333_v1 = vsel %vm1332_vm10, %v9875_v18, %v19441_v12  ;;  %v19443_v25 = vunpack.i.h.bf16 %v13208_v61  ;;  %v19445_v27 = vunpack.i.l.bf16 %v13208_v61 }
 0x20b   : > { %v18817_v43 = vunpack.i.h.bf16 %v13216_v36  ;;  %v18816_v46 = vunpack.i.l.bf16 %v13216_v36  ;;  %v18820_v18 = vunpack.i.l.bf16 %v13097_v35 }
 0x20c   : > { %3960 = vmatpush.msra.mxu1 %v1394_v50  ;;  %v1887_v47 = vsel %vm1881_vm15, %v19443_v25, %v19442_v11  ;;  %v18819_v11 = vunpack.i.h.bf16 %v13071_v6 }
 0x20d   : > { %v1883_v50 = vsel %vm1881_vm15, %v19444_v56, %v18816_v46  ;;  %v1885_v12 = vsel %vm1881_vm15, %v18817_v43, %v19445_v27  ;;  %4152 = vmatpush.msra.mxu0 %v1887_v47  ;;  %v19447_v27 = vunpack.i.l.bf16 %v13095_v55  ;;  %v19448_v47 = vunpack.i.h.bf16 %v13148_v63 }
 0x20e   : > { %3961 = vmatpush.msra.mxu1 %v1333_v1  ;;  %3992 = vmatpush.msra.mxu3 %v1883_v50  ;;  %v18822_v46 = vunpack.i.h.bf16 %v13099_v53 }
 0x20f   : > { %4072 = vmatpush.msrb.mxu2 %v1885_v12  ;;  %10338 = vrot.lane.b32.xlu2 %v12961_v16, %s18881_s2  ;;  %v1824_v1 = vsel %vm1820_vm0, %v19448_v47, %v19447_v27  ;;  %v19450_v12 = vunpack.i.h.bf16 %v13150_v28  ;;  %v19452_v27 = vunpack.i.l.bf16 %v13071_v6  ;;  %v19453_v47 = vunpack.i.h.bf16 %v13111_v62 }
 0x210   : > { %10333 = vrot.lane.b32.xlu1 %v12963_v31, %s18881_s2  ;;  %10328 = vrot.lane.b32.xlu0 %v12907_v5, %s18881_s2  ;;  %v13274_v25 = vpop.permute.xlu2 %10173  ;;  %v19454_v28 = vunpack.i.l.bf16 %v13179_v38  ;;  %v19460_v62 = vunpack.i.h.bf16 %v13097_v35  ;;  %s19791_s2 = smov 38  }
 0x211   : > { %v1822_v43 = vsel %vm1820_vm0, %v19450_v12, %v19449_v13  ;;  %19451 = vst [vmem:[#allocation93_spill] sm:$0xff] %v13274_v25  ;;  %v1761_v50 = vsel %vm1759_vm1, %v19453_v47, %v19452_v27  ;;  %3962 = vmatpush.msra.mxu1 %v1272_v49  ;;  %v19455_v13 = vunpack.i.h.bf16 %v13095_v55  ;;  %v13289_v56 = vpop.permute.xlu1 %10123  ;;  %4073 = vmatpush.msrb.mxu2 %v1824_v1  ;;  %v19463_v27 = vld [vmem:[#allocation75_spill] sm:$0xff]  ;;  %v19525_v25 = vld [vmem:[#allocation68_spill] sm:$0xff] }
 0x212   : > { %3993 = vmatpush.msra.mxu3 %v1822_v43  ;;  %19456 = vst [vmem:[#allocation94_spill] sm:$0xff] %v13289_v56  ;;  %v13293_v47 = vpop.permute.xlu0 %10118  ;;  %v1763_v43 = vsel %vm1759_vm1, %v18819_v11, %v18818_v0  ;;  %v1099_v11 = vld [vmem:[%s12155_s30 + $0x18] sm:$0xff] }
 0x213   : > { %v1826_v12 = vsel %vm1820_vm0, %v19455_v13, %v19454_v28  ;;  %4007 = vmatpush.msrb.mxu1 %v12920_v33  ;;  %v19457_v28 = vunpack.i.l.bf16 %v13133_v10  ;;  %v19458_v13 = vunpack.i.h.bf16 %v13135_v8  ;;  %4074 = vmatpush.msrb.mxu2 %v1763_v43  ;;  %v19461_v33 = vunpack.i.l.bf16 %v13099_v53 }
 0x214   : > { %4153 = vmatpush.msra.mxu0 %v1826_v12  ;;  %3994 = vmatpush.msra.mxu3 %v1761_v50  ;;  %v19459_v12 = vunpack.i.l.bf16 %v13059_v59  ;;  %v19462_v50 = vunpack.i.h.bf16 %v13047_v23  ;;  %v18830_v23 = vunpack.i.h.bf16 %v12983_v4 }
 0x215   : > { %v1765_v1 = vsel %vm1759_vm1, %v19458_v13, %v19457_v28  ;;  %4008 = vmatpush.msrb.mxu1 %v19463_v27  ;;  %v1702_v28 = vsel %vm1698_vm3, %v18822_v46, %v18820_v18  ;;  %v18824_v13 = vunpack.i.l.bf16 %v12983_v4  ;;  %v19466_v27 = vunpack.i.h.bf16 %v13075_v3 }
 0x216   : > { %v1704_v49 = vsel %vm1698_vm3, %v19460_v62, %v19459_v12  ;;  %4154 = vmatpush.msra.mxu0 %v1765_v1  ;;  %v1700_v0 = vsel %vm1698_vm3, %v19462_v50, %v19461_v33  ;;  %v19464_v62 = vunpack.i.l.bf16 %v13035_v29  ;;  %v18823_v1 = vunpack.i.l.bf16 %v13063_v45  ;;  %4075 = vmatpush.msrb.mxu2 %v1702_v28 }
 0x217   : > { %3995 = vmatpush.msra.mxu3 %v1700_v0  ;;  %v19465_v0 = vunpack.i.l.bf16 %v13073_v14  ;;  %v18825_v33 = vunpack.i.l.bf16 %v13061_v7  ;;  %v18826_v50 = vunpack.i.h.bf16 %v13063_v45  ;;  %4009 = vmatpush.msrb.mxu1 %v1099_v11  ;;  %v19468_v18 = vunpack.i.h.bf16 %v13035_v29 }
 0x218   : > { %v1641_v43 = vsel %vm1637_vm5, %v18821_v26, %v19464_v62  ;;  %4155 = vmatpush.msra.mxu0 %v1704_v49  ;;  %v19467_v62 = vunpack.i.l.bf16 %v13087_v52  ;;  %v18828_v49 = vunpack.i.l.bf16 %v13037_v48  ;;  %v18829_v28 = vunpack.i.h.bf16 %v13039_v40  ;;  %10353 = vrot.lane.b32.xlu2 %v12963_v31, %s18879_s13 }
 0x219   : > { %v1639_v12 = vsel %vm1637_vm5, %v19466_v27, %v19465_v0  ;;  %v18827_v3 = vunpack.i.l.bf16 %v13039_v40  ;;  %4076 = vmatpush.msrb.mxu2 %v1641_v43  ;;  %v13347_v0 = vpop.permute.xlu2 %10188  ;;  %v18832_v11 = vunpack.i.l.bf16 %v12939_v42  ;;  %4010 = vmatpush.msrb.mxu1 %v12844_v34  ;;  %v1580_v46 = vsel %vm1576_vm2, %v18830_v23, %v18823_v1 }
 0x21a   : > { %3996 = vmatpush.msra.mxu3 %v1639_v12  ;;  %v1643_v26 = vsel %vm1637_vm5, %v19468_v18, %v19467_v62  ;;  %19469 = vst [vmem:[#allocation75_spill] sm:$0xff] %v13347_v0  ;;  %v13355_v18 = vpop.permute.xlu1 %10138  ;;  %10348 = vrot.lane.b32.xlu1 %v12907_v5, %s18879_s13  ;;  %v13373_v62 = vpop.permute.xlu0 %10133  ;;  %v18836_v27 = vunpack.i.h.bf16 %v12781_v30  ;;  %v18834_v43 = vunpack.i.h.bf16 %v12860_v20  ;;  %v18831_v12 = vunpack.i.l.bf16 %v13022_v39  ;;  %v19536_v0 = vld [vmem:[#allocation48_spill] sm:$0xff] }
 0x21b   : > { %4156 = vmatpush.msra.mxu0 %v1643_v26  ;;  %19470 = vst [vmem:[#allocation95_spill] sm:$0xff] %v13355_v18  ;;  %10343 = vrot.lane.b32.xlu0 %v12915_v58, %s18879_s13  ;;  %v19471_v26 = vunpack.i.h.bf16 %v13049_v24  ;;  %v1582_v24 = vsel %vm1576_vm2, %v18826_v50, %v18825_v33  ;;  %v18833_v1 = vunpack.i.l.bf16 %v12946_v22  ;;  %v18837_v33 = vunpack.i.l.bf16 %v12944_v37  ;;  %v9200_v50 = vld [vmem:[%s12155_s30 + $0x68] sm:$0xff]  ;;  %v19507_v18 = vld [vmem:[#allocation61_spill] sm:$0xff] }
 0x21c   : > { %19472 = vst [vmem:[#allocation96_spill] sm:$0xff] %v13373_v62  ;;  %4077 = vmatpush.msrb.mxu2 %v1580_v46  ;;  %4011 = vmatpush.msrb.mxu1 %v12736_v44  ;;  %v1519_v46 = vsel %vm1515_vm6, %v18829_v28, %v18828_v49  ;;  %v19474_v44 = vunpack.i.h.bf16 %v13037_v48  ;;  %v19478_v28 = vunpack.i.l.bf16 %v12860_v20  ;;  %v18841_v23 = vunpack.i.l.bf16 %v12751_v32  ;;  %v19522_v62 = vld [vmem:[#allocation70_spill] sm:$0xff] }
 0x21d   : > { %v1578_v34 = vsel %vm1576_vm2, %v19471_v26, %v18824_v13  ;;  %v18835_v26 = vunpack.i.l.bf16 %v12781_v30  ;;  %4157 = vmatpush.msra.mxu0 %v1582_v24  ;;  %v19473_v13 = vunpack.i.h.bf16 %v12897_v54  ;;  %v19476_v24 = vunpack.i.l.bf16 %v12986_v19 }
 0x21e   : > { %3997 = vmatpush.msra.mxu3 %v1578_v34  ;;  %4078 = vmatpush.msrb.mxu2 %v1519_v46  ;;  %v1521_v54 = vsel %vm1515_vm6, %v19474_v44, %v18832_v11  ;;  %v18838_v44 = vunpack.i.l.bf16 %v12866_v41  ;;  %v19498_v11 = vld [vmem:[#allocation51_spill] sm:$0xff] }
 0x21f   : > { %v1517_v34 = vsel %vm1515_vm6, %v19473_v13, %v18827_v3  ;;  %4158 = vmatpush.msra.mxu0 %v1521_v54  ;;  %v19475_v13 = vld [vmem:[#allocation63_spill] sm:$0xff]  ;;  %v19477_v3 = vunpack.i.h.bf16 %v12988_v57  ;;  %v1460_v57 = vsel %vm18869_vm7, %v18834_v43, %v18831_v12  ;;  %v18840_v54 = vunpack.i.h.bf16 %v12866_v41  ;;  %v19497_v43 = vld [vmem:[#allocation77_spill] sm:$0xff] }
 0x220   : > { %3998 = vmatpush.msra.mxu3 %v1517_v34  ;;  %4012 = vmatpush.msrb.mxu1 %v19475_v13  ;;  %v19479_v34 = vunpack.i.h.bf16 %v12986_v19  ;;  %v19481_v13 = vunpack.i.h.bf16 %v12902_v60  ;;  %v19495_v12 = vunpack.i.h.bf16 %v12787_v2 }
 0x221   : > { %v1456_v49 = vsel %vm18869_vm7, %v19477_v3, %v19476_v24  ;;  %v18839_v3 = vunpack.i.l.bf16 %v12864_v17  ;;  %4159 = vmatpush.msra.mxu0 %v1460_v57  ;;  %v1397_v24 = vsel %vm1393_vm9, %v18836_v27, %v18833_v1  ;;  %v19483_v57 = vunpack.i.h.bf16 %v12946_v22  ;;  %10368 = vrot.lane.b32.xlu2 %v12907_v5, %s18877_s29 }
 0x222   : > { %v1458_v46 = vsel %vm18869_vm7, %v19479_v34, %v19478_v28  ;;  %3999 = vmatpush.msra.mxu3 %v1456_v49  ;;  %v19480_v28 = vld [vmem:[#allocation72_spill] sm:$0xff]  ;;  %v1395_v49 = vsel %vm1393_vm9, %v19481_v13, %v18835_v26  ;;  %v13435_v34 = vpop.permute.xlu2 %10203  ;;  %v19485_v13 = vld [vmem:[#allocation73_spill] sm:$0xff]  ;;  %10363 = vrot.lane.b32.xlu1 %v12915_v58, %s18877_s29  ;;  %v19492_v58 = vunpack.i.h.bf16 %v12864_v17  ;;  %v9820_v1 = vunpack.i.l.bf16 %v19497_v43  ;;  %v19555_v43 = vld [vmem:[#allocation26_spill] sm:$0xff] }
 0x223   : > { %4079 = vmatpush.msrb.mxu2 %v1458_v46  ;;  %4013 = vmatpush.msrb.mxu1 %v19480_v28  ;;  %19482 = vst [vmem:[#allocation63_spill] sm:$0xff] %v13435_v34  ;;  %v1399_v60 = vsel %vm1393_vm9, %v19483_v57, %v18837_v33  ;;  %v13443_v28 = vpop.permute.xlu1 %10153  ;;  %v19486_v26 = vld [vmem:[#allocation65_spill] sm:$0xff]  ;;  %v19489_v46 = vld [vmem:[#allocation78_spill] sm:$0xff]  ;;  %v19490_v57 = vunpack.i.h.bf16 %v19437_v9  ;;  %v19491_v33 = vld [vmem:[#allocation79_spill] sm:$0xff]  ;;  %v1336_v5 = vsel %vm1332_vm10, %v18840_v54, %v18839_v3 }
 0x224   : > { %4000 = vmatpush.msra.mxu3 %v1395_v49  ;;  %19484 = vst [vmem:[#allocation72_spill] sm:$0xff] %v13443_v28  ;;  %4160 = vmatpush.msra.mxu0 %v1399_v60  ;;  %v13450_v49 = vpop.permute.xlu0 %10148  ;;  %v1338_v9 = vsel %vm1332_vm10, %v19492_v58, %v18841_v23  ;;  %v19496_v54 = vld [vmem:[#allocation74_spill] sm:$0xff]  ;;  %v19499_v58 = vunpack.i.l.bf16 %v19485_v13  ;;  %v19500_v23 = vunpack.i.h.bf16 %v12785_v51  ;;  %v9795_v28 = vunpack.i.l.bf16 %v19522_v62  ;;  %v19547_v62 = vld [vmem:[#allocation29_spill] sm:$0xff] }
 0x225   : > { %4080 = vmatpush.msrb.mxu2 %v1397_v24  ;;  %4014 = vmatpush.msrb.mxu1 %v19486_v26  ;;  %19487 = vst [vmem:[#allocation73_spill] sm:$0xff] %v13450_v49  ;;  %v19488_v24 = vld [vmem:[#allocation69_spill] sm:$0xff]  ;;  %v1334_v60 = vsel %vm1332_vm10, %v19490_v57, %v18838_v44  ;;  %v19493_v57 = vld [vmem:[#allocation66_spill] sm:$0xff]  ;;  %v19502_v44 = vunpack.i.h.bf16 %v19485_v13  ;;  %v19506_v26 = vunpack.i.l.bf16 %v13148_v63 }
 0x226   : > { %v9845_v27 = vunpack.i.l.bf16 %v19488_v24  ;;  %10358 = vrot.lane.b32.xlu0 %v12961_v16, %s18879_s13  ;;  %4001 = vmatpush.msra.mxu3 %v1334_v60  ;;  %v19494_v60 = vunpack.i.l.bf16 %v12785_v51  ;;  %v9203_v49 = vld [vmem:[%s12155_s30 + $0x80] sm:$0xff]  ;;  %s19808_s13 = smov 37  }
 0x227   : > { %4081 = vmatpush.msrb.mxu2 %v1336_v5  ;;  %4161 = vmatpush.msra.mxu0 %v1338_v9  ;;  %v1275_v5 = vsel %vm1271_vm4, %v19500_v23, %v19499_v58  ;;  %v19501_v9 = vunpack.i.l.bf16 %v12823_v15  ;;  %v9199_v58 = vld [vmem:[%s12155_s30 + $0x60] sm:$0xff] }
 0x228   : > { %v1273_v3 = vsel %vm1271_vm4, %v19495_v12, %v19494_v60  ;;  %4015 = vmatpush.msrb.mxu1 %v19498_v11  ;;  %v19503_v12 = vunpack.i.h.bf16 %v13216_v36  ;;  %v19504_v60 = vunpack.i.l.bf16 %v13216_v36 }
 0x229   : > { %4002 = vmatpush.msra.mxu3 %v1273_v3  ;;  %v1277_v2 = vsel %vm1271_vm4, %v19502_v44, %v19501_v9  ;;  %4082 = vmatpush.msrb.mxu2 %v1275_v5  ;;  %v19505_v3 = vunpack.i.h.bf16 %v13148_v63  ;;  %v19508_v44 = vunpack.i.l.bf16 %v19489_v46  ;;  %v19509_v5 = vunpack.i.h.bf16 %v19491_v33 }
 0x22a   : > { %4162 = vmatpush.msra.mxu0 %v1277_v2  ;;  %v1884_v11 = vsel %vm1881_vm15, %v19504_v60, %v19503_v12  ;;  %4016 = vmatpush.msrb.mxu1 %v19507_v18  ;;  %v19510_v9 = vunpack.i.h.bf16 %v19489_v46  ;;  %v13518_v63 = vpop.permute.xlu2 %10218  ;;  %v19513_v12 = vunpack.i.l.bf16 %v13071_v6 }
 0x22b   : > { %v1823_v23 = vsel %vm1820_vm0, %v19506_v26, %v19505_v3  ;;  %4032 = vmatpush.msrb.mxu3 %v1884_v11  ;;  %v1216_v36 = vsel %vm1210_vm12, %v19509_v5, %v19508_v44  ;;  %19511 = vst [vmem:[#allocation65_spill] sm:$0xff] %v13518_v63  ;;  %v19512_v26 = vunpack.i.h.bf16 %v13071_v6  ;;  %v13525_v60 = vpop.permute.xlu1 %10168  ;;  %v19515_v11 = vld [vmem:[#allocation53_spill] sm:$0xff]  ;;  %v19516_v3 = vunpack.i.l.bf16 %v19493_v57  ;;  %10378 = vrot.lane.b32.xlu1 %v12961_v16, %s18877_s29 }
 0x22c   : > { %v1218_v2 = vsel %vm1210_vm12, %v19510_v9, %v9845_v27  ;;  %4127 = vmatpush.msra.mxu2 %v1216_v36  ;;  %19514 = vst [vmem:[#allocation78_spill] sm:$0xff] %v13525_v60  ;;  %4017 = vmatpush.msrb.mxu1 %v19515_v11  ;;  %v19517_v44 = vunpack.i.h.bf16 %v19496_v54  ;;  %v19518_v5 = vunpack.i.h.bf16 %v19493_v57  ;;  %v1102_v9 = vld [vmem:[%s12155_s30 + $0x30] sm:$0xff]  ;;  %v13538_v6 = vpack.i.bf16 %v9200_v50, %v9199_v58  ;;  %v19526_v58 = vld [vmem:[#allocation57_spill] sm:$0xff] }
 0x22d   : > { %4207 = vmatpush.msrb.mxu0 %v1218_v2  ;;  %v1762_v18 = vsel %vm1759_vm1, %v19513_v12, %v19512_v26  ;;  %4033 = vmatpush.msrb.mxu3 %v1823_v23  ;;  %v1104_v2 = vld [vmem:[%s12155_s30 + $0x40] sm:$0xff]  ;;  %v13540_v26 = vpop.permute.xlu0 %10163  ;;  %v19520_v12 = vld [vmem:[#allocation60_spill] sm:$0xff]  ;;  %v19521_v11 = vld [vmem:[#allocation71_spill] sm:$0xff]  ;;  %v9770_v63 = vunpack.i.l.bf16 %v19526_v58 }
 0x22e   : > { %v1155_v27 = vsel %vm18969_vm11, %v19517_v44, %v19516_v3  ;;  %v1157_v36 = vsel %vm18969_vm11, %v19518_v5, %v9820_v1  ;;  %19519 = vst [vmem:[#allocation79_spill] sm:$0xff] %v13540_v26  ;;  %v18850_v23 = vunpack.i.l.bf16 %v19521_v11  ;;  %v19523_v44 = vld [vmem:[#allocation39_spill] sm:$0xff]  ;;  %10383 = vrot.lane.b32.xlu2 %v13538_v6, %s18871_s12  ;;  %10373 = vrot.lane.b32.xlu0 %v12963_v31, %s18877_s29  ;;  %v19532_v3 = vunpack.i.h.bf16 %v19520_v12  ;;  %v19538_v5 = vld [vmem:[#allocation44_spill] sm:$0xff]  ;;  %s19761_s29 = smov 39  }
 0x22f   : > { %4128 = vmatpush.msra.mxu2 %v1155_v27  ;;  %4208 = vmatpush.msrb.mxu0 %v1157_v36  ;;  %v19524_v1 = vld [vmem:[#allocation67_spill] sm:$0xff]  ;;  %v19531_v27 = vunpack.i.l.bf16 %v13099_v53  ;;  %v19533_v36 = vld [vmem:[#allocation64_spill] sm:$0xff]  ;;  %v19539_v26 = vunpack.i.h.bf16 %v13073_v14 }
 0x230   : > { %4018 = vmatpush.msrb.mxu1 %v19523_v44  ;;  %4034 = vmatpush.msrb.mxu3 %v1762_v18  ;;  %v19527_v18 = vld [vmem:[#allocation54_spill] sm:$0xff]  ;;  %v1078_v16 = vsel %vm18859_vm14, %v19532_v3, %v18850_v23  ;;  %v9745_v31 = vunpack.i.l.bf16 %v19533_v36  ;;  %v19537_v23 = vld [vmem:[#allocation59_spill] sm:$0xff]  ;;  %v9202_v3 = vld [vmem:[%s12155_s30 + $0x78] sm:$0xff] }
 0x231   : > { %4129 = vmatpush.msra.mxu2 %v1102_v9  ;;  %4209 = vmatpush.msrb.mxu0 %v1104_v2  ;;  %v19528_v44 = vld [vmem:[#allocation62_spill] sm:$0xff]  ;;  %v19530_v2 = vunpack.i.h.bf16 %v13099_v53  ;;  %v9201_v36 = vld [vmem:[%s12155_s30 + $0x70] sm:$0xff] }
 0x232   : > { %v19529_v9 = vld [vmem:[#allocation50_spill] sm:$0xff]  ;;  %v13578_v60 = vpop.permute.xlu2 %10233 }
 0x233   : > { %4019 = vmatpush.msrb.mxu1 %v19529_v9  ;;  %v1701_v50 = vsel %vm1698_vm3, %v19531_v27, %v19530_v2  ;;  %4130 = vmatpush.msra.mxu2 %v1078_v16  ;;  %v19534_v9 = vunpack.i.h.bf16 %v19521_v11  ;;  %v9205_v27 = vld [vmem:[%s12155_s30 + $0x90] sm:$0xff]  ;;  %v9206_v2 = vld [vmem:[%s12155_s30 + $0x98] sm:$0xff]  ;;  %19535 = vst [vmem:[#allocation66_spill] sm:$0xff] %v13578_v60  ;;  %v9204_v60 = vld [vmem:[%s12155_s30 + $0x88] sm:$0xff]  ;;  %v13596_v58 = vpop.permute.xlu1 %10183 }
 0x234   : > { %4035 = vmatpush.msrb.mxu3 %v1701_v50  ;;  %v19540_v50 = vunpack.i.l.bf16 %v13073_v14  ;;  %19543 = vst [vmem:[#allocation74_spill] sm:$0xff] %v13596_v58  ;;  %v19545_v14 = vunpack.i.h.bf16 %v19524_v1 }
 0x235   : > { %v1080_v53 = vsel %vm18859_vm14, %v19534_v9, %v9795_v28  ;;  %4020 = vmatpush.msrb.mxu1 %v19538_v5  ;;  %v19541_v28 = vunpack.i.l.bf16 %v19524_v1  ;;  %v19542_v9 = vunpack.i.h.bf16 %v19525_v25  ;;  %v13616_v5 = vpack.i.bf16 %v9206_v2, %v9205_v27 }
 0x236   : > { %4210 = vmatpush.msrb.mxu0 %v1080_v53  ;;  %v1640_v16 = vsel %vm1637_vm5, %v19540_v50, %v19539_v26  ;;  %v19544_v53 = vld [vmem:[#allocation58_spill] sm:$0xff]  ;;  %v1019_v26 = vsel %vm18858_vm13, %v19545_v14, %v9770_v63  ;;  %v13603_v50 = vpop.permute.xlu0 %10178  ;;  %v19552_v63 = vunpack.i.h.bf16 %v19527_v18  ;;  %v13621_v14 = vpack.i.bf16 %v9204_v60, %v9203_v49 }
 0x237   : > { %v1017_v34 = vsel %vm18858_vm13, %v19542_v9, %v19541_v28  ;;  %v9720_v56 = vunpack.i.l.bf16 %v19544_v53  ;;  %4036 = vmatpush.msrb.mxu3 %v1640_v16  ;;  %19546 = vst [vmem:[#allocation51_spill] sm:$0xff] %v13603_v50  ;;  %4021 = vmatpush.msrb.mxu1 %v19547_v62  ;;  %v19548_v28 = vunpack.i.h.bf16 %v12983_v4  ;;  %v19549_v9 = vunpack.i.l.bf16 %v12983_v4  ;;  %v19553_v4 = vld [vmem:[#allocation55_spill] sm:$0xff] }
 0x238   : > { %4131 = vmatpush.msra.mxu2 %v1017_v34  ;;  %4211 = vmatpush.msrb.mxu0 %v1019_v26  ;;  %v19550_v53 = vunpack.i.l.bf16 %v19527_v18  ;;  %v19551_v16 = vunpack.i.h.bf16 %v19528_v44  ;;  %v958_v62 = vsel %vm18857_vm8, %v19552_v63, %v9745_v31  ;;  %v13623_v26 = vpack.i.bf16 %v9202_v3, %v9201_v36  ;;  %v19561_v36 = vld [vmem:[#allocation45_spill] sm:$0xff] }
 0x239   : > { %v1579_v58 = vsel %vm1576_vm2, %v19549_v9, %v19548_v28  ;;  %v18861_v28 = vunpack.i.l.bf16 %v19553_v4  ;;  %v19554_v9 = vld [vmem:[#allocation56_spill] sm:$0xff]  ;;  %4022 = vmatpush.msrb.mxu1 %v19555_v43  ;;  %v19556_v27 = vunpack.i.h.bf16 %v13039_v40  ;;  %v19559_v49 = vunpack.i.h.bf16 %v19536_v0  ;;  %10398 = vrot.lane.b32.xlu2 %v13616_v5, %s18871_s12 }
 0x23a   : > { %v956_v34 = vsel %vm18857_vm8, %v19551_v16, %v19550_v53  ;;  %4037 = vmatpush.msrb.mxu3 %v1579_v58  ;;  %v18862_v50 = vunpack.i.h.bf16 %v19554_v9  ;;  %4212 = vmatpush.msrb.mxu0 %v958_v62  ;;  %v19557_v58 = vunpack.i.l.bf16 %v13039_v40  ;;  %v19558_v53 = vunpack.i.l.bf16 %v19537_v23  ;;  %v13646_v40 = vld [vmem:[%s19429_s1 + $0x8] sm:$0xff]  ;;  %v19565_v62 = vld [vmem:[#allocation49_spill] sm:$0xff]  ;;  %v13668_v63 = vpop.permute.xlu2 %10248 }
 0x23b   : > { %4132 = vmatpush.msra.mxu2 %v956_v34  ;;  %vm19560_vm8 = vcmask 89088   ;;  %v9695_v31 = vunpack.i.l.bf16 %v19561_v36  ;;  %v19562_v43 = vunpack.i.h.bf16 %v19537_v23  ;;  %vm18903_vm14 = vcmask 719872   ;;  %v19564_v34 = vld [vmem:[#allocation41_spill] sm:$0xff]  ;;  %10393 = vrot.lane.b32.xlu1 %v13621_v14, %s18871_s12  ;;  %19571 = vst [vmem:[#allocation61_spill] sm:$0xff] %v13668_v63  ;;  %v13684_v63 = vpop.permute.xlu1 %10198 }
 0x23c   : > { %v1518_v2 = vsel %vm1515_vm6, %v19557_v58, %v19556_v27  ;;  %v895_v60 = vsel %vm19560_vm8, %v19559_v49, %v19558_v53  ;;  %vm19563_vm13 = vmmov %vm19560_vm8  ;;  %v19566_v58 = vunpack.i.h.bf16 %v13208_v61  ;;  %v19568_v49 = vld [vmem:[#allocation52_spill] sm:$0xff]  ;;  %10388 = vrot.lane.b32.xlu0 %v13623_v26, %s18871_s12  ;;  %9315 = vmatmul.msk.f32.vlgmr.msra.gmra.mxu1 %vm18903_vm14, %v13646_v40  ;;  %vm19574_vm8 = vcmask 728064   ;;  %19577 = vst [vmem:[#allocation53_spill] sm:$0xff] %v13684_v63  ;;  %v19585_v63 = vld [vmem:[#allocation43_spill] sm:$0xff]  ;;  %s19704_s12 = smov 117  }
 0x23d   : > { %4038 = vmatpush.msrb.mxu3 %v1518_v2  ;;  %4133 = vmatpush.msra.mxu2 %v895_v60  ;;  %v897_v16 = vsel %vm19563_vm13, %v19562_v43, %v9720_v56  ;;  %v19567_v2 = vunpack.i.l.bf16 %v13208_v61  ;;  %v9670_v60 = vunpack.i.l.bf16 %v19568_v49  ;;  %v19569_v43 = vunpack.i.h.bf16 %v12986_v19  ;;  %v19572_v61 = vld [vmem:[#allocation37_spill] sm:$0xff]  ;;  %vm19580_vm13 = vmmov %vm19574_vm8 }
 0x23e   : > { %4213 = vmatpush.msrb.mxu0 %v897_v16  ;;  %v19570_v16 = vunpack.i.l.bf16 %v12986_v19  ;;  %v834_v3 = vsel %vm19574_vm8, %v18862_v50, %v18861_v28  ;;  %v19575_v19 = vunpack.i.h.bf16 %v13095_v55  ;;  %v19581_v28 = vunpack.i.h.bf16 %v12781_v30  ;;  %v13696_v24 = vpop.permute.xlu0 %10193  ;;  %9316 = vmatmul.msk.f32.vlgmr.msra.gmra.mxu3 %vm18903_vm14, %v13646_v40 }
 0x23f   : > { %v1886_v56 = vsel %vm1881_vm15, %v19567_v2, %v19566_v58  ;;  %v19573_v2 = vld [vmem:[#allocation47_spill] sm:$0xff]  ;;  %v19578_v58 = vld [vmem:[#allocation46_spill] sm:$0xff]  ;;  %4134 = vmatpush.msra.mxu2 %v834_v3  ;;  %v19582_v50 = vunpack.i.l.bf16 %v12781_v30  ;;  %19583 = vst [vmem:[#allocation60_spill] sm:$0xff] %v13696_v24  ;;  %v19586_v3 = vunpack.i.l.bf16 %v19564_v34  ;;  %vm19588_vm8 = vcmask 736256   ;;  %9320 = vmatmul.msk.f32.vlgmr.msra.gmra.mxu0 %vm18903_vm14, %v13646_v40 }
 0x240   : > { %v1457_v27 = vsel %vm18869_vm7, %v19570_v16, %v19569_v43  ;;  %v19576_v43 = vunpack.i.l.bf16 %v13095_v55  ;;  %v9645_v53 = vunpack.i.l.bf16 %v19578_v58  ;;  %4112 = vmatpush.msra.mxu1 %v1886_v56  ;;  %v19587_v56 = vunpack.i.h.bf16 %v19565_v62  ;;  %v1101_v24 = vld [vmem:[%s12155_s30 + $0x28] sm:$0xff]  ;;  %9318 = vmatmul.msk.f32.vlgmr.msrb.gmra.mxu2 %vm18903_vm14, %v13646_v40 }
 0x241   : > { %4039 = vmatpush.msrb.mxu3 %v1457_v27  ;;  %v19579_v27 = vunpack.i.h.bf16 %v19553_v4  ;;  %v1396_v55 = vsel %vm1393_vm9, %v19582_v50, %v19581_v28  ;;  %v19590_v50 = vunpack.i.h.bf16 %v19564_v34  ;;  %v19592_v58 = vunpack.i.h.bf16 %v12866_v41  ;;  %10413 = vrot.lane.b32.xlu2 %v13621_v14, %s19616_s14 }
 0x242   : > { %v1825_v16 = vsel %vm1820_vm0, %v19576_v43, %v19575_v19  ;;  %v19584_v19 = vld [vmem:[#allocation42_spill] sm:$0xff]  ;;  %v19594_v43 = vunpack.i.h.bf16 %v13135_v8  ;;  %v19605_v30 = vunpack.i.h.bf16 %v13097_v35 }
 0x243   : > { %v836_v36 = vsel %vm19580_vm13, %v19579_v27, %v9695_v31  ;;  %4040 = vmatpush.msrb.mxu3 %v1396_v55  ;;  %v773_v31 = vsel %vm19588_vm8, %v19587_v56, %v19586_v3  ;;  %v19589_v27 = vld [vmem:[#allocation34_spill] sm:$0xff]  ;;  %4113 = vmatpush.msra.mxu1 %v1825_v16  ;;  %vm19591_vm13 = vmmov %vm19588_vm8  ;;  %v19595_v3 = vunpack.i.l.bf16 %v13135_v8  ;;  %v19596_v16 = vunpack.i.l.bf16 %v19573_v2 }
 0x244   : > { %4214 = vmatpush.msrb.mxu0 %v836_v36  ;;  %v9620_v49 = vunpack.i.l.bf16 %v19589_v27  ;;  %4135 = vmatpush.msra.mxu2 %v773_v31  ;;  %v775_v28 = vsel %vm19591_vm13, %v19590_v50, %v9670_v60  ;;  %v19593_v36 = vunpack.i.l.bf16 %v12866_v41  ;;  %v19597_v31 = vunpack.i.h.bf16 %v19572_v61 }
 0x245   : > { %v1764_v56 = vsel %vm1759_vm1, %v19595_v3, %v19594_v43  ;;  %vm19598_vm8 = vcmask 744448   ;;  %v19599_v41 = vunpack.i.h.bf16 %v19573_v2  ;;  %v19601_v50 = vunpack.i.h.bf16 %v12785_v51  ;;  %v19603_v43 = vld [vmem:[#allocation31_spill] sm:$0xff]  ;;  %10408 = vrot.lane.b32.xlu1 %v13623_v26, %s19616_s14  ;;  %10403 = vrot.lane.b32.xlu0 %v13538_v6, %s19616_s14  ;;  %v19629_v3 = vld [vmem:[#allocation24_spill] sm:$0xff] }
 0x246   : > { %v1335_v55 = vsel %vm1332_vm10, %v19593_v36, %v19592_v58  ;;  %4215 = vmatpush.msrb.mxu0 %v775_v28  ;;  %v712_v60 = vsel %vm19598_vm8, %v19597_v31, %v19596_v16  ;;  %4114 = vmatpush.msra.mxu1 %v1764_v56  ;;  %vm19600_vm13 = vmmov %vm19598_vm8  ;;  %v19602_v28 = vunpack.i.l.bf16 %v12785_v51  ;;  %v19606_v56 = vunpack.i.l.bf16 %v13097_v35  ;;  %v13750_v35 = vpop.permute.xlu2 %10263  ;;  %v19623_v36 = vld [vmem:[#allocation33_spill] sm:$0xff] }
 0x247   : > { %4041 = vmatpush.msrb.mxu3 %v1335_v55  ;;  %4136 = vmatpush.msra.mxu2 %v712_v60  ;;  %v714_v58 = vsel %vm19600_vm13, %v19599_v41, %v9645_v53  ;;  %v19604_v55 = vld [vmem:[#allocation38_spill] sm:$0xff]  ;;  %v19607_v53 = vunpack.i.l.bf16 %v19584_v19  ;;  %v19608_v31 = vunpack.i.h.bf16 %v19585_v63  ;;  %vm19609_vm8 = vcmask 809984   ;;  %v19610_v41 = vld [vmem:[#allocation40_spill] sm:$0xff]  ;;  %19613 = vst [vmem:[#allocation71_spill] sm:$0xff] %v13750_v35 }
 0x248   : > { %v1274_v8 = vsel %vm1271_vm4, %v19602_v28, %v19601_v50  ;;  %4216 = vmatpush.msrb.mxu0 %v714_v58  ;;  %v1703_v16 = vsel %vm1698_vm3, %v19606_v56, %v19605_v30  ;;  %v9595_v50 = vunpack.i.l.bf16 %v19610_v41  ;;  %v19611_v58 = vunpack.i.h.bf16 %v19584_v19  ;;  %vm19612_vm13 = vmmov %vm19609_vm8  ;;  %v19614_v30 = vld [vmem:[#allocation27_spill] sm:$0xff]  ;;  %v19615_v56 = vld [vmem:[#allocation36_spill] sm:$0xff] }
 0x249   : > { %4042 = vmatpush.msrb.mxu3 %v1274_v8  ;;  %v651_v51 = vsel %vm19609_vm8, %v19608_v31, %v19607_v53  ;;  %4115 = vmatpush.msra.mxu1 %v1703_v16  ;;  %v13756_v53 = vpop.permute.xlu1 %10213  ;;  %v19618_v31 = vld [vmem:[#allocation35_spill] sm:$0xff]  ;;  %v19622_v8 = vld [vmem:[#allocation32_spill] sm:$0xff]  ;;  %v19624_v16 = vunpack.i.h.bf16 %v19491_v33  ;;  %vm19628_vm8 = vcmask 818176   ;;  %v19630_v41 = vunpack.i.h.bf16 %v19603_v43 }
 0x24a   : > { %4137 = vmatpush.msra.mxu2 %v651_v51  ;;  %v653_v28 = vsel %vm19612_vm13, %v19611_v58, %v9620_v49  ;;  %19617 = vst [vmem:[#allocation39_spill] sm:$0xff] %v13756_v53  ;;  %v9570_v60 = vunpack.i.l.bf16 %v19618_v31  ;;  %v19619_v49 = vunpack.i.h.bf16 %v13035_v29  ;;  %v19620_v51 = vunpack.i.l.bf16 %v13035_v29  ;;  %vm19631_vm13 = vmmov %vm19628_vm8  ;;  %v19635_v19 = vld [vmem:[#allocation28_spill] sm:$0xff]  ;;  %10428 = vrot.lane.b32.xlu2 %v13623_v26, %s19667_s7 }
 0x24b   : > { %4217 = vmatpush.msrb.mxu0 %v653_v28  ;;  %v13769_v28 = vpop.permute.xlu0 %10208  ;;  %v19625_v53 = vunpack.i.l.bf16 %v19491_v33  ;;  %v19626_v29 = vunpack.i.l.bf16 %v19603_v43  ;;  %v592_v33 = vsel %vm19631_vm13, %v19630_v41, %v9595_v50  ;;  %v19632_v27 = vunpack.i.h.bf16 %v13063_v45  ;;  %9317 = vmatmul.msk.f32.vlgmr.msrb.gmra.mxu3 %vm18903_vm14, %v13646_v40 }
 0x24c   : > { %v1642_v58 = vsel %vm1637_vm5, %v19620_v51, %v19619_v49  ;;  %19621 = vst [vmem:[#allocation67_spill] sm:$0xff] %v13769_v28  ;;  %v19627_v49 = vunpack.i.h.bf16 %v19604_v55  ;;  %v9545_v28 = vunpack.i.l.bf16 %v19629_v3  ;;  %v19638_v41 = vunpack.i.l.bf16 %v19615_v56 }
 0x24d   : > { %v1215_v31 = vsel %vm1210_vm12, %v19625_v53, %v19624_v16  ;;  %4116 = vmatpush.msra.mxu1 %v1642_v58  ;;  %v19633_v53 = vunpack.i.l.bf16 %v13063_v45  ;;  %v19634_v58 = vld [vmem:[#allocation22_spill] sm:$0xff]  ;;  %4218 = vmatpush.msrb.mxu0 %v592_v33  ;;  %v19639_v50 = vunpack.i.h.bf16 %v19614_v30  ;;  %v19642_v33 = vunpack.i.h.bf16 %v19615_v56 }
 0x24e   : > { %v590_v51 = vsel %vm19628_vm8, %v19627_v49, %v19626_v29  ;;  %4087 = vmatpush.msra.mxu3 %v1215_v31  ;;  %v19636_v49 = vunpack.i.h.bf16 %v19496_v54  ;;  %v19637_v31 = vunpack.i.l.bf16 %v19496_v54  ;;  %vm19640_vm8 = vcmask 826368   ;;  %v19650_v29 = vld [vmem:[#allocation23_spill] sm:$0xff]  ;;  %10423 = vrot.lane.b32.xlu1 %v13538_v6, %s19667_s7 }
 0x24f   : > { %4138 = vmatpush.msra.mxu2 %v590_v51  ;;  %v1581_v16 = vsel %vm1576_vm2, %v19633_v53, %v19632_v27  ;;  %v529_v45 = vsel %vm19640_vm8, %v19639_v50, %v19638_v41  ;;  %v19641_v53 = vld [vmem:[#allocation30_spill] sm:$0xff]  ;;  %vm19643_vm13 = vmmov %vm19640_vm8  ;;  %v19646_v41 = vunpack.i.l.bf16 %v19622_v8  ;;  %v19647_v50 = vunpack.i.h.bf16 %v19623_v36  ;;  %10418 = vrot.lane.b32.xlu0 %v13616_v5, %s19616_s14 }
 0x250   : > { %v1154_v51 = vsel %vm18969_vm11, %v19637_v31, %v19636_v49  ;;  %4117 = vmatpush.msra.mxu1 %v1581_v16  ;;  %v9520_v35 = vunpack.i.l.bf16 %v19641_v53  ;;  %v531_v54 = vsel %vm19643_vm13, %v19642_v33, %v9570_v60  ;;  %v19644_v49 = vunpack.i.h.bf16 %v13037_v48 }
 0x251   : > { %4088 = vmatpush.msra.mxu3 %v1154_v51  ;;  %4139 = vmatpush.msra.mxu2 %v529_v45  ;;  %v19645_v16 = vunpack.i.l.bf16 %v13037_v48  ;;  %vm19648_vm8 = vcmask 891904   ;;  %v19649_v51 = vld [vmem:[#allocation21_spill] sm:$0xff]  ;;  %v19651_v60 = vunpack.i.h.bf16 %v19622_v8  ;;  %v19653_v33 = vunpack.i.h.bf16 %v12860_v20 }
 0x252   : > { %4219 = vmatpush.msrb.mxu0 %v531_v54  ;;  %v468_v27 = vsel %vm19648_vm8, %v19647_v50, %v19646_v41  ;;  %v9495_v45 = vunpack.i.l.bf16 %v19649_v51  ;;  %vm19652_vm13 = vmmov %vm19648_vm8  ;;  %v19654_v54 = vunpack.i.l.bf16 %v12860_v20  ;;  %vm19659_vm8 = vcmask 7168   ;;  %10443 = vrot.lane.b32.xlu2 %v13538_v6, %s19704_s12 }
 0x253   : > { %v1520_v31 = vsel %vm1515_vm6, %v19645_v16, %v19644_v49  ;;  %4089 = vmatpush.msra.mxu3 %v1101_v24  ;;  %4140 = vmatpush.msra.mxu2 %v468_v27  ;;  %v470_v48 = vsel %vm19652_vm13, %v19651_v60, %v9545_v28  ;;  %v13833_v16 = vpop.permute.xlu2 %10278  ;;  %v19657_v24 = vunpack.i.h.bf16 %v19520_v12  ;;  %v19658_v27 = vunpack.i.l.bf16 %v19520_v12  ;;  %v13852_v41 = vpop.permute.xlu0 %10223 }
 0x254   : > { %4118 = vmatpush.msra.mxu1 %v1520_v31  ;;  %v1459_v49 = vsel %vm18869_vm7, %v19654_v54, %v19653_v33  ;;  %19655 = vst [vmem:[#allocation68_spill] sm:$0xff] %v13833_v16  ;;  %v19656_v31 = vld [vmem:[#allocation25_spill] sm:$0xff]  ;;  %4220 = vmatpush.msrb.mxu0 %v470_v48  ;;  %v19660_v28 = vunpack.i.l.bf16 %v19634_v58  ;;  %v19661_v20 = vunpack.i.h.bf16 %v19635_v19  ;;  %vm19662_vm13 = vcmask 900096   ;;  %v13847_v33 = vpop.permute.xlu1 %10228 }
 0x255   : > { %v18870_v50 = vunpack.i.l.bf16 %v19656_v31  ;;  %v1077_v53 = vsel %vm19659_vm8, %v19658_v27, %v19657_v24  ;;  %19663 = vst [vmem:[#allocation54_spill] sm:$0xff] %v13847_v33  ;;  %v19664_v54 = vunpack.i.h.bf16 %v19634_v58  ;;  %vm19665_vm7 = vmmov %vm19662_vm13  ;;  %v19671_v27 = vunpack.i.h.bf16 %v12946_v22  ;;  %v14315_v16 = vld [vmem:[%s12155_s30 + $0x80] sm:$0xff] }
 0x256   : > { %4119 = vmatpush.msra.mxu1 %v1459_v49  ;;  %v407_v60 = vsel %vm19662_vm13, %v19661_v20, %v19660_v28  ;;  %4090 = vmatpush.msra.mxu3 %v1077_v53  ;;  %19666 = vst [vmem:[#allocation62_spill] sm:$0xff] %v13852_v41  ;;  %v10120_v49 = vunpack.i.l.bf16 %v13293_v47  ;;  %v19668_v53 = vunpack.i.h.bf16 %v19525_v25  ;;  %v19672_v28 = vunpack.i.l.bf16 %v12946_v22 }
 0x257   : > { %4141 = vmatpush.msra.mxu2 %v407_v60  ;;  %v409_v48 = vsel %vm19665_vm7, %v19664_v54, %v9520_v35  ;;  %v19669_v35 = vunpack.i.l.bf16 %v19525_v25  ;;  %vm19670_vm7 = vcmask 72704   ;;  %v19673_v60 = vld [vmem:[#allocation92_spill] sm:$0xff]  ;;  %v19674_v12 = vunpack.i.h.bf16 %v19650_v29  ;;  %10438 = vrot.lane.b32.xlu1 %v13616_v5, %s19667_s7 }
 0x258   : > { %4221 = vmatpush.msrb.mxu0 %v409_v48  ;;  %v1398_v20 = vsel %vm1393_vm9, %v19672_v28, %v19671_v27  ;;  %v10095_v54 = vunpack.i.l.bf16 %v19673_v60  ;;  %vm19675_vm8 = vcmask 908288   ;;  %v19678_v22 = vunpack.i.h.bf16 %v19528_v44  ;;  %10433 = vrot.lane.b32.xlu0 %v13621_v14, %s19667_s7 }
 0x259   : > { %v1016_v24 = vsel %vm19670_vm7, %v19669_v35, %v19668_v53  ;;  %4120 = vmatpush.msra.mxu1 %v1398_v20  ;;  %v346_v25 = vsel %vm19675_vm8, %v19674_v12, %v18870_v50  ;;  %v19676_v53 = vunpack.i.h.bf16 %v19656_v31  ;;  %vm19677_vm13 = vmmov %vm19675_vm8  ;;  %v19679_v27 = vunpack.i.l.bf16 %v19528_v44 }
 0x25a   : > { %4091 = vmatpush.msra.mxu3 %v1016_v24  ;;  %4142 = vmatpush.msra.mxu2 %v346_v25  ;;  %vm19680_vm7 = vcmask 80896   ;;  %v19681_v24 = vld [vmem:[#allocation86_spill] sm:$0xff]  ;;  %v18873_v48 = vunpack.i.h.bf16 %v13133_v10  ;;  %v19682_v12 = vunpack.i.h.bf16 %v12864_v17  ;;  %vm19687_vm8 = vcmask 89088  }
 0x25b   : > { %v348_v35 = vsel %vm19677_vm13, %v19676_v53, %v9495_v45  ;;  %v955_v28 = vsel %vm19680_vm7, %v19679_v27, %v19678_v22  ;;  %v10070_v20 = vunpack.i.l.bf16 %v19681_v24  ;;  %v19683_v45 = vunpack.i.l.bf16 %v12864_v17  ;;  %v13904_v50 = vpop.permute.xlu2 %10293  ;;  %10458 = vrot.lane.b32.xlu2 %v13616_v5, %s19704_s12 }
 0x25c   : > { %4222 = vmatpush.msrb.mxu0 %v348_v35  ;;  %4092 = vmatpush.msra.mxu3 %v955_v28  ;;  %v19684_v53 = vunpack.i.h.bf16 %v13131_v21  ;;  %v19685_v35 = vunpack.i.h.bf16 %v19536_v0  ;;  %v19686_v22 = vunpack.i.l.bf16 %v19536_v0  ;;  %19688 = vst [vmem:[#allocation50_spill] sm:$0xff] %v13904_v50  ;;  %v19689_v28 = vunpack.i.h.bf16 %v19485_v13  ;;  %v19868_v50 = vld [vmem:[#allocation40_spill] sm:$0xff] }
 0x25d   : > { %v1337_v25 = vsel %vm1332_vm10, %v19683_v45, %v19682_v12  ;;  %v19690_v17 = vunpack.i.l.bf16 %v19485_v13  ;;  %v19691_v45 = vunpack.i.h.bf16 %v13179_v38  ;;  %v19696_v13 = vunpack.i.l.bf16 %v19489_v46 }
 0x25e   : > { %v1889_v44 = vsel %vm1881_vm15, %v19684_v53, %v10120_v49  ;;  %4121 = vmatpush.msra.mxu1 %v1337_v25  ;;  %v894_v27 = vsel %vm19687_vm8, %v19686_v22, %v19685_v35  ;;  %v19692_v25 = vld [vmem:[#allocation89_spill] sm:$0xff]  ;;  %v13915_v53 = vpop.permute.xlu1 %10243  ;;  %v19695_v22 = vunpack.i.h.bf16 %v19489_v46  ;;  %vm19699_vm13 = vcmask 728064  }
 0x25f   : > { %4232 = vmatpush.msrb.mxu2 %v1889_v44  ;;  %4093 = vmatpush.msra.mxu3 %v894_v27  ;;  %v1276_v12 = vsel %vm1271_vm4, %v19690_v17, %v19689_v28  ;;  %v1828_v49 = vsel %vm1820_vm0, %v19691_v45, %v10095_v54  ;;  %19693 = vst [vmem:[#allocation48_spill] sm:$0xff] %v13915_v53  ;;  %v19694_v44 = vld [vmem:[#allocation88_spill] sm:$0xff]  ;;  %v19697_v28 = vunpack.i.h.bf16 %v19554_v9  ;;  %v19698_v54 = vunpack.i.l.bf16 %v19554_v9  ;;  %v13929_v45 = vpop.permute.xlu0 %10238 }
 0x260   : > { %4023 = vmatmul.f32.vlgmr.msrb.gmra.mxu1 %v19692_v25  ;;  %v10045_v35 = vunpack.i.l.bf16 %v19694_v44  ;;  %v1217_v27 = vsel %vm1210_vm12, %v19696_v13, %v19695_v22  ;;  %19700 = vst [vmem:[#allocation59_spill] sm:$0xff] %v13929_v45  ;;  %v18875_v46 = vunpack.i.h.bf16 %v13087_v52  ;;  %v19702_v22 = vunpack.i.h.bf16 %v19493_v57  ;;  %4143 = vmatmul.f32.vlgmr.msra.gmra.mxu2 %v19692_v25 }
 0x261   : > { %4122 = vmatpush.msra.mxu1 %v1276_v12  ;;  %4233 = vmatpush.msrb.mxu2 %v1828_v49  ;;  %v833_v17 = vsel %vm19699_vm13, %v19698_v54, %v19697_v28  ;;  %v1767_v12 = vsel %vm1759_vm1, %v18873_v48, %v10070_v20  ;;  %v19701_v49 = vld [vmem:[#allocation87_spill] sm:$0xff]  ;;  %v19703_v13 = vunpack.i.l.bf16 %v19493_v57  ;;  %v19705_v20 = vunpack.i.h.bf16 %v19565_v62  ;;  %v19713_v48 = vld [vmem:[#allocation85_spill] sm:$0xff]  ;;  %19832 = vst [vmem:[#allocation89_spill] sm:$0xff] %v14315_v16 }
 0x262   : > { %4094 = vmatpush.msra.mxu3 %v833_v17  ;;  %v10020_v0 = vunpack.i.l.bf16 %v19701_v49  ;;  %v19706_v28 = vunpack.i.l.bf16 %v19565_v62  ;;  %vm19707_vm7 = vcmask 736256   ;;  %v19708_v17 = vld [vmem:[#allocation83_spill] sm:$0xff]  ;;  %v19711_v62 = vunpack.i.l.bf16 %v19572_v61  ;;  %10453 = vrot.lane.b32.xlu1 %v13621_v14, %s19704_s12 }
 0x263   : > { %4167 = vmatpush.msrb.mxu1 %v1217_v27  ;;  %4234 = vmatpush.msrb.mxu2 %v1767_v12  ;;  %v1156_v9 = vsel %vm18969_vm11, %v19703_v13, %v19702_v22  ;;  %v1103_v27 = vld [vmem:[%s12155_s30 + $0x38] sm:$0xff]  ;;  %v9995_v12 = vunpack.i.l.bf16 %v19708_v17  ;;  %v19709_v22 = vunpack.i.h.bf16 %v13059_v59  ;;  %vm19712_vm8 = vcmask 744448  }
 0x264   : > { %v772_v54 = vsel %vm19707_vm7, %v19706_v28, %v19705_v20  ;;  %v18876_v28 = vunpack.i.h.bf16 %v12939_v42  ;;  %v9970_v57 = vunpack.i.l.bf16 %v19713_v48  ;;  %v19714_v45 = vunpack.i.h.bf16 %v19521_v11  ;;  %10448 = vrot.lane.b32.xlu0 %v13623_v26, %s19704_s12  ;;  %10473 = vrot.lane.b32.xlu2 %v13621_v14, %s19761_s29 }
 0x265   : > { %4168 = vmatpush.msrb.mxu1 %v1156_v9  ;;  %4095 = vmatpush.msra.mxu3 %v772_v54  ;;  %v1706_v13 = vsel %vm1698_vm3, %v19709_v22, %v10045_v35  ;;  %v19710_v9 = vunpack.i.h.bf16 %v19572_v61  ;;  %v1645_v54 = vsel %vm1637_vm5, %v18875_v46, %v10020_v0  ;;  %v19715_v35 = vunpack.i.l.bf16 %v19521_v11  ;;  %v13973_v22 = vpop.permute.xlu2 %10308  ;;  %v19722_v0 = vld [vmem:[#allocation84_spill] sm:$0xff] }
 0x266   : > { %4235 = vmatpush.msrb.mxu2 %v1706_v13  ;;  %vm19716_vm13 = vcmask 7168   ;;  %19717 = vst [vmem:[#allocation44_spill] sm:$0xff] %v13973_v22  ;;  %v19718_v61 = vunpack.i.h.bf16 %v19585_v63  ;;  %v19719_v13 = vunpack.i.l.bf16 %v19585_v63  ;;  %vm19720_vm7 = vcmask 809984  }
 0x267   : > { %4169 = vmatpush.msrb.mxu1 %v1103_v27  ;;  %v711_v20 = vsel %vm19712_vm8, %v19711_v62, %v19710_v9  ;;  %v1079_v27 = vsel %vm19716_vm13, %v19715_v35, %v19714_v45  ;;  %v13981_v62 = vpop.permute.xlu1 %10258  ;;  %v9941_v11 = vunpack.i.h.bf16 %v13022_v39  ;;  %v19723_v45 = vunpack.i.h.bf16 %v13061_v7  ;;  %v13993_v63 = vpop.permute.xlu0 %10253 }
 0x268   : > { %4096 = vmatpush.msra.mxu3 %v711_v20  ;;  %4236 = vmatpush.msrb.mxu2 %v1645_v54  ;;  %v650_v9 = vsel %vm19720_vm7, %v19719_v13, %v19718_v61  ;;  %19721 = vst [vmem:[#allocation29_spill] sm:$0xff] %v13981_v62  ;;  %v9945_v20 = vunpack.i.l.bf16 %v19722_v0  ;;  %v19724_v25 = vunpack.i.h.bf16 %v19524_v1  ;;  %v19725_v54 = vunpack.i.l.bf16 %v19524_v1  ;;  %v9312_v62 = vld [vmem:[%s12155_s30 + $0x88] sm:$0xff] }
 0x269   : > { %4170 = vmatpush.msrb.mxu1 %v1079_v27  ;;  %v1584_v35 = vsel %vm1576_vm2, %v19723_v45, %v9995_v12  ;;  %vm19726_vm8 = vcmask 72704   ;;  %19727 = vst [vmem:[#allocation55_spill] sm:$0xff] %v13993_v63  ;;  %v19728_v61 = vunpack.i.h.bf16 %v19604_v55  ;;  %v19729_v13 = vunpack.i.l.bf16 %v19604_v55  ;;  %v19731_v12 = vld [vmem:[#allocation80_spill] sm:$0xff] }
 0x26a   : > { %4097 = vmatpush.msra.mxu3 %v650_v9  ;;  %v1018_v27 = vsel %vm19726_vm8, %v19725_v54, %v19724_v25  ;;  %9319 = vmatmul.msk.f32.vlgmr.msra.gmra.mxu1 %vm18903_vm14, %v13646_v40  ;;  %vm19730_vm13 = vcmask 818176   ;;  %v9920_v45 = vunpack.i.l.bf16 %v19731_v12  ;;  %v9916_v46 = vunpack.i.h.bf16 %v12944_v37 }
 0x26b   : > { %4237 = vmatpush.msrb.mxu2 %v1584_v35  ;;  %4171 = vmatpush.msrb.mxu1 %v1018_v27  ;;  %v589_v9 = vsel %vm19730_vm13, %v19729_v13, %v19728_v61  ;;  %v1523_v1 = vsel %vm1515_vm6, %v18876_v28, %v9970_v57  ;;  %v19732_v25 = vunpack.i.h.bf16 %v19527_v18  ;;  %v19733_v35 = vunpack.i.l.bf16 %v19527_v18  ;;  %v19735_v27 = vld [vmem:[#allocation82_spill] sm:$0xff] }
 0x26c   : > { %4098 = vmatpush.msra.mxu3 %v589_v9  ;;  %vm19734_vm7 = vcmask 80896   ;;  %v9895_v61 = vunpack.i.l.bf16 %v19735_v27  ;;  %v19736_v57 = vunpack.i.h.bf16 %v19614_v30  ;;  %v19737_v18 = vunpack.i.l.bf16 %v19614_v30  ;;  %10468 = vrot.lane.b32.xlu1 %v13623_v26, %s19761_s29 }
 0x26d   : > { %v957_v54 = vsel %vm19734_vm7, %v19733_v35, %v19732_v25  ;;  %4238 = vmatpush.msrb.mxu2 %v1523_v1  ;;  %vm19738_vm8 = vcmask 826368   ;;  %vm19739_vm13 = vcmask 310272   ;;  %v19740_v1 = vunpack.i.h.bf16 %v19537_v23  ;;  %10463 = vrot.lane.b32.xlu0 %v13538_v6, %s19761_s29 }
 0x26e   : > { %4172 = vmatpush.msrb.mxu1 %v957_v54  ;;  %v528_v13 = vsel %vm19738_vm8, %v19737_v18, %v19736_v57  ;;  %v1462_v9 = vsel %vm19739_vm13, %v9941_v11, %v9945_v20  ;;  %v19741_v25 = vunpack.i.l.bf16 %v19537_v23  ;;  %vm19742_vm7 = vcmask 89088   ;;  %v19743_v54 = vld [vmem:[#allocation81_spill] sm:$0xff]  ;;  %v14045_v23 = vpop.permute.xlu2 %10323  ;;  %10488 = vrot.lane.b32.xlu2 %v13623_v26, %s19791_s2 }
 0x26f   : > { %4099 = vmatpush.msra.mxu3 %v528_v13  ;;  %4239 = vmatpush.msrb.mxu2 %v1462_v9  ;;  %v9870_v28 = vunpack.i.l.bf16 %v19743_v54  ;;  %v9866_v55 = vunpack.i.h.bf16 %v12823_v15  ;;  %v19744_v30 = vunpack.i.h.bf16 %v19623_v36  ;;  %v19745_v57 = vunpack.i.l.bf16 %v19623_v36  ;;  %v14052_v36 = vpop.permute.xlu1 %10273 }
 0x270   : > { %v896_v35 = vsel %vm19742_vm7, %v19741_v25, %v19740_v1  ;;  %vm19746_vm8 = vcmask 891904   ;;  %v1401_v20 = vsel %vm1393_vm9, %v9916_v46, %v9920_v45  ;;  %v19747_v13 = vunpack.i.h.bf16 %v19553_v4  ;;  %19750 = vst [vmem:[#allocation56_spill] sm:$0xff] %v14052_v36 }
 0x271   : > { %4173 = vmatpush.msrb.mxu1 %v896_v35  ;;  %v467_v18 = vsel %vm19746_vm8, %v19745_v57, %v19744_v30  ;;  %4240 = vmatpush.msrb.mxu2 %v1401_v20  ;;  %v19748_v9 = vunpack.i.l.bf16 %v19553_v4  ;;  %vm19749_vm13 = vcmask 728064   ;;  %v19751_v25 = vunpack.i.h.bf16 %v19635_v19 }
 0x272   : > { %4100 = vmatpush.msra.mxu3 %v467_v18  ;;  %v19752_v45 = vunpack.i.l.bf16 %v19635_v19  ;;  %vm19753_vm7 = vcmask 900096   ;;  %v19754_v30 = vunpack.i.h.bf16 %v12751_v32  ;;  %v14062_v18 = vpop.permute.xlu0 %10268  ;;  %v19755_v4 = vunpack.i.h.bf16 %v19564_v34 }
 0x273   : > { %v835_v1 = vsel %vm19749_vm13, %v19748_v9, %v19747_v13  ;;  %v19756_v20 = vunpack.i.l.bf16 %v19564_v34  ;;  %vm19757_vm8 = vcmask 736256   ;;  %v19758_v19 = vunpack.i.h.bf16 %v19650_v29 }
 0x274   : > { %4174 = vmatpush.msrb.mxu1 %v835_v1  ;;  %v406_v35 = vsel %vm19753_vm7, %v19752_v45, %v19751_v25  ;;  %v1340_v57 = vsel %vm1332_vm10, %v19754_v30, %v9895_v61  ;;  %v19759_v9 = vunpack.i.l.bf16 %v19650_v29  ;;  %vm19760_vm13 = vcmask 908288   ;;  %10483 = vrot.lane.b32.xlu1 %v13538_v6, %s19791_s2 }
 0x275   : > { %4101 = vmatpush.msra.mxu3 %v406_v35  ;;  %4241 = vmatpush.msrb.mxu2 %v1340_v57  ;;  %v774_v13 = vsel %vm19757_vm8, %v19756_v20, %v19755_v4  ;;  %v1279_v1 = vsel %vm1271_vm4, %v9866_v55, %v9870_v28  ;;  %v19762_v34 = vunpack.i.h.bf16 %v19573_v2  ;;  %v19763_v25 = vunpack.i.l.bf16 %v19573_v2  ;;  %v19767_v28 = vld [vmem:[#allocation42_spill] sm:$0xff] }
 0x276   : > { %4175 = vmatpush.msrb.mxu1 %v774_v13  ;;  %v345_v61 = vsel %vm19760_vm13, %v19759_v9, %v19758_v19  ;;  %vm19764_vm7 = vcmask 744448   ;;  %v19765_v35 = vunpack.i.h.bf16 %v13131_v21  ;;  %v19766_v29 = vunpack.i.l.bf16 %v13131_v21  ;;  %10478 = vrot.lane.b32.xlu0 %v13616_v5, %s19761_s29 }
 0x277   : > { %4102 = vmatpush.msra.mxu3 %v345_v61  ;;  %4242 = vmatpush.msrb.mxu2 %v1279_v1  ;;  %v713_v45 = vsel %vm19764_vm7, %v19763_v25, %v19762_v34  ;;  %v19768_v57 = vunpack.i.h.bf16 %v19767_v28  ;;  %v19769_v2 = vunpack.i.l.bf16 %v19767_v28  ;;  %vm19770_vm8 = vcmask 809984  }
 0x278   : > { %v1888_v30 = vsel %vm1881_vm15, %v19766_v29, %v19765_v35  ;;  %4176 = vmatpush.msrb.mxu1 %v713_v45  ;;  %v19771_v20 = vunpack.i.h.bf16 %v13179_v38  ;;  %v19772_v21 = vunpack.i.l.bf16 %v13179_v38  ;;  %v19773_v19 = vunpack.i.h.bf16 %v19603_v43  ;;  %v14115_v45 = vpop.permute.xlu1 %10288  ;;  %v14120_v38 = vld [vmem:[%s19429_s1] sm:$0xff]  ;;  %9322 = vmatmul.msk.f32.vlgmr.msrb.gmra.mxu2 %vm18903_vm14, %v13646_v40 }
 0x279   : > { %4192 = vmatpush.msrb.mxu3 %v1888_v30  ;;  %v652_v4 = vsel %vm19770_vm8, %v19769_v2, %v19768_v57  ;;  %v19774_v9 = vunpack.i.l.bf16 %v19603_v43  ;;  %vm19775_vm13 = vcmask 818176   ;;  %v19776_v1 = vunpack.i.h.bf16 %v13133_v10  ;;  %19778 = vst [vmem:[#allocation26_spill] sm:$0xff] %v14115_v45  ;;  %v14125_v43 = vpop.permute.xlu2 %10338  ;;  %4223 = vmatmul.f32.vlgmr.msrb.gmra.mxu0 %v14120_v38 }
 0x27a   : > { %v1827_v13 = vsel %vm1820_vm0, %v19772_v21, %v19771_v20  ;;  %4177 = vmatpush.msrb.mxu1 %v652_v4  ;;  %v19777_v34 = vunpack.i.l.bf16 %v13133_v10  ;;  %4103 = vmatmul.f32.vlgmr.msra.gmra.mxu3 %v14120_v38  ;;  %19779 = vst [vmem:[#allocation41_spill] sm:$0xff] %v14125_v43  ;;  %v14127_v35 = vpop.permute.xlu0 %10283  ;;  %v19781_v10 = vunpack.i.h.bf16 %v19615_v56  ;;  %v19782_v29 = vunpack.i.l.bf16 %v19615_v56  ;;  %v19835_v43 = vld [vmem:[#allocation70_spill] sm:$0xff] }
 0x27b   : > { %4193 = vmatpush.msrb.mxu3 %v1827_v13  ;;  %v591_v61 = vsel %vm19775_vm13, %v19774_v9, %v19773_v19  ;;  %19780 = vst [vmem:[#allocation49_spill] sm:$0xff] %v14127_v35  ;;  %vm19783_vm7 = vcmask 826368   ;;  %v19784_v28 = vunpack.i.h.bf16 %v13059_v59  ;;  %v19785_v57 = vunpack.i.l.bf16 %v13059_v59  ;;  %10503 = vrot.lane.b32.xlu2 %v13538_v6, %s19808_s13 }
 0x27c   : > { %v1766_v25 = vsel %vm1759_vm1, %v19777_v34, %v19776_v1  ;;  %4178 = vmatpush.msrb.mxu1 %v591_v61  ;;  %v530_v30 = vsel %vm19783_vm7, %v19782_v29, %v19781_v10  ;;  %v19786_v4 = vunpack.i.h.bf16 %v19622_v8  ;;  %v19787_v20 = vunpack.i.l.bf16 %v19622_v8  ;;  %10498 = vrot.lane.b32.xlu1 %v13616_v5, %s19791_s2 }
 0x27d   : > { %4194 = vmatpush.msrb.mxu3 %v1766_v25  ;;  %v1705_v2 = vsel %vm1698_vm3, %v19785_v57, %v19784_v28  ;;  %vm19788_vm8 = vcmask 891904   ;;  %v19789_v56 = vunpack.i.h.bf16 %v13087_v52  ;;  %v19790_v13 = vunpack.i.l.bf16 %v13087_v52 }
 0x27e   : > { %4179 = vmatpush.msrb.mxu1 %v530_v30  ;;  %v469_v21 = vsel %vm19788_vm8, %v19787_v20, %v19786_v4  ;;  %v19792_v59 = vunpack.i.h.bf16 %v19634_v58  ;;  %v19793_v8 = vunpack.i.l.bf16 %v19634_v58  ;;  %vm19794_vm13 = vcmask 900096   ;;  %10493 = vrot.lane.b32.xlu0 %v13621_v14, %s19791_s2 }
 0x27f   : > { %4195 = vmatpush.msrb.mxu3 %v1705_v2  ;;  %v1644_v19 = vsel %vm1637_vm5, %v19790_v13, %v19789_v56  ;;  %v19795_v52 = vunpack.i.h.bf16 %v13061_v7  ;;  %v19796_v61 = vunpack.i.l.bf16 %v13061_v7  ;;  %v19797_v34 = vunpack.i.h.bf16 %v19656_v31 }
 0x280   : > { %4180 = vmatpush.msrb.mxu1 %v469_v21  ;;  %v408_v9 = vsel %vm19794_vm13, %v19793_v8, %v19792_v59  ;;  %v19798_v25 = vunpack.i.l.bf16 %v19656_v31  ;;  %vm19799_vm7 = vcmask 908288   ;;  %v19800_v29 = vunpack.i.h.bf16 %v12939_v42  ;;  %v14176_v28 = vpop.permute.xlu1 %10303 }
 0x281   : > { %4196 = vmatpush.msrb.mxu3 %v1644_v19  ;;  %v1583_v1 = vsel %vm1576_vm2, %v19796_v61, %v19795_v52  ;;  %v19801_v58 = vunpack.i.l.bf16 %v12939_v42  ;;  %19802 = vst [vmem:[#allocation37_spill] sm:$0xff] %v14176_v28  ;;  %v19804_v57 = vunpack.i.l.bf16 %v13022_v39  ;;  %vm19805_vm8 = vcmask 310272   ;;  %v14186_v2 = vpop.permute.xlu2 %10353  ;;  %v14267_v61 = vld [vmem:[%s12155_s30 + $0x68] sm:$0xff] }
 0x282   : > { %4181 = vmatpush.msrb.mxu1 %v408_v9  ;;  %v347_v10 = vsel %vm19799_vm7, %v19798_v25, %v19797_v34  ;;  %v14178_v7 = vpop.permute.xlu0 %10298  ;;  %19806 = vst [vmem:[#allocation43_spill] sm:$0xff] %v14186_v2  ;;  %v19807_v42 = vunpack.i.l.bf16 %v12944_v37  ;;  %v19809_v39 = vunpack.i.h.bf16 %v12751_v32  ;;  %v19811_v37 = vunpack.i.l.bf16 %v12823_v15 }
 0x283   : > { %4197 = vmatpush.msrb.mxu3 %v1583_v1  ;;  %v1522_v30 = vsel %vm1515_vm6, %v19801_v58, %v19800_v29  ;;  %19803 = vst [vmem:[#allocation47_spill] sm:$0xff] %v14178_v7  ;;  %v1461_v31 = vsel %vm19805_vm8, %v19804_v57, %v9941_v11  ;;  %v19810_v11 = vunpack.i.l.bf16 %v12751_v32  ;;  %10518 = vrot.lane.b32.xlu2 %v13616_v5, %s19808_s13  ;;  %v12013_v25 = vmov 0   ;;  %v14322_v7 = vld [vmem:[%s12155_s30 + $0x70] sm:$0xff] }
 0x284   : > { %4182 = vmatpush.msrb.mxu1 %v347_v10  ;;  %v1400_v4 = vsel %vm1393_vm9, %v19807_v42, %v9916_v46  ;;  %v1278_v46 = vsel %vm1271_vm4, %v19811_v37, %v9866_v55  ;;  %10513 = vrot.lane.b32.xlu1 %v13621_v14, %s19808_s13  ;;  %vm19837_vm13 = vcmask 7168   ;;  %vm19843_vm8 = vcmask 72704  }
 0x285   : > { %4198 = vmatpush.msrb.mxu3 %v1522_v30  ;;  %4183 = vmatmul.f32.vlgmr.msrb.gmra.mxu1 %v14120_v38  ;;  %v1339_v20 = vsel %vm1332_vm10, %v19810_v11, %v19809_v39  ;;  %vm19839_vm7 = vmmov %vm19837_vm13 }
 0x286   : > { %10508 = vrot.lane.b32.xlu0 %v13623_v26, %s19808_s13  ;;  %11813 = vset.pattern.permute.xlu2 %v12013_v25 }
 0x287   : > { %4199 = vmatpush.msrb.mxu3 %v1461_v31  ;;  %10642 = vset.pattern.permute.xlu0 %v12013_v25  ;;  %v19829_v31 = vld [vmem:[#allocation69_spill] sm:$0xff] }
 0x288   : > { %v14209_v21 = vpop.permute.xlu1 %10318  ;;  %v9846_v42 = vunpack.i.h.bf16 %v19829_v31 }
 0x289   : > { %4200 = vmatpush.msrb.mxu3 %v1400_v4  ;;  %19812 = vst [vmem:[#allocation31_spill] sm:$0xff] %v14209_v21  ;;  %v14217_v32 = vpop.permute.xlu2 %10368  ;;  %v9190_v21 = vld [vmem:[%s12155_s30 + $0x58] sm:$0xff] }
 0x28a   : > { %v14211_v56 = vpop.permute.xlu0 %10313  ;;  %19814 = vst [vmem:[#allocation27_spill] sm:$0xff] %v14217_v32 }
 0x28b   : > { %4201 = vmatpush.msrb.mxu3 %v1339_v20  ;;  %19813 = vst [vmem:[#allocation38_spill] sm:$0xff] %v14211_v56  ;;  %10533 = vrot.lane.b32.xlu2 %v13621_v14, %s19817_s28 }
 0x28c   : > { %10528 = vrot.lane.b32.xlu1 %v13623_v26, %s19817_s28 }
 0x28d   : > { %4202 = vmatpush.msrb.mxu3 %v1278_v46  ;;  %v19830_v46 = vld [vmem:[#allocation77_spill] sm:$0xff] }
 0x28e   : > { %9321 = vmatmul.msk.f32.vlgmr.msrb.gmra.mxu3 %vm18903_vm14, %v13646_v40  ;;  %10523 = vrot.lane.b32.xlu0 %v13538_v6, %s19817_s28  ;;  %v9821_v25 = vunpack.i.h.bf16 %v19830_v46 }
 0x290   : > { %v14223_v15 = vpop.permute.xlu1 %10333 }
 0x291   : > { %19815 = vst [vmem:[#allocation36_spill] sm:$0xff] %v14223_v15  ;;  %v14233_v40 = vpop.permute.xlu2 %10383 }
 0x292   : > { %v14225_v55 = vpop.permute.xlu0 %10328  ;;  %v10385_v20 = vunpack.i.l.bf16 %v14233_v40  ;;  %v19833_v46 = vunpack.i.h.bf16 %v14233_v40 }
 0x293   : > { %19816 = vst [vmem:[#allocation32_spill] sm:$0xff] %v14225_v55  ;;  %10548 = vrot.lane.b32.xlu2 %v13623_v26, %s19818_s26 }
 0x294   : > { %10543 = vrot.lane.b32.xlu1 %v13538_v6, %s19818_s26 }
 0x296   : > { %10538 = vrot.lane.b32.xlu0 %v13616_v5, %s19817_s28 }
 0x298   : > { %v14235_v13 = vpop.permute.xlu1 %10348 }
 0x299   : > { %v14245_v59 = vpop.permute.xlu2 %10398 }
 0x29a   : > { %v14239_v19 = vpop.permute.xlu0 %10343  ;;  %19819 = vst [vmem:[#allocation33_spill] sm:$0xff] %v14245_v59  ;;  %v19838_v59 = vld [vmem:[#allocation57_spill] sm:$0xff] }
 0x29b   : > { %10563 = vrot.lane.b32.xlu2 %v13538_v6, %s19820_s19  ;;  %v9289_v6 = vld [vmem:[%s12155_s30 + $0x60] sm:$0xff] }
 0x29c   : > { %10558 = vrot.lane.b32.xlu1 %v13616_v5, %s19818_s26  ;;  %v10582_v10 = vpack.i.bf16 %v14267_v61, %v9289_v6 }
 0x29e   : > { %10553 = vrot.lane.b32.xlu0 %v13621_v14, %s19818_s26 }
 0x2a0   : > { %v14249_v8 = vpop.permute.xlu1 %10363 }
 0x2a1   : > { %v14257_v52 = vpop.permute.xlu2 %10413 }
 0x2a2   : > { %v14255_v9 = vpop.permute.xlu0 %10358  ;;  %19822 = vst [vmem:[#allocation22_spill] sm:$0xff] %v14257_v52 }
 0x2a3   : > { %19821 = vst [vmem:[#allocation24_spill] sm:$0xff] %v14255_v9  ;;  %10578 = vrot.lane.b32.xlu2 %v13616_v5, %s19820_s19  ;;  %v19836_v9 = vunpack.i.h.bf16 %v14249_v8 }
 0x2a4   : > { %10573 = vrot.lane.b32.xlu1 %v13621_v14, %s19820_s19 }
 0x2a6   : > { %10568 = vrot.lane.b32.xlu0 %v13623_v26, %s19820_s19 }
 0x2a8   : > { %v14269_v1 = vpop.permute.xlu1 %10378 }
 0x2a9   : > { %19823 = vst [vmem:[#allocation28_spill] sm:$0xff] %v14269_v1  ;;  %v14276_v29 = vpop.permute.xlu2 %10428 }
 0x2aa   : > { %v14271_v34 = vpop.permute.xlu0 %10373  ;;  %19826 = vst [vmem:[#allocation23_spill] sm:$0xff] %v14276_v29 }
 0x2ab   : > { %19824 = vst [vmem:[#allocation21_spill] sm:$0xff] %v14271_v34  ;;  %10593 = vrot.lane.b32.xlu2 %v13621_v14, %s19825_s16  ;;  %v10071_v34 = vunpack.i.h.bf16 %v19681_v24  ;;  %v10330_v24 = vunpack.i.l.bf16 %v14225_v55 }
 0x2ac   : > { %10588 = vrot.lane.b32.xlu1 %v13623_v26, %s19825_s16 }
 0x2ae   : > { %10583 = vrot.lane.b32.xlu0 %v10582_v10, %s19825_s16 }
 0x2b0   : > { %v14281_v58 = vpop.permute.xlu1 %10393 }
 0x2b1   : > { %19827 = vst [vmem:[#allocation25_spill] sm:$0xff] %v14281_v58  ;;  %v14287_v57 = vpop.permute.xlu2 %10443 }
 0x2b2   : > { %v14283_v30 = vpop.permute.xlu0 %10388 }
 0x2b3   : > { %19828 = vst [vmem:[#allocation92_spill] sm:$0xff] %v14283_v30  ;;  %10608 = vrot.lane.b32.xlu2 %v13623_v26, %s18906_s17  ;;  %v10390_v22 = vunpack.i.l.bf16 %v14283_v30 }
 0x2b4   : > { %10603 = vrot.lane.b32.xlu1 %v10582_v10, %s18906_s17 }
 0x2b6   : > { %10598 = vrot.lane.b32.xlu0 %v13616_v5, %s19825_s16 }
 0x2b8   : > { %v14293_v4 = vpop.permute.xlu1 %10408 }
 0x2b9   : > { %v14303_v31 = vpop.permute.xlu2 %10458  ;;  %v14511_v2 = vpop.f32.mrf.mxu1 }
 0x2ba   : > { %v14295_v39 = vpop.permute.xlu0 %10403  ;;  %19831 = vst [vmem:[#allocation86_spill] sm:$0xff] %v14303_v31  ;;  %v2740_v31 = vsel %vm18969_vm11, %v10385_v20, %v19833_v46  ;;  %v10345_v46 = vunpack.i.l.bf16 %v14239_v19 }
 0x2bb   : > { %10623 = vrot.lane.b32.xlu2 %v10582_v10, %s18998_s18  ;;  %v18897_v26 = vunpack.i.h.bf16 %v14295_v39  ;;  %v10405_v37 = vunpack.i.l.bf16 %v14295_v39 }
 0x2bc   : > { %10618 = vrot.lane.b32.xlu1 %v13616_v5, %s18906_s17  ;;  %v14325_v5 = vld [vmem:[%s12155_s30 + $0x78] sm:$0xff] }
 0x2bd   : > { %v2799_v10 = vsel %vm1210_vm12, %v9846_v42, %v10405_v37  ;;  %v2800_v11 = vsel %vm1210_vm12, %v10405_v37, %v18897_v26  ;;  %19834 = vst [vmem:[#allocation88_spill] sm:$0xff] %v14325_v5  ;;  %v2739_v42 = vsel %vm18969_vm11, %v9821_v25, %v10385_v20  ;;  %v9796_v37 = vunpack.i.h.bf16 %v19835_v43 }
 0x2be   : > { %10613 = vrot.lane.b32.xlu0 %v13621_v14, %s18906_s17  ;;  %4247 = vmatpush.msra.mxu3 %v2799_v10  ;;  %v10365_v14 = vunpack.i.l.bf16 %v14249_v8  ;;  %v10627_v10 = vpack.i.bf16 %v14325_v5, %v14322_v7  ;;  %v9771_v20 = vunpack.i.h.bf16 %v19838_v59  ;;  %v18905_v43 = vunpack.i.h.bf16 %v14045_v23  ;;  %s20161_s17 = smov 100  }
 0x2bf   : > { %4287 = vmatpush.msra.mxu2 %v2800_v11  ;;  %v10632_v11 = vpack.i.bf16 %v9312_v62, %v14315_v16  ;;  %v10325_v25 = vunpack.i.l.bf16 %v14045_v23  ;;  %v19840_v62 = vld [vmem:[#allocation64_spill] sm:$0xff]  ;;  %v10305_v59 = vunpack.i.l.bf16 %v14176_v28 }
 0x2c0   : > { %4248 = vmatpush.msra.mxu3 %v2739_v42  ;;  %v2664_v1 = vsel %vm19837_vm13, %v10365_v14, %v19836_v9  ;;  %v2663_v42 = vsel %vm19839_vm7, %v9796_v37, %v10365_v14  ;;  %v9746_v26 = vunpack.i.h.bf16 %v19840_v62  ;;  %v14347_v36 = vpop.permute.xlu1 %10423  ;;  %v2603_v9 = vsel %vm19843_vm8, %v9771_v20, %v10345_v46  ;;  %vm19845_vm13 = vmmov %vm19843_vm8 }
 0x2c1   : > { %4288 = vmatpush.msra.mxu2 %v2740_v31  ;;  %v18910_v31 = vunpack.i.h.bf16 %v14176_v28  ;;  %v14345_v63 = vpop.permute.xlu2 %10473  ;;  %vm19846_vm7 = vcmask 80896   ;;  %vm19849_vm8 = vcmask 89088  }
 0x2c2   : > { %4249 = vmatpush.msra.mxu3 %v9190_v21  ;;  %19841 = vst [vmem:[#allocation87_spill] sm:$0xff] %v14345_v63  ;;  %v14352_v21 = vpop.permute.xlu0 %10418  ;;  %v2544_v37 = vsel %vm19846_vm7, %v10325_v25, %v18905_v43  ;;  %vm19848_vm14 = vmmov %vm19846_vm7 }
 0x2c3   : > { %4289 = vmatpush.msra.mxu2 %v9289_v6  ;;  %19842 = vst [vmem:[#allocation83_spill] sm:$0xff] %v14352_v21  ;;  %v19844_v6 = vunpack.i.h.bf16 %v14239_v19  ;;  %v2543_v62 = vsel %vm19848_vm14, %v9746_v26, %v10325_v25  ;;  %v2484_v20 = vsel %vm19849_vm8, %v10305_v59, %v18910_v31  ;;  %v19850_v21 = vld [vmem:[#allocation71_spill] sm:$0xff]  ;;  %v10245_v25 = vunpack.i.l.bf16 %v13915_v53 }
 0x2c4   : > { %4250 = vmatpush.msra.mxu3 %v2663_v42  ;;  %10633 = vrot.lane.b32.xlu1 %v10632_v11, %s18998_s18  ;;  %v19847_v42 = vld [vmem:[#allocation58_spill] sm:$0xff]  ;;  %v3917_v11 = vld [vmem:[%s19854_s3] sm:$0xff]  ;;  %vm19855_vm14 = vcmask 728064   ;;  %v19861_v63 = vunpack.i.h.bf16 %v19850_v21  ;;  %s20206_s3 = smov 9  }
 0x2c5   : > { %4290 = vmatpush.msra.mxu2 %v2664_v1  ;;  %v2604_v14 = vsel %vm19845_vm13, %v10345_v46, %v19844_v6  ;;  %v9721_v1 = vunpack.i.h.bf16 %v19847_v42  ;;  %v10265_v46 = vunpack.i.l.bf16 %v19850_v21  ;;  %v19851_v6 = vld [vmem:[#allocation45_spill] sm:$0xff]  ;;  %vm19852_vm13 = vmmov %vm19849_vm8  ;;  %vm19859_vm8 = vcmask 736256  }
 0x2c6   : > { %10628 = vrot.lane.b32.xlu0 %v10627_v10, %s18998_s18  ;;  %4251 = vmatpush.msra.mxu3 %v2603_v9  ;;  %v10285_v10 = vunpack.i.l.bf16 %v14127_v35  ;;  %v9696_v43 = vunpack.i.h.bf16 %v19851_v6  ;;  %v19853_v9 = vld [vmem:[#allocation52_spill] sm:$0xff]  ;;  %vm19857_vm7 = vmmov %vm19855_vm14  ;;  %v19858_v6 = vld [vmem:[#allocation46_spill] sm:$0xff] }
 0x2c7   : > { %4291 = vmatpush.msra.mxu2 %v2604_v14  ;;  %v2483_v42 = vsel %vm19852_vm13, %v9721_v1, %v10305_v59  ;;  %v9671_v14 = vunpack.i.h.bf16 %v19853_v9  ;;  %v9646_v59 = vunpack.i.h.bf16 %v19858_v6  ;;  %vm19862_vm13 = vmmov %vm19859_vm8 }
 0x2c8   : > { %4252 = vmatpush.msra.mxu3 %v2543_v62  ;;  %v2423_v31 = vsel %vm19855_vm14, %v9696_v43, %v10285_v10  ;;  %vm19866_vm14 = vcmask 744448  }
 0x2c9   : > { %4292 = vmatpush.msra.mxu2 %v2544_v37  ;;  %v19856_v37 = vunpack.i.h.bf16 %v14127_v35  ;;  %v2363_v1 = vsel %vm19859_vm8, %v9671_v14, %v10265_v46  ;;  %v14386_v26 = vpop.permute.xlu2 %10488  ;;  %v14388_v43 = vpop.permute.xlu1 %10438  ;;  %v19865_v14 = vld [vmem:[#allocation34_spill] sm:$0xff]  ;;  %v2303_v9 = vsel %vm19866_vm14, %v9646_v59, %v10245_v25  ;;  %vm19870_vm8 = vcmask 809984  }
 0x2ca   : > { %4253 = vmatpush.msra.mxu3 %v2483_v42  ;;  %v18916_v42 = vunpack.i.h.bf16 %v13915_v53  ;;  %19860 = vst [vmem:[#allocation85_spill] sm:$0xff] %v14388_v43  ;;  %v9621_v6 = vunpack.i.h.bf16 %v19865_v14  ;;  %v9596_v43 = vunpack.i.h.bf16 %v19868_v50  ;;  %v19873_v14 = vld [vmem:[#allocation35_spill] sm:$0xff]  ;;  %v19880_v50 = vld [vmem:[#allocation30_spill] sm:$0xff] }
 0x2cb   : > { %4293 = vmatpush.msra.mxu2 %v2484_v20  ;;  %v2424_v62 = vsel %vm19857_vm7, %v10285_v10, %v19856_v37  ;;  %v10225_v20 = vunpack.i.l.bf16 %v13852_v41  ;;  %v2364_v10 = vsel %vm19862_vm13, %v10265_v46, %v19861_v63  ;;  %v19863_v37 = vld [vmem:[#allocation63_spill] sm:$0xff]  ;;  %vm19867_vm7 = vmmov %vm19866_vm14  ;;  %v19869_v46 = vld [vmem:[#allocation74_spill] sm:$0xff]  ;;  %v9571_v59 = vunpack.i.h.bf16 %v19873_v14 }
 0x2cc   : > { %4254 = vmatpush.msra.mxu3 %v2423_v31  ;;  %v10205_v31 = vunpack.i.l.bf16 %v19863_v37  ;;  %v18920_v63 = vunpack.i.h.bf16 %v19863_v37  ;;  %v10185_v56 = vunpack.i.l.bf16 %v19869_v46  ;;  %vm19872_vm13 = vmmov %vm19870_vm8  ;;  %vm19874_vm14 = vcmask 818176  }
 0x2cd   : > { %4294 = vmatpush.msra.mxu2 %v2424_v62  ;;  %v14394_v62 = vpop.permute.xlu0 %10433  ;;  %v9521_v15 = vunpack.i.h.bf16 %v19880_v50 }
 0x2ce   : > { %3920 = vperm.xlu0 %10642, %v3917_v11   ;;  %19864 = vst [vmem:[#allocation84_spill] sm:$0xff] %v14394_v62  ;;  %4255 = vmatpush.msra.mxu3 %v2363_v1  ;;  %v2304_v11 = vsel %vm19867_vm7, %v10245_v25, %v18916_v42  ;;  %v2243_v62 = vsel %vm19870_vm8, %v9621_v6, %v10225_v20  ;;  %v19871_v1 = vunpack.i.h.bf16 %v13852_v41  ;;  %v19875_v42 = vld [vmem:[#allocation79_spill] sm:$0xff]  ;;  %vm19876_vm7 = vmmov %vm19874_vm14  ;;  %vm19878_vm8 = vcmask 826368  }
 0x2cf   : > { %4295 = vmatpush.msra.mxu2 %v2364_v10  ;;  %v2183_v25 = vsel %vm19874_vm14, %v9596_v43, %v10205_v31  ;;  %v2184_v6 = vsel %vm19876_vm7, %v10205_v31, %v18920_v63  ;;  %v2123_v43 = vsel %vm19878_vm8, %v9571_v59, %v10185_v56  ;;  %v19883_v31 = vld [vmem:[#allocation94_spill] sm:$0xff]  ;;  %vm19884_vm14 = vcmask 891904  }
 0x2d0   : > { %4256 = vmatpush.msra.mxu3 %v2303_v9  ;;  %v2244_v10 = vsel %vm19872_vm13, %v10225_v20, %v19871_v1  ;;  %v10165_v9 = vunpack.i.l.bf16 %v19875_v42  ;;  %v9546_v20 = vunpack.i.h.bf16 %v19629_v3  ;;  %v19877_v1 = vld [vmem:[#allocation91_spill] sm:$0xff]  ;;  %vm19879_vm13 = vmmov %vm19878_vm8  ;;  %v19885_v59 = vunpack.i.h.bf16 %v19875_v42 }
 0x2d1   : > { %4296 = vmatpush.msra.mxu2 %v2304_v11  ;;  %v18921_v11 = vunpack.i.h.bf16 %v19869_v46  ;;  %v10145_v14 = vunpack.i.l.bf16 %v19877_v1  ;;  %v18923_v3 = vunpack.i.h.bf16 %v19877_v1  ;;  %vm19886_vm7 = vmmov %vm19884_vm14  ;;  %v18922_v50 = vunpack.i.h.bf16 %v19883_v31  ;;  %v14509_v46 = vpop.f32.mrf.mxu0 }
 0x2d2   : > { %4257 = vmatpush.msra.mxu3 %v2243_v62  ;;  %v2064_v63 = vsel %vm19886_vm7, %v10165_v9, %v19885_v59  ;;  %vm19887_vm8 = vcmask 900096   ;;  %v9314_v59 = vld [vmem:[%s12155_s30 + $0x98] sm:$0xff]  ;;  %v10096_v41 = vunpack.i.h.bf16 %v19673_v60 }
 0x2d3   : > { %4297 = vmatpush.msra.mxu2 %v2244_v10  ;;  %v2124_v10 = vsel %vm19879_vm13, %v10185_v56, %v18921_v11  ;;  %v9496_v56 = vunpack.i.h.bf16 %v19649_v51  ;;  %v2003_v11 = vsel %vm19887_vm8, %v9521_v15, %v10145_v14  ;;  %vm19888_vm13 = vmmov %vm19887_vm8  ;;  %vm19910_vm8 = vcmask 80896  }
 0x2d4   : > { %4258 = vmatpush.msra.mxu3 %v2183_v25  ;;  %v14425_v16 = vpop.permute.xlu1 %10453  ;;  %v10125_v25 = vunpack.i.l.bf16 %v19883_v31  ;;  %v10121_v31 = vunpack.i.h.bf16 %v13293_v47  ;;  %v14513_v47 = vpop.f32.mrf.mxu3 }
 0x2d5   : > { %4298 = vmatpush.msra.mxu2 %v2184_v6  ;;  %v14418_v62 = vpop.permute.xlu2 %10503  ;;  %19881 = vst [vmem:[#allocation80_spill] sm:$0xff] %v14425_v16  ;;  %v2063_v6 = vsel %vm19884_vm14, %v9546_v20, %v10165_v9  ;;  %vm19889_vm14 = vcmask 908288  }
 0x2d6   : > { %v14427_v5 = vpop.permute.xlu0 %10448  ;;  %4259 = vmatpush.msra.mxu3 %v2123_v43  ;;  %v2004_v43 = vsel %vm19888_vm13, %v10145_v14, %v18923_v3  ;;  %v1943_v20 = vsel %vm19889_vm14, %v9496_v56, %v10125_v25  ;;  %vm19890_vm7 = vmmov %vm19889_vm14  ;;  %vm19920_vm14 = vcmask 72704  }
 0x2d7   : > { %19882 = vst [vmem:[#allocation82_spill] sm:$0xff] %v14427_v5  ;;  %4299 = vmatpush.msra.mxu2 %v2124_v10  ;;  %vm19914_vm13 = vmmov %vm19910_vm8 }
 0x2d8   : > { %4260 = vmatpush.msra.mxu3 %v2063_v6 }
 0x2d9   : > { %4300 = vmatpush.msra.mxu2 %v2064_v63  ;;  %v1944_v63 = vsel %vm19890_vm7, %v10125_v25, %v18922_v50  ;;  %v9313_v25 = vld [vmem:[%s12155_s30 + $0x90] sm:$0xff]  ;;  %v14539_v33 = vpop.f32.mrf.mxu0  ;;  %vm19923_vm7 = vcmask 310272  }
 0x2da   : > { %4261 = vmatpush.msra.mxu3 %v2003_v11 }
 0x2db   : > { %4301 = vmatpush.msra.mxu2 %v2004_v43 }
 0x2dc   : > { %4262 = vmatpush.msra.mxu3 %v1943_v20  ;;  %v10637_v20 = vpack.i.bf16 %v9314_v59, %v9313_v25 }
 0x2dd   : > { %4302 = vmatpush.msra.mxu2 %v1944_v63  ;;  %v14445_v51 = vpop.permute.xlu2 %10518  ;;  %4263 = vmatmul.f32.vlgmr.msra.gmra.mxu3 %v14120_v38  ;;  %v14537_v21 = vpop.f32.mrf.mxu1 }
 0x2de   : > { %19891 = vst [vmem:[#allocation81_spill] sm:$0xff] %v14445_v51  ;;  %4303 = vmatmul.f32.vlgmr.msra.gmra.mxu2 %v14120_v38  ;;  %v14449_v15 = vpop.permute.xlu1 %10468  ;;  %10638 = vrot.lane.b32.xlu2 %v10637_v20, %s18998_s18  ;;  %s20195_s18 = smov 89  }
 0x2df   : > { %v14451_v9 = vpop.permute.xlu0 %10463 }
 0x2e5   : > { %v14453_v11 = vpop.permute.xlu2 %10533 }
 0x2e6   : > { %19892 = vst [vmem:[#allocation42_spill] sm:$0xff] %v14453_v11  ;;  %v14455_v14 = vpop.permute.xlu1 %10483 }
 0x2e8   : > { %v14457_v10 = vpop.permute.xlu0 %10478 }
 0x2e9   : > { %19893 = vst [vmem:[#allocation69_spill] sm:$0xff] %v14457_v10 }
 0x2ed   : > { %v14459_v6 = vpop.permute.xlu2 %10548 }
 0x2ee   : > { %v14463_v56 = vpop.permute.xlu1 %10498 }
 0x2ef   : > { %19894 = vst [vmem:[#allocation77_spill] sm:$0xff] %v14463_v56 }
 0x2f0   : > { %v14465_v43 = vpop.permute.xlu0 %10493 }
 0x2f1   : > { %19895 = vst [vmem:[#allocation70_spill] sm:$0xff] %v14465_v43 }
 0x2f5   : > { %v14468_v38 = vpop.permute.xlu2 %10563 }
 0x2f6   : > { %v14470_v63 = vpop.permute.xlu1 %10513 }
 0x2f7   : > { %19896 = vst [vmem:[#allocation57_spill] sm:$0xff] %v14470_v63 }
 0x2f8   : > { %v14472_v50 = vpop.permute.xlu0 %10508 }
 0x2fd   : > { %v14474_v3 = vpop.permute.xlu2 %10578 }
 0x2fe   : > { %19897 = vst [vmem:[#allocation64_spill] sm:$0xff] %v14474_v3  ;;  %v14476_v10 = vpop.permute.xlu1 %10528 }
 0x300   : > { %v14478_v51 = vpop.permute.xlu0 %10523 }
 0x305   : > { %v14480_v16 = vpop.permute.xlu2 %10593 }
 0x306   : > { %19898 = vst [vmem:[#allocation58_spill] sm:$0xff] %v14480_v16  ;;  %v14482_v56 = vpop.permute.xlu1 %10543 }
 0x307   : > { %v10545_v28 = vunpack.i.l.bf16 %v14482_v56  ;;  %v19911_v60 = vunpack.i.h.bf16 %v14482_v56 }
 0x308   : > { %v14484_v43 = vpop.permute.xlu0 %10538 }
 0x309   : > { %19899 = vst [vmem:[#allocation45_spill] sm:$0xff] %v14484_v43  ;;  %v3220_v35 = vsel %vm1637_vm5, %v10545_v28, %v19911_v60  ;;  %v10505_v60 = vunpack.i.l.bf16 %v14418_v62 }
 0x30d   : > { %v14486_v25 = vpop.permute.xlu2 %10608 }
 0x30e   : > { %v14488_v59 = vpop.permute.xlu1 %10558 }
 0x30f   : > { %19900 = vst [vmem:[#allocation52_spill] sm:$0xff] %v14488_v59 }
 0x310   : > { %v14490_v20 = vpop.permute.xlu0 %10553 }
 0x311   : > { %19901 = vst [vmem:[#allocation46_spill] sm:$0xff] %v14490_v20 }
 0x315   : > { %v14492_v63 = vpop.permute.xlu2 %10623 }
 0x316   : > { %v18943_v3 = vunpack.i.h.bf16 %v14492_v63  ;;  %v10625_v11 = vunpack.i.l.bf16 %v14492_v63  ;;  %v14497_v1 = vpop.permute.xlu1 %10573 }
 0x317   : > { %19902 = vst [vmem:[#allocation34_spill] sm:$0xff] %v14497_v1  ;;  %v14515_v1 = vpop.f32.mrf.mxu2 }
 0x318   : > { %v14499_v16 = vpop.permute.xlu0 %10568  ;;  %v3459_v43 = vsel %vm1881_vm15, %v10121_v31, %v10625_v11  ;;  %v3460_v59 = vsel %vm1881_vm15, %v10625_v11, %v18943_v3  ;;  %v10046_v3 = vunpack.i.h.bf16 %v19694_v44  ;;  %v10565_v31 = vunpack.i.l.bf16 %v14468_v38  ;;  %v14559_v44 = vpop.f32.mrf.mxu3 }
 0x319   : > { %19903 = vst [vmem:[#allocation40_spill] sm:$0xff] %v14499_v16  ;;  %4272 = vmatpush.msra.mxu1 %v3459_v43  ;;  %4312 = vmatpush.msra.mxu0 %v3460_v59  ;;  %v9996_v43 = vunpack.i.h.bf16 %v19708_v17  ;;  %v10021_v59 = vunpack.i.h.bf16 %v19701_v49  ;;  %v10570_v45 = vunpack.i.l.bf16 %v14499_v16 }
 0x31a   : > { %v3279_v29 = vsel %vm1698_vm3, %v10046_v3, %v10565_v31  ;;  %v19915_v3 = vunpack.i.h.bf16 %v14478_v51 }
 0x31e   : > { %v14505_v20 = vpop.permute.xlu1 %10588 }
 0x31f   : > { %19904 = vst [vmem:[#allocation35_spill] sm:$0xff] %v14505_v20 }
 0x320   : > { %v14507_v42 = vpop.permute.xlu0 %10583 }
 0x321   : > { %v10585_v37 = vunpack.i.l.bf16 %v14507_v42 }
 0x326   : > { %v14525_v53 = vpop.permute.xlu1 %10603 }
 0x327   : > { %v10605_v17 = vunpack.i.l.bf16 %v14525_v53  ;;  %v19906_v52 = vunpack.i.h.bf16 %v14525_v53 }
 0x328   : > { %v14527_v58 = vpop.permute.xlu0 %10598 }
 0x329   : > { %19905 = vst [vmem:[#allocation30_spill] sm:$0xff] %v14527_v58  ;;  %v3399_v11 = vsel %vm1820_vm0, %v10096_v41, %v10605_v17  ;;  %v3400_v49 = vsel %vm1820_vm0, %v10605_v17, %v19906_v52  ;;  %v3339_v58 = vsel %vm1759_vm1, %v10071_v34, %v10585_v37  ;;  %v19907_v41 = vunpack.i.h.bf16 %v14507_v42 }
 0x32a   : > { %4273 = vmatpush.msra.mxu1 %v3399_v11  ;;  %4313 = vmatpush.msra.mxu0 %v3400_v49  ;;  %v19908_v52 = vunpack.i.h.bf16 %v14468_v38  ;;  %v10370_v11 = vunpack.i.l.bf16 %v14217_v32  ;;  %v14564_v49 = vpop.f32.mrf.mxu2  ;;  %v19909_v34 = vunpack.i.h.bf16 %v14045_v23 }
 0x32b   : > { %v3340_v5 = vsel %vm1759_vm1, %v10585_v37, %v19907_v41 }
 0x32c   : > { %v3280_v17 = vsel %vm1698_vm3, %v10565_v31, %v19908_v52  ;;  %4274 = vmatpush.msra.mxu1 %v3339_v58  ;;  %4314 = vmatpush.msra.mxu0 %v3340_v5  ;;  %v14569_v37 = vsel %vm19910_vm8, %v19909_v34, %v10330_v24  ;;  %v10525_v52 = vunpack.i.l.bf16 %v14478_v51  ;;  %v19913_v34 = vunpack.i.h.bf16 %v14225_v55  ;;  %vm19929_vm8 = vmmov %vm19923_vm7 }
 0x32d   : > { %v3219_v58 = vsel %vm1637_vm5, %v10021_v59, %v10545_v28  ;;  %v10445_v5 = vunpack.i.l.bf16 %v14287_v57  ;;  %v19916_v28 = vunpack.i.h.bf16 %v14418_v62 }
 0x32e   : > { %4275 = vmatpush.msra.mxu1 %v3279_v29  ;;  %4315 = vmatpush.msra.mxu0 %v3280_v17  ;;  %v14585_v41 = vsel %vm19914_vm13, %v10330_v24, %v19913_v34  ;;  %v10485_v24 = vunpack.i.l.bf16 %v14455_v14  ;;  %v3159_v34 = vsel %vm1576_vm2, %v9996_v43, %v10525_v52  ;;  %v3160_v31 = vsel %vm1576_vm2, %v10525_v52, %v19915_v3 }
 0x32f   : > { %v3100_v59 = vsel %vm1515_vm6, %v10505_v60, %v19916_v28  ;;  %v10465_v29 = vunpack.i.l.bf16 %v14451_v9  ;;  %v19917_v43 = vunpack.i.h.bf16 %v14233_v40  ;;  %v19918_v52 = vunpack.i.l.bf16 %v14235_v13 }
 0x330   : > { %v14580_v23 = vpop.permute.xlu0 %10613  ;;  %4276 = vmatpush.msra.mxu1 %v3219_v58  ;;  %4316 = vmatpush.msra.mxu0 %v3220_v35  ;;  %v14605_v58 = vpop.f32.mrf.mxu1  ;;  %v19919_v3 = vunpack.i.h.bf16 %v14239_v19  ;;  %vm19933_vm13 = vcmask 7168  }
 0x331   : > { %19912 = vst [vmem:[#allocation97_spill] sm:$0xff] %v14580_v23  ;;  %v14607_v35 = vpop.f32.mrf.mxu0  ;;  %v14612_v17 = vsel %vm18969_vm11, %v19917_v43, %v10390_v22  ;;  %v19922_v23 = vunpack.i.h.bf16 %v14455_v14  ;;  %v19924_v43 = vunpack.i.h.bf16 %v14283_v30  ;;  %v19948_v30 = vunpack.i.h.bf16 %v14507_v42 }
 0x332   : > { %4277 = vmatpush.msra.mxu1 %v3159_v34  ;;  %4317 = vmatpush.msra.mxu0 %v3160_v31  ;;  %v14619_v28 = vsel %vm19920_vm14, %v19919_v3, %v19918_v52  ;;  %v19921_v31 = vunpack.i.h.bf16 %v19713_v48  ;;  %v19925_v3 = vunpack.i.h.bf16 %v19735_v27  ;;  %v14649_v52 = vpop.f32.mrf.mxu3  ;;  %v19931_v27 = vunpack.i.h.bf16 %v19743_v54  ;;  %vm19937_vm14 = vmmov %vm19933_vm13 }
 0x333   : > { %v3040_v40 = vsel %vm19923_vm7, %v10485_v24, %v19922_v23  ;;  %v14631_v55 = vsel %vm18969_vm11, %v10390_v22, %v19924_v43  ;;  %v19928_v43 = vunpack.i.h.bf16 %v19722_v0  ;;  %v14664_v0 = vpop.f32.mrf.mxu2  ;;  %v19935_v54 = vunpack.i.h.bf16 %v14451_v9 }
 0x334   : > { %v3099_v34 = vsel %vm1515_vm6, %v19921_v31, %v10505_v60  ;;  %4318 = vmatpush.msra.mxu0 %v3100_v59  ;;  %v2919_v48 = vsel %vm1332_vm10, %v19925_v3, %v10445_v5  ;;  %v19926_v60 = vunpack.i.l.bf16 %v14293_v4  ;;  %v19927_v31 = vunpack.i.h.bf16 %v14295_v39 }
 0x335   : > { %4278 = vmatpush.msra.mxu1 %v3099_v34  ;;  %v3039_v19 = vsel %vm19929_vm8, %v19928_v43, %v10485_v24  ;;  %v19930_v59 = vunpack.i.l.bf16 %v14347_v36  ;;  %v19932_v3 = vunpack.i.h.bf16 %v14249_v8  ;;  %v19934_v24 = vunpack.i.h.bf16 %v19731_v12 }
 0x336   : > { %v14643_v23 = vsel %vm1210_vm12, %v19927_v31, %v19926_v60  ;;  %v10610_v60 = vunpack.i.l.bf16 %v14486_v25  ;;  %4319 = vmatpush.msra.mxu0 %v3040_v40  ;;  %v19936_v8 = vunpack.i.h.bf16 %v14217_v32  ;;  %v10550_v32 = vunpack.i.l.bf16 %v14459_v6 }
 0x337   : > { %v2859_v34 = vsel %vm1271_vm4, %v19931_v27, %v19930_v59  ;;  %v14659_v39 = vsel %vm19933_vm13, %v19932_v3, %v10370_v11  ;;  %4279 = vmatpush.msra.mxu1 %v3039_v19  ;;  %v2979_v43 = vsel %vm1393_vm9, %v19934_v24, %v10465_v29  ;;  %v2980_v59 = vsel %vm1393_vm9, %v10465_v29, %v19935_v54 }
 0x338   : > { %v14662_v31 = vpop.permute.xlu0 %10628  ;;  %v14675_v27 = vsel %vm19937_vm14, %v10370_v11, %v19936_v8  ;;  %v10530_v19 = vunpack.i.l.bf16 %v14476_v10  ;;  %v10590_v29 = vunpack.i.l.bf16 %v14505_v20  ;;  %4320 = vmatpush.msra.mxu0 %v2980_v59  ;;  %v19938_v54 = vunpack.i.h.bf16 %v14287_v57 }
 0x339   : > { %v10630_v22 = vunpack.i.l.bf16 %v14662_v31  ;;  %4280 = vmatpush.msra.mxu1 %v2979_v43  ;;  %v19939_v3 = vunpack.i.h.bf16 %v14492_v63  ;;  %v19940_v12 = vunpack.i.h.bf16 %v14662_v31  ;;  %v19941_v43 = vunpack.i.h.bf16 %v14525_v53 }
 0x33a   : > { %v2920_v8 = vsel %vm1332_vm10, %v10445_v5, %v19938_v54  ;;  %v19942_v5 = vunpack.i.h.bf16 %v14486_v25  ;;  %v14703_v54 = vld [vmem:[#allocation9] sm:$0xff]  ;;  %v19945_v53 = vunpack.i.h.bf16 %v14293_v4  ;;  %vm19952_vm7 = vcmask 719872  }
 0x33b   : > { %v3461_v40 = vsel %vm1881_vm15, %v19939_v3, %v10630_v22  ;;  %v3462_v24 = vsel %vm1881_vm15, %v10630_v22, %v19940_v12  ;;  %4281 = vmatpush.msra.mxu1 %v2919_v48  ;;  %4321 = vmatpush.msra.mxu0 %v2920_v8  ;;  %v3401_v59 = vsel %vm1820_vm0, %v19941_v43, %v10610_v60  ;;  %v19943_v22 = vunpack.i.h.bf16 %v14347_v36  ;;  %v4224_v3 = vpop.f32.mrf.mxu0  ;;  %vm19953_vm8 = vmmov %vm19952_vm7 }
 0x33c   : > { %v3402_v63 = vsel %vm1820_vm0, %v10610_v60, %v19942_v5  ;;  %4352 = vmatpush.msrb.mxu3 %v3461_v40  ;;  %4392 = vmatpush.msrb.mxu2 %v3462_v24  ;;  %v19944_v12 = vunpack.i.l.bf16 %v14347_v36  ;;  %v19946_v8 = vunpack.i.l.bf16 %v14293_v4  ;;  %v19947_v60 = vunpack.i.h.bf16 %v14478_v51  ;;  %v4184_v24 = vpop.f32.mrf.mxu1 }
 0x33d   : > { %4282 = vmatpush.msra.mxu1 %v2859_v34  ;;  %v4588_v42 = vperm.slane %v14703_v54, 1  ;;  %vm19960_vm13 = vcmask 72704   ;;  %vm19968_vm14 = vcmask 310272  }
 0x33e   : > { %v2860_v48 = vsel %vm1271_vm4, %v19944_v12, %v19943_v22  ;;  %v2802_v43 = vsel %vm1210_vm12, %v19946_v8, %v19945_v53  ;;  %v14719_v5 = vsel %vm1576_vm2, %v19947_v60, %v10530_v19  ;;  %v3341_v22 = vsel %vm1759_vm1, %v19948_v30, %v10590_v29  ;;  %4353 = vmatpush.msrb.mxu3 %v3401_v59 }
 0x33f   : > { %4322 = vmatpush.msra.mxu0 %v2860_v48  ;;  %v19949_v12 = vunpack.i.h.bf16 %v14468_v38  ;;  %v19950_v53 = vunpack.i.h.bf16 %v14499_v16  ;;  %4393 = vmatpush.msrb.mxu2 %v3402_v63  ;;  %v19951_v8 = vunpack.i.h.bf16 %v14505_v20  ;;  %v4587_v48 = vperm.slane %v14703_v54, 0  ;;  %v14740_v38 = vld [vmem:[%s19429_s1 + $0x8] sm:$0xff]  ;;  %v4204_v20 = vpop.f32.mrf.mxu3 }
 0x340   : > { %v4589_v30 = vperm.slane %v14703_v54, 2  ;;  %9323 = vmatmul.msk.f32.vlgmr.msra.gmra.mxu1 %vm19952_vm7, %v14740_v38  ;;  %9324 = vmatmul.msk.f32.vlgmr.msra.gmra.mxu0 %vm19953_vm8, %v14740_v38  ;;  %v19955_v59 = vunpack.i.h.bf16 %v14482_v56  ;;  %v19956_v60 = vunpack.i.h.bf16 %v14459_v6  ;;  %vm19970_vm7 = vmmov %vm19968_vm14  ;;  %vm19976_vm8 = vcmask 89088  }
 0x341   : > { %v3281_v11 = vsel %vm1698_vm3, %v19949_v12, %v10570_v45  ;;  %v3282_v51 = vsel %vm1698_vm3, %v10570_v45, %v19950_v53  ;;  %v3342_v34 = vsel %vm1759_vm1, %v10590_v29, %v19951_v8  ;;  %v14746_v45 = vpop.permute.xlu0 %3920  ;;  %v4590_v29 = vperm.slane %v14703_v54, 3  ;;  %4327 = vmatpush.msrb.mxu1 %v14643_v23  ;;  %4367 = vmatpush.msrb.mxu0 %v2802_v43 }
 0x342   : > { %19954 = vst [vmem:[#allocation98_spill] sm:$0xff] %v14746_v45  ;;  %v3221_v63 = vsel %vm1637_vm5, %v19955_v59, %v10550_v32  ;;  %v3222_v12 = vsel %vm1637_vm5, %v10550_v32, %v19956_v60  ;;  %v19957_v53 = vunpack.i.h.bf16 %v14476_v10  ;;  %v4185_v40 = vadd.f32 %v4184_v24, %v14746_v45  ;;  %4354 = vmatpush.msrb.mxu3 %v3341_v22 }
 0x343   : > { %v4225_v16 = vadd.f32 %v4224_v3, %v14746_v45  ;;  %v3945_v56 = vadd.f32 %v14509_v46, %v14746_v45  ;;  %v4591_v59 = vperm.slane %v14703_v54, 4  ;;  %4394 = vmatpush.msrb.mxu2 %v3342_v34  ;;  %v3985_v32 = vadd.f32 %v14515_v1, %v14746_v45  ;;  %v4244_v3 = vpop.f32.mrf.mxu2  ;;  %4328 = vmatpush.msrb.mxu1 %v14612_v17 }
 0x344   : > { %v3162_v8 = vsel %vm1576_vm2, %v10530_v19, %v19957_v53  ;;  %v4025_v19 = vadd.f32 %v14537_v21, %v14746_v45  ;;  %v4065_v23 = vadd.f32 %v14539_v33, %v14746_v45  ;;  %v4592_v43 = vperm.slane %v14703_v54, 5  ;;  %4368 = vmatpush.msrb.mxu0 %v14631_v55  ;;  %4355 = vmatpush.msrb.mxu3 %v3281_v11 }
 0x345   : > { %v3965_v46 = vadd.f32 %v14511_v2, %v3945_v56  ;;  %v4105_v24 = vadd.f32 %v14649_v52, %v14746_v45  ;;  %v4145_v1 = vadd.f32 %v14664_v0, %v14746_v45  ;;  %v4593_v21 = vperm.slane %v14703_v54, 6  ;;  %4395 = vmatpush.msrb.mxu2 %v3282_v51  ;;  %4329 = vmatpush.msrb.mxu1 %v14267_v61 }
 0x346   : > { %v4005_v22 = vadd.f32 %v14513_v47, %v3985_v32  ;;  %v4045_v33 = vadd.f32 %v14559_v44, %v4025_v19  ;;  %v4085_v34 = vadd.f32 %v14564_v49, %v4065_v23  ;;  %v4205_v60 = vadd.f32 %v4204_v20, %v4185_v40  ;;  %4369 = vmatpush.msrb.mxu0 %v14322_v7 }
 0x347   : > { %v4125_v55 = vadd.f32 %v14605_v58, %v4105_v24  ;;  %v4165_v2 = vadd.f32 %v14607_v35, %v4145_v1  ;;  %v4567_v17 = vmax.f32 %v3965_v46, 0.0  ;;  %v4245_v53 = vadd.f32 %v4244_v3, %v4225_v16  ;;  %4356 = vmatpush.msrb.mxu3 %v3221_v63  ;;  %4396 = vmatpush.msrb.mxu2 %v3222_v12  ;;  %v19965_v63 = vld [vmem:[#allocation82_spill] sm:$0xff] }
 0x348   : > { %v4568_v52 = vmax.f32 %v4005_v22, 0.0  ;;  %v4569_v0 = vmax.f32 %v4045_v33, 0.0  ;;  %v4570_v56 = vmax.f32 %v4085_v34, 0.0  ;;  %v4573_v45 = vmax.f32 %v4205_v60, 0.0  ;;  %4330 = vmatpush.msrb.mxu1 %v14659_v39  ;;  %4370 = vmatpush.msrb.mxu0 %v14675_v27  ;;  %v19971_v24 = vld [vmem:[#allocation26_spill] sm:$0xff] }
 0x349   : > { %v4571_v47 = vmax.f32 %v4125_v55, 0.0  ;;  %v4572_v44 = vmax.f32 %v4165_v2, 0.0  ;;  %v14786_v20 = vmul.f32 %v4587_v48, %v4567_v17  ;;  %v4594_v49 = vperm.slane %v14703_v54, 7  ;;  %4357 = vmatpush.msrb.mxu3 %v14719_v5  ;;  %4397 = vmatpush.msrb.mxu2 %v3162_v8  ;;  %v19980_v55 = vld [vmem:[#allocation23_spill] sm:$0xff] }
 0x34a   : > { %v14790_v16 = vmul.f32 %v4588_v42, %v4568_v52  ;;  %v14792_v58 = vmul.f32 %v4589_v30, %v4569_v0  ;;  %v14794_v61 = vmul.f32 %v4593_v21, %v4573_v45  ;;  %v4574_v35 = vmax.f32 %v4245_v53, 0.0  ;;  %4331 = vmatpush.msrb.mxu1 %v14619_v28  ;;  %v19974_v21 = vld [vmem:[#allocation37_spill] sm:$0xff] }
 0x34b   : > { %v18981_v7 = vunpack.i.h.bf16 %v14386_v26  ;;  %v10470_v11 = vunpack.i.l.bf16 %v14449_v15  ;;  %v14799_v40 = vmul.f32 %v4590_v29, %v4570_v56  ;;  %4635 = vst [vmem:[#allocation3 + $0x8] sm:$0xff] %v14786_v20  ;;  %v19958_v39 = vunpack.i.h.bf16 %v14235_v13  ;;  %v19982_v0 = vld [vmem:[#allocation61_spill] sm:$0xff] }
 0x34c   : > { %v19959_v54 = vunpack.i.l.bf16 %v14235_v13  ;;  %v14808_v48 = vmul.f32 %v4591_v59, %v4571_v47  ;;  %4641 = vst [vmem:[#allocation3 + $0x90] sm:$0xff] %v14794_v61  ;;  %v19961_v27 = vunpack.i.l.bf16 %v14472_v50  ;;  %v19962_v42 = vunpack.i.h.bf16 %v14418_v62  ;;  %4332 = vmatpush.msrb.mxu1 %v14569_v37  ;;  %v19972_v37 = vld [vmem:[#allocation44_spill] sm:$0xff] }
 0x34d   : > { %v19963_v30 = vunpack.i.h.bf16 %v14472_v50  ;;  %v18975_v12 = vunpack.i.h.bf16 %v19965_v63  ;;  %v10450_v8 = vunpack.i.l.bf16 %v19965_v63  ;;  %v18977_v59 = vunpack.i.h.bf16 %v14449_v15  ;;  %4636 = vst [vmem:[#allocation3 + $0x40] sm:$0xff] %v14790_v16 }
 0x34e   : > { %v2606_v51 = vsel %vm19960_vm13, %v19959_v54, %v19958_v39  ;;  %v3101_v5 = vsel %vm1515_vm6, %v19962_v42, %v19961_v27  ;;  %v19964_v45 = vmov %v19961_v27  ;;  %v14825_v28 = vmul.f32 %v4592_v43, %v4572_v44  ;;  %4637 = vst [vmem:[#allocation3 + $0x68] sm:$0xff] %v14792_v58  ;;  %vm19979_vm13 = vmmov %vm19976_vm8  ;;  %v19989_v54 = vld [vmem:[#allocation22_spill] sm:$0xff] }
 0x34f   : > { %4371 = vmatpush.msrb.mxu0 %v2606_v51  ;;  %v3102_v29 = vsel %vm1515_vm6, %v19964_v45, %v19963_v30  ;;  %4358 = vmatpush.msrb.mxu3 %v3101_v5  ;;  %v4626_v62 = vmul.f32 %v4594_v49, %v4574_v35  ;;  %v19966_v32 = vunpack.i.l.bf16 %v14386_v26  ;;  %v19967_v19 = vunpack.i.h.bf16 %v14455_v14  ;;  %4638 = vst [vmem:[#allocation3 + $0x20] sm:$0xff] %v14799_v40  ;;  %v19984_v49 = vld [vmem:[#allocation49_spill] sm:$0xff]  ;;  %v19991_v45 = vld [vmem:[#allocation54_spill] sm:$0xff] }
 0x350   : > { %4398 = vmatpush.msrb.mxu2 %v3102_v29  ;;  %v10270_v46 = vunpack.i.l.bf16 %v14062_v18  ;;  %v10291_v1 = vunpack.i.h.bf16 %v19971_v24  ;;  %v19975_v14 = vunpack.i.h.bf16 %v19974_v21  ;;  %v19977_v33 = vunpack.i.h.bf16 %v19972_v37  ;;  %4639 = vst [vmem:[#allocation3 + $0x38] sm:$0xff] %v14808_v48  ;;  %v19997_v21 = vld [vmem:[#allocation25_spill] sm:$0xff] }
 0x351   : > { %4372 = vmatpush.msrb.mxu0 %v14585_v41  ;;  %v3041_v23 = vsel %vm19968_vm14, %v19967_v19, %v19966_v32  ;;  %v19969_v43 = vmov %v19966_v32  ;;  %v19973_v41 = vunpack.i.l.bf16 %v19972_v37  ;;  %v10430_v2 = vunpack.i.l.bf16 %v19980_v55  ;;  %4640 = vst [vmem:[#allocation3 + $0x80] sm:$0xff] %v14825_v28  ;;  %v19992_v19 = vld [vmem:[#allocation71_spill] sm:$0xff] }
 0x352   : > { %v3042_v3 = vsel %vm19970_vm7, %v19969_v43, %v18981_v7  ;;  %4359 = vmatpush.msrb.mxu3 %v3041_v23  ;;  %v19981_v17 = vunpack.i.h.bf16 %v14451_v9  ;;  %v2982_v52 = vsel %vm1393_vm9, %v10470_v11, %v18977_v59  ;;  %v10251_v56 = vunpack.i.h.bf16 %v19982_v0  ;;  %4642 = vst [vmem:[#allocation3] sm:$0xff] %v4626_v62 }
 0x353   : > { %4399 = vmatpush.msrb.mxu2 %v3042_v3  ;;  %v2485_v22 = vsel %vm19976_vm8, %v19975_v14, %v19973_v41  ;;  %v19978_v34 = vmov %v19973_v41  ;;  %v10250_v47 = vunpack.i.l.bf16 %v19982_v0  ;;  %v19983_v44 = vunpack.i.l.bf16 %v19971_v24  ;;  %v14891_v41 = vld [vmem:[#allocation3 + $0x88] sm:$0xff] }
 0x354   : > { %v2486_v60 = vsel %vm19979_vm13, %v19978_v34, %v19977_v33  ;;  %4333 = vmatpush.msrb.mxu1 %v2485_v22  ;;  %v2981_v53 = vsel %vm1393_vm9, %v19981_v17, %v10470_v11  ;;  %v19985_v35 = vunpack.i.h.bf16 %v19984_v49  ;;  %vm19986_vm14 = vcmask 728064  }
 0x355   : > { %4373 = vmatpush.msrb.mxu0 %v2486_v60  ;;  %4360 = vmatpush.msrb.mxu3 %v2981_v53  ;;  %v19987_v39 = vmov %v19983_v44  ;;  %vm19988_vm7 = vmmov %vm19986_vm14  ;;  %v10415_v51 = vunpack.i.l.bf16 %v19989_v54  ;;  %v18974_v27 = vunpack.i.h.bf16 %v19980_v55  ;;  %v19990_v42 = vunpack.i.h.bf16 %v14287_v57  ;;  %v14904_v60 = vld [vmem:[#allocation3 + $0x28] sm:$0xff]  ;;  %v20000_v53 = vld [vmem:[#allocation48_spill] sm:$0xff] }
 0x356   : > { %4400 = vmatpush.msrb.mxu2 %v2982_v52  ;;  %v2425_v9 = vsel %vm19986_vm14, %v19985_v35, %v19983_v44  ;;  %v2426_v11 = vsel %vm19988_vm7, %v19987_v39, %v10291_v1  ;;  %v2922_v30 = vsel %vm1332_vm10, %v10450_v8, %v18975_v12  ;;  %v10230_v29 = vunpack.i.l.bf16 %v19991_v45  ;;  %v20060_v12 = vld [vmem:[#allocation56_spill] sm:$0xff] }
 0x357   : > { %4334 = vmatpush.msrb.mxu1 %v2425_v9  ;;  %4374 = vmatpush.msrb.mxu0 %v2426_v11  ;;  %v2921_v5 = vsel %vm1332_vm10, %v19990_v42, %v10450_v8  ;;  %v18973_v32 = vunpack.i.h.bf16 %v19989_v54  ;;  %v19993_v23 = vunpack.i.h.bf16 %v19992_v19  ;;  %vm19994_vm8 = vcmask 736256   ;;  %v20005_v11 = vld [vmem:[#allocation62_spill] sm:$0xff] }
 0x358   : > { %4361 = vmatpush.msrb.mxu3 %v2921_v5  ;;  %4401 = vmatpush.msrb.mxu2 %v2922_v30  ;;  %v19995_v3 = vunpack.i.h.bf16 %v14062_v18  ;;  %vm19996_vm13 = vmmov %vm19994_vm8  ;;  %v10395_v14 = vunpack.i.l.bf16 %v19997_v21  ;;  %v19998_v8 = vunpack.i.h.bf16 %v14347_v36  ;;  %v2862_v33 = vsel %vm1271_vm4, %v10430_v2, %v18974_v27 }
 0x359   : > { %v2365_v43 = vsel %vm19994_vm8, %v19993_v23, %v10270_v46  ;;  %v14902_v34 = vpack.i.bf16 %v14792_v58, %v14790_v16  ;;  %v20001_v52 = vunpack.i.h.bf16 %v20000_v53  ;;  %vm20002_vm14 = vcmask 744448  }
 0x35a   : > { %v2366_v57 = vsel %vm19996_vm13, %v10270_v46, %v19995_v3  ;;  %4335 = vmatpush.msrb.mxu1 %v2365_v43  ;;  %v2861_v22 = vsel %vm1271_vm4, %v19998_v8, %v10430_v2  ;;  %v19999_v46 = vld [vmem:[#allocation67_spill] sm:$0xff]  ;;  %4402 = vmatpush.msrb.mxu2 %v2862_v33  ;;  %vm20003_vm7 = vmmov %vm20002_vm14  ;;  %v18971_v2 = vunpack.i.h.bf16 %v19997_v21  ;;  %v20004_v16 = vunpack.i.h.bf16 %v14293_v4  ;;  %v20011_v3 = vld [vmem:[#allocation21_spill] sm:$0xff] }
 0x35b   : > { %4375 = vmatpush.msrb.mxu0 %v2366_v57  ;;  %v10210_v17 = vunpack.i.l.bf16 %v19999_v46  ;;  %4362 = vmatpush.msrb.mxu3 %v2861_v22  ;;  %v2305_v36 = vsel %vm20002_vm14, %v20001_v52, %v10250_v47  ;;  %v2306_v44 = vsel %vm20003_vm7, %v10250_v47, %v10251_v56  ;;  %v2804_v49 = vsel %vm1210_vm12, %v10415_v51, %v18973_v32  ;;  %v14925_v47 = vpop.permute.xlu1 %10618  ;;  %v20013_v8 = vld [vmem:[#allocation78_spill] sm:$0xff] }
 0x35c   : > { %4336 = vmatpush.msrb.mxu1 %v2305_v36  ;;  %v2803_v58 = vsel %vm1210_vm12, %v20004_v16, %v10415_v51  ;;  %v14921_v35 = vpack.i.bf16 %v14891_v41, %v4626_v62  ;;  %v10211_v9 = vunpack.i.h.bf16 %v19999_v46  ;;  %v10231_v39 = vunpack.i.h.bf16 %v19991_v45  ;;  %4447 = vmatpush.msra.mxu2 %v2804_v49  ;;  %v20008_v51 = vld [vmem:[#allocation75_spill] sm:$0xff]  ;;  %v20009_v62 = vld [vmem:[#allocation92_spill] sm:$0xff] }
 0x35d   : > { %4376 = vmatpush.msrb.mxu0 %v2306_v44  ;;  %4407 = vmatpush.msra.mxu3 %v2803_v58  ;;  %v20006_v42 = vunpack.i.h.bf16 %v20005_v11  ;;  %vm20007_vm8 = vcmask 809984   ;;  %v14932_v5 = vpack.i.bf16 %v14786_v20, %v14904_v60  ;;  %v10190_v30 = vunpack.i.l.bf16 %v20008_v51  ;;  %v20017_v44 = vld [vmem:[#allocation43_spill] sm:$0xff]  ;;  %v20019_v58 = vld [vmem:[#allocation73_spill] sm:$0xff]  ;;  %v20020_v11 = vld [vmem:[#allocation88_spill] sm:$0xff] }
 0x35e   : > { %v20010_v19 = vunpack.i.h.bf16 %v20009_v62  ;;  %v2744_v43 = vsel %vm18969_vm11, %v10395_v14, %v18971_v2  ;;  %10649 = vrot.lane.b32.xlu2 %v14902_v34, %s18996_s5  ;;  %v10375_v57 = vunpack.i.l.bf16 %v20011_v3  ;;  %vm20012_vm13 = vmmov %vm20007_vm8  ;;  %v10170_v22 = vunpack.i.l.bf16 %v20013_v8  ;;  %10664 = vrot.lane.b32.xlu0 %v14921_v35, %s18996_s5 }
 0x35f   : > { %v2245_v4 = vsel %vm20007_vm8, %v20006_v42, %v10230_v29  ;;  %4448 = vmatpush.msra.mxu2 %v2744_v43  ;;  %v2246_v20 = vsel %vm20012_vm13, %v10230_v29, %v10231_v39  ;;  %v18970_v33 = vunpack.i.h.bf16 %v20011_v3  ;;  %vm20016_vm14 = vcmask 818176   ;;  %10644 = vrot.lane.b32.xlu1 %v14932_v5, %s18996_s5  ;;  %v20021_v42 = vld [vmem:[#allocation74_spill] sm:$0xff]  ;;  %v20024_v43 = vld [vmem:[#allocation89_spill] sm:$0xff] }
 0x360   : > { %4337 = vmatpush.msrb.mxu1 %v2245_v4  ;;  %v2743_v23 = vsel %vm18969_vm11, %v20010_v19, %v10395_v14  ;;  %4377 = vmatpush.msrb.mxu0 %v2246_v20  ;;  %v20014_v14 = vld [vmem:[#allocation63_spill] sm:$0xff]  ;;  %v10191_v36 = vunpack.i.h.bf16 %v20008_v51  ;;  %v10355_v16 = vunpack.i.l.bf16 %v20017_v44  ;;  %vm20018_vm7 = vmmov %vm20016_vm14  ;;  %v18980_v49 = vunpack.i.h.bf16 %v20019_v58 }
 0x361   : > { %4408 = vmatpush.msra.mxu3 %v2743_v23  ;;  %v20015_v53 = vunpack.i.h.bf16 %v20014_v14  ;;  %v2186_v29 = vsel %vm20018_vm7, %v10210_v17, %v10211_v9  ;;  %v20022_v4 = vunpack.i.h.bf16 %v20021_v42  ;;  %vm20023_vm8 = vcmask 826368   ;;  %4449 = vmatpush.msra.mxu2 %v20024_v43  ;;  %v20026_v20 = vld [vmem:[#allocation27_spill] sm:$0xff] }
 0x362   : > { %4378 = vmatpush.msrb.mxu0 %v2186_v29  ;;  %v10150_v19 = vunpack.i.l.bf16 %v20019_v58  ;;  %v10171_v23 = vunpack.i.h.bf16 %v20013_v8  ;;  %vm20025_vm13 = vmmov %vm20023_vm8  ;;  %v20027_v14 = vunpack.i.h.bf16 %v20026_v20  ;;  %v20029_v29 = vld [vmem:[#allocation36_spill] sm:$0xff]  ;;  %v20035_v20 = vunpack.i.h.bf16 %v14235_v13  ;;  %v20041_v13 = vld [vmem:[#allocation91_spill] sm:$0xff] }
 0x363   : > { %v2185_v52 = vsel %vm20016_vm14, %v20015_v53, %v10210_v17  ;;  %4409 = vmatpush.msra.mxu3 %v20020_v11  ;;  %v2125_v62 = vsel %vm20023_vm8, %v20022_v4, %v10190_v30  ;;  %v2126_v17 = vsel %vm20025_vm13, %v10190_v30, %v10191_v36  ;;  %vm20028_vm14 = vcmask 7168   ;;  %v20031_v4 = vld [vmem:[#allocation79_spill] sm:$0xff]  ;;  %v20098_v8 = vld [vmem:[#allocation80_spill] sm:$0xff] }
 0x364   : > { %4338 = vmatpush.msrb.mxu1 %v2185_v52  ;;  %v2667_v53 = vsel %vm20028_vm14, %v20027_v14, %v10375_v57  ;;  %v18968_v52 = vunpack.i.h.bf16 %v20017_v44  ;;  %v10335_v11 = vunpack.i.l.bf16 %v20029_v29  ;;  %4379 = vmatpush.msrb.mxu0 %v2126_v17  ;;  %vm20030_vm7 = vmmov %vm20028_vm14  ;;  %vm20033_vm8 = vcmask 891904   ;;  %v20037_v17 = vld [vmem:[#allocation90_spill] sm:$0xff] }
 0x365   : > { %4410 = vmatpush.msra.mxu3 %v2667_v53  ;;  %v2668_v42 = vsel %vm20030_vm7, %v10375_v57, %v18970_v33  ;;  %vm20034_vm13 = vmmov %vm20033_vm8  ;;  %vm20036_vm14 = vcmask 72704   ;;  %v10130_v53 = vunpack.i.l.bf16 %v20037_v17  ;;  %vm20048_vm11 = vcmask 80896  }
 0x366   : > { %4339 = vmatpush.msrb.mxu1 %v2125_v62  ;;  %v20032_v62 = vunpack.i.h.bf16 %v20031_v4  ;;  %4450 = vmatpush.msra.mxu2 %v2668_v42  ;;  %v2066_v30 = vsel %vm20034_vm13, %v10170_v22, %v10171_v23  ;;  %v2607_v14 = vsel %vm20036_vm14, %v20035_v20, %v10355_v16  ;;  %vm20038_vm7 = vmmov %vm20036_vm14  ;;  %v20039_v4 = vld [vmem:[#allocation38_spill] sm:$0xff]  ;;  %v18972_v42 = vunpack.i.h.bf16 %v20029_v29 }
 0x367   : > { %4380 = vmatpush.msrb.mxu0 %v2066_v30  ;;  %4411 = vmatpush.msra.mxu3 %v2607_v14  ;;  %v2608_v57 = vsel %vm20038_vm7, %v10355_v16, %v18968_v52  ;;  %vm20043_vm13 = vcmask 900096   ;;  %v18978_v16 = vunpack.i.h.bf16 %v20039_v4  ;;  %v15022_v2 = vpack.i.bf16 %v14808_v48, %v14799_v40 }
 0x368   : > { %v2065_v43 = vsel %vm20033_vm8, %v20032_v62, %v10170_v22  ;;  %v10315_v62 = vunpack.i.l.bf16 %v20039_v4  ;;  %4451 = vmatpush.msra.mxu2 %v2608_v57  ;;  %vm20040_vm8 = vcmask 719872   ;;  %v20042_v22 = vunpack.i.h.bf16 %v20041_v13  ;;  %vm20044_vm14 = vmmov %vm20043_vm13  ;;  %v20046_v57 = vld [vmem:[#allocation32_spill] sm:$0xff] }
 0x369   : > { %4340 = vmatpush.msrb.mxu1 %v2065_v43  ;;  %v14995_v43 = vpop.permute.xlu1 %10633  ;;  %9325 = vmatmul.msk.f32.vlgmr.msrb.gmra.mxu3 %vm20040_vm8, %v14740_v38  ;;  %v2006_v30 = vsel %vm20044_vm14, %v10150_v19, %v18980_v49  ;;  %vm20045_vm7 = vmmov %vm20040_vm8  ;;  %v20047_v52 = vunpack.i.h.bf16 %v20046_v57  ;;  %v15014_v13 = vpack.i.bf16 %v14794_v61, %v14825_v28  ;;  %v20051_v61 = vld [vmem:[#allocation97_spill] sm:$0xff]  ;;  %vm20057_vm14 = vcmask 89088  }
 0x36a   : > { %v2005_v20 = vsel %vm20043_vm13, %v20042_v22, %v10150_v19  ;;  %v18979_v14 = vunpack.i.h.bf16 %v14995_v43  ;;  %9326 = vmatmul.msk.f32.vlgmr.msrb.gmra.mxu2 %vm20045_vm7, %v14740_v38  ;;  %v18976_v22 = vunpack.i.h.bf16 %v20037_v17  ;;  %4381 = vmatpush.msrb.mxu0 %v2006_v30  ;;  %vm20049_vm8 = vmmov %vm20048_vm11  ;;  %v10615_v28 = vunpack.i.l.bf16 %v20051_v61 }
 0x36b   : > { %4341 = vmatpush.msrb.mxu1 %v2005_v20  ;;  %v2547_v33 = vsel %vm20048_vm11, %v20047_v52, %v10335_v11  ;;  %v2548_v19 = vsel %vm20049_vm8, %v10335_v11, %v18972_v42  ;;  %v20050_v20 = vld [vmem:[#allocation50_spill] sm:$0xff]  ;;  %v10635_v52 = vunpack.i.l.bf16 %v14995_v43  ;;  %10659 = vrot.lane.b32.xlu2 %v15014_v13, %s18996_s5  ;;  %vm20054_vm11 = vcmask 908288   ;;  %vm20059_vm7 = vmmov %vm20057_vm14 }
 0x36c   : > { %4412 = vmatpush.msra.mxu3 %v2547_v33  ;;  %v10295_v57 = vunpack.i.l.bf16 %v20050_v20  ;;  %4452 = vmatpush.msra.mxu2 %v2548_v19  ;;  %v20052_v33 = vld [vmem:[#allocation94_spill] sm:$0xff]  ;;  %vm20055_vm13 = vmmov %vm20054_vm11  ;;  %v20056_v30 = vunpack.i.h.bf16 %v19972_v37  ;;  %v10616_v27 = vunpack.i.h.bf16 %v20051_v61  ;;  %v10275_v37 = vunpack.i.l.bf16 %v20060_v12 }
 0x36d   : > { %10679 = vrot.lane.b32.xlu0 %v15022_v2, %s18994_s8  ;;  %10654 = vrot.lane.b32.xlu1 %v15022_v2, %s18996_s5  ;;  %v20053_v11 = vunpack.i.h.bf16 %v20052_v33  ;;  %v1946_v48 = vsel %vm20055_vm13, %v10130_v53, %v18976_v22  ;;  %v20058_v42 = vld [vmem:[#allocation58_spill] sm:$0xff]  ;;  %v2488_v33 = vsel %vm20059_vm7, %v10315_v62, %v18978_v16  ;;  %vm20063_vm8 = vcmask 728064   ;;  %s20194_s5 = smov 90  }
 0x36e   : > { %v2487_v19 = vsel %vm20057_vm14, %v20056_v30, %v10315_v62  ;;  %v10595_v32 = vunpack.i.l.bf16 %v20058_v42  ;;  %4382 = vmatpush.msrb.mxu0 %v1946_v48  ;;  %4453 = vmatpush.msra.mxu2 %v2488_v33  ;;  %v20061_v30 = vld [vmem:[#allocation55_spill] sm:$0xff]  ;;  %v15058_v62 = vld [vmem:[%s19429_s1] sm:$0xff]  ;;  %v20062_v48 = vunpack.i.h.bf16 %v14662_v31  ;;  %v18983_v33 = vunpack.i.h.bf16 %v20060_v12  ;;  %s20203_s1 = smov 10  }
 0x36f   : > { %v1945_v40 = vsel %vm20054_vm11, %v20053_v11, %v10130_v53  ;;  %v3464_v11 = vsel %vm1881_vm15, %v10635_v52, %v18979_v14  ;;  %v18984_v53 = vunpack.i.h.bf16 %v20050_v20  ;;  %4413 = vmatpush.msra.mxu3 %v2487_v19  ;;  %v18982_v22 = vunpack.i.h.bf16 %v20061_v30  ;;  %4383 = vmatmul.f32.vlgmr.msrb.gmra.mxu0 %v15058_v62  ;;  %vm20064_vm11 = vmmov %vm20063_vm8 }
 0x370   : > { %4342 = vmatpush.msrb.mxu1 %v1945_v40  ;;  %v10255_v59 = vunpack.i.l.bf16 %v20061_v30  ;;  %v18986_v40 = vunpack.i.h.bf16 %v20058_v42  ;;  %v3463_v19 = vsel %vm1881_vm15, %v20062_v48, %v10635_v52  ;;  %4472 = vmatpush.msra.mxu0 %v3464_v11  ;;  %v2427_v16 = vsel %vm20063_vm8, %v10291_v1, %v10295_v57  ;;  %v20066_v52 = vld [vmem:[#allocation35_spill] sm:$0xff]  ;;  %v20068_v48 = vld [vmem:[#allocation34_spill] sm:$0xff] }
 0x371   : > { %4343 = vmatmul.f32.vlgmr.msrb.gmra.mxu1 %v15058_v62  ;;  %v2428_v14 = vsel %vm20064_vm11, %v10295_v57, %v18984_v53  ;;  %v20065_v49 = vunpack.i.h.bf16 %v14486_v25  ;;  %4414 = vmatpush.msra.mxu3 %v2427_v16  ;;  %v3404_v31 = vsel %vm1820_vm0, %v10615_v28, %v10616_v27  ;;  %v20067_v11 = vunpack.i.h.bf16 %v20066_v52  ;;  %v20073_v52 = vld [vmem:[#allocation46_spill] sm:$0xff]  ;;  %v20082_v53 = vld [vmem:[#allocation57_spill] sm:$0xff] }
 0x372   : > { %4432 = vmatpush.msra.mxu1 %v3463_v19  ;;  %4454 = vmatpush.msra.mxu2 %v2428_v14  ;;  %v3344_v1 = vsel %vm1759_vm1, %v10595_v32, %v18986_v40  ;;  %v10575_v57 = vunpack.i.l.bf16 %v20068_v48  ;;  %v20069_v25 = vunpack.i.h.bf16 %v14062_v18  ;;  %vm20070_vm13 = vcmask 736256   ;;  %v20072_v14 = vld [vmem:[#allocation66_spill] sm:$0xff]  ;;  %v20085_v40 = vld [vmem:[#allocation93_spill] sm:$0xff] }
 0x373   : > { %v3403_v7 = vsel %vm1820_vm0, %v20065_v49, %v10615_v28  ;;  %v3343_v24 = vsel %vm1759_vm1, %v20067_v11, %v10595_v32  ;;  %4473 = vmatpush.msra.mxu0 %v3404_v31  ;;  %vm20071_vm14 = vmmov %vm20070_vm13  ;;  %v10235_v28 = vunpack.i.l.bf16 %v20072_v14  ;;  %v18985_v19 = vunpack.i.h.bf16 %v20068_v48  ;;  %v20076_v31 = vld [vmem:[#allocation39_spill] sm:$0xff]  ;;  %10674 = vrot.lane.b32.xlu2 %v14902_v34, %s18994_s8 }
 0x374   : > { %4433 = vmatpush.msra.mxu1 %v3403_v7  ;;  %v2367_v49 = vsel %vm20070_vm13, %v20069_v25, %v10275_v37  ;;  %v2368_v16 = vsel %vm20071_vm14, %v10275_v37, %v18983_v33  ;;  %v10555_v32 = vunpack.i.l.bf16 %v20073_v52  ;;  %vm20074_vm7 = vcmask 744448  }
 0x375   : > { %4415 = vmatpush.msra.mxu3 %v2367_v49  ;;  %4455 = vmatpush.msra.mxu2 %v2368_v16  ;;  %v2307_v18 = vsel %vm20074_vm7, %v10251_v56, %v10255_v59  ;;  %vm20075_vm8 = vmmov %vm20074_vm7  ;;  %v10215_v37 = vunpack.i.l.bf16 %v20076_v31  ;;  %v10556_v11 = vunpack.i.h.bf16 %v20073_v52  ;;  %v3284_v25 = vsel %vm1698_vm3, %v10575_v57, %v18985_v19  ;;  %v20080_v16 = vld [vmem:[#allocation60_spill] sm:$0xff] }
 0x376   : > { %4434 = vmatpush.msra.mxu1 %v3343_v24  ;;  %4474 = vmatpush.msra.mxu0 %v3344_v1  ;;  %v2308_v7 = vsel %vm20075_vm8, %v10255_v59, %v18982_v22  ;;  %v18991_v24 = vunpack.i.h.bf16 %v20072_v14  ;;  %v20077_v1 = vld [vmem:[#allocation42_spill] sm:$0xff]  ;;  %v20078_v59 = vld [vmem:[#allocation40_spill] sm:$0xff]  ;;  %vm20081_vm11 = vcmask 809984   ;;  %v18989_v33 = vunpack.i.h.bf16 %v20076_v31 }
 0x377   : > { %4416 = vmatpush.msra.mxu3 %v2307_v18  ;;  %4456 = vmatpush.msra.mxu2 %v2308_v7  ;;  %v10535_v0 = vunpack.i.l.bf16 %v20077_v1  ;;  %v20079_v56 = vunpack.i.h.bf16 %v20078_v59  ;;  %v18988_v18 = vunpack.i.h.bf16 %v20080_v16  ;;  %v10195_v7 = vunpack.i.l.bf16 %v20080_v16  ;;  %vm20083_vm13 = vmmov %vm20081_vm11 }
 0x378   : > { %10694 = vrot.lane.b32.xlu0 %v14932_v5, %s18992_s11  ;;  %10669 = vrot.lane.b32.xlu1 %v14932_v5, %s18994_s8  ;;  %v2247_v22 = vsel %vm20081_vm11, %v10231_v39, %v10235_v28  ;;  %v10515_v19 = vunpack.i.l.bf16 %v20082_v53  ;;  %v20084_v59 = vunpack.i.h.bf16 %v14459_v6  ;;  %v10536_v45 = vunpack.i.h.bf16 %v20077_v1 }
 0x379   : > { %v3283_v49 = vsel %vm1698_vm3, %v20079_v56, %v10575_v57  ;;  %4475 = vmatpush.msra.mxu0 %v3284_v25  ;;  %4417 = vmatpush.msra.mxu3 %v2247_v22  ;;  %v2248_v57 = vsel %vm20083_vm13, %v10235_v28, %v18991_v24  ;;  %v3224_v39 = vsel %vm1637_vm5, %v10555_v32, %v10556_v11  ;;  %vm20086_vm14 = vcmask 818176  }
 0x37a   : > { %4435 = vmatpush.msra.mxu1 %v3283_v49  ;;  %v3223_v56 = vsel %vm1637_vm5, %v20084_v59, %v10555_v32  ;;  %v10175_v49 = vunpack.i.l.bf16 %v20085_v40  ;;  %4457 = vmatpush.msra.mxu2 %v2248_v57  ;;  %v2187_v22 = vsel %vm20086_vm14, %v10211_v9, %v10215_v37  ;;  %vm20087_vm7 = vmmov %vm20086_vm14  ;;  %v20088_v28 = vunpack.i.h.bf16 %v14476_v10  ;;  %v20090_v32 = vld [vmem:[#allocation70_spill] sm:$0xff] }
 0x37b   : > { %4476 = vmatpush.msra.mxu0 %v3224_v39  ;;  %4418 = vmatpush.msra.mxu3 %v2187_v22  ;;  %v2188_v6 = vsel %vm20087_vm7, %v10215_v37, %v18989_v33  ;;  %v18987_v57 = vunpack.i.h.bf16 %v20085_v40  ;;  %v10516_v59 = vunpack.i.h.bf16 %v20082_v53  ;;  %v3164_v46 = vsel %vm1576_vm2, %v10535_v0, %v10536_v45 }
 0x37c   : > { %4436 = vmatpush.msra.mxu1 %v3223_v56  ;;  %v3163_v25 = vsel %vm1576_vm2, %v20088_v28, %v10535_v0  ;;  %4458 = vmatpush.msra.mxu2 %v2188_v6  ;;  %vm20089_vm8 = vcmask 826368   ;;  %v10496_v37 = vunpack.i.h.bf16 %v20090_v32  ;;  %v10495_v10 = vunpack.i.l.bf16 %v20090_v32  ;;  %v20093_v6 = vld [vmem:[#allocation72_spill] sm:$0xff]  ;;  %v10639_v28 = vpop.permute.xlu2 %10638 }
 0x37d   : > { %v2127_v9 = vsel %vm20089_vm8, %v10191_v36, %v10195_v7  ;;  %4477 = vmatpush.msra.mxu0 %v3164_v46  ;;  %vm20091_vm11 = vmmov %vm20089_vm8  ;;  %v20092_v39 = vunpack.i.h.bf16 %v14472_v50  ;;  %v10155_v0 = vunpack.i.l.bf16 %v20093_v6  ;;  %v3104_v51 = vsel %vm1515_vm6, %v10515_v19, %v10516_v59  ;;  %10689 = vrot.lane.b32.xlu2 %v14921_v35, %s18994_s8 }
 0x37e   : > { %4437 = vmatpush.msra.mxu1 %v3163_v25  ;;  %4419 = vmatpush.msra.mxu3 %v2127_v9  ;;  %v2128_v56 = vsel %vm20091_vm11, %v10195_v7, %v18988_v18  ;;  %vm20094_vm13 = vcmask 891904   ;;  %v20095_v25 = vld [vmem:[#allocation96_spill] sm:$0xff]  ;;  %v20096_v7 = vld [vmem:[#allocation87_spill] sm:$0xff]  ;;  %vm20100_vm7 = vcmask 310272   ;;  %vm20103_vm11 = vcmask 900096  }
 0x37f   : > { %v3103_v22 = vsel %vm1515_vm6, %v20092_v39, %v10515_v19  ;;  %4459 = vmatpush.msra.mxu2 %v2128_v56  ;;  %v2067_v36 = vsel %vm20094_vm13, %v10171_v23, %v10175_v49  ;;  %v10135_v46 = vunpack.i.l.bf16 %v20095_v25  ;;  %v10475_v9 = vunpack.i.l.bf16 %v20096_v7  ;;  %4478 = vmatpush.msra.mxu0 %v3104_v51  ;;  %vm20097_vm14 = vmmov %vm20094_vm13 }
 0x380   : > { %4438 = vmatpush.msra.mxu1 %v3103_v22  ;;  %4420 = vmatpush.msra.mxu3 %v2067_v36  ;;  %v2068_v50 = vsel %vm20097_vm14, %v10175_v49, %v18987_v57  ;;  %v10136_v56 = vunpack.i.h.bf16 %v20095_v25  ;;  %v18990_v39 = vunpack.i.h.bf16 %v20093_v6  ;;  %v10476_v19 = vunpack.i.h.bf16 %v20096_v7  ;;  %vm20101_vm8 = vmmov %vm20100_vm7  ;;  %v4304_v25 = vpop.f32.mrf.mxu2 }
 0x381   : > { %v10455_v22 = vunpack.i.l.bf16 %v20098_v8  ;;  %4460 = vmatpush.msra.mxu2 %v2068_v50  ;;  %10709 = vrot.lane.b32.xlu0 %v15014_v13, %s18992_s11  ;;  %v10641_v23 = vunpack.i.h.bf16 %v10639_v28  ;;  %v10640_v49 = vunpack.i.l.bf16 %v10639_v28  ;;  %v20099_v51 = vunpack.i.h.bf16 %v14386_v26  ;;  %vm20104_vm13 = vmmov %vm20103_vm11 }
 0x382   : > { %10684 = vrot.lane.b32.xlu1 %v15014_v13, %s18994_s8  ;;  %v3044_v57 = vsel %vm20101_vm8, %v10495_v10, %v10496_v37  ;;  %v20102_v50 = vunpack.i.h.bf16 %v20019_v58  ;;  %v2008_v33 = vsel %vm20104_vm13, %v10155_v0, %v18990_v39  ;;  %v10621_v28 = vunpack.i.h.bf16 %v14925_v47  ;;  %s20190_s8 = smov 91  }
 0x383   : > { %v3043_v36 = vsel %vm20100_vm7, %v20099_v51, %v10495_v10  ;;  %4479 = vmatpush.msra.mxu0 %v3044_v57  ;;  %4461 = vmatpush.msra.mxu2 %v2008_v33  ;;  %v20105_v26 = vunpack.i.h.bf16 %v14449_v15  ;;  %v2984_v57 = vsel %vm1393_vm9, %v10475_v9, %v10476_v19  ;;  %v20106_v58 = vunpack.i.h.bf16 %v20037_v17 }
 0x384   : > { %4439 = vmatpush.msra.mxu1 %v3043_v36  ;;  %v2007_v18 = vsel %vm20103_vm11, %v20102_v50, %v10155_v0  ;;  %vm20107_vm14 = vcmask 908288   ;;  %v20108_v36 = vld [vmem:[#allocation84_spill] sm:$0xff]  ;;  %v10456_v39 = vunpack.i.h.bf16 %v20098_v8  ;;  %v10620_v33 = vunpack.i.l.bf16 %v14925_v47 }
 0x385   : > { %4421 = vmatpush.msra.mxu3 %v2007_v18  ;;  %v2983_v51 = vsel %vm1393_vm9, %v20105_v26, %v10475_v9  ;;  %v1947_v10 = vsel %vm20107_vm14, %v20106_v58, %v10135_v46  ;;  %v10436_v50 = vunpack.i.h.bf16 %v20108_v36  ;;  %v10435_v0 = vunpack.i.l.bf16 %v20108_v36  ;;  %4480 = vmatpush.msra.mxu0 %v2984_v57  ;;  %vm20109_vm7 = vmmov %vm20107_vm14 }
 0x386   : > { %4440 = vmatpush.msra.mxu1 %v2983_v51  ;;  %v1948_v15 = vsel %vm20109_vm7, %v10135_v46, %v10136_v56  ;;  %v20110_v17 = vunpack.i.h.bf16 %v19965_v63  ;;  %v20111_v9 = vunpack.i.h.bf16 %v14995_v43  ;;  %v3466_v58 = vsel %vm1881_vm15, %v10640_v49, %v10641_v23  ;;  %v20112_v51 = vld [vmem:[#allocation83_spill] sm:$0xff]  ;;  %v20113_v43 = vld [vmem:[#allocation30_spill] sm:$0xff]  ;;  %10704 = vrot.lane.b32.xlu2 %v15022_v2, %s18992_s11 }
 0x387   : > { %4422 = vmatpush.msra.mxu3 %v1947_v10  ;;  %4462 = vmatpush.msra.mxu2 %v1948_v15  ;;  %v10421_v57 = vunpack.i.h.bf16 %v20112_v51  ;;  %v10420_v24 = vunpack.i.l.bf16 %v20112_v51  ;;  %v2924_v47 = vsel %vm1332_vm10, %v10455_v22, %v10456_v39  ;;  %v3406_v63 = vsel %vm1820_vm0, %v10620_v33, %v10621_v28  ;;  %v20115_v15 = vld [vmem:[#allocation33_spill] sm:$0xff] }
 0x388   : > { %v2923_v18 = vsel %vm1332_vm10, %v20110_v17, %v10455_v22  ;;  %v3465_v26 = vsel %vm1881_vm15, %v20111_v9, %v10640_v49  ;;  %4423 = vmatmul.f32.vlgmr.msra.gmra.mxu3 %v15058_v62  ;;  %4463 = vmatmul.f32.vlgmr.msra.gmra.mxu2 %v15058_v62  ;;  %v10600_v46 = vunpack.i.l.bf16 %v20113_v43  ;;  %v20114_v23 = vunpack.i.h.bf16 %v19980_v55  ;;  %v20116_v9 = vld [vmem:[#allocation64_spill] sm:$0xff] }
 0x389   : > { %4441 = vmatpush.msra.mxu1 %v2923_v18  ;;  %4481 = vmatpush.msra.mxu0 %v2924_v47  ;;  %v2864_v10 = vsel %vm1271_vm4, %v10435_v0, %v10436_v50  ;;  %v10400_v17 = vunpack.i.l.bf16 %v20115_v15  ;;  %v10601_v22 = vunpack.i.h.bf16 %v20113_v43  ;;  %v3405_v28 = vsel %vm1820_vm0, %v10616_v27, %v10620_v33  ;;  %v20120_v33 = vld [vmem:[#allocation52_spill] sm:$0xff] }
 0x38a   : > { %4512 = vmatpush.msrb.mxu3 %v3465_v26  ;;  %4552 = vmatpush.msrb.mxu2 %v3466_v58  ;;  %v2863_v49 = vsel %vm1271_vm4, %v20114_v23, %v10435_v0  ;;  %v10401_v18 = vunpack.i.h.bf16 %v20115_v15  ;;  %v10580_v55 = vunpack.i.l.bf16 %v20116_v9  ;;  %v20117_v26 = vunpack.i.h.bf16 %v19989_v54  ;;  %v20123_v43 = vld [vmem:[#allocation28_spill] sm:$0xff] }
 0x38b   : > { %4442 = vmatpush.msra.mxu1 %v2863_v49  ;;  %4482 = vmatpush.msra.mxu0 %v2864_v10  ;;  %v2806_v58 = vsel %vm1210_vm12, %v10420_v24, %v10421_v57  ;;  %v10581_v51 = vunpack.i.h.bf16 %v20116_v9  ;;  %v20119_v27 = vunpack.i.h.bf16 %v20058_v42  ;;  %v10560_v54 = vunpack.i.l.bf16 %v20120_v33  ;;  %v20127_v9 = vld [vmem:[#allocation24_spill] sm:$0xff] }
 0x38c   : > { %4513 = vmatpush.msrb.mxu3 %v3405_v28  ;;  %4553 = vmatpush.msrb.mxu2 %v3406_v63  ;;  %v2805_v0 = vsel %vm1210_vm12, %v20117_v26, %v10420_v24  ;;  %v3346_v24 = vsel %vm1759_vm1, %v10600_v46, %v10601_v22  ;;  %v20121_v57 = vunpack.i.h.bf16 %v19997_v21  ;;  %vm20122_vm8 = vcmask 1039360   ;;  %v9196_v63 = vld [vmem:[%s12155_s30 + $0x88] sm:$0xff]  ;;  %v20126_v22 = vld [vmem:[#allocation45_spill] sm:$0xff] }
 0x38d   : > { %4487 = vmatpush.msrb.mxu1 %v2805_v0  ;;  %4527 = vmatpush.msrb.mxu0 %v2806_v58  ;;  %v3345_v61 = vsel %vm1759_vm1, %v20119_v27, %v10600_v46  ;;  %v10380_v23 = vunpack.i.l.bf16 %v20123_v43  ;;  %v10561_v42 = vunpack.i.h.bf16 %v20120_v33  ;;  %vm20124_vm11 = vmmov %vm20122_vm8  ;;  %v20125_v10 = vunpack.i.h.bf16 %v20068_v48  ;;  %v20132_v27 = vld [vmem:[#allocation81_spill] sm:$0xff] }
 0x38e   : > { %10724 = vrot.lane.b32.xlu0 %v14902_v34, %s20118_s20  ;;  %10699 = vrot.lane.b32.xlu1 %v14902_v34, %s18992_s11  ;;  %v2745_v47 = vsel %vm20122_vm8, %v20121_v57, %v10400_v17  ;;  %v2746_v49 = vsel %vm20124_vm11, %v10400_v17, %v10401_v18  ;;  %v10381_v46 = vunpack.i.h.bf16 %v20123_v43  ;;  %v10540_v21 = vunpack.i.l.bf16 %v20126_v22  ;;  %v11817_v18 = vld [vmem:[%s12155_s30 + $0x90] sm:$0xff]  ;;  %v20137_v43 = vld [vmem:[#allocation77_spill] sm:$0xff] }
 0x38f   : > { %4514 = vmatpush.msrb.mxu3 %v3345_v61  ;;  %4554 = vmatpush.msrb.mxu2 %v3346_v24  ;;  %v3285_v15 = vsel %vm1698_vm3, %v20125_v10, %v10580_v55  ;;  %v3286_v28 = vsel %vm1698_vm3, %v10580_v55, %v10581_v51  ;;  %v10360_v26 = vunpack.i.l.bf16 %v20127_v9  ;;  %v10541_v0 = vunpack.i.h.bf16 %v20126_v22  ;;  %v20134_v24 = vld [vmem:[#allocation41_spill] sm:$0xff] }
 0x390   : > { %4488 = vmatpush.msrb.mxu1 %v2745_v47  ;;  %4528 = vmatpush.msrb.mxu0 %v2746_v49  ;;  %v10361_v17 = vunpack.i.h.bf16 %v20127_v9  ;;  %vm20128_vm13 = vcmask 719872   ;;  %v3225_v48 = vsel %vm1637_vm5, %v10556_v11, %v10560_v54  ;;  %v3226_v55 = vsel %vm1637_vm5, %v10560_v54, %v10561_v42 }
 0x391   : > { %4515 = vmatpush.msrb.mxu3 %v3285_v15  ;;  %4555 = vmatpush.msrb.mxu2 %v3286_v28  ;;  %vm20129_vm14 = vmmov %vm20128_vm13  ;;  %v20130_v58 = vunpack.i.h.bf16 %v20011_v3  ;;  %vm20131_vm7 = vcmask 7168   ;;  %v10521_v61 = vunpack.i.h.bf16 %v20132_v27  ;;  %v10520_v33 = vunpack.i.l.bf16 %v20132_v27  ;;  %v20140_v15 = vld [vmem:[#allocation69_spill] sm:$0xff]  ;;  %v20141_v28 = vld [vmem:[#allocation47_spill] sm:$0xff] }
 0x392   : > { %4489 = vmatpush.msrb.mxu1 %v9196_v63  ;;  %4529 = vmatpush.msrb.mxu0 %v11817_v18  ;;  %vm20133_vm8 = vmmov %vm20131_vm7  ;;  %v3165_v11 = vsel %vm1576_vm2, %v10536_v45, %v10540_v21  ;;  %v10341_v57 = vunpack.i.h.bf16 %v20134_v24  ;;  %v10340_v54 = vunpack.i.l.bf16 %v20134_v24  ;;  %v3166_v3 = vsel %vm1576_vm2, %v10540_v21, %v10541_v0  ;;  %v20139_v45 = vld [vmem:[#allocation31_spill] sm:$0xff] }
 0x393   : > { %9327 = vmatmul.msk.f32.vlgmr.msra.gmra.mxu1 %vm20128_vm13, %v14740_v38  ;;  %9328 = vmatmul.msk.f32.vlgmr.msra.gmra.mxu0 %vm20129_vm14, %v14740_v38  ;;  %v2669_v51 = vsel %vm20131_vm7, %v20130_v58, %v10380_v23  ;;  %v2670_v52 = vsel %vm20133_vm8, %v10380_v23, %v10381_v46  ;;  %v20135_v47 = vunpack.i.h.bf16 %v20017_v44  ;;  %vm20136_vm11 = vcmask 72704  }
 0x394   : > { %4516 = vmatpush.msrb.mxu3 %v3225_v48  ;;  %4556 = vmatpush.msrb.mxu2 %v3226_v55  ;;  %v10501_v42 = vunpack.i.h.bf16 %v20137_v43  ;;  %v10500_v23 = vunpack.i.l.bf16 %v20137_v43  ;;  %vm20138_vm13 = vmmov %vm20136_vm11  ;;  %v10321_v49 = vunpack.i.h.bf16 %v20139_v45  ;;  %v10320_v10 = vunpack.i.l.bf16 %v20139_v45  ;;  %v20145_v48 = vld [vmem:[#allocation86_spill] sm:$0xff] }
 0x395   : > { %4490 = vmatpush.msrb.mxu1 %v2669_v51  ;;  %4530 = vmatpush.msrb.mxu0 %v2670_v52  ;;  %v2609_v63 = vsel %vm20136_vm11, %v20135_v47, %v10360_v26  ;;  %v2610_v1 = vsel %vm20138_vm13, %v10360_v26, %v10361_v17  ;;  %v10481_v44 = vunpack.i.h.bf16 %v20140_v15  ;;  %v10480_v46 = vunpack.i.l.bf16 %v20140_v15  ;;  %v20148_v51 = vld [vmem:[#allocation68_spill] sm:$0xff] }
 0x396   : > { %4517 = vmatpush.msrb.mxu3 %v3165_v11  ;;  %4557 = vmatpush.msrb.mxu2 %v3166_v3  ;;  %v3105_v22 = vsel %vm1515_vm6, %v10516_v59, %v10520_v33  ;;  %v3106_v21 = vsel %vm1515_vm6, %v10520_v33, %v10521_v61  ;;  %v10301_v9 = vunpack.i.h.bf16 %v20141_v28  ;;  %v10300_v26 = vunpack.i.l.bf16 %v20141_v28  ;;  %v20152_v11 = vld [vmem:[#allocation85_spill] sm:$0xff] }
 0x397   : > { %4491 = vmatpush.msrb.mxu1 %v2609_v63  ;;  %4531 = vmatpush.msrb.mxu0 %v2610_v1  ;;  %v20142_v0 = vunpack.i.h.bf16 %v20029_v29  ;;  %vm20143_vm14 = vcmask 80896   ;;  %v10461_v55 = vunpack.i.h.bf16 %v20145_v48  ;;  %v10460_v53 = vunpack.i.l.bf16 %v20145_v48  ;;  %v20156_v3 = vld [vmem:[#allocation29_spill] sm:$0xff]  ;;  %v20160_v1 = vld [vmem:[#allocation59_spill] sm:$0xff] }
 0x398   : > { %10719 = vrot.lane.b32.xlu2 %v14932_v5, %s20118_s20  ;;  %10739 = vrot.lane.b32.xlu0 %v14921_v35, %s20118_s20  ;;  %vm20144_vm7 = vmmov %vm20143_vm14  ;;  %vm20146_vm8 = vcmask 310272   ;;  %v10281_v27 = vunpack.i.h.bf16 %v20148_v51  ;;  %v10280_v29 = vunpack.i.l.bf16 %v20148_v51  ;;  %v20149_v61 = vunpack.i.h.bf16 %v20039_v4 }
 0x399   : > { %10714 = vrot.lane.b32.xlu1 %v14921_v35, %s18992_s11  ;;  %4518 = vmatpush.msrb.mxu3 %v3105_v22  ;;  %v2549_v17 = vsel %vm20143_vm14, %v20142_v0, %v10340_v54  ;;  %v2550_v18 = vsel %vm20144_vm7, %v10340_v54, %v10341_v57  ;;  %v3045_v59 = vsel %vm20146_vm8, %v10496_v37, %v10500_v23  ;;  %vm20147_vm11 = vmmov %vm20146_vm8  ;;  %vm20150_vm13 = vcmask 89088   ;;  %v20166_v22 = vld [vmem:[#allocation53_spill] sm:$0xff]  ;;  %s20181_s11 = smov 99  }
 0x39a   : > { %4558 = vmatpush.msrb.mxu2 %v3106_v21  ;;  %4492 = vmatpush.msrb.mxu1 %v2549_v17  ;;  %v3046_v58 = vsel %vm20147_vm11, %v10500_v23, %v10501_v42  ;;  %v2489_v33 = vsel %vm20150_vm13, %v20149_v61, %v10320_v10  ;;  %vm20151_vm14 = vmmov %vm20150_vm13  ;;  %v2985_v32 = vsel %vm1393_vm9, %v10476_v19, %v10480_v46  ;;  %v10440_v24 = vunpack.i.l.bf16 %v20152_v11 }
 0x39b   : > { %4532 = vmatpush.msrb.mxu0 %v2550_v18  ;;  %4519 = vmatpush.msrb.mxu3 %v3045_v59  ;;  %v2490_v52 = vsel %vm20151_vm14, %v10320_v10, %v10321_v49  ;;  %v2986_v37 = vsel %vm1393_vm9, %v10480_v46, %v10481_v44  ;;  %v20153_v57 = vunpack.i.h.bf16 %v20050_v20  ;;  %vm20154_vm7 = vcmask 728064  }
 0x39c   : > { %4559 = vmatpush.msrb.mxu2 %v3046_v58  ;;  %4493 = vmatpush.msrb.mxu1 %v2489_v33  ;;  %vm20155_vm8 = vmmov %vm20154_vm7  ;;  %v10260_v47 = vunpack.i.l.bf16 %v20156_v3  ;;  %v10441_v63 = vunpack.i.h.bf16 %v20152_v11  ;;  %v2925_v7 = vsel %vm1332_vm10, %v10456_v39, %v10460_v53  ;;  %v2926_v19 = vsel %vm1332_vm10, %v10460_v53, %v10461_v55  ;;  %v20162_v39 = vld [vmem:[#allocation65_spill] sm:$0xff]  ;;  %v20176_v55 = vld [vmem:[#allocation76_spill] sm:$0xff] }
 0x39d   : > { %4533 = vmatpush.msrb.mxu0 %v2490_v52  ;;  %4520 = vmatpush.msrb.mxu3 %v2985_v32  ;;  %v2429_v4 = vsel %vm20154_vm7, %v20153_v57, %v10300_v26  ;;  %v2430_v54 = vsel %vm20155_vm8, %v10300_v26, %v10301_v9  ;;  %v10261_v43 = vunpack.i.h.bf16 %v20156_v3  ;;  %v20157_v20 = vunpack.i.h.bf16 %v20060_v12  ;;  %v20172_v26 = vld [vmem:[#allocation51_spill] sm:$0xff] }
 0x39e   : > { %4560 = vmatpush.msrb.mxu2 %v2986_v37  ;;  %4494 = vmatpush.msrb.mxu1 %v2429_v4  ;;  %vm20158_vm11 = vcmask 736256   ;;  %v10240_v45 = vunpack.i.l.bf16 %v20160_v1  ;;  %v10241_v8 = vunpack.i.h.bf16 %v20160_v1  ;;  %v2865_v12 = vsel %vm1271_vm4, %v10436_v50, %v10440_v24 }
 0x39f   : > { %4534 = vmatpush.msrb.mxu0 %v2430_v54  ;;  %4521 = vmatpush.msrb.mxu3 %v2925_v7  ;;  %v2369_v42 = vsel %vm20158_vm11, %v20157_v20, %v10280_v29  ;;  %vm20159_vm13 = vmmov %vm20158_vm11  ;;  %v10220_v49 = vunpack.i.l.bf16 %v20162_v39  ;;  %v2866_v10 = vsel %vm1271_vm4, %v10440_v24, %v10441_v63  ;;  %v20163_v15 = vunpack.i.h.bf16 %v20061_v30  ;;  %v20192_v24 = vld [vmem:[#allocation98_spill] sm:$0xff] }
 0x3a0   : > { %4561 = vmatpush.msrb.mxu2 %v2926_v19  ;;  %v2370_v23 = vsel %vm20159_vm13, %v10280_v29, %v10281_v27  ;;  %4495 = vmatpush.msrb.mxu1 %v2369_v42  ;;  %vm20164_vm14 = vcmask 744448   ;;  %v10221_v46 = vunpack.i.h.bf16 %v20162_v39  ;;  %v10200_v50 = vunpack.i.l.bf16 %v20166_v22  ;;  %v15473_v39 = vld [vmem:[#allocation3 + $0x68] sm:$0xff] }
 0x3a1   : > { %4535 = vmatpush.msrb.mxu0 %v2370_v23  ;;  %10734 = vrot.lane.b32.xlu2 %v15014_v13, %s20118_s20  ;;  %v2309_v44 = vsel %vm20164_vm14, %v20163_v15, %v10260_v47  ;;  %vm20165_vm7 = vmmov %vm20164_vm14  ;;  %v20167_v21 = vunpack.i.h.bf16 %v20072_v14  ;;  %vm20168_vm8 = vcmask 809984   ;;  %vm20169_vm11 = vcmask 719872  }
 0x3a2   : > { %10754 = vrot.lane.b32.xlu0 %v15022_v2, %s20161_s17  ;;  %10729 = vrot.lane.b32.xlu1 %v15022_v2, %s20118_s20  ;;  %v2310_v36 = vsel %vm20165_vm7, %v10260_v47, %v10261_v43  ;;  %v10201_v30 = vunpack.i.h.bf16 %v20166_v22  ;;  %vm20170_vm13 = vmmov %vm20168_vm8  ;;  %v10180_v0 = vunpack.i.l.bf16 %v20172_v26  ;;  %v20173_v17 = vunpack.i.h.bf16 %v20076_v31  ;;  %v20180_v31 = vld [vmem:[#allocation95_spill] sm:$0xff] }
 0x3a3   : > { %4522 = vmatpush.msrb.mxu3 %v2865_v12  ;;  %4562 = vmatpush.msrb.mxu2 %v2866_v10  ;;  %v2249_v28 = vsel %vm20168_vm8, %v20167_v21, %v10240_v45  ;;  %v2250_v9 = vsel %vm20170_vm13, %v10240_v45, %v10241_v8  ;;  %vm20171_vm14 = vmmov %vm20169_vm11  ;;  %vm20174_vm7 = vcmask 818176   ;;  %v10181_v18 = vunpack.i.h.bf16 %v20172_v26  ;;  %v15469_v12 = vld [vmem:[#allocation3 + $0x38] sm:$0xff]  ;;  %v15504_v21 = vld [vmem:[#allocation3 + $0x80] sm:$0xff] }
 0x3a4   : > { %4496 = vmatpush.msrb.mxu1 %v2309_v44  ;;  %4536 = vmatpush.msrb.mxu0 %v2310_v36  ;;  %v2189_v14 = vsel %vm20174_vm7, %v20173_v17, %v10220_v49  ;;  %vm20175_vm8 = vmmov %vm20174_vm7  ;;  %v10160_v53 = vunpack.i.l.bf16 %v20176_v55  ;;  %v20177_v59 = vunpack.i.h.bf16 %v20080_v16  ;;  %v10140_v27 = vunpack.i.l.bf16 %v20180_v31  ;;  %v15491_v44 = vld [vmem:[#allocation3 + $0x8] sm:$0xff] }
 0x3a5   : > { %9329 = vmatmul.msk.f32.vlgmr.msrb.gmra.mxu3 %vm20169_vm11, %v14740_v38  ;;  %9330 = vmatmul.msk.f32.vlgmr.msrb.gmra.mxu2 %vm20171_vm14, %v14740_v38  ;;  %v2190_v48 = vsel %vm20175_vm8, %v10220_v49, %v10221_v46  ;;  %vm20178_vm11 = vcmask 826368   ;;  %v10161_v38 = vunpack.i.h.bf16 %v20176_v55  ;;  %v20182_v29 = vunpack.i.h.bf16 %v20085_v40  ;;  %v15493_v46 = vld [vmem:[#allocation3] sm:$0xff] }
 0x3a6   : > { %4497 = vmatpush.msrb.mxu1 %v2249_v28  ;;  %4537 = vmatpush.msrb.mxu0 %v2250_v9  ;;  %v2129_v58 = vsel %vm20178_vm11, %v20177_v59, %v10200_v50  ;;  %vm20179_vm13 = vmmov %vm20178_vm11  ;;  %vm20183_vm14 = vcmask 891904   ;;  %v10141_v61 = vunpack.i.h.bf16 %v20180_v31  ;;  %v20185_v52 = vunpack.i.h.bf16 %v20093_v6  ;;  %v15506_v28 = vld [vmem:[#allocation3 + $0x90] sm:$0xff] }
 0x3a7   : > { %v2130_v51 = vsel %vm20179_vm13, %v10200_v50, %v10201_v30  ;;  %v2069_v16 = vsel %vm20183_vm14, %v20182_v29, %v10180_v0  ;;  %vm20184_vm7 = vmmov %vm20183_vm14  ;;  %vm20186_vm8 = vcmask 900096   ;;  %vm20188_vm13 = vcmask 908288  }
 0x3a8   : > { %4498 = vmatpush.msrb.mxu1 %v2189_v14  ;;  %4538 = vmatpush.msrb.mxu0 %v2190_v48  ;;  %v2070_v33 = vsel %vm20184_vm7, %v10180_v0, %v10181_v18  ;;  %v2009_v32 = vsel %vm20186_vm8, %v20185_v52, %v10160_v53  ;;  %vm20187_vm11 = vmmov %vm20186_vm8  ;;  %v1949_v40 = vsel %vm20188_vm13, %v10136_v56, %v10140_v27  ;;  %v15432_v56 = vld [vmem:[#allocation9 + $0x8] sm:$0xff]  ;;  %vm20246_vm7 = vcmask 1039360  }
 0x3a9   : > { %10749 = vrot.lane.b32.xlu2 %v14902_v34, %s20161_s17  ;;  %v2010_v37 = vsel %vm20187_vm11, %v10160_v53, %v10161_v38  ;;  %vm20189_vm14 = vmmov %vm20188_vm13  ;;  %v4305_v4 = vadd.f32 %v4304_v25, %v20192_v24  ;;  %v4595_v7 = vperm.slane %v15432_v56, 0  ;;  %v4596_v43 = vperm.slane %v15432_v56, 1 }
 0x3aa   : > { %4499 = vmatpush.msrb.mxu1 %v2129_v58  ;;  %4539 = vmatpush.msrb.mxu0 %v2130_v51  ;;  %v1950_v11 = vsel %vm20189_vm14, %v10140_v27, %v10141_v61  ;;  %v10868_v36 = vpack.i.bf16 %v15491_v44, %v14904_v60  ;;  %v10888_v50 = vpack.i.bf16 %v14891_v41, %v15493_v46  ;;  %v4597_v53 = vperm.slane %v15432_v56, 2 }
 0x3ab   : > { %10769 = vrot.lane.b32.xlu0 %v14932_v5, %s20181_s11  ;;  %10744 = vrot.lane.b32.xlu1 %v14932_v5, %s20161_s17  ;;  %v15514_v41 = vpack.i.bf16 %v15506_v28, %v15504_v21  ;;  %v4598_v58 = vperm.slane %v15432_v56, 3  ;;  %vm20251_vm8 = vcmask 7168   ;;  %vm20253_vm11 = vcmask 72704  }
 0x3ac   : > { %4500 = vmatpush.msrb.mxu1 %v2069_v16  ;;  %4540 = vmatpush.msrb.mxu0 %v2070_v33  ;;  %v6828_v33 = vld [vmem:[#allocation3 + $0x88] sm:$0xff]  ;;  %vm20255_vm13 = vcmask 80896   ;;  %vm20257_vm14 = vcmask 89088  }
 0x3ad   : > { %v10913_v52 = vpack.i.bf16 %v6828_v33, %v15493_v46 }
 0x3ae   : > { %4501 = vmatpush.msrb.mxu1 %v2009_v32  ;;  %4541 = vmatpush.msrb.mxu0 %v2010_v37 }
 0x3b0   : > { %4502 = vmatpush.msrb.mxu1 %v1949_v40  ;;  %4542 = vmatpush.msrb.mxu0 %v1950_v11 }
 0x3b1   : > { %4503 = vmatmul.f32.vlgmr.msrb.gmra.mxu1 %v15058_v62  ;;  %4543 = vmatmul.f32.vlgmr.msrb.gmra.mxu0 %v15058_v62  ;;  %v4264_v62 = vpop.f32.mrf.mxu3 }
 0x3b2   : > { %10764 = vrot.lane.b32.xlu2 %v14921_v35, %s20161_s17  ;;  %v4265_v57 = vadd.f32 %v4264_v62, %v20192_v24 }
 0x3b3   : > { %10784 = vrot.lane.b32.xlu0 %v15014_v13, %s20181_s11  ;;  %10759 = vrot.lane.b32.xlu1 %v15014_v13, %s20161_s17 }
 0x3b8   : > { %v15424_v6 = vpop.permute.xlu2 %10649 }
 0x3b9   : > { %20191 = vst [vmem:[#allocation82_spill] sm:$0xff] %v15424_v6 }
 0x3ba   : > { %10779 = vrot.lane.b32.xlu2 %v15022_v2, %s20181_s11 }
 0x3bb   : > { %10799 = vrot.lane.b32.xlu0 %v14902_v34, %s20190_s8  ;;  %10774 = vrot.lane.b32.xlu1 %v14902_v34, %s20181_s11 }
 0x3bd   : > { %v4284_v54 = vpop.f32.mrf.mxu1  ;;  %v4324_v3 = vpop.f32.mrf.mxu0 }
 0x3be   : > { %v4285_v63 = vadd.f32 %v4284_v54, %v4265_v57  ;;  %v4325_v19 = vadd.f32 %v4324_v3, %v4305_v4  ;;  %v5372_v3 = vld [vmem:[#allocation3 + $0x28] sm:$0xff] }
 0x3c0   : > { %v4575_v20 = vmax.f32 %v4285_v63, 0.0  ;;  %v4576_v42 = vmax.f32 %v4325_v19, 0.0 }
 0x3c2   : > { %10794 = vrot.lane.b32.xlu2 %v14932_v5, %s20190_s8  ;;  %v15446_v23 = vmul.f32 %v4595_v7, %v4575_v20  ;;  %v4628_v1 = vmul.f32 %v4596_v43, %v4576_v42  ;;  %v10943_v7 = vpack.i.bf16 %v15491_v44, %v5372_v3  ;;  %v4599_v20 = vperm.slane %v15432_v56, 4 }
 0x3c3   : > { %10814 = vrot.lane.b32.xlu0 %v14921_v35, %s20190_s8  ;;  %10789 = vrot.lane.b32.xlu1 %v14921_v35, %s20181_s11  ;;  %v4602_v3 = vperm.slane %v15432_v56, 7 }
 0x3c4   : > { %4644 = vst [vmem:[#allocation3 + $0x10] sm:$0xff] %v15446_v23 }
 0x3c5   : > { %v15438_v47 = vpop.permute.xlu2 %10659  ;;  %4645 = vst [vmem:[#allocation3 + $0x48] sm:$0xff] %v4628_v1 }
 0x3c6   : > { %20193 = vst [vmem:[#allocation26_spill] sm:$0xff] %v15438_v47 }
 0x3ca   : > { %10809 = vrot.lane.b32.xlu2 %v15014_v13, %s20190_s8 }
 0x3cb   : > { %10829 = vrot.lane.b32.xlu0 %v15022_v2, %s20194_s5  ;;  %10804 = vrot.lane.b32.xlu1 %v15022_v2, %s20190_s8 }
 0x3cd   : > { %v15455_v45 = vpop.permute.xlu2 %10674 }
 0x3ce   : > { %20196 = vst [vmem:[#allocation44_spill] sm:$0xff] %v15455_v45 }
 0x3d0   : > { %v15457_v2 = vpop.permute.xlu0 %10664 }
 0x3d1   : > { %20197 = vst [vmem:[#allocation37_spill] sm:$0xff] %v15457_v2  ;;  %v15459_v8 = vpop.permute.xlu1 %10644 }
 0x3d2   : > { %10824 = vrot.lane.b32.xlu2 %v14902_v34, %s20194_s5  ;;  %v15467_v34 = vld [vmem:[#allocation3 + $0x20] sm:$0xff] }
 0x3d3   : > { %10844 = vrot.lane.b32.xlu0 %v14932_v5, %s20195_s18  ;;  %10819 = vrot.lane.b32.xlu1 %v14932_v5, %s20194_s5  ;;  %v15471_v5 = vld [vmem:[#allocation3 + $0x40] sm:$0xff]  ;;  %v15479_v10 = vpack.i.bf16 %v15469_v12, %v15467_v34 }
 0x3d7   : > { %v15475_v49 = vpop.permute.xlu2 %10689 }
 0x3d8   : > { %20198 = vst [vmem:[#allocation23_spill] sm:$0xff] %v15475_v49 }
 0x3da   : > { %10839 = vrot.lane.b32.xlu2 %v14921_v35, %s20194_s5  ;;  %v10873_v35 = vpack.i.bf16 %v15473_v39, %v15471_v5 }
 0x3db   : > { %10859 = vrot.lane.b32.xlu0 %v15014_v13, %s20195_s18  ;;  %10834 = vrot.lane.b32.xlu1 %v15014_v13, %s20194_s5 }
 0x3df   : > { %v15486_v13 = vpop.permute.xlu0 %10679  ;;  %v15488_v15 = vpop.permute.xlu1 %10654 }
 0x3e0   : > { %20200 = vst [vmem:[#allocation61_spill] sm:$0xff] %v15486_v13  ;;  %v15497_v22 = vpop.permute.xlu2 %10704 }
 0x3e1   : > { %20201 = vst [vmem:[#allocation49_spill] sm:$0xff] %v15488_v15 }
 0x3e2   : > { %10854 = vrot.lane.b32.xlu2 %v15479_v10, %s20195_s18  ;;  %20202 = vst [vmem:[#allocation22_spill] sm:$0xff] %v15497_v22 }
 0x3e3   : > { %10874 = vrot.lane.b32.xlu0 %v10873_v35, %s20199_s0  ;;  %10849 = vrot.lane.b32.xlu1 %v10873_v35, %s20195_s18 }
 0x3ea   : > { %10869 = vrot.lane.b32.xlu2 %v10868_v36, %s20199_s0  ;;  %v15508_v30 = vpop.permute.xlu0 %10694  ;;  %v15510_v9 = vpop.permute.xlu1 %10669 }
 0x3eb   : > { %10889 = vrot.lane.b32.xlu0 %v10888_v50, %s20199_s0  ;;  %10864 = vrot.lane.b32.xlu1 %v10888_v50, %s20195_s18 }
 0x3ec   : > { %v4364_v60 = vpop.f32.mrf.mxu3  ;;  %v4384_v0 = vpop.f32.mrf.mxu0 }
 0x3ed   : > { %v4385_v14 = vadd.f32 %v4384_v0, %v20192_v24  ;;  %v4404_v18 = vpop.f32.mrf.mxu2 }
 0x3ee   : > { %v4344_v26 = vpop.f32.mrf.mxu1 }
 0x3ef   : > { %v4345_v17 = vadd.f32 %v4344_v26, %v20192_v24  ;;  %v4405_v59 = vadd.f32 %v4404_v18, %v4385_v14  ;;  %v15575_v18 = vpack.i.bf16 %v15504_v21, %v15469_v12  ;;  %v15595_v12 = vpack.i.bf16 %v15471_v5, %v15491_v44 }
 0x3f1   : > { %v4365_v55 = vadd.f32 %v4364_v60, %v4345_v17  ;;  %v4578_v51 = vmax.f32 %v4405_v59, 0.0 }
 0x3f2   : > { %10884 = vrot.lane.b32.xlu2 %v15514_v41, %s20199_s0  ;;  %v15520_v48 = vpop.permute.xlu2 %10719 }
 0x3f3   : > { %10904 = vrot.lane.b32.xlu0 %v15479_v10, %s20203_s1  ;;  %10879 = vrot.lane.b32.xlu1 %v15479_v10, %s20199_s0  ;;  %v4577_v38 = vmax.f32 %v4365_v55, 0.0  ;;  %v4630_v27 = vmul.f32 %v4598_v58, %v4578_v51  ;;  %v15528_v29 = vpop.permute.xlu0 %10709  ;;  %v15591_v58 = vpack.i.bf16 %v15467_v34, %v15473_v39  ;;  %v15617_v39 = vpack.i.bf16 %v15493_v46, %v15506_v28 }
 0x3f4   : > { %20204 = vst [vmem:[#allocation54_spill] sm:$0xff] %v15528_v29  ;;  %v15530_v16 = vpop.permute.xlu1 %10684 }
 0x3f5   : > { %v4629_v31 = vmul.f32 %v4597_v53, %v4577_v38  ;;  %20205 = vst [vmem:[#allocation71_spill] sm:$0xff] %v15530_v16  ;;  %v15607_v38 = vld [vmem:[#allocation3 + $0x60] sm:$0xff] }
 0x3f6   : > { %4647 = vst [vmem:[#allocation3 + $0x58] sm:$0xff] %v4630_v27  ;;  %v15613_v5 = vpack.i.bf16 %v15446_v23, %v15607_v38 }
 0x3f7   : > { %4646 = vst [vmem:[#allocation3 + $0x30] sm:$0xff] %v4629_v31 }
 0x3fa   : > { %10899 = vrot.lane.b32.xlu2 %v10873_v35, %s20203_s1 }
 0x3fb   : > { %10919 = vrot.lane.b32.xlu0 %v10868_v36, %s20206_s3  ;;  %10894 = vrot.lane.b32.xlu1 %v10868_v36, %s20203_s1  ;;  %v15535_v61 = vpop.permute.xlu2 %10734 }
 0x3fc   : > { %20207 = vst [vmem:[#allocation25_spill] sm:$0xff] %v15535_v61 }
 0x400   : > { %v15538_v32 = vpop.permute.xlu0 %10724  ;;  %v15540_v37 = vpop.permute.xlu1 %10699 }
 0x401   : > { %20208 = vst [vmem:[#allocation67_spill] sm:$0xff] %v15538_v32 }
 0x402   : > { %20209 = vst [vmem:[#allocation48_spill] sm:$0xff] %v15540_v37  ;;  %10914 = vrot.lane.b32.xlu2 %v10913_v52, %s20203_s1 }
 0x403   : > { %10934 = vrot.lane.b32.xlu0 %v15514_v41, %s20206_s3  ;;  %10909 = vrot.lane.b32.xlu1 %v15514_v41, %s20203_s1  ;;  %v15547_v40 = vpop.permute.xlu2 %10749 }
 0x404   : > { %20210 = vst [vmem:[#allocation62_spill] sm:$0xff] %v15547_v40 }
 0x40a   : > { %10929 = vrot.lane.b32.xlu2 %v15479_v10, %s20206_s3  ;;  %v15552_v11 = vpop.permute.xlu0 %10739 }
 0x40b   : > { %10949 = vrot.lane.b32.xlu0 %v10873_v35, %s20211_s23  ;;  %20212 = vst [vmem:[#allocation75_spill] sm:$0xff] %v15552_v11  ;;  %v15554_v62 = vpop.permute.xlu1 %10714  ;;  %10924 = vrot.lane.b32.xlu1 %v10873_v35, %s20206_s3  ;;  %v4424_v57 = vpop.f32.mrf.mxu3  ;;  %v4600_v35 = vperm.slane %v15432_v56, 5 }
 0x40c   : > { %20213 = vst [vmem:[#allocation92_spill] sm:$0xff] %v15554_v62  ;;  %v15557_v25 = vpop.permute.xlu2 %10764  ;;  %v4425_v4 = vadd.f32 %v4424_v57, %v20192_v24  ;;  %v4464_v54 = vpop.f32.mrf.mxu2 }
 0x40d   : > { %20214 = vst [vmem:[#allocation21_spill] sm:$0xff] %v15557_v25  ;;  %v4465_v63 = vadd.f32 %v4464_v54, %v20192_v24 }
 0x410   : > { %v4444_v19 = vpop.f32.mrf.mxu1  ;;  %v4484_v42 = vpop.f32.mrf.mxu0 }
 0x411   : > { %v4445_v43 = vadd.f32 %v4444_v19, %v4425_v4  ;;  %v4485_v1 = vadd.f32 %v4484_v42, %v4465_v63  ;;  %v4601_v4 = vperm.slane %v15432_v56, 6 }
 0x412   : > { %10944 = vrot.lane.b32.xlu2 %v10943_v7, %s20211_s23 }
 0x413   : > { %10964 = vrot.lane.b32.xlu0 %v10913_v52, %s20211_s23  ;;  %v4579_v36 = vmax.f32 %v4445_v43, 0.0  ;;  %10939 = vrot.lane.b32.xlu1 %v10913_v52, %s20206_s3  ;;  %v4580_v50 = vmax.f32 %v4485_v1, 0.0 }
 0x414   : > { %v15567_v60 = vpop.permute.xlu2 %10779  ;;  %v15569_v26 = vpop.permute.xlu0 %10754 }
 0x415   : > { %20215 = vst [vmem:[#allocation78_spill] sm:$0xff] %v15569_v26  ;;  %v4631_v0 = vmul.f32 %v4599_v20, %v4579_v36  ;;  %v15571_v17 = vpop.permute.xlu1 %10729  ;;  %v4632_v14 = vmul.f32 %v4600_v35, %v4580_v50 }
 0x416   : > { %20216 = vst [vmem:[#allocation63_spill] sm:$0xff] %v15571_v17 }
 0x417   : > { %4648 = vst [vmem:[#allocation3 + $0x70] sm:$0xff] %v4631_v0 }
 0x418   : > { %4649 = vst [vmem:[#allocation3 + $0x18] sm:$0xff] %v4632_v14 }
 0x41a   : > { %10959 = vrot.lane.b32.xlu2 %v15514_v41, %s20211_s23 }
 0x41b   : > { %10979 = vrot.lane.b32.xlu0 %v15575_v18, %s20217_s22  ;;  %10954 = vrot.lane.b32.xlu1 %v15479_v10, %s20211_s23 }
 0x41c   : > { %v15583_v55 = vpop.permute.xlu2 %10794 }
 0x41d   : > { %v15585_v53 = vpop.permute.xlu0 %10769  ;;  %v15587_v59 = vpop.permute.xlu1 %10744 }
 0x41f   : > { %v15667_v50 = vld [vmem:[#allocation3 + $0x18] sm:$0xff] }
 0x420   : > { %20228 = vst [vmem:[#allocation91_spill] sm:$0xff] %v15667_v50 }
 0x422   : > { %10974 = vrot.lane.b32.xlu2 %v15591_v58, %s20217_s22 }
 0x423   : > { %10994 = vrot.lane.b32.xlu0 %v15595_v12, %s19616_s14  ;;  %10969 = vrot.lane.b32.xlu1 %v15595_v12, %s20217_s22 }
 0x424   : > { %v15603_v10 = vpop.permute.xlu2 %10809 }
 0x425   : > { %20218 = vst [vmem:[#allocation43_spill] sm:$0xff] %v15603_v10  ;;  %v15605_v41 = vpop.permute.xlu0 %10784  ;;  %v15609_v34 = vpop.permute.xlu1 %10759 }
 0x426   : > { %20219 = vst [vmem:[#allocation73_spill] sm:$0xff] %v15605_v41 }
 0x427   : > { %20220 = vst [vmem:[#allocation88_spill] sm:$0xff] %v15609_v34  ;;  %v5991_v34 = vld [vmem:[#allocation3 + $0x20] sm:$0xff] }
 0x428   : > { %v4524_v31 = vpop.f32.mrf.mxu3  ;;  %v4564_v33 = vpop.f32.mrf.mxu2 }
 0x42a   : > { %10989 = vrot.lane.b32.xlu2 %v15613_v5, %s20217_s22 }
 0x42b   : > { %11009 = vrot.lane.b32.xlu0 %v15617_v39, %s19616_s14  ;;  %10984 = vrot.lane.b32.xlu1 %v15617_v39, %s20217_s22 }
 0x42c   : > { %v15625_v44 = vpop.permute.xlu2 %10824 }
 0x42d   : > { %20221 = vst [vmem:[#allocation74_spill] sm:$0xff] %v15625_v44  ;;  %v15627_v51 = vpop.permute.xlu0 %10799  ;;  %v15629_v23 = vpop.permute.xlu1 %10774 }
 0x42e   : > { %20222 = vst [vmem:[#allocation89_spill] sm:$0xff] %v15627_v51  ;;  %v4504_v27 = vpop.f32.mrf.mxu1  ;;  %v4544_v28 = vpop.f32.mrf.mxu0 }
 0x42f   : > { %20223 = vst [vmem:[#allocation27_spill] sm:$0xff] %v15629_v23  ;;  %v4505_v46 = vadd.f32 %v4504_v27, %v20192_v24  ;;  %v4545_v52 = vadd.f32 %v4544_v28, %v20192_v24 }
 0x431   : > { %v4525_v57 = vadd.f32 %v4524_v31, %v4505_v46  ;;  %v4565_v54 = vadd.f32 %v4564_v33, %v4545_v52 }
 0x432   : > { %11004 = vrot.lane.b32.xlu2 %v15575_v18, %s19616_s14 }
 0x433   : > { %v4581_v63 = vmax.f32 %v4525_v57, 0.0  ;;  %11024 = vrot.lane.b32.xlu0 %v15591_v58, %s19667_s7  ;;  %v4582_v7 = vmax.f32 %v4565_v54, 0.0  ;;  %10999 = vrot.lane.b32.xlu1 %v15591_v58, %s19616_s14 }
 0x434   : > { %v15641_v19 = vpop.permute.xlu2 %10839 }
 0x435   : > { %20224 = vst [vmem:[#allocation36_spill] sm:$0xff] %v15641_v19  ;;  %v15643_v24 = vmul.f32 %v4601_v4, %v4581_v63  ;;  %v15645_v43 = vpop.permute.xlu0 %10814  ;;  %v15647_v20 = vmul.f32 %v4602_v3, %v4582_v7  ;;  %v15649_v56 = vpop.permute.xlu1 %10789 }
 0x436   : > { %20225 = vst [vmem:[#allocation79_spill] sm:$0xff] %v15645_v43 }
 0x437   : > { %20226 = vst [vmem:[#allocation90_spill] sm:$0xff] %v15649_v56 }
 0x438   : > { %4650 = vst [vmem:[#allocation3 + $0x98] sm:$0xff] %v15643_v24 }
 0x439   : > { %4651 = vst [vmem:[#allocation3 + $0x78] sm:$0xff] %v15647_v20 }
 0x43a   : > { %11019 = vrot.lane.b32.xlu2 %v15595_v12, %s19667_s7 }
 0x43b   : > { %11039 = vrot.lane.b32.xlu0 %v15613_v5, %s19667_s7  ;;  %11014 = vrot.lane.b32.xlu1 %v15613_v5, %s19616_s14 }
 0x43c   : > { %v15661_v1 = vpop.permute.xlu2 %10854 }
 0x43d   : > { %v15663_v35 = vpop.permute.xlu0 %10829  ;;  %v15665_v36 = vpop.permute.xlu1 %10804 }
 0x43e   : > { %20227 = vst [vmem:[#allocation38_spill] sm:$0xff] %v15665_v36  ;;  %v10746_v36 = vunpack.i.l.bf16 %v15587_v59 }
 0x43f   : > { %v15669_v0 = vld [vmem:[#allocation3 + $0x98] sm:$0xff] }
 0x440   : > { %20229 = vst [vmem:[#allocation32_spill] sm:$0xff] %v15669_v0 }
 0x442   : > { %11034 = vrot.lane.b32.xlu2 %v15617_v39, %s19667_s7 }
 0x443   : > { %11054 = vrot.lane.b32.xlu0 %v15575_v18, %s19704_s12  ;;  %11029 = vrot.lane.b32.xlu1 %v15575_v18, %s19667_s7 }
 0x444   : > { %v15679_v31 = vpop.permute.xlu2 %10869 }
 0x445   : > { %v15681_v27 = vpop.permute.xlu0 %10844  ;;  %v15683_v46 = vpop.permute.xlu1 %10819  ;;  %v10871_v17 = vunpack.i.l.bf16 %v15679_v31 }
 0x44a   : > { %11049 = vrot.lane.b32.xlu2 %v15591_v58, %s19704_s12 }
 0x44b   : > { %11069 = vrot.lane.b32.xlu0 %v15595_v12, %s19761_s29  ;;  %11044 = vrot.lane.b32.xlu1 %v15595_v12, %s19704_s12 }
 0x44c   : > { %v15691_v28 = vpop.permute.xlu2 %10884 }
 0x44d   : > { %20230 = vst [vmem:[#allocation50_spill] sm:$0xff] %v15691_v28  ;;  %v15693_v33 = vpop.permute.xlu0 %10859  ;;  %v15695_v52 = vpop.permute.xlu1 %10834 }
 0x44e   : > { %20231 = vst [vmem:[#allocation97_spill] sm:$0xff] %v15693_v33  ;;  %v15809_v33 = vld [vmem:[#allocation3 + $0x40] sm:$0xff] }
 0x44f   : > { %20232 = vst [vmem:[#allocation94_spill] sm:$0xff] %v15695_v52 }
 0x452   : > { %11064 = vrot.lane.b32.xlu2 %v15613_v5, %s19704_s12 }
 0x453   : > { %11084 = vrot.lane.b32.xlu0 %v15617_v39, %s19761_s29  ;;  %11059 = vrot.lane.b32.xlu1 %v15617_v39, %s19704_s12 }
 0x454   : > { %v15703_v57 = vpop.permute.xlu2 %10899 }
 0x455   : > { %v15705_v4 = vpop.permute.xlu0 %10874  ;;  %v15707_v54 = vpop.permute.xlu1 %10849 }
 0x456   : > { %20233 = vst [vmem:[#allocation58_spill] sm:$0xff] %v15705_v4 }
 0x457   : > { %20234 = vst [vmem:[#allocation56_spill] sm:$0xff] %v15707_v54 }
 0x45a   : > { %11079 = vrot.lane.b32.xlu2 %v15575_v18, %s19761_s29 }
 0x45b   : > { %11099 = vrot.lane.b32.xlu0 %v15591_v58, %s19791_s2  ;;  %11074 = vrot.lane.b32.xlu1 %v15591_v58, %s19761_s29 }
 0x45c   : > { %v15715_v3 = vpop.permute.xlu2 %10914 }
 0x45d   : > { %20235 = vst [vmem:[#allocation55_spill] sm:$0xff] %v15715_v3  ;;  %v15717_v63 = vpop.permute.xlu0 %10889  ;;  %v15719_v7 = vpop.permute.xlu1 %10864 }
 0x45e   : > { %20236 = vst [vmem:[#allocation35_spill] sm:$0xff] %v15717_v63 }
 0x45f   : > { %20237 = vst [vmem:[#allocation34_spill] sm:$0xff] %v15719_v7 }
 0x462   : > { %11094 = vrot.lane.b32.xlu2 %v15595_v12, %s19791_s2 }
 0x463   : > { %11114 = vrot.lane.b32.xlu0 %v15613_v5, %s19791_s2  ;;  %11089 = vrot.lane.b32.xlu1 %v15613_v5, %s19761_s29 }
 0x464   : > { %v15727_v14 = vpop.permute.xlu2 %10929 }
 0x465   : > { %v15729_v42 = vpop.permute.xlu0 %10904  ;;  %v15731_v49 = vpop.permute.xlu1 %10879 }
 0x466   : > { %20238 = vst [vmem:[#allocation66_spill] sm:$0xff] %v15731_v49 }
 0x46a   : > { %11109 = vrot.lane.b32.xlu2 %v15617_v39, %s19791_s2 }
 0x46b   : > { %11129 = vrot.lane.b32.xlu0 %v15575_v18, %s19808_s13  ;;  %11104 = vrot.lane.b32.xlu1 %v15575_v18, %s19791_s2 }
 0x46c   : > { %v15739_v2 = vpop.permute.xlu2 %10944 }
 0x46d   : > { %v15741_v62 = vpop.permute.xlu0 %10919  ;;  %v15743_v11 = vpop.permute.xlu1 %10894 }
 0x472   : > { %11124 = vrot.lane.b32.xlu2 %v15591_v58, %s19808_s13 }
 0x473   : > { %11144 = vrot.lane.b32.xlu0 %v15595_v12, %s19817_s28  ;;  %11119 = vrot.lane.b32.xlu1 %v15595_v12, %s19808_s13 }
 0x474   : > { %v15751_v25 = vpop.permute.xlu2 %10959 }
 0x475   : > { %20239 = vst [vmem:[#allocation46_spill] sm:$0xff] %v15751_v25  ;;  %v15753_v56 = vpop.permute.xlu0 %10934  ;;  %v15755_v43 = vpop.permute.xlu1 %10909  ;;  %v6055_v25 = vld [vmem:[#allocation3] sm:$0xff] }
 0x476   : > { %20240 = vst [vmem:[#allocation39_spill] sm:$0xff] %v15753_v56 }
 0x477   : > { %20241 = vst [vmem:[#allocation42_spill] sm:$0xff] %v15755_v43  ;;  %v10946_v43 = vunpack.i.l.bf16 %v15739_v2 }
 0x47a   : > { %11139 = vrot.lane.b32.xlu2 %v15613_v5, %s19808_s13 }
 0x47b   : > { %11159 = vrot.lane.b32.xlu0 %v15617_v39, %s19817_s28  ;;  %11134 = vrot.lane.b32.xlu1 %v15617_v39, %s19808_s13 }
 0x47c   : > { %v15763_v19 = vpop.permute.xlu2 %10974 }
 0x47d   : > { %v15765_v7 = vpop.permute.xlu0 %10949  ;;  %v15767_v63 = vpop.permute.xlu1 %10924  ;;  %v19046_v49 = vunpack.i.l.bf16 %v15763_v19 }
 0x482   : > { %11154 = vrot.lane.b32.xlu2 %v15575_v18, %s19817_s28 }
 0x483   : > { %11174 = vrot.lane.b32.xlu0 %v15591_v58, %s19818_s26  ;;  %11149 = vrot.lane.b32.xlu1 %v15591_v58, %s19817_s28 }
 0x484   : > { %v15775_v3 = vpop.permute.xlu2 %10989 }
 0x485   : > { %20242 = vst [vmem:[#allocation40_spill] sm:$0xff] %v15775_v3  ;;  %v15777_v47 = vpop.permute.xlu0 %10964  ;;  %v15779_v16 = vpop.permute.xlu1 %10939  ;;  %v15793_v3 = vld [vmem:[#allocation3 + $0x38] sm:$0xff] }
 0x486   : > { %20243 = vst [vmem:[#allocation60_spill] sm:$0xff] %v15777_v47  ;;  %v5990_v47 = vld [vmem:[#allocation3 + $0x68] sm:$0xff] }
 0x487   : > { %20244 = vst [vmem:[#allocation57_spill] sm:$0xff] %v15779_v16  ;;  %v11203_v16 = vpack.i.bf16 %v15504_v21, %v15793_v3  ;;  %v6048_v21 = vld [vmem:[#allocation3 + $0x8] sm:$0xff]  ;;  %v15816_v15 = vpack.i.bf16 %v5991_v34, %v5990_v47 }
 0x488   : > { %v15819_v28 = vpack.i.bf16 %v15809_v33, %v6048_v21 }
 0x48a   : > { %11169 = vrot.lane.b32.xlu2 %v15595_v12, %s19818_s26 }
 0x48b   : > { %11189 = vrot.lane.b32.xlu0 %v15613_v5, %s19818_s26  ;;  %11164 = vrot.lane.b32.xlu1 %v15613_v5, %s19817_s28 }
 0x48c   : > { %v15787_v18 = vpop.permute.xlu2 %11004 }
 0x48d   : > { %v15789_v61 = vpop.permute.xlu0 %10979  ;;  %v15791_v58 = vpop.permute.xlu1 %10954 }
 0x492   : > { %11184 = vrot.lane.b32.xlu2 %v15617_v39, %s19818_s26 }
 0x493   : > { %11204 = vrot.lane.b32.xlu0 %v11203_v16, %s19820_s19  ;;  %11179 = vrot.lane.b32.xlu1 %v11203_v16, %s19818_s26 }
 0x494   : > { %v15801_v12 = vpop.permute.xlu2 %11019 }
 0x495   : > { %20245 = vst [vmem:[#allocation93_spill] sm:$0xff] %v15801_v12  ;;  %v15803_v5 = vpop.permute.xlu0 %10994  ;;  %v15807_v52 = vpop.permute.xlu1 %10969  ;;  %v6054_v12 = vld [vmem:[#allocation3 + $0x90] sm:$0xff] }
 0x496   : > { %v19030_v29 = vunpack.i.h.bf16 %v15803_v5  ;;  %v10996_v10 = vunpack.i.l.bf16 %v15803_v5  ;;  %v19031_v39 = vunpack.i.h.bf16 %v15807_v52  ;;  %v10971_v41 = vunpack.i.l.bf16 %v15807_v52 }
 0x497   : > { %v15856_v22 = vpack.i.bf16 %v6055_v25, %v6054_v12  ;;  %v10821_v25 = vunpack.i.l.bf16 %v15683_v46  ;;  %v20256_v12 = vunpack.i.h.bf16 %v15679_v31 }
 0x498   : > { %v5544_v16 = vsel %vm1210_vm12, %v10996_v10, %v19030_v29  ;;  %v5484_v56 = vsel %vm20246_vm7, %v10971_v41, %v19031_v39  ;;  %v10921_v10 = vunpack.i.l.bf16 %v15741_v62  ;;  %v15838_v29 = vld [vmem:[#allocation3 + $0x10] sm:$0xff]  ;;  %v10896_v39 = vunpack.i.l.bf16 %v15743_v11 }
 0x499   : > { %8247 = vmatpush.msra.mxu3 %v5544_v16  ;;  %v15854_v41 = vpack.i.bf16 %v15838_v29, %v15607_v38  ;;  %vm20258_vm7 = vcmask 728064  }
 0x49a   : > { %11199 = vrot.lane.b32.xlu2 %v15816_v15, %s19820_s19 }
 0x49b   : > { %11219 = vrot.lane.b32.xlu0 %v15819_v28, %s19825_s16  ;;  %8248 = vmatpush.msra.mxu3 %v5484_v56  ;;  %v20250_v56 = vunpack.i.h.bf16 %v15739_v2 }
 0x49c   : > { %11194 = vrot.lane.b32.xlu1 %v15819_v28, %s19820_s19  ;;  %v15834_v34 = vpop.permute.xlu2 %11034 }
 0x49d   : > { %20247 = vst [vmem:[#allocation70_spill] sm:$0xff] %v15834_v34  ;;  %v15836_v16 = vpop.permute.xlu0 %11009  ;;  %8249 = vmatpush.msra.mxu3 %v6048_v21  ;;  %v15842_v13 = vpop.permute.xlu1 %10984  ;;  %v5408_v47 = vsel %vm20251_vm8, %v10946_v43, %v20250_v56  ;;  %v20252_v21 = vunpack.i.h.bf16 %v15741_v62  ;;  %v19042_v43 = vunpack.i.h.bf16 %v15681_v27  ;;  %v10846_v56 = vunpack.i.l.bf16 %v15681_v27 }
 0x49e   : > { %20248 = vst [vmem:[#allocation72_spill] sm:$0xff] %v15836_v16  ;;  %vm20260_vm8 = vcmask 736256  }
 0x49f   : > { %20249 = vst [vmem:[#allocation96_spill] sm:$0xff] %v15842_v13  ;;  %8250 = vmatpush.msra.mxu3 %v5408_v47  ;;  %v5348_v26 = vsel %vm20253_vm11, %v10921_v10, %v20252_v21  ;;  %v20254_v47 = vunpack.i.h.bf16 %v15743_v11  ;;  %v5228_v10 = vsel %vm20257_vm14, %v10871_v17, %v20256_v12  ;;  %v5168_v13 = vsel %vm20258_vm7, %v10846_v56, %v19042_v43 }
 0x4a0   : > { %v10771_v17 = vunpack.i.l.bf16 %v15585_v53  ;;  %v20259_v12 = vunpack.i.h.bf16 %v15683_v46  ;;  %v20261_v56 = vunpack.i.h.bf16 %v15803_v5  ;;  %v19048_v43 = vunpack.i.h.bf16 %v15587_v59 }
 0x4a1   : > { %8251 = vmatpush.msra.mxu3 %v5348_v26  ;;  %v5288_v34 = vsel %vm20255_vm13, %v10896_v39, %v20254_v47  ;;  %v6053_v39 = vld [vmem:[#allocation3 + $0x80] sm:$0xff]  ;;  %vm20263_vm11 = vcmask 744448   ;;  %v20265_v5 = vunpack.i.h.bf16 %v15807_v52  ;;  %vm20266_vm13 = vcmask 1039360  }
 0x4a2   : > { %11214 = vrot.lane.b32.xlu2 %v15854_v41, %s19820_s19  ;;  %v15892_v47 = vpack.i.bf16 %v6053_v39, %v15793_v3  ;;  %v20262_v3 = vunpack.i.h.bf16 %v15583_v55  ;;  %v19047_v39 = vunpack.i.l.bf16 %v15765_v7  ;;  %vm20269_vm14 = vcmask 809984  }
 0x4a3   : > { %11234 = vrot.lane.b32.xlu0 %v15856_v22, %s19825_s16  ;;  %8252 = vmatpush.msra.mxu3 %v5288_v34  ;;  %v10796_v34 = vunpack.i.l.bf16 %v15583_v55  ;;  %vm20272_vm7 = vcmask 818176   ;;  %v10671_v52 = vunpack.i.l.bf16 %v15510_v9 }
 0x4a4   : > { %11209 = vrot.lane.b32.xlu1 %v15856_v22, %s19820_s19  ;;  %v15871_v26 = vpop.permute.xlu2 %11049 }
 0x4a5   : > { %v15876_v21 = vpop.permute.xlu0 %11024  ;;  %8253 = vmatpush.msra.mxu3 %v5228_v10  ;;  %v15880_v38 = vpop.permute.xlu1 %10999  ;;  %v5108_v10 = vsel %vm20260_vm8, %v10821_v25, %v20259_v12  ;;  %v5048_v25 = vsel %vm20263_vm11, %v10796_v34, %v20262_v3  ;;  %v5485_v12 = vsel %vm20266_vm13, %v20265_v5, %v19046_v49  ;;  %v10696_v5 = vunpack.i.l.bf16 %v15508_v30 }
 0x4a6   : > { %v19045_v16 = vunpack.i.l.bf16 %v15880_v38  ;;  %vm20274_vm8 = vcmask 7168   ;;  %vm20275_vm11 = vcmask 826368   ;;  %vm20278_vm13 = vcmask 72704  }
 0x4a7   : > { %8254 = vmatpush.msra.mxu3 %v5168_v13 }
 0x4a8   : > { %v5545_v13 = vsel %vm1210_vm12, %v20261_v56, %v19045_v16  ;;  %v10721_v56 = vunpack.i.l.bf16 %v15520_v48 }
 0x4a9   : > { %8255 = vmatpush.msra.mxu3 %v5108_v10  ;;  %8287 = vmatpush.msra.mxu2 %v5545_v13  ;;  %v10722_v10 = vunpack.i.h.bf16 %v15520_v48  ;;  %v20268_v13 = vunpack.i.h.bf16 %v15585_v53 }
 0x4aa   : > { %11229 = vrot.lane.b32.xlu2 %v15892_v47, %s19825_s16 }
 0x4ab   : > { %11249 = vrot.lane.b32.xlu0 %v15816_v15, %s20264_s27  ;;  %8256 = vmatpush.msra.mxu3 %v5048_v25  ;;  %v4988_v3 = vsel %vm20269_vm14, %v10771_v17, %v20268_v13  ;;  %v20273_v17 = vunpack.i.h.bf16 %v15739_v2  ;;  %v19064_v25 = vunpack.i.l.bf16 %v15703_v57  ;;  %v20277_v2 = vunpack.i.h.bf16 %v15741_v62 }
 0x4ac   : > { %11224 = vrot.lane.b32.xlu1 %v15816_v15, %s19825_s16  ;;  %8288 = vmatpush.msra.mxu2 %v5485_v12  ;;  %v15919_v34 = vpop.permute.xlu2 %11064  ;;  %v4928_v12 = vsel %vm20272_vm7, %v10746_v36, %v19048_v43  ;;  %v19063_v36 = vunpack.i.l.bf16 %v15705_v4  ;;  %v10646_v43 = vunpack.i.l.bf16 %v15459_v8  ;;  %vm20280_vm14 = vcmask 891904  }
 0x4ad   : > { %20267 = vst [vmem:[#allocation87_spill] sm:$0xff] %v15919_v34  ;;  %v15925_v16 = vpop.permute.xlu0 %11039  ;;  %8257 = vmatpush.msra.mxu3 %v4988_v3  ;;  %v15929_v49 = vpop.permute.xlu1 %11014  ;;  %v5409_v13 = vsel %vm20274_vm8, %v20273_v17, %v19047_v39  ;;  %v10672_v3 = vunpack.i.h.bf16 %v15510_v9  ;;  %v10647_v39 = vunpack.i.h.bf16 %v15459_v8  ;;  %v20281_v62 = vunpack.i.h.bf16 %v15743_v11 }
 0x4ae   : > { %20270 = vst [vmem:[#allocation80_spill] sm:$0xff] %v15925_v16  ;;  %8289 = vmatpush.msra.mxu2 %v15809_v33  ;;  %v4868_v33 = vsel %vm20275_vm11, %v10721_v56, %v10722_v10  ;;  %v20279_v56 = vunpack.i.h.bf16 %v15508_v30  ;;  %vm20282_vm7 = vcmask 80896   ;;  %vm20283_vm8 = vcmask 900096  }
 0x4af   : > { %20271 = vst [vmem:[#allocation84_spill] sm:$0xff] %v15929_v49  ;;  %8258 = vmatpush.msra.mxu3 %v4928_v12  ;;  %v20276_v12 = vunpack.i.l.bf16 %v15767_v63  ;;  %v5289_v8 = vsel %vm20282_vm7, %v20281_v62, %v19064_v25  ;;  %vm20285_vm11 = vcmask 89088   ;;  %v19060_v62 = vunpack.i.l.bf16 %v15625_v44 }
 0x4b0   : > { %8290 = vmatpush.msra.mxu2 %v5409_v13  ;;  %v4808_v13 = vsel %vm20280_vm14, %v10696_v5, %v20279_v56  ;;  %v4748_v5 = vsel %vm20283_vm8, %v10671_v52, %v10672_v3  ;;  %v20287_v52 = vunpack.i.h.bf16 %v15681_v27  ;;  %vm20288_vm14 = vcmask 728064  }
 0x4b1   : > { %8259 = vmatpush.msra.mxu3 %v4868_v33  ;;  %v5349_v17 = vsel %vm20278_vm13, %v20277_v2, %v20276_v12  ;;  %v19062_v33 = vunpack.i.l.bf16 %v15707_v54  ;;  %vm20286_vm13 = vcmask 908288   ;;  %vm20290_vm7 = vcmask 736256  }
 0x4b2   : > { %8291 = vmatpush.msra.mxu2 %v5349_v17  ;;  %11244 = vrot.lane.b32.xlu2 %v15819_v28, %s20264_s27  ;;  %v20284_v17 = vunpack.i.h.bf16 %v15679_v31  ;;  %v19058_v31 = vunpack.i.l.bf16 %v15629_v23  ;;  %v20292_v27 = vunpack.i.h.bf16 %v15583_v55  ;;  %vm20293_vm8 = vcmask 744448  }
 0x4b3   : > { %11264 = vrot.lane.b32.xlu0 %v15854_v41, %s20264_s27  ;;  %8260 = vmatpush.msra.mxu3 %v4808_v13  ;;  %v4688_v13 = vsel %vm20286_vm13, %v10646_v43, %v10647_v39  ;;  %vm20297_vm13 = vcmask 818176  }
 0x4b4   : > { %11239 = vrot.lane.b32.xlu1 %v15854_v41, %s19825_s16  ;;  %8292 = vmatpush.msra.mxu2 %v5289_v8  ;;  %v15969_v12 = vpop.permute.xlu2 %11079  ;;  %v5229_v11 = vsel %vm20285_vm11, %v20284_v17, %v19063_v36  ;;  %v19050_v8 = vunpack.i.l.bf16 %v15627_v51  ;;  %v20289_v17 = vunpack.i.h.bf16 %v15683_v46  ;;  %vm20295_vm11 = vcmask 809984  }
 0x4b5   : > { %v15974_v2 = vpop.permute.xlu0 %11054  ;;  %8261 = vmatpush.msra.mxu3 %v4748_v5  ;;  %v15981_v56 = vpop.permute.xlu1 %11029  ;;  %v5169_v5 = vsel %vm20288_vm14, %v20287_v52, %v19062_v33  ;;  %v19056_v52 = vunpack.i.l.bf16 %v15538_v32  ;;  %vm20298_vm14 = vcmask 826368  }
 0x4b6   : > { %8293 = vmatpush.msra.mxu2 %v5229_v11  ;;  %v5109_v43 = vsel %vm20290_vm7, %v20289_v17, %v19060_v62  ;;  %v5049_v11 = vsel %vm20293_vm8, %v20292_v27, %v19050_v8  ;;  %v20294_v17 = vunpack.i.h.bf16 %v15585_v53  ;;  %v16021_v27 = vld [vmem:[#allocation3 + $0x48] sm:$0xff]  ;;  %vm20301_vm7 = vcmask 891904  }
 0x4b7   : > { %8262 = vmatpush.msra.mxu3 %v4688_v13  ;;  %v19057_v13 = vunpack.i.l.bf16 %v15547_v40  ;;  %v4869_v53 = vsel %vm20298_vm14, %v10722_v10, %v19056_v52  ;;  %v19053_v10 = vunpack.i.l.bf16 %v15424_v6  ;;  %vm20304_vm8 = vcmask 900096  }
 0x4b8   : > { %8294 = vmatpush.msra.mxu2 %v5169_v5  ;;  %v4989_v55 = vsel %vm20295_vm11, %v20294_v17, %v19058_v31  ;;  %v16036_v17 = vpack.i.bf16 %v16021_v27, %v15838_v29  ;;  %vm20306_vm11 = vcmask 908288  }
 0x4ba   : > { %8295 = vmatpush.msra.mxu2 %v5109_v43  ;;  %11259 = vrot.lane.b32.xlu2 %v15856_v22, %s20264_s27 }
 0x4bb   : > { %11279 = vrot.lane.b32.xlu0 %v15892_v47, %s20291_s24 }
 0x4bc   : > { %11254 = vrot.lane.b32.xlu1 %v15892_v47, %s20264_s27  ;;  %8296 = vmatpush.msra.mxu2 %v5049_v11  ;;  %v16008_v46 = vpop.permute.xlu2 %11094  ;;  %v19055_v47 = vunpack.i.l.bf16 %v15540_v37  ;;  %v20296_v11 = vunpack.i.h.bf16 %v15587_v59  ;;  %v20300_v59 = vunpack.i.h.bf16 %v15508_v30  ;;  %v4689_v30 = vsel %vm20306_vm11, %v10647_v39, %v19053_v10 }
 0x4bd   : > { %v16012_v5 = vpop.permute.xlu0 %11069  ;;  %v16019_v43 = vpop.permute.xlu1 %11044 }
 0x4be   : > { %8297 = vmatpush.msra.mxu2 %v4989_v55  ;;  %v4929_v8 = vsel %vm20297_vm13, %v20296_v11, %v19057_v13  ;;  %v19054_v55 = vunpack.i.l.bf16 %v15455_v45  ;;  %v4809_v48 = vsel %vm20301_vm7, %v20300_v59, %v19055_v47  ;;  %v19065_v59 = vunpack.i.h.bf16 %v16008_v46 }
 0x4bf   : > { %vm20308_vm13 = vcmask 310272  }
 0x4c0   : > { %8298 = vmatpush.msra.mxu2 %v4929_v8  ;;  %v4749_v8 = vsel %vm20304_vm8, %v10672_v3, %v19054_v55  ;;  %vm20313_vm14 = vmmov %vm20308_vm13 }
 0x4c1   : > { %vm20319_vm7 = vmmov %vm20308_vm13 }
 0x4c2   : > { %8299 = vmatpush.msra.mxu2 %v4869_v53  ;;  %11274 = vrot.lane.b32.xlu2 %v15816_v15, %s20291_s24  ;;  %v6233_v53 = vld [vmem:[#allocation3 + $0x70] sm:$0xff]  ;;  %vm20320_vm8 = vmmov %vm20319_vm7 }
 0x4c3   : > { %11294 = vrot.lane.b32.xlu0 %v16036_v17, %s20299_s10  ;;  %vm20323_vm11 = vmmov %vm20319_vm7 }
 0x4c4   : > { %11269 = vrot.lane.b32.xlu1 %v15819_v28, %s20291_s24  ;;  %8300 = vmatpush.msra.mxu2 %v4809_v48  ;;  %v16050_v29 = vpop.permute.xlu2 %11109  ;;  %v20307_v28 = vpack.i.bf16 %v15647_v20, %v15643_v24 }
 0x4c5   : > { %20302 = vst [vmem:[#allocation83_spill] sm:$0xff] %v16050_v29  ;;  %v16053_v15 = vpop.permute.xlu0 %11084  ;;  %v16060_v11 = vpop.permute.xlu1 %11059 }
 0x4c6   : > { %20303 = vst [vmem:[#allocation30_spill] sm:$0xff] %v16053_v15  ;;  %8301 = vmatpush.msra.mxu2 %v4749_v8  ;;  %v6232_v8 = vld [vmem:[#allocation3 + $0x58] sm:$0xff]  ;;  %v19061_v47 = vunpack.i.h.bf16 %v16053_v15 }
 0x4c7   : > { %20305 = vst [vmem:[#allocation33_spill] sm:$0xff] %v16060_v11 }
 0x4c8   : > { %8302 = vmatpush.msra.mxu2 %v4689_v30  ;;  %v16082_v30 = vpack.i.bf16 %v15667_v50, %v6233_v53  ;;  %v19059_v53 = vunpack.i.h.bf16 %v16050_v29 }
 0x4ca   : > { %11289 = vrot.lane.b32.xlu2 %v15854_v41, %s20291_s24  ;;  %v6231_v41 = vld [vmem:[#allocation3 + $0x30] sm:$0xff] }
 0x4cb   : > { %11309 = vrot.lane.b32.xlu0 %v20307_v28, %s20299_s10  ;;  %v16093_v24 = vpack.i.bf16 %v6232_v8, %v6231_v41 }
 0x4cc   : > { %11284 = vrot.lane.b32.xlu1 %v15856_v22, %s20291_s24  ;;  %v16073_v9 = vpop.permute.xlu2 %11124 }
 0x4cd   : > { %v16075_v3 = vpop.permute.xlu0 %11099  ;;  %v16079_v48 = vpop.permute.xlu1 %11074 }
 0x4ce   : > { %v19066_v39 = vunpack.i.l.bf16 %v16075_v3  ;;  %v19072_v25 = vunpack.i.h.bf16 %v16075_v3 }
 0x4d0   : > { %v16089_v22 = vsel %vm20308_vm13, %v19065_v59, %v19066_v39  ;;  %vm20363_vm13 = vmmov %vm20319_vm7 }
 0x4d2   : > { %11304 = vrot.lane.b32.xlu2 %v16082_v30, %s20299_s10 }
 0x4d3   : > { %11324 = vrot.lane.b32.xlu0 %v16082_v30, %s20309_s21 }
 0x4d4   : > { %11299 = vrot.lane.b32.xlu1 %v16093_v24, %s20299_s10  ;;  %v16099_v20 = vpop.permute.xlu2 %11139  ;;  %s20316_s10 = smov 109  }
 0x4d5   : > { %20310 = vst [vmem:[#allocation64_spill] sm:$0xff] %v16099_v20  ;;  %v16101_v28 = vpop.permute.xlu0 %11114  ;;  %v16105_v55 = vpop.permute.xlu1 %11089 }
 0x4d6   : > { %20311 = vst [vmem:[#allocation52_spill] sm:$0xff] %v16101_v28  ;;  %v11116_v10 = vunpack.i.l.bf16 %v16101_v28  ;;  %v11091_v41 = vunpack.i.l.bf16 %v16105_v55 }
 0x4d7   : > { %20312 = vst [vmem:[#allocation28_spill] sm:$0xff] %v16105_v55  ;;  %v6296_v55 = vld [vmem:[#allocation3 + $0x78] sm:$0xff] }
 0x4d8   : > { %v16112_v8 = vsel %vm20313_vm14, %v19059_v53, %v11116_v10  ;;  %v16117_v52 = vsel %vm1393_vm9, %v19061_v47, %v11091_v41  ;;  %v19071_v41 = vunpack.i.h.bf16 %v16073_v9  ;;  %vm20385_vm14 = vcmask 1039360  }
 0x4d9   : > { %20314 = vst [vmem:[#allocation45_spill] sm:$0xff] %v16112_v8 }
 0x4da   : > { %20315 = vst [vmem:[#allocation24_spill] sm:$0xff] %v16117_v52  ;;  %11319 = vrot.lane.b32.xlu2 %v16093_v24, %s20309_s21  ;;  %v20322_v52 = vunpack.i.l.bf16 %v16050_v29 }
 0x4db   : > { %11339 = vrot.lane.b32.xlu0 %v16093_v24, %s20316_s10 }
 0x4dc   : > { %11314 = vrot.lane.b32.xlu1 %v16036_v17, %s20309_s21  ;;  %v16125_v13 = vpop.permute.xlu2 %11154 }
 0x4dd   : > { %v11157_v31 = vunpack.i.h.bf16 %v16125_v13  ;;  %v19070_v10 = vunpack.i.l.bf16 %v16125_v13  ;;  %v11130_v53 = vpop.permute.xlu0 %11129  ;;  %v11105_v36 = vpop.permute.xlu1 %11104 }
 0x4de   : > { %v11132_v47 = vunpack.i.h.bf16 %v11130_v53  ;;  %v11131_v33 = vunpack.i.l.bf16 %v11130_v53  ;;  %v11107_v59 = vunpack.i.h.bf16 %v11105_v36  ;;  %v11106_v39 = vunpack.i.l.bf16 %v11105_v36 }
 0x4df   : > { %v16135_v28 = vsel %vm1576_vm2, %v19070_v10, %v11157_v31 }
 0x4e0   : > { %20317 = vst [vmem:[#allocation81_spill] sm:$0xff] %v16135_v28  ;;  %v16140_v49 = vsel %vm1515_vm6, %v19071_v41, %v11131_v33  ;;  %v16143_v62 = vsel %vm1515_vm6, %v11131_v33, %v11132_v47  ;;  %v16148_v53 = vsel %vm20319_vm7, %v19072_v25, %v11106_v39  ;;  %v16151_v36 = vsel %vm20320_vm8, %v11106_v39, %v11107_v59 }
 0x4e1   : > { %20318 = vst [vmem:[#allocation41_spill] sm:$0xff] %v16143_v62  ;;  %v16156_v10 = vsel %vm20323_vm11, %v11107_v59, %v20322_v52  ;;  %v16161_v41 = vpack.i.bf16 %v6296_v55, %v15669_v0  ;;  %v19074_v52 = vunpack.i.l.bf16 %v16073_v9  ;;  %v20370_v0 = vunpack.i.l.bf16 %v15871_v26 }
 0x4e2   : > { %20321 = vst [vmem:[#allocation77_spill] sm:$0xff] %v16151_v36  ;;  %11334 = vrot.lane.b32.xlu2 %v16036_v17, %s20316_s10  ;;  %vm20393_vm7 = vcmask 7168   ;;  %vm20397_vm8 = vcmask 72704   ;;  %vm20399_vm11 = vcmask 908288  }
 0x4e3   : > { %20324 = vst [vmem:[#allocation31_spill] sm:$0xff] %v16156_v10  ;;  %11354 = vrot.lane.b32.xlu0 %v16036_v17, %s20118_s20 }
 0x4e4   : > { %11329 = vrot.lane.b32.xlu1 %v16161_v41, %s20309_s21  ;;  %v16167_v33 = vpop.permute.xlu2 %11169 }
 0x4e5   : > { %v16169_v39 = vpop.permute.xlu0 %11144  ;;  %v16171_v25 = vpop.permute.xlu1 %11119 }
 0x4e6   : > { %v19073_v59 = vunpack.i.h.bf16 %v16171_v25 }
 0x4e8   : > { %v16180_v55 = vsel %vm1515_vm6, %v19073_v59, %v19074_v52  ;;  %v11141_v59 = vunpack.i.l.bf16 %v16099_v20 }
 0x4ea   : > { %11349 = vrot.lane.b32.xlu2 %v16161_v41, %s20316_s10 }
 0x4eb   : > { %11369 = vrot.lane.b32.xlu0 %v16161_v41, %s20118_s20 }
 0x4ec   : > { %11344 = vrot.lane.b32.xlu1 %v16082_v30, %s20316_s10  ;;  %v16188_v10 = vpop.permute.xlu2 %11184 }
 0x4ed   : > { %20325 = vst [vmem:[#allocation69_spill] sm:$0xff] %v16188_v10  ;;  %v16190_v36 = vpop.permute.xlu0 %11159  ;;  %v16193_v28 = vpop.permute.xlu1 %11134 }
 0x4ee   : > { %20326 = vst [vmem:[#allocation47_spill] sm:$0xff] %v16190_v36  ;;  %v19079_v62 = vunpack.i.l.bf16 %v16190_v36  ;;  %v19081_v52 = vunpack.i.h.bf16 %v16193_v28  ;;  %v19080_v34 = vunpack.i.l.bf16 %v16193_v28 }
 0x4ef   : > { %20327 = vst [vmem:[#allocation86_spill] sm:$0xff] %v16193_v28 }
 0x4f0   : > { %v16201_v8 = vsel %vm1576_vm2, %v11157_v31, %v19079_v62  ;;  %v16206_v16 = vsel %vm1515_vm6, %v19081_v52, %v11141_v59  ;;  %v16211_v6 = vsel %vm1515_vm6, %v11132_v47, %v19080_v34  ;;  %v19089_v52 = vunpack.i.h.bf16 %v16188_v10 }
 0x4f1   : > { %20328 = vst [vmem:[#allocation68_spill] sm:$0xff] %v16201_v8  ;;  %v19090_v8 = vunpack.i.h.bf16 %v16190_v36 }
 0x4f2   : > { %20329 = vst [vmem:[#allocation85_spill] sm:$0xff] %v16206_v16  ;;  %11364 = vrot.lane.b32.xlu2 %v16082_v30, %s20118_s20 }
 0x4f3   : > { %20330 = vst [vmem:[#allocation29_spill] sm:$0xff] %v16211_v6  ;;  %11384 = vrot.lane.b32.xlu0 %v16082_v30, %s20161_s17 }
 0x4f4   : > { %11359 = vrot.lane.b32.xlu1 %v16093_v24, %s20118_s20  ;;  %v16219_v31 = vpop.permute.xlu2 %11199 }
 0x4f5   : > { %v16221_v62 = vpop.permute.xlu0 %11174  ;;  %v16223_v59 = vpop.permute.xlu1 %11149  ;;  %v19132_v44 = vunpack.i.l.bf16 %v16219_v31 }
 0x4fa   : > { %11379 = vrot.lane.b32.xlu2 %v16093_v24, %s20161_s17 }
 0x4fb   : > { %11399 = vrot.lane.b32.xlu0 %v16093_v24, %s20181_s11 }
 0x4fc   : > { %11374 = vrot.lane.b32.xlu1 %v16036_v17, %s20161_s17  ;;  %v16231_v47 = vpop.permute.xlu2 %11214 }
 0x4fd   : > { %20331 = vst [vmem:[#allocation59_spill] sm:$0xff] %v16231_v47  ;;  %v16233_v34 = vpop.permute.xlu0 %11189  ;;  %v16237_v6 = vpop.permute.xlu1 %11164 }
 0x4fe   : > { %20332 = vst [vmem:[#allocation65_spill] sm:$0xff] %v16233_v34  ;;  %v11191_v20 = vunpack.i.l.bf16 %v16233_v34  ;;  %v11166_v16 = vunpack.i.l.bf16 %v16237_v6 }
 0x4ff   : > { %20333 = vst [vmem:[#allocation53_spill] sm:$0xff] %v16237_v6 }
 0x500   : > { %v16244_v45 = vsel %vm1637_vm5, %v19089_v52, %v11191_v20  ;;  %v16249_v29 = vsel %vm1576_vm2, %v19090_v8, %v11166_v16 }
 0x501   : > { %20334 = vst [vmem:[#allocation51_spill] sm:$0xff] %v16244_v45  ;;  %v19105_v45 = vunpack.i.l.bf16 %v16188_v10 }
 0x502   : > { %20335 = vst [vmem:[#allocation76_spill] sm:$0xff] %v16249_v29  ;;  %11394 = vrot.lane.b32.xlu2 %v16036_v17, %s20181_s11 }
 0x503   : > { %11414 = vrot.lane.b32.xlu0 %v16036_v17, %s20190_s8 }
 0x504   : > { %11389 = vrot.lane.b32.xlu1 %v16161_v41, %s20161_s17  ;;  %v16257_v6 = vpop.permute.xlu2 %11229 }
 0x505   : > { %v11232_v34 = vunpack.i.h.bf16 %v16257_v6  ;;  %v19103_v20 = vunpack.i.l.bf16 %v16257_v6  ;;  %v16261_v52 = vpop.permute.xlu0 %11204  ;;  %v16265_v29 = vpop.permute.xlu1 %11179 }
 0x506   : > { %v11207_v16 = vunpack.i.h.bf16 %v16261_v52  ;;  %v19102_v8 = vunpack.i.l.bf16 %v16261_v52  ;;  %v11182_v11 = vunpack.i.h.bf16 %v16265_v29  ;;  %v19104_v37 = vunpack.i.l.bf16 %v16265_v29 }
 0x507   : > { %v16273_v32 = vsel %vm1759_vm1, %v19103_v20, %v11232_v34 }
 0x508   : > { %20336 = vst [vmem:[#allocation95_spill] sm:$0xff] %v16273_v32  ;;  %v16278_v15 = vsel %vm1698_vm3, %v19102_v8, %v11207_v16  ;;  %v16283_v28 = vsel %vm1637_vm5, %v19104_v37, %v11182_v11  ;;  %v16288_v40 = vsel %vm1637_vm5, %v11182_v11, %v19105_v45  ;;  %v11216_v32 = vunpack.i.l.bf16 %v16231_v47 }
 0x509   : > { %20337 = vst [vmem:[#allocation98_spill] sm:$0xff] %v16278_v15  ;;  %v7804_v15 = vld [vmem:[#allocation7] sm:$0xff] }
 0x50a   : > { %20338 = vst [vmem:[#allocation99_spill] sm:$0xff] %v16283_v28  ;;  %11409 = vrot.lane.b32.xlu2 %v16161_v41, %s20181_s11  ;;  %8263 = vmatmul.f32.vlgmr.msra.gmra.mxu3 %v7804_v15 }
 0x50b   : > { %20339 = vst [vmem:[#allocation100_spill] sm:$0xff] %v16288_v40  ;;  %11429 = vrot.lane.b32.xlu0 %v16161_v41, %s20190_s8  ;;  %8303 = vmatmul.f32.vlgmr.msra.gmra.mxu2 %v7804_v15 }
 0x50c   : > { %11404 = vrot.lane.b32.xlu1 %v16082_v30, %s20181_s11  ;;  %v16296_v8 = vpop.permute.xlu2 %11244 }
 0x50d   : > { %v16298_v20 = vpop.permute.xlu0 %11219 }
 0x50e   : > { %v16300_v37 = vpop.permute.xlu1 %11194 }
 0x512   : > { %11424 = vrot.lane.b32.xlu2 %v16082_v30, %s20190_s8 }
 0x513   : > { %11444 = vrot.lane.b32.xlu0 %v16082_v30, %s20194_s5 }
 0x514   : > { %11419 = vrot.lane.b32.xlu1 %v16093_v24, %s20190_s8  ;;  %v16308_v11 = vpop.permute.xlu2 %11259  ;;  %s8953_s8 = scalar_lea.sflag [#allocation6], %s12151_s15 }
 0x515   : > { %v16310_v45 = vpop.permute.xlu0 %11234 }
 0x516   : > { %20340 = vst [vmem:[#allocation101_spill] sm:$0xff] %v16310_v45  ;;  %v19117_v40 = vunpack.i.l.bf16 %v16310_v45  ;;  %v16313_v28 = vpop.permute.xlu1 %11209 }
 0x517   : > { %20341 = vst [vmem:[#allocation102_spill] sm:$0xff] %v16313_v28  ;;  %v19115_v36 = vunpack.i.h.bf16 %v16313_v28  ;;  %v19116_v10 = vunpack.i.l.bf16 %v16313_v28  ;;  %v19133_v28 = vunpack.i.h.bf16 %v16219_v31 }
 0x518   : > { %v16321_v23 = vsel %vm1759_vm1, %v11232_v34, %v19117_v40 }
 0x519   : > { %20342 = vst [vmem:[#allocation103_spill] sm:$0xff] %v16321_v23  ;;  %v16326_v51 = vsel %vm1698_vm3, %v19115_v36, %v11216_v32  ;;  %v16331_v47 = vsel %vm1698_vm3, %v11207_v16, %v19116_v10  ;;  %v6026_v23 = vsel %vm1698_vm3, %v19132_v44, %v19133_v28  ;;  %v20353_v28 = vunpack.i.h.bf16 %v16223_v59 }
 0x51a   : > { %20343 = vst [vmem:[#allocation104_spill] sm:$0xff] %v16326_v51  ;;  %11439 = vrot.lane.b32.xlu2 %v16093_v24, %s20194_s5 }
 0x51b   : > { %20344 = vst [vmem:[#allocation105_spill] sm:$0xff] %v16331_v47  ;;  %11459 = vrot.lane.b32.xlu0 %v16093_v24, %s20195_s18 }
 0x51c   : > { %11434 = vrot.lane.b32.xlu1 %v16036_v17, %s20194_s5  ;;  %v16339_v34 = vpop.permute.xlu2 %11274 }
 0x51d   : > { %v19125_v15 = vunpack.i.h.bf16 %v16339_v34  ;;  %v19124_v32 = vunpack.i.l.bf16 %v16339_v34  ;;  %v16343_v36 = vpop.permute.xlu0 %11249 }
 0x51e   : > { %v19127_v16 = vunpack.i.h.bf16 %v16343_v36  ;;  %v19126_v10 = vunpack.i.l.bf16 %v16343_v36  ;;  %v16347_v40 = vpop.permute.xlu1 %11224 }
 0x51f   : > { %v6206_v51 = vsel %vm1881_vm15, %v19124_v32, %v19125_v15  ;;  %v20346_v32 = vunpack.i.l.bf16 %v16347_v40 }
 0x520   : > { %8352 = vmatpush.msrb.mxu3 %v6206_v51  ;;  %v6146_v54 = vsel %vm1820_vm0, %v19126_v10, %v19127_v16  ;;  %v20345_v51 = vunpack.i.h.bf16 %v16347_v40  ;;  %v20350_v16 = vunpack.i.h.bf16 %v16221_v62 }
 0x522   : > { %11454 = vrot.lane.b32.xlu2 %v16036_v17, %s20195_s18  ;;  %8353 = vmatpush.msrb.mxu3 %v6146_v54  ;;  %v6086_v15 = vsel %vm1759_vm1, %v20346_v32, %v20345_v51  ;;  %v19136_v32 = vunpack.i.h.bf16 %v16308_v11 }
 0x523   : > { %11474 = vrot.lane.b32.xlu0 %v16036_v17, %s20199_s0 }
 0x524   : > { %11449 = vrot.lane.b32.xlu1 %v16161_v41, %s20194_s5  ;;  %v16376_v10 = vpop.permute.xlu2 %11289  ;;  %8354 = vmatpush.msrb.mxu3 %v6086_v15 }
 0x525   : > { %20347 = vst [vmem:[#allocation106_spill] sm:$0xff] %v16376_v10  ;;  %v16380_v47 = vpop.permute.xlu0 %11264  ;;  %v20351_v10 = vunpack.i.l.bf16 %v16221_v62 }
 0x526   : > { %20348 = vst [vmem:[#allocation107_spill] sm:$0xff] %v16380_v47  ;;  %v11266_v51 = vunpack.i.l.bf16 %v16380_v47  ;;  %v16389_v4 = vpop.permute.xlu1 %11239  ;;  %8355 = vmatpush.msrb.mxu3 %v6026_v23  ;;  %v20354_v23 = vunpack.i.l.bf16 %v16223_v59 }
 0x527   : > { %20349 = vst [vmem:[#allocation108_spill] sm:$0xff] %v16389_v4  ;;  %v11241_v54 = vunpack.i.l.bf16 %v16389_v4  ;;  %v5966_v50 = vsel %vm1637_vm5, %v20351_v10, %v20350_v16  ;;  %v20355_v4 = vunpack.i.h.bf16 %v16310_v45  ;;  %v20357_v16 = vunpack.i.h.bf16 %v16073_v9 }
 0x528   : > { %8356 = vmatpush.msrb.mxu3 %v5966_v50  ;;  %v16401_v44 = vsel %vm1820_vm0, %v19136_v32, %v11266_v51  ;;  %v5906_v15 = vsel %vm1576_vm2, %v20354_v23, %v20353_v28  ;;  %v20358_v28 = vunpack.i.l.bf16 %v16073_v9  ;;  %v20361_v32 = vunpack.i.h.bf16 %v16075_v3 }
 0x529   : > { %20352 = vst [vmem:[#allocation109_spill] sm:$0xff] %v16401_v44  ;;  %v16411_v47 = vsel %vm1759_vm1, %v20355_v4, %v11241_v54  ;;  %v20362_v10 = vunpack.i.l.bf16 %v16075_v3  ;;  %v20364_v45 = vunpack.i.h.bf16 %v16079_v48  ;;  %v20365_v3 = vunpack.i.l.bf16 %v16079_v48 }
 0x52a   : > { %20356 = vst [vmem:[#allocation110_spill] sm:$0xff] %v16411_v47  ;;  %11469 = vrot.lane.b32.xlu2 %v16161_v41, %s20195_s18  ;;  %8357 = vmatpush.msrb.mxu3 %v5906_v15  ;;  %v5846_v51 = vsel %vm1515_vm6, %v20358_v28, %v20357_v16  ;;  %v20366_v16 = vunpack.i.h.bf16 %v16339_v34 }
 0x52b   : > { %11489 = vrot.lane.b32.xlu0 %v16161_v41, %s20199_s0  ;;  %v5786_v9 = vsel %vm20363_vm13, %v20362_v10, %v20361_v32  ;;  %v5726_v32 = vsel %vm1393_vm9, %v20365_v3, %v20364_v45  ;;  %v19141_v10 = vunpack.i.h.bf16 %v15787_v18  ;;  %vm20401_vm13 = vcmask 80896  }
 0x52c   : > { %11464 = vrot.lane.b32.xlu1 %v16082_v30, %s20195_s18  ;;  %v16426_v4 = vpop.permute.xlu2 %11304  ;;  %8358 = vmatpush.msrb.mxu3 %v5846_v51 }
 0x52d   : > { %20359 = vst [vmem:[#allocation111_spill] sm:$0xff] %v16426_v4  ;;  %v16430_v23 = vpop.permute.xlu0 %11279 }
 0x52e   : > { %20360 = vst [vmem:[#allocation112_spill] sm:$0xff] %v16430_v23  ;;  %v11281_v51 = vunpack.i.l.bf16 %v16430_v23  ;;  %v11255_v47 = vpop.permute.xlu1 %11254  ;;  %8359 = vmatpush.msrb.mxu3 %v5786_v9  ;;  %v20367_v9 = vunpack.i.h.bf16 %v16430_v23 }
 0x52f   : > { %v11257_v54 = vunpack.i.h.bf16 %v11255_v47  ;;  %v11256_v44 = vunpack.i.l.bf16 %v11255_v47  ;;  %v20369_v47 = vunpack.i.h.bf16 %v15871_v26 }
 0x530   : > { %8360 = vmatpush.msrb.mxu3 %v5726_v32  ;;  %v6207_v50 = vsel %vm1881_vm15, %v20366_v16, %v11281_v51  ;;  %v16455_v15 = vsel %vm1881_vm15, %v11281_v51, %v20367_v9  ;;  %v20372_v32 = vunpack.i.l.bf16 %v16308_v11  ;;  %v20375_v9 = vunpack.i.h.bf16 %v15876_v21 }
 0x531   : > { %20368 = vst [vmem:[#allocation113_spill] sm:$0xff] %v16455_v15  ;;  %8392 = vmatpush.msrb.mxu2 %v6207_v50  ;;  %v5666_v45 = vsel %vm1332_vm10, %v20370_v0, %v20369_v47  ;;  %v16463_v3 = vsel %vm1820_vm0, %v11256_v44, %v11257_v54  ;;  %v20374_v50 = vunpack.i.h.bf16 %v16343_v36  ;;  %v20386_v15 = vunpack.i.l.bf16 %v16265_v29 }
 0x532   : > { %20371 = vst [vmem:[#allocation114_spill] sm:$0xff] %v16463_v3  ;;  %v16468_v28 = vsel %vm1820_vm0, %v11257_v54, %v20372_v32  ;;  %11484 = vrot.lane.b32.xlu2 %v16082_v30, %s20199_s0  ;;  %8361 = vmatpush.msrb.mxu3 %v5666_v45  ;;  %v20376_v54 = vunpack.i.l.bf16 %v15876_v21  ;;  %v6889_v32 = vld [vmem:[#allocation3 + $0x10] sm:$0xff]  ;;  %v20378_v45 = vunpack.i.l.bf16 %v16257_v6  ;;  %v20383_v3 = vunpack.i.h.bf16 %v15789_v61 }
 0x533   : > { %20373 = vst [vmem:[#allocation115_spill] sm:$0xff] %v16468_v28  ;;  %v6147_v0 = vsel %vm1820_vm0, %v20374_v50, %v11256_v44  ;;  %11504 = vrot.lane.b32.xlu0 %v16082_v30, %s20203_s1  ;;  %v20379_v44 = vunpack.i.h.bf16 %v16347_v40  ;;  %v20381_v28 = vunpack.i.l.bf16 %v16261_v52  ;;  %v16511_v23 = vpack.i.bf16 %v16021_v27, %v6889_v32  ;;  %v5436_v32 = vld [vmem:[#allocation3 + $0x38] sm:$0xff] }
 0x534   : > { %8393 = vmatpush.msrb.mxu2 %v6147_v0  ;;  %v5606_v47 = vsel %vm1271_vm4, %v20376_v54, %v20375_v9  ;;  %11479 = vrot.lane.b32.xlu1 %v16093_v24, %s20199_s0  ;;  %v16486_v51 = vpop.permute.xlu2 %11319  ;;  %v20380_v0 = vunpack.i.l.bf16 %v15787_v18  ;;  %v19150_v52 = vunpack.i.h.bf16 %v15661_v1  ;;  %v11171_v29 = vunpack.i.l.bf16 %v16167_v33 }
 0x535   : > { %20377 = vst [vmem:[#allocation116_spill] sm:$0xff] %v16486_v51  ;;  %8362 = vmatpush.msrb.mxu3 %v5606_v47  ;;  %v6087_v50 = vsel %vm1759_vm1, %v20379_v44, %v20378_v45  ;;  %v16498_v9 = vpop.permute.xlu0 %11294  ;;  %v20382_v47 = vunpack.i.h.bf16 %v16219_v31  ;;  %v20384_v45 = vunpack.i.l.bf16 %v15789_v61 }
 0x536   : > { %v5548_v16 = vsel %vm1210_vm12, %v20380_v0, %v19141_v10  ;;  %8394 = vmatpush.msrb.mxu2 %v6087_v50  ;;  %v11270_v54 = vpop.permute.xlu1 %11269  ;;  %v11247_v0 = vunpack.i.h.bf16 %v16296_v8 }
 0x537   : > { %8407 = vmatpush.msra.mxu3 %v5548_v16  ;;  %v6027_v6 = vsel %vm1698_vm3, %v20382_v47, %v20381_v28  ;;  %v5488_v44 = vsel %vm20385_vm14, %v20384_v45, %v20383_v3  ;;  %v11246_v16 = vunpack.i.l.bf16 %v16296_v8  ;;  %v11272_v50 = vunpack.i.h.bf16 %v11270_v54 }
 0x538   : > { %v11271_v10 = vunpack.i.l.bf16 %v11270_v54  ;;  %8395 = vmatpush.msrb.mxu2 %v6027_v6  ;;  %v19142_v28 = vunpack.i.h.bf16 %v15791_v58  ;;  %v20387_v3 = vunpack.i.h.bf16 %v16221_v62  ;;  %v11222_v45 = vunpack.i.h.bf16 %v16298_v20 }
 0x539   : > { %8408 = vmatpush.msra.mxu3 %v5488_v44  ;;  %v11221_v8 = vunpack.i.l.bf16 %v16298_v20  ;;  %v20388_v6 = vunpack.i.l.bf16 %v16339_v34  ;;  %v19149_v20 = vunpack.i.l.bf16 %v15727_v14  ;;  %v11196_v34 = vunpack.i.l.bf16 %v16300_v37 }
 0x53a   : > { %v5967_v27 = vsel %vm1637_vm5, %v20387_v3, %v20386_v15  ;;  %v6204_v54 = vsel %vm1881_vm15, %v11271_v10, %v11272_v50  ;;  %v19154_v15 = vunpack.i.h.bf16 %v15727_v14  ;;  %v11197_v10 = vunpack.i.h.bf16 %v16300_v37  ;;  %11499 = vrot.lane.b32.xlu2 %v16093_v24, %s20203_s1 }
 0x53b   : > { %v6205_v44 = vsel %vm1881_vm15, %v11272_v50, %v20388_v6  ;;  %8396 = vmatpush.msrb.mxu2 %v5967_v27  ;;  %8409 = vmatpush.msra.mxu3 %v5436_v32  ;;  %v6144_v50 = vsel %vm1820_vm0, %v11246_v16, %v11247_v0  ;;  %v19153_v3 = vunpack.i.h.bf16 %v15729_v42  ;;  %v19147_v27 = vunpack.i.l.bf16 %v15729_v42 }
 0x53c   : > { %8272 = vmatpush.msra.mxu1 %v6204_v54  ;;  %8312 = vmatpush.msra.mxu0 %v6205_v44  ;;  %v20389_v32 = vunpack.i.l.bf16 %v16343_v36  ;;  %v20390_v54 = vunpack.i.l.bf16 %v16125_v13  ;;  %v20391_v6 = vunpack.i.h.bf16 %v16223_v59  ;;  %v16553_v47 = vpop.permute.xlu2 %11334  ;;  %v11172_v16 = vunpack.i.h.bf16 %v16167_v33 }
 0x53d   : > { %11519 = vrot.lane.b32.xlu0 %v16093_v24, %s20206_s3  ;;  %11494 = vrot.lane.b32.xlu1 %v16036_v17, %s20203_s1  ;;  %v20392_v17 = vunpack.i.l.bf16 %v15791_v58  ;;  %v6084_v13 = vsel %vm1759_vm1, %v11221_v8, %v11222_v45  ;;  %v5352_v8 = vsel %vm20397_vm8, %v19149_v20, %v19154_v15  ;;  %vm20405_vm14 = vcmask 89088  }
 0x53e   : > { %8273 = vmatpush.msra.mxu1 %v6144_v50  ;;  %v6145_v37 = vsel %vm1820_vm0, %v11247_v0, %v20389_v32  ;;  %v5907_v44 = vsel %vm1576_vm2, %v20391_v6, %v20390_v54  ;;  %v16562_v0 = vpop.permute.xlu0 %11309  ;;  %v19148_v50 = vunpack.i.l.bf16 %v15663_v35  ;;  %v19144_v32 = vunpack.i.h.bf16 %v16426_v4  ;;  %v16568_v33 = vpop.permute.xlu1 %11284 }
 0x53f   : > { %8313 = vmatpush.msra.mxu0 %v6145_v37  ;;  %8397 = vmatpush.msrb.mxu2 %v5907_v44  ;;  %v5412_v36 = vsel %vm20393_vm7, %v20392_v17, %v19142_v28  ;;  %20394 = vst [vmem:[#allocation117_spill] sm:$0xff] %v16562_v0  ;;  %v19143_v54 = vunpack.i.l.bf16 %v16562_v0  ;;  %v20395_v37 = vunpack.i.l.bf16 %v16347_v40  ;;  %v20396_v44 = vld [vmem:[#allocation66_spill] sm:$0xff]  ;;  %v19152_v40 = vunpack.i.l.bf16 %v15974_v2  ;;  %v20488_v0 = vld [vmem:[#allocation43_spill] sm:$0xff] }
 0x540   : > { %8410 = vmatpush.msra.mxu3 %v5412_v36  ;;  %8274 = vmatpush.msra.mxu1 %v6084_v13  ;;  %v19151_v17 = vunpack.i.h.bf16 %v20396_v44  ;;  %v19146_v28 = vunpack.i.l.bf16 %v20396_v44  ;;  %v6024_v36 = vsel %vm1698_vm3, %v11196_v34, %v11197_v10  ;;  %v19145_v13 = vunpack.i.l.bf16 %v15969_v12 }
 0x541   : > { %v6085_v6 = vsel %vm1759_vm1, %v11222_v45, %v20395_v37  ;;  %8398 = vmatpush.msrb.mxu2 %v16140_v49  ;;  %v20398_v45 = vunpack.i.l.bf16 %v16219_v31  ;;  %v16592_v49 = vsel %vm20399_vm11, %v19144_v32, %v19143_v54  ;;  %v11146_v34 = vunpack.i.l.bf16 %v16169_v39 }
 0x542   : > { %8314 = vmatpush.msra.mxu0 %v6085_v6  ;;  %8411 = vmatpush.msra.mxu3 %v5352_v8  ;;  %20400 = vst [vmem:[#allocation66_spill] sm:$0xff] %v16592_v49  ;;  %v11147_v6 = vunpack.i.h.bf16 %v16169_v39  ;;  %v5292_v31 = vsel %vm20401_vm13, %v19147_v27, %v19153_v3  ;;  %v20402_v8 = vld [vmem:[#allocation38_spill] sm:$0xff]  ;;  %v20403_v54 = vunpack.i.l.bf16 %v16221_v62  ;;  %v20406_v62 = vunpack.i.l.bf16 %v15661_v1 }
 0x543   : > { %8275 = vmatpush.msra.mxu1 %v6024_v36  ;;  %v6025_v37 = vsel %vm1698_vm3, %v11197_v10, %v20398_v45  ;;  %8399 = vmatpush.msrb.mxu2 %v16148_v53  ;;  %v5964_v10 = vsel %vm1637_vm5, %v11171_v29, %v11172_v16  ;;  %v19165_v36 = vunpack.i.h.bf16 %v20402_v8  ;;  %v11121_v45 = vunpack.i.l.bf16 %v16171_v25 }
 0x544   : > { %8315 = vmatpush.msra.mxu0 %v6025_v37  ;;  %8412 = vmatpush.msra.mxu3 %v5292_v31  ;;  %v5965_v39 = vsel %vm1637_vm5, %v11172_v16, %v20403_v54  ;;  %v20404_v53 = vunpack.i.h.bf16 %v16079_v48  ;;  %v19164_v32 = vunpack.i.l.bf16 %v20402_v8  ;;  %v5232_v29 = vsel %vm20405_vm14, %v19146_v28, %v19151_v17  ;;  %v16639_v27 = vpop.permute.xlu2 %11349 }
 0x545   : > { %8276 = vmatpush.msra.mxu1 %v5964_v10  ;;  %vm20407_vm7 = vcmask 728064   ;;  %v20408_v54 = vunpack.i.h.bf16 %v15663_v35  ;;  %vm20409_vm8 = vcmask 736256   ;;  %v20410_v10 = vld [vmem:[#allocation72_spill] sm:$0xff]  ;;  %11514 = vrot.lane.b32.xlu2 %v16511_v23, %s20206_s3  ;;  %20413 = vst [vmem:[#allocation38_spill] sm:$0xff] %v16639_v27  ;;  %v20414_v20 = vunpack.i.l.bf16 %v16223_v59 }
 0x546   : > { %v5727_v37 = vsel %vm1393_vm9, %v20404_v53, %v19145_v13  ;;  %8316 = vmatpush.msra.mxu0 %v5965_v39  ;;  %v5172_v16 = vsel %vm20407_vm7, %v20406_v62, %v19150_v52  ;;  %v19161_v39 = vunpack.i.l.bf16 %v20410_v10  ;;  %v20411_v53 = vld [vmem:[#allocation96_spill] sm:$0xff]  ;;  %v19162_v13 = vunpack.i.l.bf16 %v15981_v56  ;;  %8413 = vmatpush.msra.mxu3 %v5232_v29  ;;  %v16651_v17 = vpop.permute.xlu0 %11324 }
 0x547   : > { %8400 = vmatpush.msrb.mxu2 %v5727_v37  ;;  %v5112_v31 = vsel %vm20409_vm8, %v19148_v50, %v20408_v54  ;;  %v19163_v37 = vunpack.i.l.bf16 %v20411_v53  ;;  %v20412_v62 = vunpack.i.h.bf16 %v15871_v26  ;;  %v11096_v54 = vunpack.i.l.bf16 %v16008_v46  ;;  %11534 = vrot.lane.b32.xlu0 %v16511_v23, %s20211_s23  ;;  %20415 = vst [vmem:[#allocation72_spill] sm:$0xff] %v16651_v17  ;;  %v16656_v23 = vpop.permute.xlu1 %11299 }
 0x548   : > { %v11072_v50 = vunpack.i.h.bf16 %v16012_v5  ;;  %11509 = vrot.lane.b32.xlu1 %v16161_v41, %s20203_s1  ;;  %v5904_v29 = vsel %vm1576_vm2, %v11146_v34, %v11147_v6  ;;  %v5905_v52 = vsel %vm1576_vm2, %v11147_v6, %v20414_v20  ;;  %v19155_v3 = vunpack.i.l.bf16 %v16651_v17  ;;  %20416 = vst [vmem:[#allocation96_spill] sm:$0xff] %v16656_v23  ;;  %8414 = vmatpush.msra.mxu3 %v5172_v16 }
 0x549   : > { %v5667_v28 = vsel %vm1332_vm10, %v20412_v62, %v19152_v40  ;;  %v11071_v62 = vunpack.i.l.bf16 %v16012_v5  ;;  %v19159_v40 = vunpack.i.h.bf16 %v16486_v51  ;;  %8277 = vmatpush.msra.mxu1 %v5904_v29  ;;  %8317 = vmatpush.msra.mxu0 %v5905_v52  ;;  %v20417_v15 = vunpack.i.h.bf16 %v16171_v25 }
 0x54a   : > { %v19157_v59 = vunpack.i.l.bf16 %v16426_v4  ;;  %v19160_v20 = vunpack.i.h.bf16 %v16498_v9  ;;  %8401 = vmatpush.msrb.mxu2 %v5667_v28  ;;  %v19158_v5 = vunpack.i.h.bf16 %v16656_v23  ;;  %v19156_v6 = vunpack.i.l.bf16 %v16656_v23  ;;  %8415 = vmatpush.msra.mxu3 %v5112_v31 }
 0x54b   : > { %v5844_v34 = vsel %vm1515_vm6, %v11121_v45, %v20417_v15  ;;  %v19166_v52 = vunpack.i.l.bf16 %v15567_v60  ;;  %8318 = vmatpush.msra.mxu0 %v16180_v55  ;;  %v20418_v25 = vunpack.i.h.bf16 %v15876_v21  ;;  %v20419_v28 = vunpack.i.h.bf16 %v15787_v18 }
 0x54c   : > { %8278 = vmatpush.msra.mxu1 %v5844_v34  ;;  %vm20420_vm11 = vcmask 900096   ;;  %v20422_v55 = vunpack.i.h.bf16 %v16008_v46  ;;  %vm20423_vm13 = vcmask 310272   ;;  %vm20424_vm14 = vcmask 908288  }
 0x54d   : > { %v5607_v15 = vsel %vm1271_vm4, %v20418_v25, %v19162_v13  ;;  %v5549_v45 = vsel %vm1210_vm12, %v20419_v28, %v19161_v39  ;;  %v16682_v16 = vsel %vm20420_vm11, %v19159_v40, %v19155_v3  ;;  %v16692_v34 = vsel %vm20424_vm14, %v19160_v20, %v19156_v6  ;;  %vm20426_vm7 = vmmov %vm20424_vm14  ;;  %v20429_v28 = vld [vmem:[#allocation78_spill] sm:$0xff]  ;;  %8319 = vmatpush.msra.mxu0 %v16089_v22  ;;  %v20433_v40 = vld [vmem:[#allocation63_spill] sm:$0xff]  ;;  %v16728_v13 = vpop.permute.xlu2 %11364 }
 0x54e   : > { %20421 = vst [vmem:[#allocation118_spill] sm:$0xff] %v16682_v16  ;;  %8402 = vmatpush.msrb.mxu2 %v5607_v15  ;;  %v5784_v29 = vsel %vm20423_vm13, %v11096_v54, %v20422_v55  ;;  %v16699_v25 = vsel %vm20426_vm7, %v19158_v5, %v19157_v59  ;;  %v20428_v15 = vld [vmem:[#allocation22_spill] sm:$0xff]  ;;  %v19168_v54 = vunpack.i.h.bf16 %v20429_v28  ;;  %vm20430_vm8 = vcmask 744448   ;;  %11529 = vrot.lane.b32.xlu2 %v16161_v41, %s20206_s3 }
 0x54f   : > { %20425 = vst [vmem:[#allocation119_spill] sm:$0xff] %v16692_v34  ;;  %8279 = vmatpush.msra.mxu1 %v5784_v29  ;;  %v5052_v55 = vsel %vm20430_vm8, %v19164_v32, %v19165_v36  ;;  %v11047_v3 = vunpack.i.h.bf16 %v16019_v43  ;;  %v11046_v6 = vunpack.i.l.bf16 %v16019_v43  ;;  %v20431_v59 = vunpack.i.h.bf16 %v15789_v61  ;;  %v20439_v32 = vld [vmem:[#allocation93_spill] sm:$0xff]  ;;  %v16742_v31 = vpop.permute.xlu1 %11314  ;;  %11549 = vrot.lane.b32.xlu0 %v16161_v41, %s20211_s23 }
 0x550   : > { %20427 = vst [vmem:[#allocation120_spill] sm:$0xff] %v16699_v25  ;;  %8447 = vmatpush.msra.mxu2 %v5549_v45  ;;  %8416 = vmatpush.msra.mxu3 %v5052_v55  ;;  %vm20432_vm11 = vcmask 1039360   ;;  %v5724_v29 = vsel %vm1393_vm9, %v11071_v62, %v11072_v50  ;;  %v19167_v5 = vunpack.i.l.bf16 %v20429_v28  ;;  %v19174_v20 = vunpack.i.h.bf16 %v20433_v40  ;;  %v20494_v25 = vld [vmem:[#allocation54_spill] sm:$0xff] }
 0x551   : > { %v5489_v45 = vsel %vm20432_vm11, %v20431_v59, %v19163_v37  ;;  %8280 = vmatpush.msra.mxu1 %v5724_v29  ;;  %v20434_v39 = vunpack.i.l.bf16 %v16079_v48  ;;  %v20435_v22 = vunpack.i.h.bf16 %v15567_v60  ;;  %vm20436_vm13 = vcmask 809984   ;;  %20437 = vst [vmem:[#allocation22_spill] sm:$0xff] %v16728_v13  ;;  %v20438_v59 = vld [vmem:[#allocation46_spill] sm:$0xff]  ;;  %v5437_v48 = vld [vmem:[#allocation3 + $0x80] sm:$0xff]  ;;  %11524 = vrot.lane.b32.xlu1 %v16082_v30, %s20206_s3  ;;  %s9072_s3 = sshll.u32 %s12151_s15, 7 }
 0x552   : > { %8448 = vmatpush.msra.mxu2 %v5489_v45  ;;  %v19169_v37 = vunpack.i.l.bf16 %v20438_v59  ;;  %v11022_v36 = vunpack.i.h.bf16 %v20439_v32  ;;  %v11021_v45 = vunpack.i.l.bf16 %v20439_v32  ;;  %v11002_v46 = vunpack.i.h.bf16 %v15880_v38  ;;  %s18330_s21 = scalar_lea.vmem [#allocation10], %s9072_s3 }
 0x553   : > { %v5725_v43 = vsel %vm1393_vm9, %v11072_v50, %v20434_v39  ;;  %v4992_v55 = vsel %vm20436_vm13, %v19166_v52, %v20435_v22  ;;  %v16734_v50 = vpop.permute.xlu0 %11339  ;;  %v20441_v39 = vld [vmem:[#allocation39_spill] sm:$0xff]  ;;  %v19171_v22 = vunpack.i.h.bf16 %v16553_v47  ;;  %v19172_v32 = vunpack.i.l.bf16 %v16486_v51 }
 0x554   : > { %8320 = vmatpush.msra.mxu0 %v5725_v43  ;;  %8417 = vmatpush.msra.mxu3 %v4992_v55  ;;  %20440 = vst [vmem:[#allocation78_spill] sm:$0xff] %v16734_v50  ;;  %v19170_v52 = vunpack.i.l.bf16 %v16734_v50  ;;  %v5664_v43 = vsel %vm1332_vm10, %v11046_v6, %v11047_v3  ;;  %v20442_v55 = vunpack.i.l.bf16 %v15871_v26  ;;  %v19173_v29 = vunpack.i.h.bf16 %v16742_v31 }
 0x555   : > { %8449 = vmatpush.msra.mxu2 %v5437_v48  ;;  %v10977_v62 = vunpack.i.h.bf16 %v15763_v19  ;;  %8281 = vmatpush.msra.mxu1 %v5664_v43  ;;  %vm20443_vm14 = vcmask 818176   ;;  %v20444_v6 = vunpack.i.h.bf16 %v15791_v58  ;;  %vm20445_vm7 = vcmask 7168   ;;  %v20448_v43 = vld [vmem:[#allocation42_spill] sm:$0xff] }
 0x556   : > { %v5665_v48 = vsel %vm1332_vm10, %v11047_v3, %v20442_v55  ;;  %v4932_v41 = vsel %vm20443_vm14, %v19167_v5, %v19168_v54  ;;  %vm20446_vm8 = vcmask 891904   ;;  %v19175_v55 = vunpack.i.l.bf16 %v20448_v43  ;;  %11544 = vrot.lane.b32.xlu2 %v16082_v30, %s20211_s23 }
 0x557   : > { %8321 = vmatpush.msra.mxu0 %v5665_v48  ;;  %v5413_v26 = vsel %vm20445_vm7, %v20444_v6, %v19169_v37  ;;  %v16770_v3 = vsel %vm20446_vm8, %v19171_v22, %v19170_v52  ;;  %8418 = vmatpush.msra.mxu3 %v4932_v41  ;;  %v5604_v48 = vsel %vm1271_vm4, %v11021_v45, %v11022_v36  ;;  %v20449_v5 = vunpack.i.l.bf16 %v15876_v21  ;;  %v20452_v37 = vld [vmem:[#allocation61_spill] sm:$0xff] }
 0x558   : > { %20447 = vst [vmem:[#allocation63_spill] sm:$0xff] %v16770_v3  ;;  %8450 = vmatpush.msra.mxu2 %v5413_v26  ;;  %vm20450_vm11 = vcmask 900096   ;;  %v19177_v52 = vunpack.i.h.bf16 %v20452_v37  ;;  %v19176_v22 = vunpack.i.l.bf16 %v20452_v37  ;;  %8282 = vmatpush.msra.mxu1 %v5604_v48  ;;  %v20453_v41 = vunpack.i.l.bf16 %v15880_v38 }
 0x559   : > { %v5605_v54 = vsel %vm1271_vm4, %v11022_v36, %v20449_v5  ;;  %v16782_v6 = vsel %vm20450_vm11, %v19173_v29, %v19172_v32  ;;  %v20454_v21 = vunpack.i.l.bf16 %v15787_v18  ;;  %v20455_v5 = vunpack.i.l.bf16 %v20433_v40  ;;  %v5434_v29 = vld [vmem:[#allocation3 + $0x68] sm:$0xff]  ;;  %11539 = vrot.lane.b32.xlu1 %v16093_v24, %s20211_s23 }
 0x55a   : > { %20451 = vst [vmem:[#allocation46_spill] sm:$0xff] %v16782_v6  ;;  %8322 = vmatpush.msra.mxu0 %v5605_v54  ;;  %v5546_v45 = vsel %vm1210_vm12, %v20453_v41, %v11002_v46  ;;  %vm20456_vm13 = vcmask 826368   ;;  %v20457_v32 = vunpack.i.l.bf16 %v20441_v39  ;;  %v20458_v54 = vunpack.i.h.bf16 %v15727_v14 }
 0x55b   : > { %v5547_v36 = vsel %vm1210_vm12, %v11002_v46, %v20454_v21  ;;  %8327 = vmatpush.msrb.mxu1 %v5546_v45  ;;  %v4872_v26 = vsel %vm20456_vm13, %v20455_v5, %v19174_v20  ;;  %vm20459_vm14 = vcmask 72704   ;;  %v20460_v18 = vunpack.i.l.bf16 %v15763_v19  ;;  %v16808_v45 = vpop.permute.xlu2 %11379  ;;  %v20465_v21 = vld [vmem:[#allocation50_spill] sm:$0xff]  ;;  %v5435_v20 = vld [vmem:[#allocation3 + $0x20] sm:$0xff] }
 0x55c   : > { %8367 = vmatpush.msrb.mxu0 %v5547_v36  ;;  %v5353_v38 = vsel %vm20459_vm14, %v20458_v54, %v20457_v32  ;;  %8419 = vmatpush.msra.mxu3 %v4872_v26  ;;  %vm20461_vm7 = vcmask 1039360   ;;  %v20462_v48 = vunpack.i.l.bf16 %v15789_v61  ;;  %20464 = vst [vmem:[#allocation93_spill] sm:$0xff] %v16808_v45  ;;  %v19178_v36 = vunpack.i.l.bf16 %v20465_v21  ;;  %v16822_v54 = vpop.permute.xlu0 %11354 }
 0x55d   : > { %8451 = vmatpush.msra.mxu2 %v5353_v38  ;;  %v5486_v46 = vsel %vm20461_vm7, %v20460_v18, %v10977_v62  ;;  %vm20463_vm8 = vmmov %vm20461_vm7  ;;  %v10952_v5 = vunpack.i.h.bf16 %v15765_v7  ;;  %v20466_v32 = vunpack.i.h.bf16 %v20428_v15  ;;  %v20467_v26 = vunpack.i.l.bf16 %v20428_v15  ;;  %v20471_v38 = vld [vmem:[#allocation49_spill] sm:$0xff]  ;;  %v20478_v18 = vld [vmem:[#allocation94_spill] sm:$0xff] }
 0x55e   : > { %v5487_v41 = vsel %vm20463_vm8, %v10977_v62, %v20462_v48  ;;  %8328 = vmatpush.msrb.mxu1 %v5486_v46  ;;  %vm20468_vm11 = vcmask 891904   ;;  %v20469_v61 = vunpack.i.h.bf16 %v15729_v42  ;;  %vm20470_vm13 = vcmask 80896   ;;  %v20472_v46 = vld [vmem:[#allocation73_spill] sm:$0xff] }
 0x55f   : > { %8368 = vmatpush.msrb.mxu0 %v5487_v41  ;;  %v4812_v19 = vsel %vm20468_vm11, %v20467_v26, %v20466_v32  ;;  %vm20473_vm14 = vcmask 900096   ;;  %v16832_v26 = vpop.permute.xlu1 %11329  ;;  %vm20477_vm7 = vcmask 89088   ;;  %v10927_v48 = vunpack.i.h.bf16 %v15767_v63 }
 0x560   : > { %v5293_v62 = vsel %vm20470_vm13, %v20469_v61, %v19175_v55  ;;  %8420 = vmatpush.msra.mxu3 %v4812_v19  ;;  %v4752_v32 = vsel %vm20473_vm14, %v19176_v22, %v19177_v52  ;;  %20474 = vst [vmem:[#allocation39_spill] sm:$0xff] %v16832_v26  ;;  %v20475_v61 = vld [vmem:[#allocation97_spill] sm:$0xff]  ;;  %8329 = vmatpush.msrb.mxu1 %v5434_v29  ;;  %v20476_v19 = vunpack.i.h.bf16 %v20396_v44  ;;  %v7028_v55 = vld [vmem:[#allocation3 + $0x70] sm:$0xff]  ;;  %v20482_v49 = vunpack.i.l.bf16 %v15765_v7  ;;  %v16856_v52 = vld [vmem:[#allocation7 + $0x8] sm:$0xff] }
 0x561   : > { %8452 = vmatpush.msra.mxu2 %v5293_v62  ;;  %8369 = vmatpush.msrb.mxu0 %v5435_v20  ;;  %v10902_v20 = vunpack.i.h.bf16 %v15703_v57  ;;  %vm20483_vm8 = vcmask 7168   ;;  %vm20486_vm11 = vmmov %vm20473_vm14  ;;  %vm20493_vm14 = vcmask 908288   ;;  %v20496_v24 = vunpack.i.h.bf16 %v15661_v1 }
 0x562   : > { %v5233_v62 = vsel %vm20477_vm7, %v20476_v19, %v19178_v36  ;;  %8421 = vmatpush.msra.mxu3 %v4752_v32  ;;  %v20479_v19 = vld [vmem:[#allocation32_spill] sm:$0xff]  ;;  %v20480_v36 = vld [vmem:[#allocation91_spill] sm:$0xff]  ;;  %v5410_v22 = vsel %vm20483_vm8, %v20482_v49, %v10952_v5  ;;  %v20484_v32 = vunpack.i.l.bf16 %v16832_v26  ;;  %vm20490_vm13 = vmmov %vm20483_vm8  ;;  %v20491_v49 = vunpack.i.h.bf16 %v20471_v38 }
 0x563   : > { %8453 = vmatpush.msra.mxu2 %v5233_v62  ;;  %v20481_v41 = vpack.i.bf16 %v20479_v19, %v20480_v36  ;;  %v20485_v62 = vunpack.i.h.bf16 %v16651_v17  ;;  %8330 = vmatpush.msrb.mxu1 %v5410_v22  ;;  %v20489_v36 = vunpack.i.l.bf16 %v15791_v58  ;;  %v7027_v26 = vld [vmem:[#allocation3 + $0x58] sm:$0xff]  ;;  %vm20497_vm7 = vcmask 728064  }
 0x564   : > { %v20498_v58 = vunpack.i.l.bf16 %v20472_v46  ;;  %vm20500_vm8 = vcmask 809984   ;;  %v16887_v30 = vpack.i.bf16 %v7028_v55, %v7027_v26  ;;  %v20508_v55 = vunpack.i.h.bf16 %v20402_v8 }
 0x565   : > { %11564 = vrot.lane.b32.xlu0 %v20481_v41, %s20217_s22  ;;  %v16863_v29 = vsel %vm20486_vm11, %v20485_v62, %v20484_v32  ;;  %v5411_v7 = vsel %vm20490_vm13, %v10952_v5, %v20489_v36  ;;  %v20492_v41 = vunpack.i.l.bf16 %v20471_v38  ;;  %v20495_v62 = vunpack.i.l.bf16 %v20475_v61 }
 0x566   : > { %20487 = vst [vmem:[#allocation42_spill] sm:$0xff] %v16863_v29  ;;  %8370 = vmatpush.msrb.mxu0 %v5411_v7  ;;  %v20499_v5 = vunpack.i.h.bf16 %v15567_v60  ;;  %vm20502_vm11 = vcmask 719872   ;;  %v20503_v7 = vunpack.i.h.bf16 %v16568_v33  ;;  %vm20506_vm13 = vcmask 72704   ;;  %11559 = vrot.lane.b32.xlu2 %v16887_v30, %s20217_s22 }
 0x567   : > { %v4692_v19 = vsel %vm20493_vm14, %v20492_v41, %v20491_v49  ;;  %v5173_v22 = vsel %vm20497_vm7, %v20496_v24, %v20495_v62  ;;  %v20501_v49 = vld [vmem:[#allocation58_spill] sm:$0xff]  ;;  %9333 = vmatmul.msk.f32.vlgmr.msrb.gmra.mxu3 %vm20502_vm11, %v16856_v52  ;;  %v20505_v24 = vunpack.i.l.bf16 %v15767_v63  ;;  %vm20509_vm14 = vcmask 744448   ;;  %vm20512_vm7 = vmmov %vm20506_vm13 }
 0x568   : > { %8422 = vmatpush.msra.mxu3 %v4692_v19  ;;  %v4993_v36 = vsel %vm20500_vm8, %v20499_v5, %v20498_v58  ;;  %v10877_v41 = vunpack.i.h.bf16 %v20501_v49  ;;  %8454 = vmatpush.msra.mxu2 %v5173_v22  ;;  %v20504_v19 = vunpack.i.l.bf16 %v16568_v33  ;;  %v20507_v58 = vunpack.i.l.bf16 %v20488_v0  ;;  %v16905_v22 = vpop.permute.xlu2 %11394  ;;  %v20510_v5 = vld [vmem:[#allocation88_spill] sm:$0xff] }
 0x569   : > { %v5350_v32 = vsel %vm20506_vm13, %v20505_v24, %v10927_v48  ;;  %v20511_v16 = vunpack.i.l.bf16 %v15727_v14  ;;  %v20513_v63 = vunpack.i.l.bf16 %v20478_v18  ;;  %vm20515_vm8 = vcmask 736256  }
 0x56a   : > { %v6210_v62 = vsel %vm1881_vm15, %v20504_v19, %v20503_v7  ;;  %v5053_v26 = vsel %vm20509_vm14, %v20508_v55, %v20507_v58  ;;  %8331 = vmatpush.msrb.mxu1 %v5350_v32  ;;  %v20514_v19 = vunpack.i.h.bf16 %v15663_v35  ;;  %v20516_v17 = vunpack.i.l.bf16 %v15703_v57  ;;  %v16919_v55 = vpop.permute.xlu0 %11369 }
 0x56b   : > { %8512 = vmatpush.msrb.mxu3 %v6210_v62  ;;  %v5351_v7 = vsel %vm20512_vm7, %v10927_v48, %v20511_v16  ;;  %vm20517_vm11 = vcmask 80896   ;;  %20518 = vst [vmem:[#allocation61_spill] sm:$0xff] %v16919_v55  ;;  %v20519_v14 = vunpack.i.h.bf16 %v16308_v11  ;;  %v20520_v16 = vunpack.i.l.bf16 %v16308_v11 }
 0x56c   : > { %v5113_v24 = vsel %vm20515_vm8, %v20514_v19, %v20513_v63  ;;  %v5290_v58 = vsel %vm20517_vm11, %v20516_v17, %v10902_v20  ;;  %8371 = vmatpush.msrb.mxu0 %v5351_v7  ;;  %v20521_v32 = vunpack.i.l.bf16 %v15729_v42  ;;  %vm20522_vm13 = vmmov %vm20517_vm11  ;;  %v19185_v57 = vunpack.i.l.bf16 %v16919_v55  ;;  %v16931_v63 = vpop.permute.xlu1 %11344  ;;  %v7026_v7 = vld [vmem:[#allocation3 + $0x30] sm:$0xff]  ;;  %v20525_v42 = vld [vmem:[#allocation101_spill] sm:$0xff] }
 0x56d   : > { %8455 = vmatpush.msra.mxu2 %v5113_v24  ;;  %v6150_v48 = vsel %vm1820_vm0, %v20520_v16, %v20519_v14  ;;  %20523 = vst [vmem:[#allocation50_spill] sm:$0xff] %v16931_v63  ;;  %8332 = vmatpush.msrb.mxu1 %v5290_v58  ;;  %v19186_v11 = vunpack.i.l.bf16 %v16931_v63  ;;  %v20524_v14 = vld [vmem:[#allocation56_spill] sm:$0xff]  ;;  %v20528_v17 = vunpack.i.l.bf16 %v20501_v49  ;;  %vm20529_vm14 = vcmask 89088   ;;  %v20533_v19 = vld [vmem:[#allocation74_spill] sm:$0xff] }
 0x56e   : > { %v5291_v62 = vsel %vm20522_vm13, %v10902_v20, %v20521_v32  ;;  %8513 = vmatpush.msrb.mxu3 %v6150_v48  ;;  %v10852_v16 = vunpack.i.h.bf16 %v20524_v14  ;;  %v20526_v20 = vunpack.i.h.bf16 %v20525_v42  ;;  %v20527_v32 = vunpack.i.l.bf16 %v20525_v42  ;;  %vm20535_vm8 = vmmov %vm20529_vm14  ;;  %11579 = vrot.lane.b32.xlu0 %v16887_v30, %s19616_s14 }
 0x56f   : > { %8372 = vmatpush.msrb.mxu0 %v5291_v62  ;;  %8456 = vmatpush.msra.mxu2 %v5053_v26  ;;  %v5230_v48 = vsel %vm20529_vm14, %v20528_v17, %v10877_v41  ;;  %v20530_v58 = vunpack.i.h.bf16 %v16728_v13  ;;  %vm20531_vm7 = vcmask 826368   ;;  %v10827_v62 = vunpack.i.h.bf16 %v20533_v19 }
 0x570   : > { %v6090_v29 = vsel %vm1759_vm1, %v20527_v32, %v20526_v20  ;;  %8333 = vmatpush.msrb.mxu1 %v5230_v48  ;;  %v20534_v26 = vunpack.i.l.bf16 %v20396_v44  ;;  %v7025_v20 = vld [vmem:[#allocation3 + $0x48] sm:$0xff]  ;;  %v20536_v49 = vunpack.i.h.bf16 %v16734_v50  ;;  %vm20537_vm11 = vcmask 891904  }
 0x571   : > { %v16951_v24 = vsel %vm20531_vm7, %v20530_v58, %v19185_v57  ;;  %8514 = vmatpush.msrb.mxu3 %v6090_v29  ;;  %v20539_v32 = vunpack.i.l.bf16 %v16639_v27  ;;  %v20540_v58 = vunpack.i.h.bf16 %v16931_v63  ;;  %vm20541_vm13 = vmmov %vm20537_vm11  ;;  %v20543_v29 = vld [vmem:[#allocation25_spill] sm:$0xff]  ;;  %8457 = vmatpush.msra.mxu2 %v4993_v36  ;;  %v16972_v44 = vpack.i.bf16 %v7026_v7, %v7025_v20  ;;  %v20560_v27 = vld [vmem:[#allocation27_spill] sm:$0xff] }
 0x572   : > { %20532 = vst [vmem:[#allocation49_spill] sm:$0xff] %v16951_v24  ;;  %v5231_v42 = vsel %vm20535_vm8, %v10877_v41, %v20534_v26  ;;  %v16962_v17 = vsel %vm20537_vm11, %v20536_v49, %v19186_v11  ;;  %v20544_v41 = vld [vmem:[#allocation71_spill] sm:$0xff]  ;;  %v20545_v49 = vld [vmem:[#allocation102_spill] sm:$0xff]  ;;  %v20549_v36 = vunpack.i.h.bf16 %v20428_v15  ;;  %vm20550_vm14 = vmmov %vm20537_vm11  ;;  %v20552_v26 = vunpack.i.l.bf16 %v20524_v14 }
 0x573   : > { %20538 = vst [vmem:[#allocation73_spill] sm:$0xff] %v16962_v17  ;;  %v16969_v57 = vsel %vm20541_vm13, %v20540_v58, %v20539_v32  ;;  %8373 = vmatpush.msrb.mxu0 %v5231_v42  ;;  %v20546_v11 = vunpack.i.h.bf16 %v20545_v49  ;;  %v20547_v24 = vunpack.i.l.bf16 %v20545_v49  ;;  %v20548_v58 = vunpack.i.l.bf16 %v20494_v25  ;;  %v20551_v42 = vld [vmem:[#allocation89_spill] sm:$0xff]  ;;  %11554 = vrot.lane.b32.xlu1 %v16972_v44, %s20217_s22  ;;  %v17019_v17 = vpop.permute.xlu0 %11384 }
 0x574   : > { %20542 = vst [vmem:[#allocation97_spill] sm:$0xff] %v16969_v57  ;;  %v10802_v20 = vunpack.i.h.bf16 %v20551_v42  ;;  %vm20553_vm7 = vcmask 728064   ;;  %v20554_v49 = vunpack.i.l.bf16 %v15661_v1  ;;  %v20557_v57 = vunpack.i.h.bf16 %v20433_v40  ;;  %11574 = vrot.lane.b32.xlu2 %v16972_v44, %s19616_s14 }
 0x575   : > { %v6030_v32 = vsel %vm1698_vm3, %v20547_v24, %v20546_v11  ;;  %v4813_v7 = vsel %vm20550_vm14, %v20549_v36, %v20548_v58  ;;  %v5170_v48 = vsel %vm20553_vm7, %v20552_v26, %v10852_v16  ;;  %vm20555_vm8 = vmmov %vm20553_vm7  ;;  %v20556_v11 = vunpack.i.l.bf16 %v20543_v29  ;;  %v17003_v36 = vpop.permute.xlu2 %11409  ;;  %20569 = vst [vmem:[#allocation32_spill] sm:$0xff] %v17019_v17 }
 0x576   : > { %8515 = vmatpush.msrb.mxu3 %v6030_v32  ;;  %v5171_v24 = vsel %vm20555_vm8, %v10852_v16, %v20554_v49  ;;  %vm20558_vm11 = vcmask 826368   ;;  %20559 = vst [vmem:[#allocation94_spill] sm:$0xff] %v17003_v36  ;;  %v10777_v55 = vunpack.i.h.bf16 %v20560_v27  ;;  %8334 = vmatpush.msrb.mxu1 %v5170_v48  ;;  %v20561_v14 = vunpack.i.l.bf16 %v20510_v5  ;;  %v20564_v32 = vld [vmem:[#allocation69_spill] sm:$0xff]  ;;  %v7032_v48 = vld [vmem:[#allocation3 + $0x50] sm:$0xff] }
 0x577   : > { %v4873_v58 = vsel %vm20558_vm11, %v20557_v57, %v20556_v11  ;;  %8374 = vmatpush.msrb.mxu0 %v5171_v24  ;;  %v20562_v26 = vunpack.i.h.bf16 %v20429_v28  ;;  %vm20563_vm13 = vcmask 818176   ;;  %v20565_v16 = vunpack.i.h.bf16 %v20564_v32  ;;  %11594 = vrot.lane.b32.xlu0 %v16972_v44, %s19667_s7 }
 0x578   : > { %v20566_v49 = vunpack.i.l.bf16 %v20564_v32  ;;  %v20567_v57 = vunpack.i.l.bf16 %v20533_v19  ;;  %vm20568_vm14 = vcmask 736256   ;;  %v20570_v24 = vunpack.i.l.bf16 %v15663_v35 }
 0x579   : > { %v4933_v1 = vsel %vm20563_vm13, %v20562_v26, %v20561_v14  ;;  %vm20571_vm7 = vmmov %vm20568_vm14  ;;  %v20572_v26 = vld [vmem:[#allocation47_spill] sm:$0xff]  ;;  %v19195_v19 = vunpack.i.l.bf16 %v17019_v17  ;;  %vm20578_vm8 = vcmask 744448   ;;  %v19205_v23 = vunpack.i.h.bf16 %v16905_v22 }
 0x57a   : > { %v5970_v4 = vsel %vm1637_vm5, %v20566_v49, %v20565_v16  ;;  %v5110_v11 = vsel %vm20568_vm14, %v20567_v57, %v10827_v62  ;;  %8458 = vmatpush.msra.mxu2 %v4933_v1  ;;  %v5111_v14 = vsel %vm20571_vm7, %v10827_v62, %v20570_v24  ;;  %v20573_v63 = vunpack.i.h.bf16 %v20572_v26  ;;  %v17031_v49 = vpop.permute.xlu1 %11359  ;;  %v20576_v62 = vld [vmem:[#allocation62_spill] sm:$0xff]  ;;  %vm20580_vm11 = vmmov %vm20578_vm8  ;;  %v7031_v57 = vld [vmem:[#allocation3 + $0x78] sm:$0xff] }
 0x57b   : > { %8516 = vmatpush.msrb.mxu3 %v5970_v4  ;;  %v20574_v32 = vunpack.i.l.bf16 %v20572_v26  ;;  %20575 = vst [vmem:[#allocation91_spill] sm:$0xff] %v17031_v49  ;;  %8335 = vmatpush.msrb.mxu1 %v5110_v11  ;;  %v19199_v35 = vunpack.i.h.bf16 %v17031_v49  ;;  %v19196_v4 = vunpack.i.l.bf16 %v17031_v49  ;;  %v10752_v1 = vunpack.i.h.bf16 %v20576_v62 }
 0x57c   : > { %8375 = vmatpush.msrb.mxu0 %v5111_v14  ;;  %8459 = vmatpush.msra.mxu2 %v4873_v58  ;;  %v20579_v26 = vunpack.i.l.bf16 %v20402_v8  ;;  %v20581_v11 = vunpack.i.h.bf16 %v16808_v45  ;;  %v20583_v58 = vld [vmem:[#allocation86_spill] sm:$0xff]  ;;  %v20586_v8 = vunpack.i.h.bf16 %v16822_v54  ;;  %vm20587_vm14 = vcmask 826368  }
 0x57d   : > { %v5910_v16 = vsel %vm1576_vm2, %v20574_v32, %v20573_v63  ;;  %v20577_v63 = vunpack.i.l.bf16 %v20551_v42  ;;  %v20585_v42 = vunpack.i.l.bf16 %v20583_v58  ;;  %vm20590_vm7 = vmmov %vm20587_vm14  ;;  %v10862_v49 = vunpack.i.h.bf16 %v20475_v61 }
 0x57e   : > { %8517 = vmatpush.msrb.mxu3 %v5910_v16  ;;  %v5051_v32 = vsel %vm20580_vm11, %v10802_v20, %v20579_v26  ;;  %v17049_v14 = vsel %vm20563_vm13, %v20581_v11, %v19195_v19  ;;  %v20584_v16 = vunpack.i.h.bf16 %v20583_v58  ;;  %v20589_v26 = vunpack.i.l.bf16 %v16728_v13  ;;  %8460 = vmatpush.msra.mxu2 %v4813_v7  ;;  %v20597_v19 = vld [vmem:[#allocation30_spill] sm:$0xff]  ;;  %v20602_v11 = vld [vmem:[#allocation48_spill] sm:$0xff] }
 0x57f   : > { %v5050_v24 = vsel %vm20578_vm8, %v20577_v63, %v10802_v20  ;;  %20582 = vst [vmem:[#allocation43_spill] sm:$0xff] %v17049_v14  ;;  %8376 = vmatpush.msrb.mxu0 %v5051_v32  ;;  %v17061_v20 = vsel %vm20587_vm14, %v20586_v8, %v19196_v4  ;;  %v20592_v32 = vld [vmem:[#allocation26_spill] sm:$0xff]  ;;  %v20593_v58 = vunpack.i.l.bf16 %v20560_v27  ;;  %vm20594_vm8 = vcmask 809984  }
 0x580   : > { %8336 = vmatpush.msrb.mxu1 %v5050_v24  ;;  %v5850_v63 = vsel %vm1515_vm6, %v20585_v42, %v20584_v16  ;;  %20588 = vst [vmem:[#allocation54_spill] sm:$0xff] %v17061_v20  ;;  %v17068_v24 = vsel %vm20590_vm7, %v19199_v35, %v20589_v26  ;;  %v20595_v42 = vunpack.i.l.bf16 %v15567_v60  ;;  %vm20596_vm11 = vmmov %vm20594_vm8  ;;  %v20598_v13 = vunpack.i.l.bf16 %v20544_v41  ;;  %v20618_v14 = vld [vmem:[#allocation106_spill] sm:$0xff]  ;;  %v20731_v20 = vld [vmem:[#allocation35_spill] sm:$0xff] }
 0x581   : > { %20591 = vst [vmem:[#allocation58_spill] sm:$0xff] %v17068_v24  ;;  %8518 = vmatpush.msrb.mxu3 %v5850_v63  ;;  %v4990_v16 = vsel %vm20594_vm8, %v20593_v58, %v10777_v55  ;;  %v20599_v26 = vunpack.i.h.bf16 %v20452_v37  ;;  %vm20600_vm13 = vcmask 900096   ;;  %v17083_v7 = vpack.i.bf16 %v7032_v48, %v7031_v57  ;;  %v20601_v63 = vld [vmem:[#allocation67_spill] sm:$0xff]  ;;  %v17097_v48 = vpop.permute.xlu2 %11424  ;;  %v20609_v57 = vld [vmem:[#allocation33_spill] sm:$0xff]  ;;  %v17113_v24 = vpop.permute.xlu0 %11399 }
 0x582   : > { %v4991_v8 = vsel %vm20596_vm11, %v10777_v55, %v20595_v42  ;;  %8337 = vmatpush.msrb.mxu1 %v4990_v16  ;;  %v10727_v27 = vunpack.i.h.bf16 %v20601_v63  ;;  %v10702_v58 = vunpack.i.h.bf16 %v20602_v11  ;;  %v20603_v60 = vunpack.i.l.bf16 %v20576_v62  ;;  %20608 = vst [vmem:[#allocation88_spill] sm:$0xff] %v17097_v48  ;;  %v17119_v51 = vpop.permute.xlu1 %11374 }
 0x583   : > { %8377 = vmatpush.msrb.mxu0 %v4991_v8  ;;  %v4753_v35 = vsel %vm20600_vm13, %v20599_v26, %v20598_v13  ;;  %vm20604_vm14 = vcmask 818176   ;;  %v20605_v16 = vunpack.i.l.bf16 %v20592_v32  ;;  %v20606_v42 = vunpack.i.h.bf16 %v20471_v38  ;;  %11569 = vrot.lane.b32.xlu1 %v17083_v7, %s20217_s22  ;;  %20616 = vst [vmem:[#allocation56_spill] sm:$0xff] %v17113_v24  ;;  %v20617_v8 = vld [vmem:[#allocation70_spill] sm:$0xff]  ;;  %s9370_s22 = sshll.u32 %s12072_s25, 7  ;;  %s8966_s25 = sshll.u32 %s18330_s21, 4  ;;  %s8967_s25 = int_to_ptr.vmem [resolvable:$true] %s8966_s25 }
 0x584   : > { %8461 = vmatpush.msra.mxu2 %v4753_v35  ;;  %v4930_v55 = vsel %vm20604_vm14, %v20603_v60, %v10752_v1  ;;  %vm20607_vm7 = vcmask 908288   ;;  %v20610_v35 = vld [vmem:[#allocation83_spill] sm:$0xff]  ;;  %vm20613_vm8 = vcmask 310272   ;;  %vm20615_vm11 = vmmov %vm20604_vm14  ;;  %v11291_v34 = vunpack.i.l.bf16 %v20618_v14  ;;  %11589 = vrot.lane.b32.xlu2 %v17083_v7, %s19616_s14 }
 0x585   : > { %v4693_v13 = vsel %vm20607_vm7, %v20606_v42, %v20605_v16  ;;  %v20611_v62 = vunpack.i.h.bf16 %v20610_v35  ;;  %v20612_v60 = vunpack.i.l.bf16 %v20610_v35  ;;  %v20614_v16 = vunpack.i.l.bf16 %v20429_v28  ;;  %8338 = vmatpush.msrb.mxu1 %v4930_v55  ;;  %11609 = vrot.lane.b32.xlu0 %v17083_v7, %s19667_s7 }
 0x586   : > { %v19204_v6 = vunpack.i.l.bf16 %v17113_v24  ;;  %v19206_v28 = vunpack.i.l.bf16 %v16808_v45  ;;  %8462 = vmatpush.msra.mxu2 %v4693_v13  ;;  %vm20622_vm13 = vcmask 719872   ;;  %v20623_v35 = vunpack.i.h.bf16 %v16568_v33 }
 0x587   : > { %v5790_v4 = vsel %vm20613_vm8, %v20612_v60, %v20611_v62  ;;  %v4931_v42 = vsel %vm20615_vm11, %v10752_v1, %v20614_v16  ;;  %v20619_v1 = vunpack.i.h.bf16 %v20597_v19  ;;  %v20620_v62 = vunpack.i.l.bf16 %v20597_v19  ;;  %9334 = vmatmul.msk.f32.vlgmr.msrb.gmra.mxu2 %vm20622_vm13, %v16856_v52 }
 0x588   : > { %8519 = vmatpush.msrb.mxu3 %v5790_v4  ;;  %8378 = vmatpush.msrb.mxu0 %v4931_v42  ;;  %v20621_v4 = vld [vmem:[#allocation44_spill] sm:$0xff]  ;;  %v6211_v26 = vsel %vm1881_vm15, %v20623_v35, %v11291_v34  ;;  %v20624_v13 = vunpack.i.l.bf16 %v20601_v63  ;;  %vm20625_vm14 = vcmask 826368   ;;  %vm20626_vm7 = vcmask 809984  }
 0x589   : > { %v5730_v60 = vsel %vm1393_vm9, %v20620_v62, %v20619_v1  ;;  %v10677_v55 = vunpack.i.h.bf16 %v20621_v4  ;;  %v17143_v1 = vsel %vm20626_vm7, %v19205_v23, %v19204_v6  ;;  %8552 = vmatpush.msrb.mxu2 %v6211_v26  ;;  %v20628_v62 = vunpack.i.l.bf16 %v20433_v40  ;;  %vm20629_vm8 = vmmov %vm20625_vm14  ;;  %v20637_v6 = vld [vmem:[#allocation109_spill] sm:$0xff] }
 0x58a   : > { %8520 = vmatpush.msrb.mxu3 %v5730_v60  ;;  %v4870_v42 = vsel %vm20625_vm14, %v20624_v13, %v10727_v27  ;;  %20627 = vst [vmem:[#allocation101_spill] sm:$0xff] %v17143_v1  ;;  %v20630_v16 = vunpack.i.h.bf16 %v20609_v57  ;;  %v20631_v34 = vunpack.i.l.bf16 %v20609_v57  ;;  %v20632_v35 = vunpack.i.h.bf16 %v17119_v51 }
 0x58b   : > { %8339 = vmatpush.msrb.mxu1 %v4870_v42  ;;  %v4871_v60 = vsel %vm20629_vm8, %v10727_v27, %v20628_v62  ;;  %v20634_v26 = vunpack.i.l.bf16 %v20602_v11  ;;  %vm20635_vm13 = vcmask 891904   ;;  %v7090_v27 = vld [vmem:[#allocation3 + $0x98] sm:$0xff]  ;;  %v20636_v42 = vld [vmem:[#allocation82_spill] sm:$0xff]  ;;  %8553 = vmatpush.msrb.mxu2 %v20637_v6  ;;  %v20640_v23 = vunpack.i.h.bf16 %v20617_v8 }
 0x58c   : > { %v5670_v63 = vsel %vm1332_vm10, %v20631_v34, %v20630_v16  ;;  %v17158_v13 = vsel %vm20615_vm11, %v20632_v35, %v19206_v28  ;;  %8379 = vmatpush.msrb.mxu0 %v4871_v60  ;;  %v10652_v62 = vunpack.i.h.bf16 %v20636_v42  ;;  %v20638_v16 = vunpack.i.l.bf16 %v20428_v15  ;;  %vm20639_vm14 = vmmov %vm20635_vm13  ;;  %v17176_v28 = vpop.permute.xlu2 %11439  ;;  %v20644_v6 = vld [vmem:[#allocation110_spill] sm:$0xff] }
 0x58d   : > { %20633 = vst [vmem:[#allocation74_spill] sm:$0xff] %v17158_v13  ;;  %8521 = vmatpush.msrb.mxu3 %v5670_v63  ;;  %v4810_v40 = vsel %vm20635_vm13, %v20634_v26, %v10702_v58  ;;  %v20641_v35 = vunpack.i.l.bf16 %v20617_v8  ;;  %v20642_v11 = vunpack.i.l.bf16 %v20621_v4  ;;  %vm20643_vm7 = vcmask 900096   ;;  %v7089_v26 = vld [vmem:[#allocation3 + $0x18] sm:$0xff]  ;;  %8554 = vmatpush.msrb.mxu2 %v20644_v6  ;;  %v20661_v6 = vld [vmem:[#allocation51_spill] sm:$0xff] }
 0x58e   : > { %8340 = vmatpush.msrb.mxu1 %v4810_v40  ;;  %v4811_v34 = vsel %vm20639_vm14, %v10702_v58, %v20638_v16  ;;  %v20645_v15 = vunpack.i.l.bf16 %v20452_v37  ;;  %vm20646_vm8 = vmmov %vm20643_vm7  ;;  %v17182_v40 = vpack.i.bf16 %v7090_v27, %v7089_v26  ;;  %v17184_v16 = vpop.permute.xlu0 %11414  ;;  %v19209_v4 = vunpack.i.h.bf16 %v17019_v17  ;;  %v20691_v17 = vld [vmem:[#allocation29_spill] sm:$0xff] }
 0x58f   : > { %v5610_v60 = vsel %vm1271_vm4, %v20641_v35, %v20640_v23  ;;  %8380 = vmatpush.msrb.mxu0 %v4811_v34  ;;  %v4750_v63 = vsel %vm20643_vm7, %v20642_v11, %v10677_v55  ;;  %v17188_v23 = vpop.permute.xlu1 %11389  ;;  %v20648_v37 = vunpack.i.l.bf16 %v20636_v42  ;;  %vm20649_vm11 = vcmask 908288   ;;  %v20650_v34 = vld [vmem:[#allocation104_spill] sm:$0xff]  ;;  %v20657_v11 = vld [vmem:[#allocation113_spill] sm:$0xff] }
 0x590   : > { %8522 = vmatpush.msrb.mxu3 %v5610_v60  ;;  %8341 = vmatpush.msrb.mxu1 %v4750_v63  ;;  %v4751_v58 = vsel %vm20646_vm8, %v10677_v55, %v20645_v15  ;;  %20647 = vst [vmem:[#allocation25_spill] sm:$0xff] %v17188_v23  ;;  %v19207_v27 = vunpack.i.l.bf16 %v17188_v23  ;;  %v20651_v35 = vunpack.i.l.bf16 %v20471_v38  ;;  %vm20652_vm13 = vmmov %vm20649_vm11  ;;  %vm20653_vm14 = vcmask 719872   ;;  %v20659_v63 = vld [vmem:[#allocation112_spill] sm:$0xff]  ;;  %v20662_v15 = vld [vmem:[#allocation114_spill] sm:$0xff] }
 0x591   : > { %8381 = vmatpush.msrb.mxu0 %v4751_v58  ;;  %11584 = vrot.lane.b32.xlu1 %v17182_v40, %s19616_s14  ;;  %v4690_v55 = vsel %vm20649_vm11, %v20648_v37, %v10652_v62  ;;  %vm20654_vm7 = vcmask 818176   ;;  %vm20656_vm8 = vmmov %vm20653_vm14  ;;  %v20658_v38 = vunpack.i.l.bf16 %v16568_v33  ;;  %v17224_v37 = vld [vmem:[#allocation7] sm:$0xff]  ;;  %vm20670_vm11 = vcmask 744448  }
 0x592   : > { %8555 = vmatpush.msrb.mxu2 %v20650_v34  ;;  %8342 = vmatpush.msrb.mxu1 %v4690_v55  ;;  %v4691_v60 = vsel %vm20652_vm13, %v10652_v62, %v20651_v35  ;;  %v17210_v42 = vsel %vm20654_vm7, %v19209_v4, %v19207_v27  ;;  %v20660_v62 = vunpack.i.h.bf16 %v20659_v63  ;;  %v20663_v55 = vld [vmem:[#allocation115_spill] sm:$0xff]  ;;  %v20664_v34 = vld [vmem:[#allocation76_spill] sm:$0xff]  ;;  %v19210_v35 = vunpack.i.h.bf16 %v17097_v48 }
 0x593   : > { %8382 = vmatpush.msrb.mxu0 %v4691_v60  ;;  %9331 = vmatmul.msk.f32.vlgmr.msra.gmra.mxu1 %vm20653_vm14, %v16856_v52  ;;  %20655 = vst [vmem:[#allocation71_spill] sm:$0xff] %v17210_v42  ;;  %v20666_v60 = vld [vmem:[#allocation95_spill] sm:$0xff]  ;;  %v19213_v63 = vunpack.i.l.bf16 %v17003_v36  ;;  %vm20674_vm13 = vcmask 809984   ;;  %vm20693_vm7 = vcmask 736256  }
 0x594   : > { %9332 = vmatmul.msk.f32.vlgmr.msra.gmra.mxu0 %vm20656_vm8, %v16856_v52  ;;  %8432 = vmatpush.msra.mxu1 %v20657_v11  ;;  %v6209_v26 = vsel %vm1881_vm15, %v20660_v62, %v20658_v38  ;;  %v17222_v58 = vpop.permute.xlu2 %11454  ;;  %v19212_v62 = vunpack.i.h.bf16 %v17113_v24  ;;  %vm20676_vm14 = vmmov %vm20674_vm13  ;;  %v20681_v42 = vld [vmem:[#allocation99_spill] sm:$0xff]  ;;  %v7009_v24 = vld [vmem:[#allocation3 + $0x48] sm:$0xff] }
 0x595   : > { %8472 = vmatpush.msra.mxu0 %v6209_v26  ;;  %8556 = vmatpush.msrb.mxu2 %v20661_v6  ;;  %v20668_v26 = vld [vmem:[#allocation103_spill] sm:$0xff]  ;;  %v20669_v6 = vld [vmem:[#allocation85_spill] sm:$0xff]  ;;  %vm20696_vm8 = vmmov %vm20670_vm11 }
 0x596   : > { %8433 = vmatpush.msra.mxu1 %v20662_v15  ;;  %8423 = vmatmul.f32.vlgmr.msra.gmra.mxu3 %v17224_v37  ;;  %v17229_v33 = vpop.permute.xlu0 %11429 }
 0x597   : > { %8473 = vmatpush.msra.mxu0 %v20663_v55  ;;  %8557 = vmatpush.msrb.mxu2 %v20664_v34  ;;  %20665 = vst [vmem:[#allocation102_spill] sm:$0xff] %v17229_v33  ;;  %v19208_v11 = vunpack.i.l.bf16 %v17229_v33  ;;  %v17236_v38 = vpop.permute.xlu1 %11404  ;;  %v20690_v33 = vld [vmem:[#allocation41_spill] sm:$0xff] }
 0x598   : > { %8434 = vmatpush.msra.mxu1 %v20666_v60  ;;  %11604 = vrot.lane.b32.xlu2 %v17182_v40, %s19667_s7  ;;  %20667 = vst [vmem:[#allocation89_spill] sm:$0xff] %v17236_v38  ;;  %v19214_v15 = vunpack.i.h.bf16 %v17236_v38  ;;  %v19211_v55 = vunpack.i.l.bf16 %v17236_v38  ;;  %v20672_v60 = vld [vmem:[#allocation98_spill] sm:$0xff] }
 0x599   : > { %8474 = vmatpush.msra.mxu0 %v20668_v26  ;;  %8558 = vmatpush.msrb.mxu2 %v20669_v6  ;;  %v17253_v34 = vsel %vm20670_vm11, %v19210_v35, %v19208_v11  ;;  %v20673_v26 = vld [vmem:[#allocation105_spill] sm:$0xff]  ;;  %v20678_v11 = vld [vmem:[#allocation80_spill] sm:$0xff]  ;;  %vm20699_vm11 = vmmov %vm20696_vm8 }
 0x59a   : > { %11624 = vrot.lane.b32.xlu0 %v17182_v40, %s19704_s12  ;;  %11599 = vrot.lane.b32.xlu1 %v16887_v30, %s19667_s7  ;;  %20671 = vst [vmem:[#allocation27_spill] sm:$0xff] %v17253_v34  ;;  %v17262_v6 = vsel %vm20674_vm13, %v19212_v62, %v19211_v55  ;;  %v17269_v27 = vsel %vm20676_vm14, %v19214_v15, %v19213_v63  ;;  %v11041_v4 = vunpack.i.l.bf16 %v20678_v11  ;;  %v20679_v35 = vld [vmem:[#allocation45_spill] sm:$0xff]  ;;  %v20682_v34 = vld [vmem:[#allocation100_spill] sm:$0xff]  ;;  %vm20704_vm13 = vcmask 719872  }
 0x59b   : > { %8435 = vmatpush.msra.mxu1 %v20672_v60  ;;  %8475 = vmatpush.msra.mxu0 %v20673_v26  ;;  %20675 = vst [vmem:[#allocation69_spill] sm:$0xff] %v17262_v6  ;;  %v20680_v60 = vld [vmem:[#allocation87_spill] sm:$0xff]  ;;  %v20683_v55 = vld [vmem:[#allocation24_spill] sm:$0xff]  ;;  %v20685_v63 = vld [vmem:[#allocation81_spill] sm:$0xff]  ;;  %vm20715_vm14 = vcmask 728064  }
 0x59c   : > { %20677 = vst [vmem:[#allocation47_spill] sm:$0xff] %v17269_v27  ;;  %8559 = vmatpush.msrb.mxu2 %v20679_v35  ;;  %8343 = vmatmul.f32.vlgmr.msrb.gmra.mxu1 %v17224_v37  ;;  %v11066_v26 = vunpack.i.l.bf16 %v20680_v60  ;;  %v17279_v62 = vpop.permute.xlu2 %11469  ;;  %v20686_v15 = vld [vmem:[#allocation68_spill] sm:$0xff]  ;;  %v20687_v35 = vunpack.i.h.bf16 %v20609_v57 }
 0x59d   : > { %8436 = vmatpush.msra.mxu1 %v20681_v42  ;;  %8476 = vmatpush.msra.mxu0 %v20682_v34  ;;  %20684 = vst [vmem:[#allocation62_spill] sm:$0xff] %v17279_v62  ;;  %v11082_v42 = vunpack.i.h.bf16 %v15969_v12 }
 0x59e   : > { %8560 = vmatpush.msrb.mxu2 %v20683_v55  ;;  %8383 = vmatmul.f32.vlgmr.msrb.gmra.mxu0 %v17224_v37  ;;  %v5671_v27 = vsel %vm1332_vm10, %v20687_v35, %v11066_v26  ;;  %v17286_v23 = vpop.permute.xlu0 %11444  ;;  %v20689_v55 = vunpack.i.h.bf16 %v20617_v8  ;;  %v19227_v35 = vunpack.i.h.bf16 %v17184_v16 }
 0x59f   : > { %8437 = vmatpush.msra.mxu1 %v20685_v63  ;;  %8477 = vmatpush.msra.mxu0 %v20686_v15  ;;  %20688 = vst [vmem:[#allocation86_spill] sm:$0xff] %v17286_v23  ;;  %v19223_v63 = vunpack.i.l.bf16 %v17286_v23  ;;  %v17296_v15 = vpop.permute.xlu1 %11419 }
 0x5a0   : > { %8561 = vmatpush.msrb.mxu2 %v5671_v27  ;;  %v5611_v36 = vsel %vm1271_vm4, %v20689_v55, %v11041_v4  ;;  %11619 = vrot.lane.b32.xlu2 %v16887_v30, %s19704_s12  ;;  %v19230_v27 = vunpack.i.h.bf16 %v17296_v15  ;;  %v19226_v34 = vunpack.i.l.bf16 %v17296_v15  ;;  %v11057_v4 = vunpack.i.h.bf16 %v15974_v2 }
 0x5a1   : > { %8438 = vmatpush.msra.mxu1 %v20690_v33  ;;  %8478 = vmatpush.msra.mxu0 %v20691_v17  ;;  %v20692_v55 = vunpack.i.h.bf16 %v17176_v28  ;;  %v20695_v17 = vld [vmem:[#allocation77_spill] sm:$0xff]  ;;  %v20698_v33 = vunpack.i.l.bf16 %v17097_v48 }
 0x5a2   : > { %8562 = vmatpush.msrb.mxu2 %v5611_v36  ;;  %11639 = vrot.lane.b32.xlu0 %v16887_v30, %s19761_s29  ;;  %v17322_v36 = vsel %vm20696_vm8, %v19227_v35, %v19226_v34  ;;  %v11012_v34 = vunpack.i.h.bf16 %v20410_v10  ;;  %v20703_v35 = vunpack.i.l.bf16 %v20597_v19  ;;  %vm20718_vm8 = vcmask 736256  }
 0x5a3   : > { %v17312_v26 = vsel %vm20693_vm7, %v20692_v55, %v19223_v63  ;;  %11614 = vrot.lane.b32.xlu1 %v16972_v44, %s19704_s12  ;;  %8439 = vmatpush.msra.mxu1 %v20695_v17  ;;  %20697 = vst [vmem:[#allocation30_spill] sm:$0xff] %v17322_v36  ;;  %v17329_v6 = vsel %vm20699_vm11, %v19230_v27, %v20698_v33  ;;  %v11032_v55 = vunpack.i.h.bf16 %v15981_v56  ;;  %v20701_v63 = vld [vmem:[#allocation31_spill] sm:$0xff]  ;;  %v20702_v17 = vunpack.i.l.bf16 %v15969_v12  ;;  %v20705_v33 = vld [vmem:[#allocation84_spill] sm:$0xff] }
 0x5a4   : > { %20694 = vst [vmem:[#allocation26_spill] sm:$0xff] %v17312_v26  ;;  %8479 = vmatpush.msra.mxu0 %v20701_v63  ;;  %8463 = vmatmul.f32.vlgmr.msra.gmra.mxu2 %v17224_v37  ;;  %v5729_v48 = vsel %vm1393_vm9, %v11082_v42, %v20703_v35  ;;  %v11016_v27 = vunpack.i.l.bf16 %v20705_v33  ;;  %v20706_v63 = vunpack.i.l.bf16 %v15974_v2  ;;  %vm20717_vm7 = vcmask 1039360  }
 0x5a5   : > { %20700 = vst [vmem:[#allocation67_spill] sm:$0xff] %v17329_v6  ;;  %v5728_v38 = vsel %vm1393_vm9, %v20702_v17, %v11082_v42  ;;  %9337 = vmatmul.msk.f32.vlgmr.msrb.gmra.mxu3 %vm20704_vm13, %v16856_v52  ;;  %v17347_v17 = vpop.permute.xlu2 %11484  ;;  %v10987_v6 = vunpack.i.h.bf16 %v20411_v53  ;;  %vm20720_vm11 = vmmov %vm20717_vm7 }
 0x5a6   : > { %8440 = vmatpush.msra.mxu1 %v5728_v38  ;;  %8480 = vmatpush.msra.mxu0 %v5729_v48  ;;  %v5668_v12 = vsel %vm1332_vm10, %v20706_v63, %v11057_v4  ;;  %20707 = vst [vmem:[#allocation48_spill] sm:$0xff] %v17347_v17  ;;  %v20708_v38 = vunpack.i.l.bf16 %v20609_v57  ;;  %v17353_v42 = vpop.permute.xlu0 %11459  ;;  %v20709_v48 = vunpack.i.l.bf16 %v15981_v56  ;;  %v19231_v57 = vunpack.i.l.bf16 %v17176_v28 }
 0x5a7   : > { %v17362_v26 = vpop.permute.xlu1 %11434  ;;  %v5551_v63 = vsel %vm1210_vm12, %v11012_v34, %v11016_v27  ;;  %v20713_v3 = vunpack.i.l.bf16 %v17353_v42  ;;  %v20719_v27 = vld [vmem:[#allocation60_spill] sm:$0xff] }
 0x5a8   : > { %8441 = vmatpush.msra.mxu1 %v5668_v12  ;;  %v5669_v19 = vsel %vm1332_vm10, %v11057_v4, %v20708_v38  ;;  %v5608_v2 = vsel %vm1271_vm4, %v20709_v48, %v11032_v55  ;;  %11634 = vrot.lane.b32.xlu2 %v16972_v44, %s19761_s29  ;;  %v20710_v4 = vunpack.i.l.bf16 %v20617_v8  ;;  %v20711_v38 = vunpack.i.l.bf16 %v20410_v10  ;;  %v20712_v48 = vld [vmem:[#allocation40_spill] sm:$0xff] }
 0x5a9   : > { %8481 = vmatpush.msra.mxu0 %v5669_v19  ;;  %v19232_v19 = vunpack.i.h.bf16 %v17362_v26  ;;  %v10991_v35 = vunpack.i.l.bf16 %v20712_v48  ;;  %v20716_v10 = vunpack.i.l.bf16 %v20411_v53  ;;  %v5438_v53 = vld [vmem:[#allocation3 + $0x90] sm:$0xff] }
 0x5aa   : > { %8442 = vmatpush.msra.mxu1 %v5608_v2  ;;  %v5609_v12 = vsel %vm1271_vm4, %v11032_v55, %v20710_v4  ;;  %v5550_v56 = vsel %vm1210_vm12, %v20711_v38, %v11012_v34  ;;  %v20714_v2 = vunpack.i.h.bf16 %v17222_v58  ;;  %v10962_v55 = vunpack.i.h.bf16 %v20438_v59  ;;  %11654 = vrot.lane.b32.xlu0 %v16972_v44, %s19825_s16  ;;  %v20721_v38 = vld [vmem:[#allocation57_spill] sm:$0xff] }
 0x5ab   : > { %8482 = vmatpush.msra.mxu0 %v5609_v12  ;;  %v5490_v4 = vsel %vm20717_vm7, %v20716_v10, %v10987_v6  ;;  %v17392_v34 = vsel %vm20718_vm8, %v19232_v19, %v19231_v57  ;;  %11629 = vrot.lane.b32.xlu1 %v17083_v7, %s19704_s12  ;;  %v10937_v12 = vunpack.i.h.bf16 %v20441_v39  ;;  %v10912_v10 = vunpack.i.h.bf16 %v20448_v43  ;;  %vm20725_vm8 = vmmov %vm20704_vm13 }
 0x5ac   : > { %8487 = vmatpush.msrb.mxu1 %v5550_v56  ;;  %v17379_v8 = vsel %vm20715_vm14, %v20714_v2, %v20713_v3  ;;  %v10966_v3 = vunpack.i.l.bf16 %v20719_v27  ;;  %9338 = vmatmul.msk.f32.vlgmr.msrb.gmra.mxu2 %vm20704_vm13, %v16856_v52  ;;  %v10941_v56 = vunpack.i.l.bf16 %v20721_v38  ;;  %v5439_v2 = vld [vmem:[#allocation3] sm:$0xff]  ;;  %vm20722_vm14 = vmmov %vm20704_vm13  ;;  %vm20724_vm7 = vcmask 7168  }
 0x5ad   : > { %8527 = vmatpush.msrb.mxu0 %v5551_v63  ;;  %v5491_v63 = vsel %vm20720_vm11, %v10987_v6, %v10991_v35  ;;  %v17408_v35 = vpop.permute.xlu2 %11499  ;;  %9335 = vmatmul.msk.f32.vlgmr.msra.gmra.mxu1 %vm20725_vm8, %v16856_v52  ;;  %vm20726_vm11 = vmmov %vm20724_vm7  ;;  %vm20729_vm13 = vcmask 72704   ;;  %vm20735_vm8 = vcmask 736256  }
 0x5ae   : > { %8488 = vmatpush.msrb.mxu1 %v5490_v4  ;;  %9336 = vmatmul.msk.f32.vlgmr.msra.gmra.mxu0 %vm20722_vm14, %v16856_v52  ;;  %v20723_v4 = vunpack.i.l.bf16 %v20438_v59  ;;  %v19238_v59 = vunpack.i.h.bf16 %v17286_v23  ;;  %v20730_v52 = vld [vmem:[#allocation55_spill] sm:$0xff]  ;;  %vm20732_vm14 = vmmov %vm20729_vm13 }
 0x5af   : > { %8528 = vmatpush.msrb.mxu0 %v5491_v63  ;;  %v17410_v63 = vpop.permute.xlu0 %11474  ;;  %v17417_v57 = vpop.permute.xlu1 %11449 }
 0x5b0   : > { %8489 = vmatpush.msrb.mxu1 %v5438_v53  ;;  %v5414_v6 = vsel %vm20724_vm7, %v20723_v4, %v10962_v55  ;;  %v5415_v53 = vsel %vm20726_vm11, %v10962_v55, %v10966_v3  ;;  %11649 = vrot.lane.b32.xlu2 %v16972_v44, %s20264_s27  ;;  %20727 = vst [vmem:[#allocation33_spill] sm:$0xff] %v17417_v57  ;;  %v20728_v4 = vunpack.i.l.bf16 %v20441_v39  ;;  %v19237_v50 = vunpack.i.l.bf16 %v17417_v57 }
 0x5b1   : > { %8529 = vmatpush.msrb.mxu0 %v5439_v2  ;;  %v10887_v2 = vunpack.i.h.bf16 %v20465_v21  ;;  %v10891_v55 = vunpack.i.l.bf16 %v20731_v20  ;;  %v5355_v3 = vsel %vm20732_vm14, %v10937_v12, %v10941_v56  ;;  %vm20734_vm7 = vcmask 80896  }
 0x5b2   : > { %8490 = vmatpush.msrb.mxu1 %v5414_v6  ;;  %v5354_v19 = vsel %vm20729_vm13, %v20728_v4, %v10937_v12  ;;  %v10916_v6 = vunpack.i.l.bf16 %v20730_v52  ;;  %11669 = vrot.lane.b32.xlu0 %v16972_v44, %s19817_s28  ;;  %v17439_v4 = vsel %vm20735_vm8, %v19238_v59, %v19237_v50  ;;  %vm20738_vm11 = vmmov %vm20734_vm7  ;;  %v10837_v56 = vunpack.i.h.bf16 %v20478_v18 }
 0x5b3   : > { %8530 = vmatpush.msrb.mxu0 %v5415_v53  ;;  %v20733_v53 = vunpack.i.l.bf16 %v20448_v43  ;;  %20736 = vst [vmem:[#allocation83_spill] sm:$0xff] %v17439_v4  ;;  %11644 = vrot.lane.b32.xlu1 %v16972_v44, %s20291_s24  ;;  %v20739_v43 = vunpack.i.l.bf16 %v20465_v21  ;;  %vm20740_vm13 = vcmask 89088   ;;  %v10812_v50 = vunpack.i.h.bf16 %v20488_v0  ;;  %v20742_v4 = vld [vmem:[#allocation36_spill] sm:$0xff] }
 0x5b4   : > { %8491 = vmatpush.msrb.mxu1 %v5354_v19  ;;  %v20737_v19 = vld [vmem:[#allocation34_spill] sm:$0xff]  ;;  %v5295_v12 = vsel %vm20738_vm11, %v10912_v10, %v10916_v6  ;;  %vm20741_vm14 = vmmov %vm20740_vm13  ;;  %v10787_v59 = vunpack.i.h.bf16 %v20472_v46  ;;  %v10841_v57 = vunpack.i.l.bf16 %v20742_v4  ;;  %vm20750_vm11 = vcmask 736256  }
 0x5b5   : > { %8531 = vmatpush.msrb.mxu0 %v5355_v3  ;;  %v5294_v39 = vsel %vm20734_vm7, %v20733_v53, %v10912_v10  ;;  %v10866_v13 = vunpack.i.l.bf16 %v20737_v19  ;;  %v5234_v3 = vsel %vm20740_vm13, %v20739_v43, %v10887_v2  ;;  %v5235_v53 = vsel %vm20741_vm14, %v10887_v2, %v10891_v55  ;;  %v17470_v23 = vpop.permute.xlu2 %11514  ;;  %vm20752_vm13 = vmmov %vm20750_vm11 }
 0x5b6   : > { %8492 = vmatpush.msrb.mxu1 %v5294_v39  ;;  %v20743_v39 = vunpack.i.l.bf16 %v20475_v61  ;;  %vm20744_vm7 = vcmask 728064   ;;  %v5115_v55 = vsel %vm20752_vm13, %v10837_v56, %v10841_v57  ;;  %v20758_v57 = vunpack.i.h.bf16 %v17353_v42 }
 0x5b7   : > { %8532 = vmatpush.msrb.mxu0 %v5295_v12  ;;  %v17456_v6 = vpop.permute.xlu0 %11489  ;;  %v20746_v12 = vld [vmem:[#allocation79_spill] sm:$0xff]  ;;  %vm20747_vm8 = vmmov %vm20744_vm7 }
 0x5b8   : > { %8493 = vmatpush.msrb.mxu1 %v5234_v3  ;;  %v5174_v10 = vsel %vm20744_vm7, %v20743_v39, %v10862_v49  ;;  %20745 = vst [vmem:[#allocation70_spill] sm:$0xff] %v17456_v6  ;;  %v10816_v21 = vunpack.i.l.bf16 %v20746_v12  ;;  %v5175_v2 = vsel %vm20747_vm8, %v10862_v49, %v10866_v13  ;;  %11664 = vrot.lane.b32.xlu2 %v16972_v44, %s19818_s26  ;;  %v17464_v3 = vpop.permute.xlu1 %11464  ;;  %v20751_v13 = vld [vmem:[#allocation90_spill] sm:$0xff]  ;;  %v20753_v61 = vunpack.i.l.bf16 %v17456_v6  ;;  %vm20763_vm13 = vmmov %vm20747_vm8  ;;  %v20768_v6 = vld [vmem:[#allocation75_spill] sm:$0xff] }
 0x5b9   : > { %8533 = vmatpush.msrb.mxu0 %v5235_v53  ;;  %20748 = vst [vmem:[#allocation106_spill] sm:$0xff] %v17464_v3  ;;  %v20749_v53 = vunpack.i.l.bf16 %v20478_v18  ;;  %v19245_v49 = vunpack.i.l.bf16 %v17464_v3  ;;  %v10791_v43 = vunpack.i.l.bf16 %v20751_v13  ;;  %vm20757_vm7 = vcmask 744448  }
 0x5ba   : > { %8494 = vmatpush.msrb.mxu1 %v5174_v10  ;;  %11684 = vrot.lane.b32.xlu0 %v16972_v44, %s19791_s2  ;;  %v20756_v10 = vunpack.i.l.bf16 %v20488_v0 }
 0x5bb   : > { %8534 = vmatpush.msrb.mxu0 %v5175_v2  ;;  %v5114_v39 = vsel %vm20750_vm11, %v20749_v53, %v10837_v56  ;;  %v20754_v2 = vunpack.i.h.bf16 %v17347_v17  ;;  %v10762_v53 = vunpack.i.h.bf16 %v20510_v5  ;;  %v17495_v56 = vsel %vm20747_vm8, %v20758_v57, %v19245_v49  ;;  %11659 = vrot.lane.b32.xlu1 %v16972_v44, %s19820_s19  ;;  %vm20760_vm11 = vmmov %vm20757_vm7  ;;  %v20767_v49 = vld [vmem:[#allocation21_spill] sm:$0xff] }
 0x5bc   : > { %8495 = vmatpush.msrb.mxu1 %v5114_v39  ;;  %v5054_v45 = vsel %vm20757_vm7, %v20756_v10, %v10812_v50  ;;  %20759 = vst [vmem:[#allocation82_spill] sm:$0xff] %v17495_v56  ;;  %v20762_v39 = vunpack.i.h.bf16 %v17464_v3  ;;  %v10737_v10 = vunpack.i.h.bf16 %v20543_v29  ;;  %vm20771_vm8 = vcmask 818176   ;;  %v20786_v56 = vld [vmem:[#allocation23_spill] sm:$0xff] }
 0x5bd   : > { %v17482_v18 = vsel %vm20741_vm14, %v20754_v2, %v20753_v61  ;;  %8535 = vmatpush.msrb.mxu0 %v5115_v55  ;;  %v5055_v55 = vsel %vm20760_vm11, %v10812_v50, %v10816_v21  ;;  %v20761_v61 = vunpack.i.l.bf16 %v17279_v62  ;;  %v20765_v2 = vunpack.i.l.bf16 %v20472_v46  ;;  %v20773_v46 = vld [vmem:[#allocation92_spill] sm:$0xff]  ;;  %vm20774_vm11 = vmmov %vm20771_vm8 }
 0x5be   : > { %20755 = vst [vmem:[#allocation44_spill] sm:$0xff] %v17482_v18  ;;  %8496 = vmatpush.msrb.mxu1 %v5054_v45  ;;  %vm20766_vm14 = vcmask 809984   ;;  %v10766_v18 = vunpack.i.l.bf16 %v20767_v49  ;;  %v10741_v45 = vunpack.i.l.bf16 %v20768_v6  ;;  %v10712_v21 = vunpack.i.h.bf16 %v20494_v25 }
 0x5bf   : > { %v17505_v0 = vsel %vm20763_vm13, %v20762_v39, %v20761_v61  ;;  %8536 = vmatpush.msrb.mxu0 %v5055_v55  ;;  %v4994_v57 = vsel %vm20766_vm14, %v20765_v2, %v10787_v59  ;;  %vm20769_vm7 = vmmov %vm20766_vm14  ;;  %v10687_v62 = vunpack.i.h.bf16 %v20544_v41  ;;  %v20770_v61 = vunpack.i.l.bf16 %v20510_v5  ;;  %v17519_v39 = vpop.permute.xlu0 %11504 }
 0x5c0   : > { %20764 = vst [vmem:[#allocation109_spill] sm:$0xff] %v17505_v0  ;;  %8497 = vmatpush.msrb.mxu1 %v4994_v57  ;;  %v4995_v50 = vsel %vm20769_vm7, %v10787_v59, %v10791_v43  ;;  %v10716_v2 = vunpack.i.l.bf16 %v20773_v46  ;;  %v19251_v0 = vunpack.i.h.bf16 %v17408_v35  ;;  %v4935_v57 = vsel %vm20774_vm11, %v10762_v53, %v10766_v18  ;;  %11679 = vrot.lane.b32.xlu2 %v16887_v30, %s20291_s24  ;;  %v17527_v43 = vpop.permute.xlu1 %11479 }
 0x5c1   : > { %8537 = vmatpush.msrb.mxu0 %v4995_v50  ;;  %v4934_v55 = vsel %vm20771_vm8, %v20770_v61, %v10762_v53  ;;  %20772 = vst [vmem:[#allocation110_spill] sm:$0xff] %v17519_v39  ;;  %v19250_v59 = vunpack.i.l.bf16 %v17519_v39  ;;  %v20775_v50 = vunpack.i.l.bf16 %v20543_v29  ;;  %vm20776_vm13 = vcmask 826368  }
 0x5c2   : > { %8498 = vmatpush.msrb.mxu1 %v4934_v55  ;;  %v19254_v55 = vunpack.i.l.bf16 %v17527_v43  ;;  %v19255_v18 = vunpack.i.l.bf16 %v17347_v17  ;;  %vm20777_vm14 = vmmov %vm20776_vm13  ;;  %vm20778_vm7 = vcmask 80896   ;;  %v10662_v29 = vunpack.i.h.bf16 %v20592_v32  ;;  %11699 = vrot.lane.b32.xlu0 %v16887_v30, %s19820_s19 }
 0x5c3   : > { %8538 = vmatpush.msrb.mxu0 %v4935_v57  ;;  %v4874_v61 = vsel %vm20776_vm13, %v20775_v50, %v10737_v10  ;;  %v4875_v53 = vsel %vm20777_vm14, %v10737_v10, %v10741_v45  ;;  %v17542_v5 = vsel %vm20778_vm7, %v19251_v0, %v19250_v59  ;;  %v20780_v57 = vunpack.i.l.bf16 %v20494_v25  ;;  %v20785_v59 = vld [vmem:[#allocation37_spill] sm:$0xff]  ;;  %11674 = vrot.lane.b32.xlu1 %v16972_v44, %s19808_s13 }
 0x5c4   : > { %8499 = vmatpush.msrb.mxu1 %v4874_v61  ;;  %20779 = vst [vmem:[#allocation104_spill] sm:$0xff] %v17542_v5  ;;  %vm20781_vm8 = vcmask 891904   ;;  %v17550_v61 = vpop.permute.xlu2 %11529  ;;  %v20783_v10 = vunpack.i.h.bf16 %v17410_v63  ;;  %vm20784_vm11 = vcmask 89088   ;;  %v10666_v0 = vunpack.i.l.bf16 %v20785_v59 }
 0x5c5   : > { %8539 = vmatpush.msrb.mxu0 %v4875_v53  ;;  %v4814_v50 = vsel %vm20781_vm8, %v20780_v57, %v10712_v21  ;;  %20782 = vst [vmem:[#allocation113_spill] sm:$0xff] %v17550_v61  ;;  %v10691_v53 = vunpack.i.l.bf16 %v20786_v56  ;;  %vm20787_vm13 = vmmov %vm20781_vm8  ;;  %v20788_v57 = vunpack.i.h.bf16 %v17527_v43  ;;  %vm20792_vm7 = vcmask 900096  }
 0x5c6   : > { %v17557_v45 = vsel %vm20784_vm11, %v20783_v10, %v19254_v55  ;;  %8500 = vmatpush.msrb.mxu1 %v4814_v50  ;;  %v4815_v25 = vsel %vm20787_vm13, %v10712_v21, %v10716_v2  ;;  %vm20789_vm14 = vmmov %vm20784_vm11  ;;  %v20791_v10 = vunpack.i.l.bf16 %v20544_v41  ;;  %v20794_v44 = vunpack.i.l.bf16 %v20592_v32 }
 0x5c7   : > { %v17569_v3 = vsel %vm20789_vm14, %v20788_v57, %v19255_v18  ;;  %8540 = vmatpush.msrb.mxu0 %v4815_v25  ;;  %vm20793_vm8 = vmmov %vm20792_vm7  ;;  %vm20795_vm11 = vcmask 908288   ;;  %v17578_v2 = vpop.permute.xlu0 %11519  ;;  %v19261_v50 = vunpack.i.h.bf16 %v17470_v23  ;;  %vm20797_vm14 = vcmask 72704  }
 0x5c8   : > { %20790 = vst [vmem:[#allocation112_spill] sm:$0xff] %v17569_v3  ;;  %v4754_v55 = vsel %vm20792_vm7, %v20791_v10, %v10687_v62  ;;  %v4755_v5 = vsel %vm20793_vm8, %v10687_v62, %v10691_v53  ;;  %v4694_v21 = vsel %vm20795_vm11, %v20794_v44, %v10662_v29  ;;  %vm20796_vm13 = vmmov %vm20795_vm11  ;;  %11694 = vrot.lane.b32.xlu2 %v16887_v30, %s19825_s16  ;;  %v19257_v41 = vunpack.i.l.bf16 %v17578_v2 }
 0x5c9   : > { %8501 = vmatpush.msrb.mxu1 %v4754_v55  ;;  %8541 = vmatpush.msrb.mxu0 %v4755_v5  ;;  %v4695_v57 = vsel %vm20796_vm13, %v10662_v29, %v10666_v0  ;;  %v17585_v55 = vpop.permute.xlu1 %11494  ;;  %v19256_v62 = vunpack.i.l.bf16 %v17408_v35  ;;  %vm20798_vm7 = vcmask 80896   ;;  %v19260_v10 = vunpack.i.h.bf16 %v17519_v39  ;;  %vm20806_vm11 = vmmov %vm20797_vm14 }
 0x5ca   : > { %v19258_v32 = vunpack.i.h.bf16 %v17585_v55  ;;  %v17596_v0 = vsel %vm20797_vm14, %v19261_v50, %v19257_v41  ;;  %11714 = vrot.lane.b32.xlu0 %v16887_v30, %s19808_s13  ;;  %vm20801_vm8 = vmmov %vm20798_vm7  ;;  %v19271_v18 = vunpack.i.l.bf16 %v17550_v61  ;;  %vm20808_vm13 = vcmask 7168  }
 0x5cb   : > { %8502 = vmatpush.msrb.mxu1 %v4694_v21  ;;  %8542 = vmatpush.msrb.mxu0 %v4695_v57  ;;  %vm20810_vm14 = vmmov %vm20806_vm11 }
 0x5cc   : > { %8503 = vmatmul.f32.vlgmr.msrb.gmra.mxu1 %v17224_v37  ;;  %8543 = vmatmul.f32.vlgmr.msrb.gmra.mxu0 %v17224_v37  ;;  %v17605_v5 = vsel %vm20798_vm7, %v19258_v32, %v19256_v62  ;;  %v17609_v29 = vpop.permute.xlu2 %11544  ;;  %vm20812_vm7 = vcmask 1039360  }
 0x5cd   : > { %11689 = vrot.lane.b32.xlu1 %v16887_v30, %s20264_s27  ;;  %20799 = vst [vmem:[#allocation51_spill] sm:$0xff] %v17609_v29  ;;  %v19270_v32 = vunpack.i.h.bf16 %v17609_v29 }
 0x5cf   : > { %v17613_v53 = vpop.permute.xlu0 %11534 }
 0x5d0   : > { %11709 = vrot.lane.b32.xlu2 %v16887_v30, %s19817_s28 }
 0x5d1   : > { %v17615_v25 = vpop.permute.xlu1 %11509 }
 0x5d2   : > { %20800 = vst [vmem:[#allocation114_spill] sm:$0xff] %v17615_v25  ;;  %v19259_v44 = vunpack.i.l.bf16 %v17615_v25  ;;  %11729 = vrot.lane.b32.xlu0 %v17182_v40, %s20264_s27 }
 0x5d4   : > { %v17628_v21 = vsel %vm20801_vm8, %v19260_v10, %v19259_v44  ;;  %v17630_v57 = vpop.permute.xlu2 %11559  ;;  %vm20814_vm8 = vmmov %vm20808_vm13 }
 0x5d5   : > { %11704 = vrot.lane.b32.xlu1 %v16887_v30, %s19818_s26  ;;  %20802 = vst [vmem:[#allocation115_spill] sm:$0xff] %v17628_v21  ;;  %v20805_v21 = vunpack.i.h.bf16 %v17578_v2 }
 0x5d7   : > { %v17637_v62 = vpop.permute.xlu0 %11549 }
 0x5d8   : > { %11724 = vrot.lane.b32.xlu2 %v17182_v40, %s20291_s24  ;;  %20803 = vst [vmem:[#allocation76_spill] sm:$0xff] %v17637_v62  ;;  %v19269_v44 = vunpack.i.l.bf16 %v17637_v62 }
 0x5d9   : > { %v17639_v41 = vpop.permute.xlu1 %11524 }
 0x5da   : > { %11744 = vrot.lane.b32.xlu0 %v17182_v40, %s19820_s19  ;;  %20804 = vst [vmem:[#allocation95_spill] sm:$0xff] %v17639_v41  ;;  %v19272_v10 = vunpack.i.h.bf16 %v17639_v41  ;;  %v19266_v50 = vunpack.i.l.bf16 %v17639_v41  ;;  %v19289_v41 = vunpack.i.l.bf16 %v17630_v57 }
 0x5dc   : > { %v17653_v25 = vsel %vm20806_vm11, %v20805_v21, %v19266_v50  ;;  %v17667_v3 = vsel %vm20810_vm14, %v19272_v10, %v19271_v18  ;;  %v11575_v17 = vpop.permute.xlu2 %11574  ;;  %v11017_v21 = vunpack.i.h.bf16 %v20705_v33  ;;  %v19279_v10 = vunpack.i.h.bf16 %v17630_v57  ;;  %vm20815_vm11 = vmmov %vm20814_vm8 }
 0x5dd   : > { %11719 = vrot.lane.b32.xlu1 %v16887_v30, %s19791_s2  ;;  %20807 = vst [vmem:[#allocation103_spill] sm:$0xff] %v17653_v25  ;;  %v17660_v30 = vsel %vm20808_vm13, %v19270_v32, %v19269_v44  ;;  %v11577_v50 = vunpack.i.h.bf16 %v11575_v17  ;;  %v11576_v62 = vunpack.i.l.bf16 %v11575_v17  ;;  %v19280_v17 = vunpack.i.l.bf16 %v17609_v29  ;;  %vm20817_vm13 = vmmov %vm20812_vm7 }
 0x5de   : > { %20809 = vst [vmem:[#allocation85_spill] sm:$0xff] %v17660_v30  ;;  %v11537_v30 = vunpack.i.h.bf16 %v17613_v53  ;;  %v10992_v25 = vunpack.i.h.bf16 %v20712_v48  ;;  %vm20818_vm14 = vmmov %vm20812_vm7 }
 0x5df   : > { %20811 = vst [vmem:[#allocation98_spill] sm:$0xff] %v17667_v3  ;;  %v7120_v44 = vsel %vm1210_vm12, %v11017_v21, %v11576_v62  ;;  %v7121_v32 = vsel %vm1210_vm12, %v11576_v62, %v11577_v50  ;;  %v17678_v18 = vpop.permute.xlu0 %11564 }
 0x5e0   : > { %11739 = vrot.lane.b32.xlu2 %v17083_v7, %s20291_s24  ;;  %8567 = vmatpush.msra.mxu3 %v7120_v44  ;;  %v19277_v33 = vunpack.i.l.bf16 %v17678_v18 }
 0x5e1   : > { %8607 = vmatpush.msra.mxu2 %v7121_v32  ;;  %v17682_v3 = vpop.permute.xlu1 %11539 }
 0x5e2   : > { %11759 = vrot.lane.b32.xlu0 %v17083_v7, %s19825_s16  ;;  %v19281_v21 = vunpack.i.h.bf16 %v17682_v3  ;;  %v19278_v62 = vunpack.i.l.bf16 %v17682_v3  ;;  %v17695_v32 = vsel %vm20812_vm7, %v19279_v10, %v19277_v33 }
 0x5e3   : > { %20813 = vst [vmem:[#allocation105_spill] sm:$0xff] %v17695_v32  ;;  %v11536_v32 = vunpack.i.l.bf16 %v17613_v53  ;;  %v11516_v53 = vunpack.i.l.bf16 %v17470_v23 }
 0x5e4   : > { %v17700_v44 = vsel %vm20814_vm8, %v11537_v30, %v19278_v62  ;;  %v17707_v61 = vsel %vm20815_vm11, %v19281_v21, %v19280_v17  ;;  %v17709_v39 = vpop.permute.xlu2 %11589  ;;  %vm20819_vm11 = vmmov %vm20814_vm8 }
 0x5e5   : > { %11734 = vrot.lane.b32.xlu1 %v17182_v40, %s19825_s16  ;;  %20816 = vst [vmem:[#allocation80_spill] sm:$0xff] %v17707_v61 }
 0x5e7   : > { %v17715_v33 = vpop.permute.xlu0 %11579 }
 0x5e8   : > { %11754 = vrot.lane.b32.xlu2 %v17182_v40, %s19818_s26  ;;  %v19286_v62 = vunpack.i.l.bf16 %v17715_v33 }
 0x5e9   : > { %v11555_v10 = vpop.permute.xlu1 %11554 }
 0x5ea   : > { %11774 = vrot.lane.b32.xlu0 %v17182_v40, %s19808_s13  ;;  %v11557_v17 = vunpack.i.h.bf16 %v11555_v10  ;;  %v11556_v21 = vunpack.i.l.bf16 %v11555_v10  ;;  %v17727_v29 = vsel %vm1210_vm12, %v11577_v50, %v19286_v62  ;;  %v10967_v50 = vunpack.i.h.bf16 %v20719_v27  ;;  %v7008_v62 = vld [vmem:[#allocation3 + $0x10] sm:$0xff] }
 0x5eb   : > { %v10917_v27 = vunpack.i.h.bf16 %v20730_v52 }
 0x5ec   : > { %v7060_v1 = vsel %vm20817_vm13, %v10992_v25, %v11556_v21  ;;  %v7061_v48 = vsel %vm20818_vm14, %v11556_v21, %v11557_v17  ;;  %v17739_v10 = vsel %vm20812_vm7, %v11557_v17, %v19289_v41  ;;  %v10942_v25 = vunpack.i.h.bf16 %v20721_v38 }
 0x5ed   : > { %11749 = vrot.lane.b32.xlu1 %v17083_v7, %s20264_s27  ;;  %8568 = vmatpush.msra.mxu3 %v7060_v1  ;;  %v11496_v21 = vunpack.i.l.bf16 %v17585_v55  ;;  %v6984_v1 = vsel %vm20814_vm8, %v10967_v50, %v11536_v32  ;;  %v6985_v17 = vsel %vm20819_vm11, %v11536_v32, %v11537_v30  ;;  %vm20820_vm13 = vcmask 72704   ;;  %s8965_s27 = scalar_lea.hbm %s18660_s6, %s9370_s22 }
 0x5ee   : > { %8608 = vmatpush.msra.mxu2 %v7061_v48  ;;  %v11476_v48 = vunpack.i.l.bf16 %v17410_v63  ;;  %v6924_v38 = vsel %vm20820_vm13, %v10942_v25, %v11516_v53  ;;  %v20821_v30 = vunpack.i.h.bf16 %v17470_v23  ;;  %vm20822_vm14 = vmmov %vm20820_vm13  ;;  %v10892_v32 = vunpack.i.h.bf16 %v20731_v20  ;;  %s8968_s5 = sshll.u32 %s8965_s27, 4  ;;  %s8969_s5 = int_to_ptr.hbm [resolvable:$true] %s8968_s5 }
 0x5ef   : > { %8569 = vmatpush.msra.mxu3 %v7008_v62  ;;  %v17751_v41 = vpop.permute.xlu0 %11594  ;;  %vm20823_vm7 = vcmask 80896   ;;  %vm20826_vm11 = vcmask 1039360   ;;  %vm20827_vm13 = vcmask 89088   ;;  %s11925_s11 = sshra.s32 %s8969_s5, 4  ;;  %s11926_s11 = int_to_ptr.hbm [resolvable:$true] %s11925_s11 }
 0x5f0   : > { %11769 = vrot.lane.b32.xlu2 %v17083_v7, %s19820_s19  ;;  %8609 = vmatpush.msra.mxu2 %v7009_v24  ;;  %v19297_v24 = vunpack.i.h.bf16 %v17678_v18  ;;  %v6925_v52 = vsel %vm20822_vm14, %v11516_v53, %v20821_v30  ;;  %v6864_v25 = vsel %vm20823_vm7, %v10917_v27, %v11496_v21  ;;  %vm20825_vm8 = vmmov %vm20823_vm7  ;;  %v10867_v53 = vunpack.i.h.bf16 %v20737_v19  ;;  %s11927_s16 = scalar_lea.hbm %s11926_s11, 128  ;;  %p11932_p0 = scmp.lt.s32.totalorder %s11926_s11, %s18660_s6 }
 0x5f1   : > { %8570 = vmatpush.msra.mxu3 %v6984_v1  ;;  %v11456_v1 = vunpack.i.l.bf16 %v17222_v58  ;;  %v6804_v27 = vsel %vm20827_vm13, %v10892_v32, %v11476_v48  ;;  %v20828_v30 = vunpack.i.h.bf16 %v17410_v63  ;;  %vm20829_vm14 = vmmov %vm20827_vm13  ;;  %vm20830_vm7 = vcmask 728064   ;;  %p11928_p4 = scmp.ne.s32.totalorder %s11926_s11, %s11927_s16 }
 0x5f2   : > { %v17722_v61 = vpop.permute.xlu2 %11604  ;;  %11789 = vrot.lane.b32.xlu0 %v17083_v7, %s19817_s28  ;;  %8610 = vmatpush.msra.mxu2 %v6985_v17  ;;  %v20824_v17 = vunpack.i.h.bf16 %v17585_v55  ;;  %v20831_v19 = vunpack.i.h.bf16 %v17222_v58  ;;  %v11396_v63 = vunpack.i.l.bf16 %v16905_v22 }
 0x5f3   : > { %8571 = vmatpush.msra.mxu3 %v6924_v38  ;;  %v11436_v38 = vunpack.i.l.bf16 %v17362_v26  ;;  %v6805_v55 = vsel %vm20829_vm14, %v11476_v48, %v20828_v30  ;;  %v10792_v48 = vunpack.i.h.bf16 %v20751_v13  ;;  %vm20837_vm14 = vcmask 744448   ;;  %p11929_p6 = pnand %p11928_p4, %p12103_p11 }
 0x5f4   : > { %8611 = vmatpush.msra.mxu2 %v6925_v52  ;;  %v6865_v23 = vsel %vm20825_vm8, %v11496_v21, %v20824_v17  ;;  %v10842_v21 = vunpack.i.h.bf16 %v20742_v4  ;;  %v11416_v52 = vunpack.i.l.bf16 %v17184_v16  ;;  %vm20832_vm8 = vmmov %vm20830_vm7  ;;  %v10817_v17 = vunpack.i.h.bf16 %v20746_v12 }
 0x5f5   : > { %11764 = vrot.lane.b32.xlu1 %v17182_v40, %s19817_s28  ;;  %v17753_v62 = vpop.permute.xlu1 %11569  ;;  %8572 = vmatpush.msra.mxu3 %v6864_v25  ;;  %v6744_v25 = vsel %vm20830_vm7, %v10867_v53, %v11456_v1  ;;  %v6745_v32 = vsel %vm20832_vm8, %v11456_v1, %v20831_v19  ;;  %v19292_v1 = vunpack.i.l.bf16 %v17709_v39  ;;  %v19304_v12 = vunpack.i.h.bf16 %v17715_v33  ;;  %vm20839_vm7 = vmmov %vm20837_vm14  ;;  %p11930_p13 = pneg %p11929_p6 }
 0x5f6   : > { %v19291_v36 = vunpack.i.l.bf16 %v17753_v62  ;;  %8612 = vmatpush.msra.mxu2 %v6865_v23  ;;  %v11376_v23 = vunpack.i.l.bf16 %v17119_v51  ;;  %v6624_v13 = vsel %vm20837_vm14, %v10817_v17, %v11416_v52  ;;  %v11356_v17 = vunpack.i.l.bf16 %v16822_v54 }
 0x5f7   : > { %8573 = vmatpush.msra.mxu3 %v6804_v27  ;;  %v17806_v27 = vpop.permute.xlu0 %11609  ;;  %vm20840_vm8 = vcmask 809984  }
 0x5f8   : > { %11784 = vrot.lane.b32.xlu2 %v17182_v40, %s19791_s2  ;;  %v17778_v20 = vsel %vm20826_vm11, %v19297_v24, %v19291_v36  ;;  %8613 = vmatpush.msra.mxu2 %v6805_v55  ;;  %vm20833_vm11 = vcmask 736256   ;;  %20836 = vst [vmem:[#allocation45_spill] sm:$0xff] %v17806_v27  ;;  %v20838_v55 = vunpack.i.h.bf16 %v17184_v16  ;;  %v6564_v16 = vsel %vm20840_vm8, %v10792_v48, %v11396_v63 }
 0x5f9   : > { %8574 = vmatpush.msra.mxu3 %v6744_v25  ;;  %v6684_v4 = vsel %vm20833_vm11, %v10842_v21, %v11436_v38  ;;  %vm20835_vm13 = vmmov %vm20833_vm11  ;;  %v19294_v25 = vunpack.i.h.bf16 %v17722_v61 }
 0x5fa   : > { %v17757_v50 = vpop.permute.xlu2 %11619  ;;  %11804 = vrot.lane.b32.xlu0 %v17083_v7, %s19791_s2  ;;  %8614 = vmatpush.msra.mxu2 %v6745_v32  ;;  %v6625_v21 = vsel %vm20839_vm7, %v11416_v52, %v20838_v55  ;;  %v10767_v32 = vunpack.i.h.bf16 %v20767_v49  ;;  %v8238_v52 = vld [vmem:[%s18658_s4] sm:$0xff]  ;;  %vm20842_vm11 = vmmov %vm20840_vm8  ;;  %vm20848_vm7 = vcmask 826368  }
 0x5fb   : > { %8575 = vmatpush.msra.mxu3 %v6684_v4  ;;  %vm20850_vm8 = vmmov %vm20848_vm7 }
 0x5fd   : > { %11779 = vrot.lane.b32.xlu1 %v17083_v7, %s19818_s26  ;;  %8576 = vmatpush.msra.mxu3 %v6624_v13  ;;  %v7272_v13 = vld [vmem:[#allocation3 + $0x50] sm:$0xff]  ;;  %s11931_s26 = scalar_lea.hbm %s18660_s6, 256 }
 0x5fe   : > { %p11933_p7 = scmp.lt.s32.totalorder %s11931_s26, %s11927_s16 }
 0x5ff   : > { %8577 = vmatpush.msra.mxu3 %v6564_v16 }
 0x600   : > { %11799 = vrot.lane.b32.xlu2 %v17083_v7, %s19808_s13  ;;  %v20834_v7 = vunpack.i.h.bf16 %v17362_v26  ;;  %v19290_v26 = vunpack.i.l.bf16 %v17806_v27  ;;  %p11934_p5 = por %p11933_p7, %p11932_p0 }
 0x602   : > { %v17799_v53 = vpop.permute.xlu2 %11634  ;;  %v6685_v58 = vsel %vm20835_vm13, %v11436_v38, %v20834_v7  ;;  %v11336_v7 = vunpack.i.l.bf16 %v16553_v47  ;;  %vm20845_vm13 = vcmask 818176   ;;  %p11935_p8 = pnand %p11934_p5, %p11930_p13 }
 0x603   : > { %v17808_v30 = vpop.permute.xlu1 %11584  ;;  %8615 = vmatpush.msra.mxu2 %v6685_v58  ;;  %v17852_v58 = vld [vmem:[#allocation3 + $0x78] sm:$0xff]  ;;  %v6504_v55 = vsel %vm20845_vm13, %v10767_v32, %v11376_v23  ;;  %vm20847_vm14 = vmmov %vm20845_vm13  ;;  %v20849_v32 = vunpack.i.h.bf16 %v16822_v54  ;;  %v20852_v54 = vunpack.i.h.bf16 %v16553_v47 }
 0x604   : > { %v19301_v38 = vunpack.i.h.bf16 %v17808_v30  ;;  %v19298_v19 = vunpack.i.l.bf16 %v17808_v30  ;;  %20844 = vst [vmem:[#allocation99_spill] sm:$0xff] %v17852_v58  ;;  %8578 = vmatpush.msra.mxu3 %v6504_v55  ;;  %v11808_v36 = vpack.i.bf16 %v7272_v13, %v17852_v58  ;;  %v11067_v58 = vunpack.i.h.bf16 %v20680_v60 }
 0x605   : > { %11794 = vrot.lane.b32.xlu1 %v17182_v40, %s19761_s29  ;;  %8616 = vmatpush.msra.mxu2 %v6625_v21  ;;  %v20841_v40 = vunpack.i.h.bf16 %v16905_v22  ;;  %v17848_v22 = vsel %vm1271_vm4, %v19294_v25, %v19290_v26  ;;  %v20846_v21 = vunpack.i.h.bf16 %v17119_v51  ;;  %v11316_v26 = vunpack.i.l.bf16 %v16742_v31 }
 0x606   : > { %v17834_v49 = vsel %vm1210_vm12, %v19304_v12, %v19298_v19  ;;  %v17841_v48 = vsel %vm1210_vm12, %v19301_v38, %v19292_v1  ;;  %20843 = vst [vmem:[#allocation87_spill] sm:$0xff] %v17848_v22  ;;  %v10692_v51 = vunpack.i.h.bf16 %v20786_v56  ;;  %v19303_v56 = vunpack.i.h.bf16 %v17757_v50 }
 0x607   : > { %v6565_v4 = vsel %vm20842_vm11, %v11396_v63, %v20841_v40  ;;  %v10742_v63 = vunpack.i.h.bf16 %v20768_v6  ;;  %v6505_v16 = vsel %vm20847_vm14, %v11376_v23, %v20846_v21  ;;  %v10717_v40 = vunpack.i.h.bf16 %v20773_v46 }
 0x608   : > { %8617 = vmatpush.msra.mxu2 %v6565_v4  ;;  %8241 = vperm.xlu2 %11813, %v8238_v52   ;;  %v6445_v4 = vsel %vm20850_vm8, %v11356_v17, %v20849_v32  ;;  %v11296_v23 = vunpack.i.l.bf16 %v16498_v9  ;;  %vm20851_vm11 = vcmask 891904   ;;  %v10667_v52 = vunpack.i.h.bf16 %v20785_v59 }
 0x609   : > { %v6444_v6 = vsel %vm20848_vm7, %v10742_v63, %v11356_v17  ;;  %v6384_v46 = vsel %vm20851_vm11, %v10717_v40, %v11336_v7  ;;  %vm20853_vm13 = vmmov %vm20851_vm11  ;;  %vm20854_vm14 = vcmask 900096   ;;  %vm20857_vm8 = vcmask 908288  }
 0x60a   : > { %8618 = vmatpush.msra.mxu2 %v6505_v16  ;;  %v17862_v1 = vpop.permute.xlu2 %11649  ;;  %8579 = vmatpush.msra.mxu3 %v6444_v6  ;;  %v6385_v17 = vsel %vm20853_vm13, %v11336_v7, %v20852_v54  ;;  %v6324_v59 = vsel %vm20854_vm14, %v10692_v51, %v11316_v26  ;;  %v20855_v16 = vunpack.i.h.bf16 %v16742_v31  ;;  %vm20856_vm7 = vmmov %vm20854_vm14  ;;  %v6264_v47 = vsel %vm20857_vm8, %v10667_v52, %v11296_v23 }
 0x60b   : > { %v20858_v6 = vunpack.i.h.bf16 %v16498_v9  ;;  %vm20859_vm11 = vmmov %vm20857_vm8  ;;  %vm20872_vm13 = vcmask 310272   ;;  %vm20888_vm8 = vcmask 7168  }
 0x60c   : > { %8619 = vmatpush.msra.mxu2 %v6445_v4  ;;  %v17872_v63 = vpop.permute.xlu0 %11624  ;;  %v17874_v13 = vpop.permute.xlu1 %11599  ;;  %8580 = vmatpush.msra.mxu3 %v6384_v46  ;;  %v6325_v40 = vsel %vm20856_vm7, %v11316_v26, %v20855_v16  ;;  %vm20874_vm14 = vmmov %vm20872_vm13  ;;  %vm20884_vm7 = vcmask 1039360  }
 0x60d   : > { %11809 = vrot.lane.b32.xlu1 %v11808_v36, %s19761_s29  ;;  %v19295_v55 = vunpack.i.l.bf16 %v17872_v63  ;;  %v19302_v21 = vunpack.i.h.bf16 %v17874_v13  ;;  %v19293_v36 = vunpack.i.l.bf16 %v17722_v61  ;;  %v6265_v32 = vsel %vm20859_vm11, %v11296_v23, %v20858_v6 }
 0x60e   : > { %8620 = vmatpush.msra.mxu2 %v6385_v17  ;;  %8581 = vmatpush.msra.mxu3 %v6324_v59  ;;  %v11292_v6 = vunpack.i.h.bf16 %v20618_v14  ;;  %vm20890_vm11 = vcmask 719872  }
 0x60f   : > { %v17893_v7 = vsel %vm1332_vm10, %v19303_v56, %v19295_v55  ;;  %v17903_v31 = vsel %vm1271_vm4, %v19302_v21, %v19293_v36  ;;  %v11651_v36 = vunpack.i.l.bf16 %v17862_v1  ;;  %v20863_v56 = vld [vmem:[#allocation108_spill] sm:$0xff] }
 0x610   : > { %8621 = vmatpush.msra.mxu2 %v6325_v40  ;;  %8582 = vmatpush.msra.mxu3 %v6264_v47  ;;  %v11242_v12 = vunpack.i.h.bf16 %v20863_v56 }
 0x611   : > { %8583 = vmatmul.f32.vlgmr.msra.gmra.mxu3 %v17224_v37 }
 0x612   : > { %8622 = vmatpush.msra.mxu2 %v6265_v32  ;;  %v17906_v26 = vpop.permute.xlu2 %11664 }
 0x613   : > { %8623 = vmatmul.f32.vlgmr.msra.gmra.mxu2 %v17224_v37  ;;  %v19300_v37 = vunpack.i.h.bf16 %v17872_v63 }
 0x614   : > { %v17909_v4 = vpop.permute.xlu0 %11639 }
 0x615   : > { %v17911_v51 = vpop.permute.xlu1 %11614 }
 0x61a   : > { %v17913_v9 = vpop.permute.xlu2 %11679 }
 0x61b   : > { %v19296_v23 = vunpack.i.h.bf16 %v17913_v9  ;;  %v11681_v46 = vunpack.i.l.bf16 %v17913_v9 }
 0x61c   : > { %v17917_v52 = vpop.permute.xlu0 %11654 }
 0x61d   : > { %v7783_v54 = vsel %vm1881_vm15, %v11681_v46, %v19296_v23  ;;  %v17922_v17 = vpop.permute.xlu1 %11629  ;;  %v20862_v23 = vld [vmem:[#allocation107_spill] sm:$0xff]  ;;  %v19305_v19 = vunpack.i.h.bf16 %v17917_v52 }
 0x61e   : > { %20860 = vst [vmem:[#allocation100_spill] sm:$0xff] %v17922_v17  ;;  %8712 = vmatpush.msrb.mxu2 %v7783_v54  ;;  %v19299_v59 = vunpack.i.l.bf16 %v17922_v17  ;;  %v19306_v54 = vunpack.i.h.bf16 %v17862_v1  ;;  %v11267_v24 = vunpack.i.h.bf16 %v20862_v23 }
 0x620   : > { %v17931_v16 = vsel %vm1332_vm10, %v19300_v37, %v19299_v59  ;;  %v11656_v59 = vunpack.i.l.bf16 %v17917_v52  ;;  %v7721_v23 = vsel %vm1820_vm0, %v11651_v36, %v19306_v54 }
 0x621   : > { %20861 = vst [vmem:[#allocation24_spill] sm:$0xff] %v17931_v16 }
 0x622   : > { %v17933_v40 = vpop.permute.xlu2 %11694 }
 0x624   : > { %v17935_v47 = vpop.permute.xlu0 %11669 }
 0x625   : > { %v11645_v32 = vpop.permute.xlu1 %11644  ;;  %v20868_v22 = vunpack.i.h.bf16 %v17935_v47 }
 0x626   : > { %v11647_v25 = vunpack.i.h.bf16 %v11645_v32  ;;  %v11646_v55 = vunpack.i.l.bf16 %v11645_v32  ;;  %v7720_v32 = vsel %vm1820_vm0, %v11267_v24, %v11651_v36 }
 0x628   : > { %v7780_v37 = vsel %vm1881_vm15, %v11292_v6, %v11646_v55  ;;  %v7781_v38 = vsel %vm1881_vm15, %v11646_v55, %v11647_v25  ;;  %v7782_v21 = vsel %vm1881_vm15, %v11647_v25, %v11681_v46  ;;  %v7660_v55 = vsel %vm1759_vm1, %v11242_v12, %v11656_v59 }
 0x629   : > { %8592 = vmatpush.msra.mxu1 %v7780_v37  ;;  %8632 = vmatpush.msra.mxu0 %v7781_v38  ;;  %v7661_v25 = vsel %vm1759_vm1, %v11656_v59, %v19305_v19  ;;  %v20864_v38 = vld [vmem:[#allocation59_spill] sm:$0xff]  ;;  %v11671_v59 = vunpack.i.l.bf16 %v17935_v47  ;;  %v20866_v19 = vld [vmem:[#allocation53_spill] sm:$0xff] }
 0x62a   : > { %v17946_v14 = vpop.permute.xlu2 %11709  ;;  %8672 = vmatpush.msrb.mxu3 %v7782_v21  ;;  %v11217_v46 = vunpack.i.h.bf16 %v20864_v38  ;;  %v11666_v21 = vunpack.i.l.bf16 %v17906_v26  ;;  %v11167_v54 = vunpack.i.h.bf16 %v20866_v19 }
 0x62b   : > { %8593 = vmatpush.msra.mxu1 %v7720_v32  ;;  %8633 = vmatpush.msra.mxu0 %v7721_v23  ;;  %v20865_v32 = vld [vmem:[#allocation65_spill] sm:$0xff] }
 0x62c   : > { %v17953_v6 = vpop.permute.xlu0 %11684  ;;  %v11192_v12 = vunpack.i.h.bf16 %v20865_v32  ;;  %v20867_v32 = vunpack.i.h.bf16 %v17906_v26 }
 0x62d   : > { %v17960_v56 = vpop.permute.xlu1 %11659  ;;  %8594 = vmatpush.msra.mxu1 %v7660_v55  ;;  %8634 = vmatpush.msra.mxu0 %v7661_v25  ;;  %v20873_v17 = vunpack.i.h.bf16 %v17953_v6 }
 0x62e   : > { %v19307_v36 = vunpack.i.h.bf16 %v17960_v56  ;;  %v11661_v37 = vunpack.i.l.bf16 %v17960_v56  ;;  %v7540_v24 = vsel %vm1637_vm5, %v11192_v12, %v11666_v21  ;;  %v7541_v23 = vsel %vm1637_vm5, %v11666_v21, %v20867_v32  ;;  %v20870_v12 = vld [vmem:[#allocation52_spill] sm:$0xff] }
 0x62f   : > { %v11686_v21 = vunpack.i.l.bf16 %v17953_v6 }
 0x630   : > { %v7600_v38 = vsel %vm1698_vm3, %v11217_v46, %v11661_v37  ;;  %v7601_v55 = vsel %vm1698_vm3, %v11661_v37, %v19307_v36  ;;  %v7480_v46 = vsel %vm1576_vm2, %v11167_v54, %v11671_v59  ;;  %v7481_v37 = vsel %vm1576_vm2, %v11671_v59, %v20868_v22 }
 0x631   : > { %8595 = vmatpush.msra.mxu1 %v7600_v38  ;;  %8635 = vmatpush.msra.mxu0 %v7601_v55  ;;  %v20869_v38 = vld [vmem:[#allocation64_spill] sm:$0xff]  ;;  %v11636_v59 = vunpack.i.l.bf16 %v17799_v53 }
 0x632   : > { %v17973_v25 = vpop.permute.xlu2 %11724  ;;  %v11142_v55 = vunpack.i.h.bf16 %v20869_v38 }
 0x633   : > { %8596 = vmatpush.msra.mxu1 %v7540_v24  ;;  %8636 = vmatpush.msra.mxu0 %v7541_v23  ;;  %v11117_v23 = vunpack.i.h.bf16 %v20870_v12  ;;  %v11616_v12 = vunpack.i.l.bf16 %v17911_v51 }
 0x634   : > { %v17985_v36 = vpop.permute.xlu0 %11699 }
 0x635   : > { %v17987_v16 = vpop.permute.xlu1 %11674  ;;  %8597 = vmatpush.msra.mxu1 %v7480_v46  ;;  %8637 = vmatpush.msra.mxu0 %v7481_v37  ;;  %v20871_v37 = vld [vmem:[#allocation28_spill] sm:$0xff]  ;;  %v7360_v22 = vsel %vm20872_vm13, %v11117_v23, %v11686_v21  ;;  %v11042_v23 = vunpack.i.h.bf16 %v20678_v11  ;;  %vm20891_vm13 = vmmov %vm20890_vm11 }
 0x636   : > { %v19313_v24 = vunpack.i.h.bf16 %v17987_v16  ;;  %v11676_v54 = vunpack.i.l.bf16 %v17987_v16  ;;  %v11092_v38 = vunpack.i.h.bf16 %v20871_v37  ;;  %v20875_v37 = vunpack.i.h.bf16 %v17799_v53 }
 0x638   : > { %v7420_v32 = vsel %vm1515_vm6, %v11142_v55, %v11676_v54  ;;  %v7421_v46 = vsel %vm1515_vm6, %v11676_v54, %v19313_v24  ;;  %v7361_v55 = vsel %vm20874_vm14, %v11686_v21, %v20873_v17  ;;  %v11597_v54 = vunpack.i.h.bf16 %v17751_v41 }
 0x639   : > { %8598 = vmatpush.msra.mxu1 %v7420_v32  ;;  %8638 = vmatpush.msra.mxu0 %v7421_v46  ;;  %v11596_v32 = vunpack.i.l.bf16 %v17751_v41  ;;  %v7300_v46 = vsel %vm1393_vm9, %v11092_v38, %v11636_v59  ;;  %v7301_v24 = vsel %vm1393_vm9, %v11636_v59, %v20875_v37  ;;  %v7240_v21 = vsel %vm1332_vm10, %v11067_v58, %v11616_v12 }
 0x63a   : > { %v18001_v19 = vpop.permute.xlu2 %11739  ;;  %v11696_v59 = vunpack.i.l.bf16 %v17933_v40  ;;  %v20877_v58 = vunpack.i.h.bf16 %v17862_v1  ;;  %v20879_v1 = vunpack.i.l.bf16 %v17715_v33  ;;  %vm20894_vm14 = vcmask 72704  }
 0x63b   : > { %8599 = vmatpush.msra.mxu1 %v7360_v22  ;;  %8639 = vmatpush.msra.mxu0 %v7361_v55  ;;  %v20876_v22 = vunpack.i.h.bf16 %v17911_v51  ;;  %v7180_v11 = vsel %vm1271_vm4, %v11042_v23, %v11596_v32  ;;  %v11701_v55 = vunpack.i.l.bf16 %v17985_v36  ;;  %v20931_v41 = vunpack.i.l.bf16 %v17808_v30 }
 0x63c   : > { %v18027_v37 = vpop.permute.xlu0 %11714 }
 0x63d   : > { %8600 = vmatpush.msra.mxu1 %v7300_v46  ;;  %8640 = vmatpush.msra.mxu0 %v7301_v24  ;;  %v7241_v38 = vsel %vm1332_vm10, %v11616_v12, %v20876_v22  ;;  %v7181_v24 = vsel %vm1271_vm4, %v11596_v32, %v11597_v54  ;;  %v11702_v22 = vunpack.i.h.bf16 %v17985_v36  ;;  %v20878_v32 = vunpack.i.h.bf16 %v17715_v33 }
 0x63f   : > { %v18017_v27 = vpop.permute.xlu1 %11689  ;;  %8601 = vmatpush.msra.mxu1 %v7240_v21  ;;  %8641 = vmatpush.msra.mxu0 %v7241_v38  ;;  %v7123_v23 = vsel %vm1210_vm12, %v20879_v1, %v20878_v32 }
 0x640   : > { %v11692_v60 = vunpack.i.h.bf16 %v18017_v27  ;;  %v11691_v17 = vunpack.i.l.bf16 %v18017_v27 }
 0x641   : > { %8602 = vmatpush.msra.mxu1 %v7180_v11  ;;  %8642 = vmatpush.msra.mxu0 %v7181_v24  ;;  %v20881_v11 = vunpack.i.h.bf16 %v17933_v40 }
 0x642   : > { %v7722_v46 = vsel %vm1820_vm0, %v20877_v58, %v11691_v17  ;;  %v7723_v12 = vsel %vm1820_vm0, %v11691_v17, %v11692_v60  ;;  %v18041_v21 = vpop.permute.xlu2 %11754  ;;  %v20880_v17 = vunpack.i.h.bf16 %v17917_v52  ;;  %v20882_v58 = vunpack.i.h.bf16 %v17630_v57 }
 0x643   : > { %8673 = vmatpush.msrb.mxu3 %v7722_v46  ;;  %8713 = vmatpush.msrb.mxu2 %v7723_v12  ;;  %v7663_v24 = vsel %vm1759_vm1, %v11696_v59, %v20881_v11  ;;  %v20883_v46 = vunpack.i.l.bf16 %v17630_v57  ;;  %v20885_v52 = vunpack.i.h.bf16 %v17960_v56  ;;  %v7010_v57 = vld [vmem:[#allocation3 + $0x30] sm:$0xff]  ;;  %v20886_v56 = vunpack.i.h.bf16 %v17682_v3 }
 0x644   : > { %8647 = vmatpush.msrb.mxu1 %v17727_v29  ;;  %8687 = vmatpush.msrb.mxu0 %v7123_v23  ;;  %v7662_v38 = vsel %vm1759_vm1, %v20880_v17, %v11696_v59  ;;  %v7603_v59 = vsel %vm1698_vm3, %v11701_v55, %v11702_v22  ;;  %v7011_v23 = vld [vmem:[#allocation3 + $0x58] sm:$0xff]  ;;  %v11711_v17 = vunpack.i.l.bf16 %v17946_v14  ;;  %v20889_v11 = vunpack.i.h.bf16 %v17906_v26 }
 0x645   : > { %8674 = vmatpush.msrb.mxu3 %v7662_v38  ;;  %8714 = vmatpush.msrb.mxu2 %v7663_v24  ;;  %v7063_v33 = vsel %vm20884_vm7, %v20883_v46, %v20882_v58  ;;  %v7602_v12 = vsel %vm1698_vm3, %v20885_v52, %v11701_v55  ;;  %v20887_v38 = vunpack.i.l.bf16 %v17682_v3  ;;  %v18084_v46 = vld [vmem:[#allocation7 + $0x8] sm:$0xff]  ;;  %v11717_v3 = vunpack.i.h.bf16 %v18027_v37  ;;  %v18092_v52 = vpop.permute.xlu0 %11729 }
 0x646   : > { %8648 = vmatpush.msrb.mxu1 %v17739_v10  ;;  %8688 = vmatpush.msrb.mxu0 %v7063_v33  ;;  %v11712_v10 = vunpack.i.h.bf16 %v17946_v14  ;;  %v11716_v33 = vunpack.i.l.bf16 %v18027_v37  ;;  %vm20898_vm7 = vcmask 80896  }
 0x647   : > { %v18061_v29 = vpop.permute.xlu1 %11704  ;;  %8675 = vmatpush.msrb.mxu3 %v7602_v12  ;;  %8715 = vmatpush.msrb.mxu2 %v7603_v59  ;;  %v6987_v55 = vsel %vm20888_vm8, %v20887_v38, %v20886_v56  ;;  %v20892_v12 = vunpack.i.h.bf16 %v17578_v2  ;;  %v20893_v59 = vunpack.i.l.bf16 %v17578_v2  ;;  %v20896_v56 = vunpack.i.h.bf16 %v17408_v35 }
 0x648   : > { %v11707_v32 = vunpack.i.h.bf16 %v18061_v29  ;;  %v11706_v1 = vunpack.i.l.bf16 %v18061_v29  ;;  %8649 = vmatpush.msrb.mxu1 %v7010_v57  ;;  %8689 = vmatpush.msrb.mxu0 %v7011_v23  ;;  %v20895_v57 = vunpack.i.h.bf16 %v17935_v47  ;;  %v20897_v38 = vunpack.i.l.bf16 %v17408_v35 }
 0x649   : > { %9339 = vmatmul.msk.f32.vlgmr.msra.gmra.mxu1 %vm20890_vm11, %v18084_v46  ;;  %9340 = vmatmul.msk.f32.vlgmr.msra.gmra.mxu0 %vm20891_vm13, %v18084_v46  ;;  %v20899_v47 = vunpack.i.h.bf16 %v17987_v16  ;;  %v20900_v35 = vunpack.i.h.bf16 %v17527_v43  ;;  %vm20902_vm8 = vcmask 89088   ;;  %v11642_v16 = vunpack.i.h.bf16 %v17909_v4 }
 0x64a   : > { %v7542_v24 = vsel %vm1637_vm5, %v20889_v11, %v11706_v1  ;;  %v7543_v58 = vsel %vm1637_vm5, %v11706_v1, %v11707_v32  ;;  %8650 = vmatpush.msrb.mxu1 %v17700_v44  ;;  %8690 = vmatpush.msrb.mxu0 %v6987_v55  ;;  %v18095_v26 = vpop.permute.xlu2 %11769  ;;  %v6927_v1 = vsel %vm20894_vm14, %v20893_v59, %v20892_v12  ;;  %v11641_v12 = vunpack.i.l.bf16 %v17909_v4 }
 0x64b   : > { %8676 = vmatpush.msrb.mxu3 %v7542_v24  ;;  %8716 = vmatpush.msrb.mxu2 %v7543_v58  ;;  %v7482_v23 = vsel %vm1576_vm2, %v20895_v57, %v11711_v17  ;;  %v7483_v44 = vsel %vm1576_vm2, %v11711_v17, %v11712_v10  ;;  %v6867_v2 = vsel %vm20898_vm7, %v20897_v38, %v20896_v56  ;;  %v20904_v59 = vunpack.i.l.bf16 %v17353_v42 }
 0x64c   : > { %8651 = vmatpush.msrb.mxu1 %v17596_v0  ;;  %8691 = vmatpush.msrb.mxu0 %v6927_v1  ;;  %v7422_v55 = vsel %vm1515_vm6, %v20899_v47, %v11716_v33  ;;  %v7423_v17 = vsel %vm1515_vm6, %v11716_v33, %v11717_v3  ;;  %v20903_v33 = vunpack.i.h.bf16 %v17353_v42  ;;  %vm20905_vm11 = vcmask 728064  }
 0x64d   : > { %8677 = vmatpush.msrb.mxu3 %v7482_v23  ;;  %8717 = vmatpush.msrb.mxu2 %v7483_v44  ;;  %v20906_v57 = vunpack.i.h.bf16 %v17953_v6  ;;  %vm20907_vm13 = vcmask 310272   ;;  %v11621_v44 = vunpack.i.l.bf16 %v17757_v50  ;;  %v20909_v42 = vunpack.i.h.bf16 %v17176_v28 }
 0x64e   : > { %8652 = vmatpush.msrb.mxu1 %v17605_v5  ;;  %8692 = vmatpush.msrb.mxu0 %v6867_v2  ;;  %v20901_v5 = vunpack.i.l.bf16 %v17527_v43  ;;  %v6747_v1 = vsel %vm20905_vm11, %v20904_v59, %v20903_v33  ;;  %vm20908_vm14 = vmmov %vm20907_vm13  ;;  %v20910_v56 = vunpack.i.l.bf16 %v17176_v28  ;;  %vm20911_vm7 = vcmask 736256   ;;  %v18154_v2 = vpop.permute.xlu0 %11744  ;;  %v20919_v33 = vld [vmem:[#allocation56_spill] sm:$0xff] }
 0x64f   : > { %v18115_v0 = vpop.permute.xlu1 %11719  ;;  %8678 = vmatpush.msrb.mxu3 %v7422_v55  ;;  %8718 = vmatpush.msrb.mxu2 %v7423_v17  ;;  %v11601_v38 = vunpack.i.l.bf16 %v17874_v13  ;;  %v7303_v55 = vsel %vm1393_vm9, %v11641_v12, %v11642_v16  ;;  %v20913_v28 = vunpack.i.h.bf16 %v17296_v15  ;;  %v20914_v17 = vunpack.i.l.bf16 %v17296_v15 }
 0x650   : > { %v11722_v11 = vunpack.i.h.bf16 %v18115_v0  ;;  %v11721_v24 = vunpack.i.l.bf16 %v18115_v0  ;;  %v6807_v58 = vsel %vm20902_vm8, %v20901_v5, %v20900_v35  ;;  %8653 = vmatpush.msrb.mxu1 %v17557_v45  ;;  %v6687_v6 = vsel %vm20911_vm7, %v20910_v56, %v20909_v42  ;;  %v20916_v35 = vld [vmem:[#allocation30_spill] sm:$0xff] }
 0x651   : > { %8693 = vmatpush.msrb.mxu0 %v6807_v58  ;;  %vm20915_vm8 = vcmask 744448   ;;  %v20918_v58 = vunpack.i.h.bf16 %v17757_v50  ;;  %v20920_v59 = vunpack.i.h.bf16 %v20919_v33  ;;  %v20921_v15 = vunpack.i.l.bf16 %v20919_v33 }
 0x652   : > { %v7362_v23 = vsel %vm20907_vm13, %v20906_v57, %v11721_v24  ;;  %v7363_v43 = vsel %vm20908_vm14, %v11721_v24, %v11722_v11  ;;  %8654 = vmatpush.msrb.mxu1 %v17379_v8  ;;  %v18146_v45 = vpop.permute.xlu2 %11784  ;;  %v20912_v8 = vunpack.i.h.bf16 %v17799_v53  ;;  %v6627_v24 = vsel %vm20915_vm8, %v20914_v17, %v20913_v28  ;;  %v20923_v57 = vld [vmem:[#allocation101_spill] sm:$0xff]  ;;  %v20936_v17 = vld [vmem:[#allocation54_spill] sm:$0xff] }
 0x653   : > { %8694 = vmatpush.msrb.mxu0 %v6747_v1  ;;  %8679 = vmatpush.msrb.mxu3 %v7362_v23  ;;  %v20917_v53 = vunpack.i.h.bf16 %v17911_v51  ;;  %vm20922_vm11 = vcmask 809984   ;;  %v7182_v51 = vsel %vm1271_vm4, %v11597_v54, %v11601_v38  ;;  %v20924_v23 = vunpack.i.h.bf16 %v17874_v13 }
 0x654   : > { %8719 = vmatpush.msrb.mxu2 %v7363_v43  ;;  %8655 = vmatpush.msrb.mxu1 %v17392_v34  ;;  %v7302_v47 = vsel %vm1393_vm9, %v20912_v8, %v11641_v12  ;;  %v7243_v12 = vsel %vm1332_vm10, %v11621_v44, %v20918_v58  ;;  %v6567_v1 = vsel %vm20922_vm11, %v20921_v15, %v20920_v59  ;;  %v20925_v43 = vld [vmem:[#allocation93_spill] sm:$0xff]  ;;  %vm20928_vm13 = vcmask 818176   ;;  %v20945_v15 = vld [vmem:[#allocation63_spill] sm:$0xff] }
 0x655   : > { %8695 = vmatpush.msrb.mxu0 %v6687_v6  ;;  %8680 = vmatpush.msrb.mxu3 %v7302_v47  ;;  %v7242_v5 = vsel %vm1332_vm10, %v20917_v53, %v11621_v44  ;;  %v7183_v50 = vsel %vm1271_vm4, %v11601_v38, %v20924_v23  ;;  %v20926_v44 = vunpack.i.h.bf16 %v20925_v43  ;;  %v20927_v42 = vunpack.i.l.bf16 %v20925_v43  ;;  %v20929_v6 = vld [vmem:[#allocation74_spill] sm:$0xff]  ;;  %v20932_v38 = vld [vmem:[#allocation91_spill] sm:$0xff]  ;;  %v20940_v53 = vld [vmem:[#allocation105_spill] sm:$0xff] }
 0x656   : > { %8720 = vmatpush.msrb.mxu2 %v7303_v55  ;;  %8656 = vmatpush.msrb.mxu1 %v20916_v35  ;;  %v20930_v8 = vunpack.i.h.bf16 %v17808_v30  ;;  %v20933_v47 = vunpack.i.h.bf16 %v20932_v38  ;;  %v20934_v55 = vunpack.i.l.bf16 %v20932_v38  ;;  %vm20935_vm14 = vcmask 826368   ;;  %v18221_v59 = vpop.permute.xlu0 %11759  ;;  %v20946_v23 = vld [vmem:[#allocation116_spill] sm:$0xff]  ;;  %v8264_v38 = vpop.f32.mrf.mxu3 }
 0x657   : > { %8696 = vmatpush.msrb.mxu0 %v6627_v24  ;;  %v18169_v34 = vpop.permute.xlu1 %11734  ;;  %8681 = vmatpush.msrb.mxu3 %v7242_v5  ;;  %v6507_v56 = vsel %vm20928_vm13, %v20927_v42, %v20926_v44  ;;  %v20937_v24 = vunpack.i.h.bf16 %v17678_v18  ;;  %v20938_v30 = vunpack.i.l.bf16 %v17678_v18  ;;  %vm20939_vm7 = vcmask 1039360   ;;  %v7013_v18 = vld [vmem:[#allocation3 + $0x18] sm:$0xff] }
 0x658   : > { %8721 = vmatpush.msrb.mxu2 %v7243_v12  ;;  %8657 = vmatpush.msrb.mxu1 %v20923_v57  ;;  %v7125_v54 = vsel %vm1210_vm12, %v20931_v41, %v20930_v8  ;;  %v6447_v28 = vsel %vm20935_vm14, %v20934_v55, %v20933_v47  ;;  %vm20944_vm8 = vcmask 891904   ;;  %v11726_v33 = vunpack.i.l.bf16 %v17973_v25  ;;  %v8304_v47 = vpop.f32.mrf.mxu2 }
 0x659   : > { %8697 = vmatpush.msrb.mxu0 %v6567_v1  ;;  %8682 = vmatpush.msrb.mxu3 %v7182_v51  ;;  %v7065_v35 = vsel %vm20939_vm7, %v20938_v30, %v20937_v24  ;;  %v7012_v1 = vld [vmem:[#allocation3 + $0x70] sm:$0xff]  ;;  %v11727_v51 = vunpack.i.h.bf16 %v17973_v25  ;;  %v20948_v43 = vunpack.i.l.bf16 %v20946_v23  ;;  %vm20949_vm11 = vcmask 900096  }
 0x65a   : > { %8722 = vmatpush.msrb.mxu2 %v7183_v50  ;;  %8658 = vmatpush.msrb.mxu1 %v20929_v6  ;;  %v18200_v13 = vpop.permute.xlu2 %11799  ;;  %v20947_v50 = vunpack.i.h.bf16 %v20946_v23  ;;  %v11731_v42 = vunpack.i.l.bf16 %v18092_v52  ;;  %v20951_v6 = vld [vmem:[#allocation51_spill] sm:$0xff]  ;;  %vm20954_vm13 = vcmask 7168   ;;  %v11732_v55 = vunpack.i.h.bf16 %v18092_v52 }
 0x65b   : > { %8698 = vmatpush.msrb.mxu0 %v6507_v56  ;;  %8727 = vmatpush.msra.mxu3 %v17834_v49  ;;  %v20941_v49 = vld [vmem:[#allocation78_spill] sm:$0xff]  ;;  %v20952_v8 = vunpack.i.h.bf16 %v20951_v6  ;;  %v20953_v41 = vunpack.i.l.bf16 %v20951_v6  ;;  %vm20959_vm14 = vcmask 908288   ;;  %vm20964_vm7 = vcmask 72704  }
 0x65c   : > { %8767 = vmatpush.msra.mxu2 %v7125_v54  ;;  %8659 = vmatpush.msrb.mxu1 %v20936_v17  ;;  %v20942_v5 = vunpack.i.h.bf16 %v20941_v49  ;;  %v20943_v58 = vunpack.i.l.bf16 %v20941_v49  ;;  %v6327_v44 = vsel %vm20949_vm11, %v20948_v43, %v20947_v50  ;;  %v20950_v56 = vld [vmem:[#allocation46_spill] sm:$0xff]  ;;  %v20956_v17 = vld [vmem:[#allocation96_spill] sm:$0xff]  ;;  %v11736_v49 = vunpack.i.l.bf16 %v18169_v34  ;;  %v8324_v43 = vpop.f32.mrf.mxu0 }
 0x65d   : > { %8699 = vmatpush.msrb.mxu0 %v6447_v28  ;;  %8728 = vmatpush.msra.mxu3 %v20940_v53  ;;  %v6989_v54 = vsel %vm20954_vm13, %v20953_v41, %v20952_v8  ;;  %v20955_v28 = vld [vmem:[#allocation80_spill] sm:$0xff]  ;;  %v20957_v24 = vunpack.i.h.bf16 %v20956_v17  ;;  %v20958_v30 = vunpack.i.l.bf16 %v20956_v17  ;;  %v8284_v53 = vpop.f32.mrf.mxu1  ;;  %v7785_v6 = vsel %vm1881_vm15, %v11726_v33, %v11727_v51 }
 0x65e   : > { %8768 = vmatpush.msra.mxu2 %v7065_v35  ;;  %v6387_v12 = vsel %vm20944_vm8, %v20943_v58, %v20942_v5  ;;  %8660 = vmatpush.msrb.mxu1 %v20945_v15  ;;  %v20960_v5 = vld [vmem:[#allocation119_spill] sm:$0xff]  ;;  %v11747_v41 = vunpack.i.h.bf16 %v18154_v2  ;;  %vm20970_vm8 = vcmask 80896   ;;  %vm20975_vm11 = vcmask 89088  }
 0x65f   : > { %8700 = vmatpush.msrb.mxu0 %v6387_v12  ;;  %v18224_v57 = vpop.permute.xlu1 %11749  ;;  %8729 = vmatpush.msra.mxu3 %v7012_v1  ;;  %v6267_v35 = vsel %vm20959_vm14, %v20958_v30, %v20957_v24  ;;  %v20961_v58 = vld [vmem:[#allocation95_spill] sm:$0xff]  ;;  %vm20981_vm13 = vcmask 728064   ;;  %vm20986_vm14 = vcmask 736256   ;;  %v11741_v0 = vunpack.i.l.bf16 %v18001_v19 }
 0x660   : > { %8769 = vmatpush.msra.mxu2 %v7013_v18  ;;  %8661 = vmatpush.msrb.mxu1 %v20950_v56  ;;  %v20962_v12 = vunpack.i.h.bf16 %v20961_v58  ;;  %v20963_v15 = vunpack.i.l.bf16 %v20961_v58  ;;  %v20965_v18 = vunpack.i.h.bf16 %v17913_v9  ;;  %v20966_v56 = vld [vmem:[#allocation103_spill] sm:$0xff] }
 0x661   : > { %8701 = vmatpush.msrb.mxu0 %v6327_v44  ;;  %8730 = vmatpush.msra.mxu3 %v20955_v28  ;;  %v11737_v44 = vunpack.i.h.bf16 %v18169_v34  ;;  %v20967_v28 = vld [vmem:[#allocation110_spill] sm:$0xff] }
 0x662   : > { %8770 = vmatpush.msra.mxu2 %v6989_v54  ;;  %8662 = vmatpush.msrb.mxu1 %v20960_v5  ;;  %v6929_v1 = vsel %vm20964_vm7, %v20963_v15, %v20962_v12  ;;  %v7784_v23 = vsel %vm1881_vm15, %v20965_v18, %v11726_v33  ;;  %v18256_v50 = vpop.permute.xlu2 %8241  ;;  %v11746_v54 = vunpack.i.l.bf16 %v18154_v2  ;;  %v20968_v17 = vunpack.i.h.bf16 %v20967_v28  ;;  %v20971_v5 = vld [vmem:[#allocation104_spill] sm:$0xff] }
 0x663   : > { %8702 = vmatpush.msrb.mxu0 %v6267_v35  ;;  %8731 = vmatpush.msra.mxu3 %v20966_v56  ;;  %v8265_v8 = vadd.f32 %v8264_v38, %v18256_v50  ;;  %v8305_v9 = vadd.f32 %v8304_v47, %v18256_v50  ;;  %v20969_v24 = vunpack.i.l.bf16 %v20967_v28  ;;  %v7724_v33 = vsel %vm1820_vm0, %v11692_v60, %v11731_v42  ;;  %v8887_v35 = vld [vmem:[%s12155_s30 + $0x8] sm:$0xff]  ;;  %v8888_v38 = vld [vmem:[%s12155_s30 + $0x10] sm:$0xff]  ;;  %v18298_v28 = vpop.permute.xlu0 %11774 }
 0x664   : > { %8771 = vmatpush.msra.mxu2 %v6929_v1  ;;  %8752 = vmatpush.msra.mxu1 %v7784_v23  ;;  %v7725_v47 = vsel %vm1820_vm0, %v11731_v42, %v11732_v55  ;;  %v11757_v15 = vunpack.i.h.bf16 %v18041_v21  ;;  %v20972_v1 = vld [vmem:[#allocation48_spill] sm:$0xff]  ;;  %v20976_v56 = vunpack.i.h.bf16 %v17933_v40  ;;  %v11756_v42 = vunpack.i.l.bf16 %v18041_v21 }
 0x665   : > { %8792 = vmatpush.msra.mxu0 %v7785_v6  ;;  %v6869_v30 = vsel %vm20970_vm8, %v20969_v24, %v20968_v17  ;;  %8732 = vmatpush.msra.mxu3 %v20971_v5  ;;  %v8285_v58 = vadd.f32 %v8284_v53, %v8265_v8  ;;  %v8325_v12 = vadd.f32 %v8324_v43, %v8305_v9  ;;  %v20973_v27 = vunpack.i.h.bf16 %v20972_v1  ;;  %v20977_v53 = vld [vmem:[#allocation112_spill] sm:$0xff]  ;;  %v20978_v17 = vld [vmem:[#allocation106_spill] sm:$0xff] }
 0x666   : > { %8772 = vmatpush.msra.mxu2 %v6869_v30  ;;  %8753 = vmatpush.msra.mxu1 %v7724_v33  ;;  %v20974_v60 = vunpack.i.l.bf16 %v20972_v1  ;;  %v7664_v6 = vsel %vm1759_vm1, %v20976_v56, %v11736_v49  ;;  %v7665_v43 = vsel %vm1759_vm1, %v11736_v49, %v11737_v44  ;;  %v20979_v24 = vunpack.i.h.bf16 %v20978_v17  ;;  %v20982_v5 = vld [vmem:[#allocation82_spill] sm:$0xff] }
 0x667   : > { %8793 = vmatpush.msra.mxu0 %v7725_v47  ;;  %v18288_v23 = vpop.permute.xlu1 %11764  ;;  %8733 = vmatpush.msra.mxu3 %v20977_v53  ;;  %v8895_v8 = vadd.f32 %v8887_v35, %v8285_v58  ;;  %v8896_v9 = vadd.f32 %v8888_v38, %v8325_v12  ;;  %v20980_v40 = vunpack.i.l.bf16 %v20978_v17  ;;  %v7604_v33 = vsel %vm1698_vm3, %v11702_v22, %v11746_v54  ;;  %v20983_v12 = vld [vmem:[#allocation86_spill] sm:$0xff] }
 0x668   : > { %v6809_v18 = vsel %vm20975_vm11, %v20974_v60, %v20973_v27  ;;  %8754 = vmatpush.msra.mxu1 %v7664_v6  ;;  %v7605_v49 = vsel %vm1698_vm3, %v11746_v54, %v11747_v41  ;;  %v11767_v35 = vunpack.i.h.bf16 %v18288_v23  ;;  %v11766_v38 = vunpack.i.l.bf16 %v18288_v23  ;;  %v20987_v60 = vld [vmem:[#allocation26_spill] sm:$0xff]  ;;  %v20988_v6 = vld [vmem:[#allocation88_spill] sm:$0xff] }
 0x669   : > { %8773 = vmatpush.msra.mxu2 %v6809_v18  ;;  %8794 = vmatpush.msra.mxu0 %v7665_v43  ;;  %v6749_v30 = vsel %vm20981_vm13, %v20980_v40, %v20979_v24  ;;  %v8903_v47 = vmax.f32 %v8895_v8, 0.0  ;;  %v8904_v58 = vmax.f32 %v8896_v9, 0.0  ;;  %v20984_v36 = vunpack.i.h.bf16 %v20983_v12  ;;  %v20993_v24 = vld [vmem:[#allocation89_spill] sm:$0xff] }
 0x66a   : > { %8734 = vmatpush.msra.mxu3 %v20982_v5  ;;  %8755 = vmatpush.msra.mxu1 %v7604_v33  ;;  %v20985_v22 = vunpack.i.l.bf16 %v20983_v12  ;;  %v11777_v54 = vunpack.i.h.bf16 %v18298_v28  ;;  %v11776_v27 = vunpack.i.l.bf16 %v18298_v28  ;;  %v7544_v18 = vsel %vm1637_vm5, %v11707_v32, %v11756_v42  ;;  %v20997_v5 = vld [vmem:[#allocation69_spill] sm:$0xff] }
 0x66b   : > { %8774 = vmatpush.msra.mxu2 %v6749_v30  ;;  %8795 = vmatpush.msra.mxu0 %v7605_v49  ;;  %v7545_v56 = vsel %vm1637_vm5, %v11756_v42, %v11757_v15  ;;  %8911 = vst [vmem:[%s18330_s21] sm:$0xff] %v8903_v47  ;;  %v20989_v53 = vunpack.i.h.bf16 %v20988_v6  ;;  %v20990_v43 = vunpack.i.l.bf16 %v20988_v6  ;;  %vm20991_vm7 = vcmask 744448   ;;  %v20992_v42 = vld [vmem:[#allocation67_spill] sm:$0xff]  ;;  %v21010_v6 = vld [vmem:[#allocation50_spill] sm:$0xff] }
 0x66c   : > { %v6689_v1 = vsel %vm20986_vm14, %v20985_v22, %v20984_v36  ;;  %8735 = vmatpush.msra.mxu3 %v20987_v60  ;;  %8756 = vmatpush.msra.mxu1 %v7544_v18  ;;  %8912 = vst [vmem:[%s18330_s21 + $0x8] sm:$0xff] %v8904_v58  ;;  %v11787_v32 = vunpack.i.h.bf16 %v18146_v45  ;;  %v11786_v8 = vunpack.i.l.bf16 %v18146_v45  ;;  %v7484_v9 = vsel %vm1576_vm2, %v11712_v10, %v11766_v38  ;;  %v21002_v36 = vld [vmem:[#allocation43_spill] sm:$0xff]  ;;  %v21005_v22 = vld [vmem:[#allocation22_spill] sm:$0xff] }
 0x66d   : > { %8775 = vmatpush.msra.mxu2 %v6689_v1  ;;  %8796 = vmatpush.msra.mxu0 %v7545_v56  ;;  %v6629_v29 = vsel %vm20991_vm7, %v20990_v43, %v20989_v53  ;;  %v7485_v17 = vsel %vm1576_vm2, %v11766_v38, %v11767_v35  ;;  %v20994_v40 = vunpack.i.h.bf16 %v20993_v24  ;;  %v20995_v30 = vunpack.i.l.bf16 %v20993_v24  ;;  %v20998_v38 = vld [vmem:[#allocation32_spill] sm:$0xff]  ;;  %v21009_v18 = vld [vmem:[#allocation58_spill] sm:$0xff]  ;;  %v8344_v24 = vpop.f32.mrf.mxu1 }
 0x66e   : > { %8736 = vmatpush.msra.mxu3 %v20992_v42  ;;  %8757 = vmatpush.msra.mxu1 %v7484_v9  ;;  %vm20996_vm8 = vcmask 809984   ;;  %v7424_v14 = vsel %vm1515_vm6, %v11717_v3, %v11776_v27  ;;  %v7425_v10 = vsel %vm1515_vm6, %v11776_v27, %v11777_v54  ;;  %v20999_v47 = vunpack.i.h.bf16 %v20998_v38  ;;  %v21017_v42 = vld [vmem:[#allocation111_spill] sm:$0xff] }
 0x66f   : > { %8776 = vmatpush.msra.mxu2 %v6629_v29  ;;  %8797 = vmatpush.msra.mxu0 %v7485_v17  ;;  %v6569_v33 = vsel %vm20996_vm8, %v20995_v30, %v20994_v40  ;;  %v18353_v49 = vpop.permute.xlu1 %11779  ;;  %v21000_v58 = vunpack.i.l.bf16 %v20998_v38  ;;  %vm21001_vm11 = vcmask 818176   ;;  %vm21003_vm13 = vcmask 310272   ;;  %v8384_v40 = vpop.f32.mrf.mxu0  ;;  %v21021_v30 = vld [vmem:[#allocation72_spill] sm:$0xff]  ;;  %v18406_v38 = vld [vmem:[#allocation7] sm:$0xff] }
 0x670   : > { %8737 = vmatpush.msra.mxu3 %v20997_v5  ;;  %8758 = vmatpush.msra.mxu1 %v7424_v14  ;;  %v7364_v37 = vsel %vm21003_vm13, %v11722_v11, %v11786_v8  ;;  %vm21004_vm14 = vmmov %vm21003_vm13  ;;  %v21006_v1 = vunpack.i.h.bf16 %v21005_v22  ;;  %v21007_v27 = vunpack.i.l.bf16 %v21005_v22  ;;  %vm21008_vm7 = vcmask 826368   ;;  %v18382_v11 = vpop.permute.xlu0 %11789 }
 0x671   : > { %8777 = vmatpush.msra.mxu2 %v6569_v33  ;;  %8798 = vmatpush.msra.mxu0 %v7425_v10  ;;  %v6509_v12 = vsel %vm21001_vm11, %v21000_v58, %v20999_v47  ;;  %v7365_v3 = vsel %vm21004_vm14, %v11786_v8, %v11787_v32  ;;  %v11742_v56 = vunpack.i.h.bf16 %v18001_v19  ;;  %v21011_v53 = vunpack.i.h.bf16 %v21010_v6  ;;  %v21016_v8 = vld [vmem:[#allocation73_spill] sm:$0xff] }
 0x672   : > { %8738 = vmatpush.msra.mxu3 %v21002_v36  ;;  %8759 = vmatpush.msra.mxu1 %v7364_v37  ;;  %v6449_v60 = vsel %vm21008_vm7, %v21007_v27, %v21006_v1  ;;  %v21012_v43 = vunpack.i.l.bf16 %v21010_v6  ;;  %vm21013_vm8 = vcmask 891904   ;;  %vm21014_vm11 = vcmask 719872   ;;  %v21025_v37 = vld [vmem:[#allocation118_spill] sm:$0xff]  ;;  %v8364_v1 = vpop.f32.mrf.mxu3  ;;  %v8889_v27 = vld [vmem:[%s12155_s30 + $0x18] sm:$0xff] }
 0x673   : > { %8778 = vmatpush.msra.mxu2 %v6509_v12  ;;  %8799 = vmatpush.msra.mxu0 %v7365_v3  ;;  %vm21015_vm13 = vmmov %vm21014_vm11  ;;  %v21018_v9 = vunpack.i.h.bf16 %v21017_v42  ;;  %v21019_v19 = vunpack.i.l.bf16 %v21017_v42  ;;  %vm21020_vm14 = vcmask 908288   ;;  %v21022_v33 = vunpack.i.h.bf16 %v21021_v30  ;;  %v21026_v42 = vld [vmem:[#allocation120_spill] sm:$0xff] }
 0x674   : > { %8739 = vmatpush.msra.mxu3 %v21009_v18  ;;  %v6389_v29 = vsel %vm21013_vm8, %v21012_v43, %v21011_v53  ;;  %9342 = vmatmul.msk.f32.vlgmr.msrb.gmra.mxu2 %vm21015_vm13, %v18084_v46  ;;  %v21023_v5 = vunpack.i.l.bf16 %v21021_v30  ;;  %vm21024_vm7 = vcmask 900096   ;;  %v8345_v47 = vadd.f32 %v8344_v24, %v18256_v50  ;;  %v8890_v18 = vld [vmem:[%s12155_s30 + $0x20] sm:$0xff]  ;;  %vm21073_vm8 = vmmov %vm21014_vm11 }
 0x675   : > { %8779 = vmatpush.msra.mxu2 %v6449_v60  ;;  %9341 = vmatmul.msk.f32.vlgmr.msrb.gmra.mxu3 %vm21014_vm11, %v18084_v46  ;;  %v6269_v17 = vsel %vm21020_vm14, %v21019_v19, %v21018_v9  ;;  %v8385_v58 = vadd.f32 %v8384_v40, %v18256_v50  ;;  %v11752_v12 = vunpack.i.h.bf16 %v18224_v57  ;;  %v11751_v36 = vunpack.i.l.bf16 %v18224_v57  ;;  %v8404_v60 = vpop.f32.mrf.mxu2 }
 0x676   : > { %8740 = vmatpush.msra.mxu3 %v21016_v8  ;;  %v6329_v14 = vsel %vm21024_vm7, %v21023_v5, %v21022_v33  ;;  %8663 = vmatmul.f32.vlgmr.msrb.gmra.mxu1 %v18406_v38  ;;  %v7786_v6 = vsel %vm1881_vm15, %v11727_v51, %v11741_v0  ;;  %v7787_v53 = vsel %vm1881_vm15, %v11741_v0, %v11742_v56  ;;  %v11762_v57 = vunpack.i.h.bf16 %v18221_v59  ;;  %vm21072_vm15 = vmmov %vm21014_vm11 }
 0x677   : > { %8780 = vmatpush.msra.mxu2 %v6389_v29  ;;  %v18404_v10 = vpop.permute.xlu1 %11794  ;;  %8703 = vmatmul.f32.vlgmr.msrb.gmra.mxu0 %v18406_v38  ;;  %v8365_v43 = vadd.f32 %v8364_v1, %v8345_v47  ;;  %v8405_v29 = vadd.f32 %v8404_v60, %v8385_v58  ;;  %v11761_v8 = vunpack.i.l.bf16 %v18221_v59  ;;  %v11772_v0 = vunpack.i.h.bf16 %v18095_v26  ;;  %v8444_v1 = vpop.f32.mrf.mxu1  ;;  %vm21086_vm7 = vmmov %vm21073_vm8 }
 0x678   : > { %8741 = vmatpush.msra.mxu3 %v21025_v37  ;;  %v11797_v3 = vunpack.i.h.bf16 %v18404_v10  ;;  %v11796_v22 = vunpack.i.l.bf16 %v18404_v10  ;;  %v11771_v19 = vunpack.i.l.bf16 %v18095_v26  ;;  %v7726_v4 = vsel %vm1820_vm0, %v11732_v55, %v11751_v36  ;;  %v11805_v34 = vpop.permute.xlu0 %11804  ;;  %v21052_v10 = vld [vmem:[#allocation115_spill] sm:$0xff] }
 0x679   : > { %8781 = vmatpush.msra.mxu2 %v6329_v14  ;;  %v8897_v51 = vadd.f32 %v8889_v27, %v8365_v43  ;;  %v8898_v56 = vadd.f32 %v8890_v18, %v8405_v29  ;;  %v11592_v59 = vunpack.i.h.bf16 %v17709_v39  ;;  %v21028_v24 = vunpack.i.l.bf16 %v17872_v63  ;;  %v8484_v27 = vpop.f32.mrf.mxu0 }
 0x67a   : > { %8742 = vmatpush.msra.mxu3 %v21026_v42  ;;  %v7304_v9 = vsel %vm1393_vm9, %v11642_v16, %v11796_v22  ;;  %v7305_v25 = vsel %vm1393_vm9, %v11796_v22, %v11797_v3  ;;  %v7727_v16 = vsel %vm1820_vm0, %v11751_v36, %v11752_v12  ;;  %v11782_v33 = vunpack.i.h.bf16 %v18353_v49  ;;  %v8424_v22 = vpop.f32.mrf.mxu3  ;;  %v8892_v42 = vld [vmem:[%s12155_s30 + $0x30] sm:$0xff] }
 0x67b   : > { %8782 = vmatpush.msra.mxu2 %v6269_v17  ;;  %8760 = vmatpush.msra.mxu1 %v7304_v9  ;;  %v21027_v17 = vunpack.i.h.bf16 %v17872_v63  ;;  %v8905_v26 = vmax.f32 %v8897_v51, 0.0  ;;  %v8906_v30 = vmax.f32 %v8898_v56, 0.0  ;;  %v11781_v52 = vunpack.i.l.bf16 %v18353_v49  ;;  %v21035_v9 = vld [vmem:[#allocation113_spill] sm:$0xff] }
 0x67c   : > { %8832 = vmatpush.msrb.mxu3 %v7786_v6  ;;  %8800 = vmatpush.msra.mxu0 %v7305_v25  ;;  %v7666_v55 = vsel %vm1759_vm1, %v11737_v44, %v11761_v8  ;;  %v7667_v5 = vsel %vm1759_vm1, %v11761_v8, %v11762_v57  ;;  %v11572_v63 = vunpack.i.h.bf16 %v17753_v62  ;;  %v11792_v14 = vunpack.i.h.bf16 %v18382_v11  ;;  %v7014_v25 = vld [vmem:[#allocation3 + $0x98] sm:$0xff] }
 0x67d   : > { %8872 = vmatpush.msrb.mxu2 %v7787_v53  ;;  %v7245_v40 = vsel %vm1332_vm10, %v21028_v24, %v21027_v17  ;;  %8761 = vmatpush.msra.mxu1 %v17893_v7  ;;  %v11791_v47 = vunpack.i.l.bf16 %v18382_v11  ;;  %v21029_v49 = vunpack.i.h.bf16 %v17722_v61  ;;  %v21030_v7 = vunpack.i.l.bf16 %v17722_v61  ;;  %8913 = vst [vmem:[%s18330_s21 + $0x10] sm:$0xff] %v8905_v26  ;;  %v8891_v53 = vld [vmem:[%s12155_s30 + $0x28] sm:$0xff] }
 0x67e   : > { %8833 = vmatpush.msrb.mxu3 %v7726_v4  ;;  %8801 = vmatpush.msra.mxu0 %v7245_v40  ;;  %v7606_v44 = vsel %vm1698_vm3, %v11747_v41, %v11771_v19  ;;  %v7607_v12 = vsel %vm1698_vm3, %v11771_v19, %v11772_v0  ;;  %8914 = vst [vmem:[%s18330_s21 + $0x18] sm:$0xff] %v8906_v30  ;;  %v11802_v11 = vunpack.i.h.bf16 %v18200_v13  ;;  %v11801_v36 = vunpack.i.l.bf16 %v18200_v13  ;;  %v21036_v4 = vld [vmem:[#allocation99_spill] sm:$0xff]  ;;  %v21040_v40 = vld [vmem:[#allocation100_spill] sm:$0xff]  ;;  %v21041_v30 = vld [vmem:[#allocation85_spill] sm:$0xff] }
 0x67f   : > { %8873 = vmatpush.msrb.mxu2 %v7727_v16  ;;  %v7185_v58 = vsel %vm1271_vm4, %v21030_v7, %v21029_v49  ;;  %8762 = vmatpush.msra.mxu1 %v17903_v31  ;;  %v21031_v61 = vunpack.i.l.bf16 %v17709_v39  ;;  %v8464_v31 = vpop.f32.mrf.mxu2  ;;  %v7546_v2 = vsel %vm1637_vm5, %v11757_v15, %v11781_v52  ;;  %v7547_v41 = vsel %vm1637_vm5, %v11781_v52, %v11782_v33  ;;  %v21032_v39 = vld [vmem:[#allocation76_spill] sm:$0xff]  ;;  %v11810_v18 = vpop.permute.xlu1 %11809  ;;  %v21044_v52 = vld [vmem:[#allocation70_spill] sm:$0xff] }
 0x680   : > { %8834 = vmatpush.msrb.mxu3 %v7666_v55  ;;  %8802 = vmatpush.msra.mxu0 %v7185_v58  ;;  %v8425_v13 = vadd.f32 %v8424_v22, %v18256_v50  ;;  %v11552_v60 = vunpack.i.h.bf16 %v21032_v39  ;;  %v21033_v6 = vunpack.i.l.bf16 %v17753_v62  ;;  %vm21034_vm0 = vcmask 1039360   ;;  %v21047_v7 = vld [vmem:[#allocation62_spill] sm:$0xff]  ;;  %v21048_v58 = vld [vmem:[#allocation45_spill] sm:$0xff] }
 0x681   : > { %8874 = vmatpush.msrb.mxu2 %v7667_v5  ;;  %v7127_v37 = vsel %vm1210_vm12, %v21031_v61, %v11592_v59  ;;  %8807 = vmatpush.msrb.mxu1 %v17841_v48  ;;  %v7487_v21 = vsel %vm1576_vm2, %v11791_v47, %v11792_v14  ;;  %v8465_v15 = vadd.f32 %v8464_v31, %v18256_v50  ;;  %v11807_v43 = vunpack.i.h.bf16 %v11805_v34 }
 0x682   : > { %8835 = vmatpush.msrb.mxu3 %v7606_v44  ;;  %8847 = vmatpush.msrb.mxu0 %v7127_v37  ;;  %v7067_v48 = vsel %vm21034_vm0, %v21033_v6, %v11572_v63  ;;  %v11806_v29 = vunpack.i.l.bf16 %v11805_v34  ;;  %v7486_v57 = vsel %vm1576_vm2, %v11767_v35, %v11791_v47  ;;  %v8445_v8 = vadd.f32 %v8444_v1, %v8425_v13  ;;  %v21037_v35 = vld [vmem:[#allocation114_spill] sm:$0xff]  ;;  %v8524_v47 = vpop.f32.mrf.mxu3  ;;  %v8894_v13 = vld [vmem:[%s12155_s30 + $0x40] sm:$0xff]  ;;  %vm21087_vm0 = vmmov %vm21086_vm7 }
 0x683   : > { %8875 = vmatpush.msrb.mxu2 %v7607_v12  ;;  %8808 = vmatpush.msrb.mxu1 %v17778_v20  ;;  %v11532_v62 = vunpack.i.h.bf16 %v21035_v9  ;;  %v7427_v51 = vsel %vm1515_vm6, %v11801_v36, %v11802_v11  ;;  %v8485_v56 = vadd.f32 %v8484_v27, %v8465_v15  ;;  %v11812_v0 = vunpack.i.h.bf16 %v11810_v18  ;;  %v21049_v34 = vld [vmem:[#allocation98_spill] sm:$0xff]  ;;  %v8504_v11 = vpop.f32.mrf.mxu1  ;;  %v21054_v1 = vld [vmem:[#allocation33_spill] sm:$0xff] }
 0x684   : > { %8836 = vmatpush.msrb.mxu3 %v7546_v2  ;;  %8848 = vmatpush.msrb.mxu0 %v7067_v48  ;;  %v11811_v19 = vunpack.i.l.bf16 %v11810_v18  ;;  %v7426_v20 = vsel %vm1515_vm6, %v11777_v54, %v11801_v36  ;;  %v8899_v23 = vadd.f32 %v8891_v53, %v8445_v8  ;;  %v11512_v16 = vunpack.i.h.bf16 %v21037_v35  ;;  %v8544_v36 = vpop.f32.mrf.mxu0 }
 0x685   : > { %8876 = vmatpush.msrb.mxu2 %v7547_v41  ;;  %8809 = vmatpush.msrb.mxu1 %v7014_v25  ;;  %v21038_v59 = vunpack.i.l.bf16 %v21032_v39  ;;  %vm21039_vm1 = vcmask 7168   ;;  %v8900_v24 = vadd.f32 %v8892_v42, %v8485_v56  ;;  %v11632_v26 = vunpack.i.h.bf16 %v21040_v40  ;;  %v8893_v41 = vld [vmem:[%s12155_s30 + $0x38] sm:$0xff]  ;;  %v21064_v25 = vld [vmem:[#allocation109_spill] sm:$0xff] }
 0x686   : > { %8837 = vmatpush.msrb.mxu3 %v7486_v57  ;;  %8849 = vmatpush.msrb.mxu0 %v21036_v4  ;;  %vm21042_vm2 = vcmask 310272   ;;  %v8907_v33 = vmax.f32 %v8899_v23, 0.0  ;;  %v11492_v55 = vunpack.i.h.bf16 %v21044_v52  ;;  %v21045_v5 = vunpack.i.l.bf16 %v21035_v9  ;;  %v21055_v39 = vld [vmem:[#allocation24_spill] sm:$0xff]  ;;  %v21061_v57 = vld [vmem:[#allocation87_spill] sm:$0xff] }
 0x687   : > { %8877 = vmatpush.msrb.mxu2 %v7487_v21  ;;  %v6991_v17 = vsel %vm21039_vm1, %v21038_v59, %v11552_v60  ;;  %8810 = vmatpush.msrb.mxu1 %v21041_v30  ;;  %v7366_v28 = vsel %vm21042_vm2, %v11787_v32, %v11806_v29  ;;  %vm21043_vm3 = vmmov %vm21042_vm2  ;;  %vm21046_vm5 = vcmask 72704   ;;  %v8908_v14 = vmax.f32 %v8900_v24, 0.0  ;;  %v8564_v49 = vpop.f32.mrf.mxu2  ;;  %v21058_v21 = vld [vmem:[#allocation44_spill] sm:$0xff]  ;;  %v21068_v23 = vld [vmem:[#allocation83_spill] sm:$0xff] }
 0x688   : > { %8838 = vmatpush.msrb.mxu3 %v7426_v20  ;;  %8850 = vmatpush.msrb.mxu0 %v6991_v17  ;;  %v7367_v54 = vsel %vm21043_vm3, %v11806_v29, %v11807_v43  ;;  %v6931_v63 = vsel %vm21046_vm5, %v21045_v5, %v11532_v62  ;;  %v11472_v45 = vunpack.i.h.bf16 %v21047_v7  ;;  %v11612_v32 = vunpack.i.h.bf16 %v21048_v58  ;;  %8915 = vst [vmem:[%s18330_s21 + $0x20] sm:$0xff] %v8907_v33  ;;  %v21060_v43 = vld [vmem:[#allocation102_spill] sm:$0xff]  ;;  %v21074_v24 = vld [vmem:[#allocation27_spill] sm:$0xff] }
 0x689   : > { %8878 = vmatpush.msrb.mxu2 %v7427_v51  ;;  %8811 = vmatpush.msrb.mxu1 %v21049_v34  ;;  %v7306_v44 = vsel %vm1393_vm9, %v11797_v3, %v11811_v19  ;;  %v7307_v12 = vsel %vm1393_vm9, %v11811_v19, %v11812_v0  ;;  %v21050_v61 = vunpack.i.l.bf16 %v21037_v35  ;;  %vm21051_vm6 = vcmask 80896   ;;  %8916 = vst [vmem:[%s18330_s21 + $0x28] sm:$0xff] %v8908_v14  ;;  %v21065_v51 = vld [vmem:[#allocation94_spill] sm:$0xff]  ;;  %v21069_v35 = vld [vmem:[#allocation25_spill] sm:$0xff]  ;;  %v21083_v14 = vld [vmem:[#allocation39_spill] sm:$0xff] }
 0x68a   : > { %8839 = vmatpush.msrb.mxu3 %v7366_v28  ;;  %8851 = vmatpush.msrb.mxu0 %v6931_v63  ;;  %v8505_v22 = vadd.f32 %v8504_v11, %v18256_v50  ;;  %v8545_v31 = vadd.f32 %v8544_v36, %v18256_v50  ;;  %v21053_v3 = vunpack.i.l.bf16 %v21040_v40  ;;  %v11452_v27 = vunpack.i.h.bf16 %v21054_v1  ;;  %v21075_v40 = vld [vmem:[#allocation61_spill] sm:$0xff]  ;;  %v21079_v33 = vld [vmem:[#allocation38_spill] sm:$0xff]  ;;  %v21082_v63 = vld [vmem:[#allocation71_spill] sm:$0xff] }
 0x68b   : > { %8879 = vmatpush.msrb.mxu2 %v7367_v54  ;;  %v6871_v37 = vsel %vm21051_vm6, %v21050_v61, %v11512_v16  ;;  %8812 = vmatpush.msrb.mxu1 %v21052_v10  ;;  %v21056_v60 = vunpack.i.l.bf16 %v21044_v52  ;;  %vm21057_vm9 = vcmask 89088   ;;  %v21059_v15 = vunpack.i.l.bf16 %v21048_v58  ;;  %v21078_v54 = vld [vmem:[#allocation47_spill] sm:$0xff]  ;;  %v21089_v58 = vld [vmem:[#allocation117_spill] sm:$0xff]  ;;  %v21095_v61 = vld [vmem:[#allocation42_spill] sm:$0xff] }
 0x68c   : > { %8840 = vmatpush.msrb.mxu3 %v7306_v44  ;;  %8852 = vmatpush.msrb.mxu0 %v6871_v37  ;;  %v7247_v2 = vsel %vm1332_vm10, %v21053_v3, %v11632_v26  ;;  %v8525_v6 = vadd.f32 %v8524_v47, %v8505_v22  ;;  %v8565_v48 = vadd.f32 %v8564_v49, %v8545_v31  ;;  %v11432_v29 = vunpack.i.h.bf16 %v21060_v43  ;;  %v21098_v22 = vld [vmem:[#allocation66_spill] sm:$0xff] }
 0x68d   : > { %8880 = vmatpush.msrb.mxu2 %v7307_v12  ;;  %v6811_v18 = vsel %vm21057_vm9, %v21056_v60, %v11492_v55  ;;  %8813 = vmatpush.msrb.mxu1 %v21058_v21  ;;  %v7187_v53 = vsel %vm1271_vm4, %v21059_v15, %v11612_v32  ;;  %v21062_v8 = vunpack.i.l.bf16 %v21047_v7  ;;  %vm21063_vm10 = vcmask 728064   ;;  %v21092_v12 = vld [vmem:[#allocation97_spill] sm:$0xff] }
 0x68e   : > { %8841 = vmatpush.msrb.mxu3 %v21055_v39  ;;  %8853 = vmatpush.msrb.mxu0 %v6811_v18  ;;  %v8901_v9 = vadd.f32 %v8893_v41, %v8525_v6  ;;  %v8902_v62 = vadd.f32 %v8894_v13, %v8565_v48  ;;  %v11412_v56 = vunpack.i.h.bf16 %v21065_v51  ;;  %v21066_v0 = vunpack.i.l.bf16 %v21054_v1  ;;  %v9347_v13 = vld [vmem:[%s12155_s30 + $0x58] sm:$0xff] }
 0x68f   : > { %8881 = vmatpush.msrb.mxu2 %v7247_v2  ;;  %v6751_v42 = vsel %vm21063_vm10, %v21062_v8, %v11472_v45  ;;  %8814 = vmatpush.msrb.mxu1 %v21064_v25  ;;  %vm21067_vm4 = vcmask 736256   ;;  %v11392_v16 = vunpack.i.h.bf16 %v21069_v35  ;;  %v21070_v59 = vunpack.i.l.bf16 %v21060_v43  ;;  %v21088_v45 = vld [vmem:[#allocation49_spill] sm:$0xff] }
 0x690   : > { %8842 = vmatpush.msrb.mxu3 %v21061_v57  ;;  %8854 = vmatpush.msrb.mxu0 %v6751_v42  ;;  %v6691_v19 = vsel %vm21067_vm4, %v21066_v0, %v11452_v27  ;;  %v8909_v4 = vmax.f32 %v8901_v9, 0.0  ;;  %v8910_v20 = vmax.f32 %v8902_v62, 0.0  ;;  %vm21071_vm12 = vcmask 744448   ;;  %v9348_v27 = vld [vmem:[%s12155_s30 + $0x60] sm:$0xff]  ;;  %v9349_v57 = vld [vmem:[%s12155_s30 + $0x68] sm:$0xff]  ;;  %v9350_v42 = vld [vmem:[%s12155_s30 + $0x70] sm:$0xff] }
 0x691   : > { %8882 = vmatpush.msrb.mxu2 %v7187_v53  ;;  %8743 = vmatmul.f32.vlgmr.msra.gmra.mxu3 %v18406_v38  ;;  %v6631_v17 = vsel %vm21071_vm12, %v21070_v59, %v11432_v29  ;;  %v11372_v26 = vunpack.i.h.bf16 %v21075_v40  ;;  %v21076_v30 = vunpack.i.l.bf16 %v21065_v51  ;;  %vm21077_vm11 = vcmask 809984   ;;  %v9351_v59 = vld [vmem:[%s12155_s30 + $0x78] sm:$0xff] }
 0x692   : > { %8783 = vmatmul.f32.vlgmr.msra.gmra.mxu2 %v18406_v38  ;;  %8815 = vmatpush.msrb.mxu1 %v21068_v23  ;;  %8917 = vst [vmem:[%s18330_s21 + $0x30] sm:$0xff] %v8909_v4  ;;  %v11352_v52 = vunpack.i.h.bf16 %v21079_v33  ;;  %v21080_v55 = vunpack.i.l.bf16 %v21069_v35  ;;  %vm21081_vm13 = vcmask 818176   ;;  %v11332_v47 = vunpack.i.h.bf16 %v21083_v14 }
 0x693   : > { %8855 = vmatpush.msrb.mxu0 %v6691_v19  ;;  %9343 = vmatmul.msk.f32.vlgmr.msra.gmra.mxu1 %vm21072_vm15, %v18084_v46  ;;  %8918 = vst [vmem:[%s18330_s21 + $0x38] sm:$0xff] %v8910_v20  ;;  %v6571_v28 = vsel %vm21077_vm11, %v21076_v30, %v11412_v56  ;;  %v21084_v49 = vunpack.i.l.bf16 %v21075_v40  ;;  %vm21085_vm14 = vcmask 826368   ;;  %v11312_v32 = vunpack.i.h.bf16 %v21089_v58 }
 0x694   : > { %9344 = vmatmul.msk.f32.vlgmr.msra.gmra.mxu0 %vm21073_vm8, %v18084_v46  ;;  %8816 = vmatpush.msrb.mxu1 %v21074_v24  ;;  %v6511_v5 = vsel %vm21081_vm13, %v21080_v55, %v11392_v16  ;;  %v21090_v34 = vunpack.i.l.bf16 %v21079_v33  ;;  %vm21091_vm1 = vcmask 891904   ;;  %v21093_v11 = vunpack.i.l.bf16 %v21083_v14  ;;  %v8584_v31 = vpop.f32.mrf.mxu3 }
 0x695   : > { %8856 = vmatpush.msrb.mxu0 %v6631_v17  ;;  %v6451_v7 = vsel %vm21085_vm14, %v21084_v49, %v11372_v26  ;;  %vm21094_vm2 = vcmask 900096   ;;  %vm21097_vm3 = vcmask 908288   ;;  %v8585_v3 = vadd.f32 %v8584_v31, %v18256_v50  ;;  %v9352_v17 = vld [vmem:[%s12155_s30 + $0x80] sm:$0xff]  ;;  %v9354_v49 = vld [vmem:[%s12155_s30 + $0x90] sm:$0xff] }
 0x696   : > { %8817 = vmatpush.msrb.mxu1 %v21078_v54  ;;  %v6391_v44 = vsel %vm21091_vm1, %v21090_v34, %v11352_v52  ;;  %v6331_v36 = vsel %vm21094_vm2, %v21093_v11, %v11332_v47  ;;  %v8624_v10 = vpop.f32.mrf.mxu2  ;;  %v9353_v47 = vld [vmem:[%s12155_s30 + $0x88] sm:$0xff] }
 0x697   : > { %8857 = vmatpush.msrb.mxu0 %v6571_v28  ;;  %v8625_v2 = vadd.f32 %v8624_v10, %v18256_v50 }
 0x698   : > { %8818 = vmatpush.msrb.mxu1 %v21082_v63 }
 0x699   : > { %8858 = vmatpush.msrb.mxu0 %v6511_v5  ;;  %9345 = vmatmul.msk.f32.vlgmr.msrb.gmra.mxu3 %vm21086_vm7, %v18084_v46 }
 0x69a   : > { %9346 = vmatmul.msk.f32.vlgmr.msrb.gmra.mxu2 %vm21087_vm0, %v18084_v46  ;;  %8819 = vmatpush.msrb.mxu1 %v21088_v45  ;;  %v21096_v46 = vunpack.i.l.bf16 %v21089_v58 }
 0x69b   : > { %8859 = vmatpush.msrb.mxu0 %v6451_v7 }
 0x69c   : > { %8820 = vmatpush.msrb.mxu1 %v21092_v12  ;;  %v6271_v37 = vsel %vm21097_vm3, %v21096_v46, %v11312_v32 }
 0x69d   : > { %8860 = vmatpush.msrb.mxu0 %v6391_v44 }
 0x69e   : > { %8821 = vmatpush.msrb.mxu1 %v21095_v61 }
 0x69f   : > { %8861 = vmatpush.msrb.mxu0 %v6331_v36 }
 0x6a0   : > { %8822 = vmatpush.msrb.mxu1 %v21098_v22 }
 0x6a1   : > { %8862 = vmatpush.msrb.mxu0 %v6271_v37  ;;  %8823 = vmatmul.f32.vlgmr.msrb.gmra.mxu1 %v18406_v38 }
 0x6a2   : > { %8863 = vmatmul.f32.vlgmr.msrb.gmra.mxu0 %v18406_v38 }
 0x6c6   : > { %v8604_v41 = vpop.f32.mrf.mxu1  ;;  %v8644_v1 = vpop.f32.mrf.mxu0 }
 0x6c7   : > { %v8605_v39 = vadd.f32 %v8604_v41, %v8585_v3  ;;  %v8645_v60 = vadd.f32 %v8644_v1, %v8625_v2 }
 0x6c9   : > { %v8927_v18 = vadd.f32 %v9347_v13, %v8605_v39  ;;  %v8928_v6 = vadd.f32 %v9348_v27, %v8645_v60 }
 0x6cb   : > { %v8935_v48 = vmax.f32 %v8927_v18, 0.0  ;;  %v8936_v21 = vmax.f32 %v8928_v6, 0.0 }
 0x6cd   : > { %9355 = vst [vmem:[%s18330_s21 + $0x40] sm:$0xff] %v8935_v48 }
 0x6ce   : > { %9356 = vst [vmem:[%s18330_s21 + $0x48] sm:$0xff] %v8936_v21 }
 0x6f3   : > { %v8664_v38 = vpop.f32.mrf.mxu1 }
 0x6f4   : > { %v8704_v15 = vpop.f32.mrf.mxu0  ;;  %v8665_v53 = vadd.f32 %v8664_v38, %v18256_v50 }
 0x6f5   : > { %v8705_v43 = vadd.f32 %v8704_v15, %v18256_v50 }
 0x6f7   : > { %v8724_v8 = vpop.f32.mrf.mxu2 }
 0x6f8   : > { %v8684_v29 = vpop.f32.mrf.mxu3  ;;  %v8725_v62 = vadd.f32 %v8724_v8, %v8705_v43 }
 0x6f9   : > { %v8685_v9 = vadd.f32 %v8684_v29, %v8665_v53 }
 0x6fa   : > { %v8930_v51 = vadd.f32 %v9350_v42, %v8725_v62 }
 0x6fb   : > { %v8929_v25 = vadd.f32 %v9349_v57, %v8685_v9 }
 0x6fc   : > { %v8938_v0 = vmax.f32 %v8930_v51, 0.0 }
 0x6fd   : > { %v8937_v56 = vmax.f32 %v8929_v25, 0.0 }
 0x6fe   : > { %9358 = vst [vmem:[%s18330_s21 + $0x58] sm:$0xff] %v8938_v0 }
 0x6ff   : > { %9357 = vst [vmem:[%s18330_s21 + $0x50] sm:$0xff] %v8937_v56 }
 0x710   : > { %v8764_v19 = vpop.f32.mrf.mxu1 }
 0x711   : > { %v8804_v4 = vpop.f32.mrf.mxu0 }
 0x714   : > { %v8744_v20 = vpop.f32.mrf.mxu3 }
 0x715   : > { %v8784_v23 = vpop.f32.mrf.mxu2  ;;  %v8745_v35 = vadd.f32 %v8744_v20, %v18256_v50 }
 0x716   : > { %v8785_v16 = vadd.f32 %v8784_v23, %v18256_v50 }
 0x717   : > { %v8765_v24 = vadd.f32 %v8764_v19, %v8745_v35 }
 0x718   : > { %v8805_v40 = vadd.f32 %v8804_v4, %v8785_v16 }
 0x719   : > { %v8931_v26 = vadd.f32 %v9351_v59, %v8765_v24 }
 0x71a   : > { %v8932_v30 = vadd.f32 %v9352_v17, %v8805_v40 }
 0x71b   : > { %v8939_v28 = vmax.f32 %v8931_v26, 0.0 }
 0x71c   : > { %v8940_v54 = vmax.f32 %v8932_v30, 0.0  ;;  %v8844_v33 = vpop.f32.mrf.mxu3 }
 0x71d   : > { %9359 = vst [vmem:[%s18330_s21 + $0x60] sm:$0xff] %v8939_v28  ;;  %v8884_v52 = vpop.f32.mrf.mxu2 }
 0x71e   : > { %9360 = vst [vmem:[%s18330_s21 + $0x68] sm:$0xff] %v8940_v54  ;;  %v8824_v55 = vpop.f32.mrf.mxu1 }
 0x71f   : > { %v8864_v5 = vpop.f32.mrf.mxu0  ;;  %v8825_v63 = vadd.f32 %v8824_v55, %v18256_v50 }
 0x720   : > { %v8865_v14 = vadd.f32 %v8864_v5, %v18256_v50 }
 0x721   : > { %v8845_v7 = vadd.f32 %v8844_v33, %v8825_v63 }
 0x722   : > { %v8885_v45 = vadd.f32 %v8884_v52, %v8865_v14 }
 0x723   : > { %v8933_v58 = vadd.f32 %v9353_v47, %v8845_v7 }
 0x724   : > { %v8934_v32 = vadd.f32 %v9354_v49, %v8885_v45 }
 0x725   : > { %v8941_v34 = vmax.f32 %v8933_v58, 0.0 }
 0x726   : > { %v8942_v44 = vmax.f32 %v8934_v32, 0.0 }
 0x727   : > { %9361 = vst [vmem:[%s18330_s21 + $0x70] sm:$0xff] %v8941_v34 }
 0x728   : > { %9362 = vst [vmem:[%s18330_s21 + $0x78] sm:$0xff] %v8942_v44 }
 0x729   : > { %11938 = shalt.err (!%p11935_p8)
}
 0x72a   : > { %s12014_s15 = smov 1024   ;;  %s12015_s12 = smov 64  }
 0x72b   : > { %9384 = dma.vmem_to_hbm [thread:$0]  (%p12103_p11), %s8967_s25, 2048, %s8969_s5, %s8953_s8, %s12014_s15, %s12014_s15, %s12015_s12  }
 0x72c PF: > { %s21099_s18 = sld [smem:[#allocation14_spill]] }
 0x72d   : > { %s21101_s7 = sld [smem:[#allocation17_spill]] }
 0x732   : > { %s8983_s2 = sand.u32 1, %s21099_s18  }
 0x733   : > { %p21102_p9 = scmp.ge.s32.totalorder %s21101_s7, 2  ;;  %s8984_s13 = scalar_lea.sflag [#allocation6], %s8983_s2 }
 0x735   : > { %p9398_p10 = pnand %p21102_p9, %p12107_p12 }
 0x737   : > { %p9399_p1 = pneg %p9398_p10 }
 0x739   : > { %11964 = dma.done.wait (%p9399_p1), %s8984_s13, 2048  }
 0x73a   : > { %11966 = vsyncadd (%p9399_p1), %s8984_s13, 4294965248  ;;  %s21103_s24 = sld [smem:[#allocation18_spill]] }
 0x73b   : > { %s21104_s21 = sld [smem:[#allocation15_spill]] }
 0x73c   : > { %s21105_s22 = sld [smem:[#allocation16_spill]] }
 0x73d   : > { %s21106_s23 = sld [smem:[#allocation19_spill]] }
 0x740   : > { %p20_p2 = scmp.ge.s32.totalorder %s21103_s24, 4  }
 0x742   :  { %22 = sbr.rel (!%p20_p2) target bundleno = 12 (0xc), region = 100 }
 0x747   :  { %8990 = vsyncpa [#allocation5], 1 }
 0x748   :  { %8992 = vsyncpa [#allocation5 + $0x1], 1 }
 0x749   :  { %8993 = vsyncpa [#allocation8], 1 }
 0x74a   :  { %8994 = vsyncpa [#allocation6], 1 }
 0x74b   :  { %8996 = vsyncpa [#allocation6 + $0x1], 1 }

</bundles_post_ra>
